<compile_context>
chip_gen: v7x
topology: tpu7x:2x2x1
jax: 0.10.0
libtpu: 0.0.40
codegen_flags: <defaults>
</compile_context>

<pallas_src>
import jax
import jax.numpy as jnp
from jax.experimental import pallas as pl
from jax.experimental.pallas import tpu as pltpu

# ----------------------------- configuration --------------------------------
NUM_LAYERS = 2
INPUT_DIM = 8            # == len_step in the PyTorch module
HIDDEN_DIM = 32
OUT_DIM = 32             # RNN output dim (must equal HIDDEN_DIM for MergeLayer)
NUM_WALK = 4
BATCH = 2
K_NODES = 3              # size of the dim that is summed over (dim=-2)

N_POS = 4 * BATCH * NUM_WALK * INPUT_DIM    # 256 embedding positions
M_SEQ = 4 * BATCH * NUM_WALK                # 32 independent RNN sequences


# --------------------------- fused forward kernel ----------------------------
def honet_kernel(x_ref, ew1_ref, eb1_ref, ew2_ref, eb2_ref,
                 rw_ref, rb_ref, rwo_ref, rbo_ref,
                 mw1_ref, mb1_ref, mw2_ref, mb2_ref,
                 o_ref, emb_scr, out_scr):
    n, k_total, _ = x_ref.shape            # (256, 3, 8)
    hdim = ew1_ref.shape[1]                # 32

    # ---- stage 1: trainable_embedding MLP fused with sum(dim=-2) -----------
    # One tall matmul over all N*K rows instead of K small ones.
    xall = jnp.concatenate([x_ref[:, k, :] for k in range(k_total)], axis=0)   # (K*N, D)
    h1 = jnp.maximum(
        jnp.dot(xall, ew1_ref[...], preferred_element_type=jnp.float32)
        + eb1_ref[...], 0.0)                                                    # (K*N, H)
    acc = h1[0:n, :]
    for k in range(1, k_total):            # static K loop, contiguous slice-sum
        acc = acc + h1[k * n:(k + 1) * n, :]
    # sum_k (relu(x_k W1 + b1) W2 + b2) == (sum_k relu(...)) W2 + K * b2
    emb_scr[...] = (jnp.dot(acc, ew2_ref[...], preferred_element_type=jnp.float32)
                    + k_total * eb2_ref[...])                                   # (N, H)

    # ---- stage 2: stacked tanh RNN, fully unrolled over time ---------------
    # Row n of emb_scr = sequence m = n // L, time step t = n % L.  The
    # time-major slice is a strided VMEM read -- no wrapper transpose, no
    # HBM round-trip.
    hid = [jnp.zeros((M_SEQ, hdim), jnp.float32) for _ in range(NUM_LAYERS)]
    for t in range(INPUT_DIM):                                   # static unroll
        inp = emb_scr[pl.ds(t, M_SEQ, stride=INPUT_DIM), :]      # (M, H)
        for l in range(NUM_LAYERS):                              # static layers
            cat = jnp.concatenate([inp, hid[l]], axis=-1)        # (M, 2H)
            hid[l] = jnp.tanh(
                jnp.dot(cat, rw_ref[l], preferred_element_type=jnp.float32)
                + rb_ref[l])
            inp = hid[l]

    # Output projection, then mean over walks via strided reads.
    out_scr[...] = (jnp.dot(hid[NUM_LAYERS - 1], rwo_ref[...],
                            preferred_element_type=jnp.float32) + rbo_ref[...])  # (M, OUT)
    walk_sum = out_scr[pl.ds(0, 4 * BATCH, stride=NUM_WALK), :]
    for w in range(1, NUM_WALK):
        walk_sum = walk_sum + out_scr[pl.ds(w, 4 * BATCH, stride=NUM_WALK), :]
    walk_mean = walk_sum * (1.0 / NUM_WALK)          # (4*B, OUT), row = seg*B + b

    # ---- stage 3: MergeLayer (concat -> Linear -> ReLU -> Linear) ----------
    # Lane-concat of the 4 segments gives a lane-dense (B, 128) operand.
    xcat = jnp.concatenate(
        [walk_mean[s * BATCH:(s + 1) * BATCH, :] for s in range(4)], axis=-1)   # (B, 4*OUT)
    hmrg = jnp.maximum(
        jnp.dot(xcat, mw1_ref[...], preferred_element_type=jnp.float32)
        + mb1_ref[...], 0.0)
    # dropout(p=0.5) is identity in eval mode
    o_ref[...] = (jnp.dot(hmrg, mw2_ref[...], preferred_element_type=jnp.float32)
                  + mb2_ref[...])                                               # (B, 1)


def honet_forward(x, p):
    score = pl.pallas_call(
        honet_kernel,
        out_shape=jax.ShapeDtypeStruct((BATCH, 1), jnp.float32),
        grid=(1,),
        in_specs=[
            pl.BlockSpec((N_POS, K_NODES, INPUT_DIM), lambda i: (0, 0, 0)),
            pl.BlockSpec((INPUT_DIM, HIDDEN_DIM), lambda i: (0, 0)),
            pl.BlockSpec((1, HIDDEN_DIM), lambda i: (0, 0)),
            pl.BlockSpec((HIDDEN_DIM, HIDDEN_DIM), lambda i: (0, 0)),
            pl.BlockSpec((1, HIDDEN_DIM), lambda i: (0, 0)),
            pl.BlockSpec((NUM_LAYERS, 2 * HIDDEN_DIM, HIDDEN_DIM), lambda i: (0, 0, 0)),
            pl.BlockSpec((NUM_LAYERS, 1, HIDDEN_DIM), lambda i: (0, 0, 0)),
            pl.BlockSpec((HIDDEN_DIM, OUT_DIM), lambda i: (0, 0)),
            pl.BlockSpec((1, OUT_DIM), lambda i: (0, 0)),
            pl.BlockSpec((4 * OUT_DIM, HIDDEN_DIM), lambda i: (0, 0)),
            pl.BlockSpec((1, HIDDEN_DIM), lambda i: (0, 0)),
            pl.BlockSpec((HIDDEN_DIM, 1), lambda i: (0, 0)),
            pl.BlockSpec((1, 1), lambda i: (0, 0)),
        ],
        out_specs=pl.BlockSpec((BATCH, 1), lambda i: (0, 0)),
        scratch_shapes=[
            pltpu.VMEM((N_POS, HIDDEN_DIM), jnp.float32),   # embedded positions
            pltpu.VMEM((M_SEQ, OUT_DIM), jnp.float32),      # per-sequence RNN out
        ],
        compiler_params=pltpu.CompilerParams(
            dimension_semantics=("arbitrary",),
            vmem_limit_bytes=32 * 1024 * 1024,   # insurance if shapes ever scale
        ),
    )(x, p["emb_w1"], p["emb_b1"], p["emb_w2"], p["emb_b2"],
      p["rnn_w"], p["rnn_b"], p["rnn_wo"], p["rnn_bo"],
      p["mrg_w1"], p["mrg_b1"], p["mrg_w2"], p["mrg_b2"])
    return jnp.squeeze(score, axis=1)                                           # (B,)


# --------------------------- pure-JAX reference -------------------------------
def honet_reference(x, p):
    h = jnp.maximum(x @ p["emb_w1"] + p["emb_b1"], 0.0)
    emb = (h @ p["emb_w2"] + p["emb_b2"]).sum(axis=-2)                          # (N, H)
    seq = emb.reshape(M_SEQ, INPUT_DIM, HIDDEN_DIM)
    hid = [jnp.zeros((M_SEQ, HIDDEN_DIM), jnp.float32) for _ in range(NUM_LAYERS)]
    for t in range(INPUT_DIM):
        inp = seq[:, t, :]
        for l in range(NUM_LAYERS):
            cat = jnp.concatenate([inp, hid[l]], axis=-1)
            hid[l] = jnp.tanh(cat @ p["rnn_w"][l] + p["rnn_b"][l])
            inp = hid[l]
    out = hid[-1] @ p["rnn_wo"] + p["rnn_bo"]
    out = out.reshape(4, BATCH, NUM_WALK, OUT_DIM).mean(axis=2)                 # (4, B, OUT)
    xcat = jnp.concatenate([out[0], out[1], out[2], out[3]], axis=-1)           # (B, 4*OUT)
    hh = jnp.maximum(xcat @ p["mrg_w1"] + p["mrg_b1"], 0.0)
    return jnp.squeeze(hh @ p["mrg_w2"] + p["mrg_b2"], axis=1)


# ------------------------------ param init ------------------------------------
def xavier_normal(key, shape):
    fan_in, fan_out = shape
    std = (2.0 / (fan_in + fan_out)) ** 0.5
    return std * jax.random.normal(key, shape, jnp.float32)


def init_params(key):
    ks = jax.random.split(key, 16)
    p = {
        "emb_w1": xavier_normal(ks[0], (INPUT_DIM, HIDDEN_DIM)),
        "emb_b1": 0.01 * jax.random.normal(ks[1], (1, HIDDEN_DIM), jnp.float32),
        "emb_w2": xavier_normal(ks[2], (HIDDEN_DIM, HIDDEN_DIM)),
        "emb_b2": 0.01 * jax.random.normal(ks[3], (1, HIDDEN_DIM), jnp.float32),
        # fused [W_ih; W_hh] per layer: (2H, H)
        "rnn_w": jnp.stack([xavier_normal(k, (2 * HIDDEN_DIM, HIDDEN_DIM))
                            for k in jax.random.split(ks[4], NUM_LAYERS)]),
        "rnn_b": 0.01 * jax.random.normal(ks[5], (NUM_LAYERS, 1, HIDDEN_DIM), jnp.float32),
        "rnn_wo": xavier_normal(ks[6], (HIDDEN_DIM, OUT_DIM)),
        "rnn_bo": 0.01 * jax.random.normal(ks[7], (1, OUT_DIM), jnp.float32),
        "mrg_w1": xavier_normal(ks[8], (4 * HIDDEN_DIM, HIDDEN_DIM)),
        "mrg_b1": 0.01 * jax.random.normal(ks[9], (1, HIDDEN_DIM), jnp.float32),
        "mrg_w2": xavier_normal(ks[10], (HIDDEN_DIM, 1)),
        "mrg_b2": 0.01 * jax.random.normal(ks[11], (1, 1), jnp.float32),
    }
    return p


if __name__ == "__main__":
    key = jax.random.PRNGKey(0)
    k_x, k_p = jax.random.split(key)
    x = jax.random.normal(k_x, (N_POS, K_NODES, INPUT_DIM), jnp.float32)   # (256, 3, 8)
    params = init_params(k_p)

    out = jax.jit(honet_forward)(x, params)
    out = jax.block_until_ready(out)

    ref = honet_reference(x, params)
    assert out.shape == (BATCH,)
    assert jnp.allclose(out, ref, rtol=5e-2, atol=5e-2), (out, ref)

    print("KERNEL_OK")
</pallas_src>

<mosaic_0001>
module attributes {stable_mosaic.version = 11 : i64} {
  func.func @honet_kernel(%arg0: i32, %arg1: memref<256x3x8xf32, #tpu.memory_space<vmem>>, %arg2: memref<8x32xf32, #tpu.memory_space<vmem>>, %arg3: memref<1x32xf32, #tpu.memory_space<vmem>>, %arg4: memref<32x32xf32, #tpu.memory_space<vmem>>, %arg5: memref<1x32xf32, #tpu.memory_space<vmem>>, %arg6: memref<2x64x32xf32, #tpu.memory_space<vmem>>, %arg7: memref<2x1x32xf32, #tpu.memory_space<vmem>>, %arg8: memref<32x32xf32, #tpu.memory_space<vmem>>, %arg9: memref<1x32xf32, #tpu.memory_space<vmem>>, %arg10: memref<128x32xf32, #tpu.memory_space<vmem>>, %arg11: memref<1x32xf32, #tpu.memory_space<vmem>>, %arg12: memref<32x1xf32, #tpu.memory_space<vmem>>, %arg13: memref<1x1xf32, #tpu.memory_space<vmem>>, %arg14: memref<2x1xf32, #tpu.memory_space<vmem>>, %arg15: memref<256x32xf32, #tpu.memory_space<vmem>>, %arg16: memref<32x32xf32, #tpu.memory_space<vmem>>) attributes {dimension_semantics = [#tpu.dimension_semantics<arbitrary>], iteration_bounds = array<i64: 1>, scalar_prefetch = 0 : i64, scratch_operands = 2 : i64, tpu.core_type = #tpu.core_type<tc>, window_params = [{pipeline_mode = #tpu.pipeline_mode<synchronous>, transform_indices = @transform_0, window_bounds = array<i64: 256, 3, 8>}, {pipeline_mode = #tpu.pipeline_mode<synchronous>, transform_indices = @transform_1, window_bounds = array<i64: 8, 32>}, {pipeline_mode = #tpu.pipeline_mode<synchronous>, transform_indices = @transform_2, window_bounds = array<i64: 1, 32>}, {pipeline_mode = #tpu.pipeline_mode<synchronous>, transform_indices = @transform_3, window_bounds = array<i64: 32, 32>}, {pipeline_mode = #tpu.pipeline_mode<synchronous>, transform_indices = @transform_4, window_bounds = array<i64: 1, 32>}, {pipeline_mode = #tpu.pipeline_mode<synchronous>, transform_indices = @transform_5, window_bounds = array<i64: 2, 64, 32>}, {pipeline_mode = #tpu.pipeline_mode<synchronous>, transform_indices = @transform_6, window_bounds = array<i64: 2, 1, 32>}, {pipeline_mode = #tpu.pipeline_mode<synchronous>, transform_indices = @transform_7, window_bounds = array<i64: 32, 32>}, {pipeline_mode = #tpu.pipeline_mode<synchronous>, transform_indices = @transform_8, window_bounds = array<i64: 1, 32>}, {pipeline_mode = #tpu.pipeline_mode<synchronous>, transform_indices = @transform_9, window_bounds = array<i64: 128, 32>}, {pipeline_mode = #tpu.pipeline_mode<synchronous>, transform_indices = @transform_10, window_bounds = array<i64: 1, 32>}, {pipeline_mode = #tpu.pipeline_mode<synchronous>, transform_indices = @transform_11, window_bounds = array<i64: 32, 1>}, {pipeline_mode = #tpu.pipeline_mode<synchronous>, transform_indices = @transform_12, window_bounds = array<i64: 1, 1>}, {pipeline_mode = #tpu.pipeline_mode<synchronous>, transform_indices = @transform_13, window_bounds = array<i64: 2, 1>}]} {
    %c0 = arith.constant 0 : index
    %c0_0 = arith.constant 0 : index
    %c0_1 = arith.constant 0 : index
    %0 = vector.load %arg1[%c0, %c0_0, %c0_1] : memref<256x3x8xf32, #tpu.memory_space<vmem>>, vector<256x1x8xf32>
    %1 = vector.shape_cast %0 : vector<256x1x8xf32> to vector<256x8xf32>
    %c0_2 = arith.constant 0 : index
    %c1 = arith.constant 1 : index
    %c0_3 = arith.constant 0 : index
    %2 = vector.load %arg1[%c0_2, %c1, %c0_3] : memref<256x3x8xf32, #tpu.memory_space<vmem>>, vector<256x1x8xf32>
    %3 = vector.shape_cast %2 : vector<256x1x8xf32> to vector<256x8xf32>
    %c0_4 = arith.constant 0 : index
    %c2 = arith.constant 2 : index
    %c0_5 = arith.constant 0 : index
    %4 = vector.load %arg1[%c0_4, %c2, %c0_5] : memref<256x3x8xf32, #tpu.memory_space<vmem>>, vector<256x1x8xf32>
    %5 = vector.shape_cast %4 : vector<256x1x8xf32> to vector<256x8xf32>
    %6 = tpu.concatenate %1, %3, %5 in 0 : vector<256x8xf32>, vector<256x8xf32>, vector<256x8xf32> -> vector<768x8xf32>
    %c0_6 = arith.constant 0 : index
    %c0_7 = arith.constant 0 : index
    %7 = vector.load %arg2[%c0_6, %c0_7] : memref<8x32xf32, #tpu.memory_space<vmem>>, vector<8x32xf32>
    %cst = arith.constant dense<0.000000e+00> : vector<768x32xf32>
    %8 = tpu.matmul %6, %7, %cst {dimension_numbers = #tpu.dot_dimension_numbers<[1], [0], [0], [1], [0, 0, 1, 1], [], []>} : vector<768x8xf32>, vector<8x32xf32>, vector<768x32xf32> -> vector<768x32xf32>
    %c0_8 = arith.constant 0 : index
    %c0_9 = arith.constant 0 : index
    %9 = vector.load %arg3[%c0_8, %c0_9] : memref<1x32xf32, #tpu.memory_space<vmem>>, vector<1x32xf32>
    %10 = vector.broadcast %9 : vector<1x32xf32> to vector<768x32xf32>
    %11 = arith.addf %8, %10 : vector<768x32xf32>
    %cst_10 = arith.constant 0.000000e+00 : f32
    %12 = vector.broadcast %cst_10 : f32 to vector<768x32xf32>
    %13 = arith.maximumf %11, %12 : vector<768x32xf32>
    %14 = vector.extract_strided_slice %13 {offsets = [0, 0], sizes = [256, 32], strides = [1, 1]} : vector<768x32xf32> to vector<256x32xf32>
    %15 = vector.extract_strided_slice %13 {offsets = [256, 0], sizes = [256, 32], strides = [1, 1]} : vector<768x32xf32> to vector<256x32xf32>
    %16 = arith.addf %14, %15 : vector<256x32xf32>
    %17 = vector.extract_strided_slice %13 {offsets = [512, 0], sizes = [256, 32], strides = [1, 1]} : vector<768x32xf32> to vector<256x32xf32>
    %18 = arith.addf %16, %17 : vector<256x32xf32>
    %c0_11 = arith.constant 0 : index
    %c0_12 = arith.constant 0 : index
    %19 = vector.load %arg4[%c0_11, %c0_12] : memref<32x32xf32, #tpu.memory_space<vmem>>, vector<32x32xf32>
    %cst_13 = arith.constant dense<0.000000e+00> : vector<256x32xf32>
    %20 = tpu.matmul %18, %19, %cst_13 {dimension_numbers = #tpu.dot_dimension_numbers<[1], [0], [0], [1], [0, 0, 1, 1], [], []>} : vector<256x32xf32>, vector<32x32xf32>, vector<256x32xf32> -> vector<256x32xf32>
    %c0_14 = arith.constant 0 : index
    %c0_15 = arith.constant 0 : index
    %21 = vector.load %arg5[%c0_14, %c0_15] : memref<1x32xf32, #tpu.memory_space<vmem>>, vector<1x32xf32>
    %cst_16 = arith.constant 3.000000e+00 : f32
    %22 = vector.broadcast %cst_16 : f32 to vector<1x32xf32>
    %23 = arith.mulf %22, %21 : vector<1x32xf32>
    %24 = vector.broadcast %23 : vector<1x32xf32> to vector<256x32xf32>
    %25 = arith.addf %20, %24 : vector<256x32xf32>
    %c0_17 = arith.constant 0 : index
    %c0_18 = arith.constant 0 : index
    %26 = vector.load %arg15[%c0_17, %c0_18] : memref<256x32xf32, #tpu.memory_space<vmem>>, vector<256x32xf32>
    tpu.vector_store %arg15[%c0_17, %c0_18], %25 {strides = array<i32>} : memref<256x32xf32, #tpu.memory_space<vmem>>, vector<256x32xf32>,
    %cst_19 = arith.constant 0.000000e+00 : f32
    %27 = vector.broadcast %cst_19 : f32 to vector<32x32xf32>
    %cst_20 = arith.constant 0.000000e+00 : f32
    %28 = vector.broadcast %cst_20 : f32 to vector<32x32xf32>
    %c0_21 = arith.constant 0 : index
    %c0_22 = arith.constant 0 : index
    %29 = tpu.strided_load %arg15[%c0_21, %c0_22] {strides = array<i32: 8, 1>} : memref<256x32xf32, #tpu.memory_space<vmem>>, vector<32x32xf32>
    %30 = tpu.concatenate %29, %27 in 1 : vector<32x32xf32>, vector<32x32xf32> -> vector<32x64xf32>
    %c0_23 = arith.constant 0 : index
    %c0_24 = arith.constant 0 : index
    %c0_25 = arith.constant 0 : index
    %31 = vector.load %arg6[%c0_23, %c0_24, %c0_25] : memref<2x64x32xf32, #tpu.memory_space<vmem>>, vector<1x64x32xf32>
    %32 = vector.shape_cast %31 : vector<1x64x32xf32> to vector<64x32xf32>
    %cst_26 = arith.constant dense<0.000000e+00> : vector<32x32xf32>
    %33 = tpu.matmul %30, %32, %cst_26 {dimension_numbers = #tpu.dot_dimension_numbers<[1], [0], [0], [1], [0, 0, 1, 1], [], []>} : vector<32x64xf32>, vector<64x32xf32>, vector<32x32xf32> -> vector<32x32xf32>
    %c0_27 = arith.constant 0 : index
    %c0_28 = arith.constant 0 : index
    %c0_29 = arith.constant 0 : index
    %34 = vector.load %arg7[%c0_27, %c0_28, %c0_29] : memref<2x1x32xf32, #tpu.memory_space<vmem>>, vector<1x1x32xf32>
    %35 = vector.shape_cast %34 : vector<1x1x32xf32> to vector<1x32xf32>
    %36 = vector.broadcast %35 : vector<1x32xf32> to vector<32x32xf32>
    %37 = arith.addf %33, %36 : vector<32x32xf32>
    %38 = math.tanh %37 : vector<32x32xf32>
    %39 = tpu.concatenate %38, %28 in 1 : vector<32x32xf32>, vector<32x32xf32> -> vector<32x64xf32>
    %c1_30 = arith.constant 1 : index
    %c0_31 = arith.constant 0 : index
    %c0_32 = arith.constant 0 : index
    %40 = vector.load %arg6[%c1_30, %c0_31, %c0_32] : memref<2x64x32xf32, #tpu.memory_space<vmem>>, vector<1x64x32xf32>
    %41 = vector.shape_cast %40 : vector<1x64x32xf32> to vector<64x32xf32>
    %cst_33 = arith.constant dense<0.000000e+00> : vector<32x32xf32>
    %42 = tpu.matmul %39, %41, %cst_33 {dimension_numbers = #tpu.dot_dimension_numbers<[1], [0], [0], [1], [0, 0, 1, 1], [], []>} : vector<32x64xf32>, vector<64x32xf32>, vector<32x32xf32> -> vector<32x32xf32>
    %c1_34 = arith.constant 1 : index
    %c0_35 = arith.constant 0 : index
    %c0_36 = arith.constant 0 : index
    %43 = vector.load %arg7[%c1_34, %c0_35, %c0_36] : memref<2x1x32xf32, #tpu.memory_space<vmem>>, vector<1x1x32xf32>
    %44 = vector.shape_cast %43 : vector<1x1x32xf32> to vector<1x32xf32>
    %45 = vector.broadcast %44 : vector<1x32xf32> to vector<32x32xf32>
    %46 = arith.addf %42, %45 : vector<32x32xf32>
    %47 = math.tanh %46 : vector<32x32xf32>
    %c1_37 = arith.constant 1 : index
    %c0_38 = arith.constant 0 : index
    %48 = tpu.strided_load %arg15[%c1_37, %c0_38] {strides = array<i32: 8, 1>} : memref<256x32xf32, #tpu.memory_space<vmem>>, vector<32x32xf32>
    %49 = tpu.concatenate %48, %38 in 1 : vector<32x32xf32>, vector<32x32xf32> -> vector<32x64xf32>
    %c0_39 = arith.constant 0 : index
    %c0_40 = arith.constant 0 : index
    %c0_41 = arith.constant 0 : index
    %50 = vector.load %arg6[%c0_39, %c0_40, %c0_41] : memref<2x64x32xf32, #tpu.memory_space<vmem>>, vector<1x64x32xf32>
    %51 = vector.shape_cast %50 : vector<1x64x32xf32> to vector<64x32xf32>
    %cst_42 = arith.constant dense<0.000000e+00> : vector<32x32xf32>
    %52 = tpu.matmul %49, %51, %cst_42 {dimension_numbers = #tpu.dot_dimension_numbers<[1], [0], [0], [1], [0, 0, 1, 1], [], []>} : vector<32x64xf32>, vector<64x32xf32>, vector<32x32xf32> -> vector<32x32xf32>
    %c0_43 = arith.constant 0 : index
    %c0_44 = arith.constant 0 : index
    %c0_45 = arith.constant 0 : index
    %53 = vector.load %arg7[%c0_43, %c0_44, %c0_45] : memref<2x1x32xf32, #tpu.memory_space<vmem>>, vector<1x1x32xf32>
    %54 = vector.shape_cast %53 : vector<1x1x32xf32> to vector<1x32xf32>
    %55 = vector.broadcast %54 : vector<1x32xf32> to vector<32x32xf32>
    %56 = arith.addf %52, %55 : vector<32x32xf32>
    %57 = math.tanh %56 : vector<32x32xf32>
    %58 = tpu.concatenate %57, %47 in 1 : vector<32x32xf32>, vector<32x32xf32> -> vector<32x64xf32>
    %c1_46 = arith.constant 1 : index
    %c0_47 = arith.constant 0 : index
    %c0_48 = arith.constant 0 : index
    %59 = vector.load %arg6[%c1_46, %c0_47, %c0_48] : memref<2x64x32xf32, #tpu.memory_space<vmem>>, vector<1x64x32xf32>
    %60 = vector.shape_cast %59 : vector<1x64x32xf32> to vector<64x32xf32>
    %cst_49 = arith.constant dense<0.000000e+00> : vector<32x32xf32>
    %61 = tpu.matmul %58, %60, %cst_49 {dimension_numbers = #tpu.dot_dimension_numbers<[1], [0], [0], [1], [0, 0, 1, 1], [], []>} : vector<32x64xf32>, vector<64x32xf32>, vector<32x32xf32> -> vector<32x32xf32>
    %c1_50 = arith.constant 1 : index
    %c0_51 = arith.constant 0 : index
    %c0_52 = arith.constant 0 : index
    %62 = vector.load %arg7[%c1_50, %c0_51, %c0_52] : memref<2x1x32xf32, #tpu.memory_space<vmem>>, vector<1x1x32xf32>
    %63 = vector.shape_cast %62 : vector<1x1x32xf32> to vector<1x32xf32>
    %64 = vector.broadcast %63 : vector<1x32xf32> to vector<32x32xf32>
    %65 = arith.addf %61, %64 : vector<32x32xf32>
    %66 = math.tanh %65 : vector<32x32xf32>
    %c2_53 = arith.constant 2 : index
    %c0_54 = arith.constant 0 : index
    %67 = tpu.strided_load %arg15[%c2_53, %c0_54] {strides = array<i32: 8, 1>} : memref<256x32xf32, #tpu.memory_space<vmem>>, vector<32x32xf32>
    %68 = tpu.concatenate %67, %57 in 1 : vector<32x32xf32>, vector<32x32xf32> -> vector<32x64xf32>
    %c0_55 = arith.constant 0 : index
    %c0_56 = arith.constant 0 : index
    %c0_57 = arith.constant 0 : index
    %69 = vector.load %arg6[%c0_55, %c0_56, %c0_57] : memref<2x64x32xf32, #tpu.memory_space<vmem>>, vector<1x64x32xf32>
    %70 = vector.shape_cast %69 : vector<1x64x32xf32> to vector<64x32xf32>
    %cst_58 = arith.constant dense<0.000000e+00> : vector<32x32xf32>
    %71 = tpu.matmul %68, %70, %cst_58 {dimension_numbers = #tpu.dot_dimension_numbers<[1], [0], [0], [1], [0, 0, 1, 1], [], []>} : vector<32x64xf32>, vector<64x32xf32>, vector<32x32xf32> -> vector<32x32xf32>
    %c0_59 = arith.constant 0 : index
    %c0_60 = arith.constant 0 : index
    %c0_61 = arith.constant 0 : index
    %72 = vector.load %arg7[%c0_59, %c0_60, %c0_61] : memref<2x1x32xf32, #tpu.memory_space<vmem>>, vector<1x1x32xf32>
    %73 = vector.shape_cast %72 : vector<1x1x32xf32> to vector<1x32xf32>
    %74 = vector.broadcast %73 : vector<1x32xf32> to vector<32x32xf32>
    %75 = arith.addf %71, %74 : vector<32x32xf32>
    %76 = math.tanh %75 : vector<32x32xf32>
    %77 = tpu.concatenate %76, %66 in 1 : vector<32x32xf32>, vector<32x32xf32> -> vector<32x64xf32>
    %c1_62 = arith.constant 1 : index
    %c0_63 = arith.constant 0 : index
    %c0_64 = arith.constant 0 : index
    %78 = vector.load %arg6[%c1_62, %c0_63, %c0_64] : memref<2x64x32xf32, #tpu.memory_space<vmem>>, vector<1x64x32xf32>
    %79 = vector.shape_cast %78 : vector<1x64x32xf32> to vector<64x32xf32>
    %cst_65 = arith.constant dense<0.000000e+00> : vector<32x32xf32>
    %80 = tpu.matmul %77, %79, %cst_65 {dimension_numbers = #tpu.dot_dimension_numbers<[1], [0], [0], [1], [0, 0, 1, 1], [], []>} : vector<32x64xf32>, vector<64x32xf32>, vector<32x32xf32> -> vector<32x32xf32>
    %c1_66 = arith.constant 1 : index
    %c0_67 = arith.constant 0 : index
    %c0_68 = arith.constant 0 : index
    %81 = vector.load %arg7[%c1_66, %c0_67, %c0_68] : memref<2x1x32xf32, #tpu.memory_space<vmem>>, vector<1x1x32xf32>
    %82 = vector.shape_cast %81 : vector<1x1x32xf32> to vector<1x32xf32>
    %83 = vector.broadcast %82 : vector<1x32xf32> to vector<32x32xf32>
    %84 = arith.addf %80, %83 : vector<32x32xf32>
    %85 = math.tanh %84 : vector<32x32xf32>
    %c3 = arith.constant 3 : index
    %c0_69 = arith.constant 0 : index
    %86 = tpu.strided_load %arg15[%c3, %c0_69] {strides = array<i32: 8, 1>} : memref<256x32xf32, #tpu.memory_space<vmem>>, vector<32x32xf32>
    %87 = tpu.concatenate %86, %76 in 1 : vector<32x32xf32>, vector<32x32xf32> -> vector<32x64xf32>
    %c0_70 = arith.constant 0 : index
    %c0_71 = arith.constant 0 : index
    %c0_72 = arith.constant 0 : index
    %88 = vector.load %arg6[%c0_70, %c0_71, %c0_72] : memref<2x64x32xf32, #tpu.memory_space<vmem>>, vector<1x64x32xf32>
    %89 = vector.shape_cast %88 : vector<1x64x32xf32> to vector<64x32xf32>
    %cst_73 = arith.constant dense<0.000000e+00> : vector<32x32xf32>
    %90 = tpu.matmul %87, %89, %cst_73 {dimension_numbers = #tpu.dot_dimension_numbers<[1], [0], [0], [1], [0, 0, 1, 1], [], []>} : vector<32x64xf32>, vector<64x32xf32>, vector<32x32xf32> -> vector<32x32xf32>
    %c0_74 = arith.constant 0 : index
    %c0_75 = arith.constant 0 : index
    %c0_76 = arith.constant 0 : index
    %91 = vector.load %arg7[%c0_74, %c0_75, %c0_76] : memref<2x1x32xf32, #tpu.memory_space<vmem>>, vector<1x1x32xf32>
    %92 = vector.shape_cast %91 : vector<1x1x32xf32> to vector<1x32xf32>
    %93 = vector.broadcast %92 : vector<1x32xf32> to vector<32x32xf32>
    %94 = arith.addf %90, %93 : vector<32x32xf32>
    %95 = math.tanh %94 : vector<32x32xf32>
    %96 = tpu.concatenate %95, %85 in 1 : vector<32x32xf32>, vector<32x32xf32> -> vector<32x64xf32>
    %c1_77 = arith.constant 1 : index
    %c0_78 = arith.constant 0 : index
    %c0_79 = arith.constant 0 : index
    %97 = vector.load %arg6[%c1_77, %c0_78, %c0_79] : memref<2x64x32xf32, #tpu.memory_space<vmem>>, vector<1x64x32xf32>
    %98 = vector.shape_cast %97 : vector<1x64x32xf32> to vector<64x32xf32>
    %cst_80 = arith.constant dense<0.000000e+00> : vector<32x32xf32>
    %99 = tpu.matmul %96, %98, %cst_80 {dimension_numbers = #tpu.dot_dimension_numbers<[1], [0], [0], [1], [0, 0, 1, 1], [], []>} : vector<32x64xf32>, vector<64x32xf32>, vector<32x32xf32> -> vector<32x32xf32>
    %c1_81 = arith.constant 1 : index
    %c0_82 = arith.constant 0 : index
    %c0_83 = arith.constant 0 : index
    %100 = vector.load %arg7[%c1_81, %c0_82, %c0_83] : memref<2x1x32xf32, #tpu.memory_space<vmem>>, vector<1x1x32xf32>
    %101 = vector.shape_cast %100 : vector<1x1x32xf32> to vector<1x32xf32>
    %102 = vector.broadcast %101 : vector<1x32xf32> to vector<32x32xf32>
    %103 = arith.addf %99, %102 : vector<32x32xf32>
    %104 = math.tanh %103 : vector<32x32xf32>
    %c4 = arith.constant 4 : index
    %c0_84 = arith.constant 0 : index
    %105 = tpu.strided_load %arg15[%c4, %c0_84] {strides = array<i32: 8, 1>} : memref<256x32xf32, #tpu.memory_space<vmem>>, vector<32x32xf32>
    %106 = tpu.concatenate %105, %95 in 1 : vector<32x32xf32>, vector<32x32xf32> -> vector<32x64xf32>
    %c0_85 = arith.constant 0 : index
    %c0_86 = arith.constant 0 : index
    %c0_87 = arith.constant 0 : index
    %107 = vector.load %arg6[%c0_85, %c0_86, %c0_87] : memref<2x64x32xf32, #tpu.memory_space<vmem>>, vector<1x64x32xf32>
    %108 = vector.shape_cast %107 : vector<1x64x32xf32> to vector<64x32xf32>
    %cst_88 = arith.constant dense<0.000000e+00> : vector<32x32xf32>
    %109 = tpu.matmul %106, %108, %cst_88 {dimension_numbers = #tpu.dot_dimension_numbers<[1], [0], [0], [1], [0, 0, 1, 1], [], []>} : vector<32x64xf32>, vector<64x32xf32>, vector<32x32xf32> -> vector<32x32xf32>
    %c0_89 = arith.constant 0 : index
    %c0_90 = arith.constant 0 : index
    %c0_91 = arith.constant 0 : index
    %110 = vector.load %arg7[%c0_89, %c0_90, %c0_91] : memref<2x1x32xf32, #tpu.memory_space<vmem>>, vector<1x1x32xf32>
    %111 = vector.shape_cast %110 : vector<1x1x32xf32> to vector<1x32xf32>
    %112 = vector.broadcast %111 : vector<1x32xf32> to vector<32x32xf32>
    %113 = arith.addf %109, %112 : vector<32x32xf32>
    %114 = math.tanh %113 : vector<32x32xf32>
    %115 = tpu.concatenate %114, %104 in 1 : vector<32x32xf32>, vector<32x32xf32> -> vector<32x64xf32>
    %c1_92 = arith.constant 1 : index
    %c0_93 = arith.constant 0 : index
    %c0_94 = arith.constant 0 : index
    %116 = vector.load %arg6[%c1_92, %c0_93, %c0_94] : memref<2x64x32xf32, #tpu.memory_space<vmem>>, vector<1x64x32xf32>
    %117 = vector.shape_cast %116 : vector<1x64x32xf32> to vector<64x32xf32>
    %cst_95 = arith.constant dense<0.000000e+00> : vector<32x32xf32>
    %118 = tpu.matmul %115, %117, %cst_95 {dimension_numbers = #tpu.dot_dimension_numbers<[1], [0], [0], [1], [0, 0, 1, 1], [], []>} : vector<32x64xf32>, vector<64x32xf32>, vector<32x32xf32> -> vector<32x32xf32>
    %c1_96 = arith.constant 1 : index
    %c0_97 = arith.constant 0 : index
    %c0_98 = arith.constant 0 : index
    %119 = vector.load %arg7[%c1_96, %c0_97, %c0_98] : memref<2x1x32xf32, #tpu.memory_space<vmem>>, vector<1x1x32xf32>
    %120 = vector.shape_cast %119 : vector<1x1x32xf32> to vector<1x32xf32>
    %121 = vector.broadcast %120 : vector<1x32xf32> to vector<32x32xf32>
    %122 = arith.addf %118, %121 : vector<32x32xf32>
    %123 = math.tanh %122 : vector<32x32xf32>
    %c5 = arith.constant 5 : index
    %c0_99 = arith.constant 0 : index
    %124 = tpu.strided_load %arg15[%c5, %c0_99] {strides = array<i32: 8, 1>} : memref<256x32xf32, #tpu.memory_space<vmem>>, vector<32x32xf32>
    %125 = tpu.concatenate %124, %114 in 1 : vector<32x32xf32>, vector<32x32xf32> -> vector<32x64xf32>
    %c0_100 = arith.constant 0 : index
    %c0_101 = arith.constant 0 : index
    %c0_102 = arith.constant 0 : index
    %126 = vector.load %arg6[%c0_100, %c0_101, %c0_102] : memref<2x64x32xf32, #tpu.memory_space<vmem>>, vector<1x64x32xf32>
    %127 = vector.shape_cast %126 : vector<1x64x32xf32> to vector<64x32xf32>
    %cst_103 = arith.constant dense<0.000000e+00> : vector<32x32xf32>
    %128 = tpu.matmul %125, %127, %cst_103 {dimension_numbers = #tpu.dot_dimension_numbers<[1], [0], [0], [1], [0, 0, 1, 1], [], []>} : vector<32x64xf32>, vector<64x32xf32>, vector<32x32xf32> -> vector<32x32xf32>
    %c0_104 = arith.constant 0 : index
    %c0_105 = arith.constant 0 : index
    %c0_106 = arith.constant 0 : index
    %129 = vector.load %arg7[%c0_104, %c0_105, %c0_106] : memref<2x1x32xf32, #tpu.memory_space<vmem>>, vector<1x1x32xf32>
    %130 = vector.shape_cast %129 : vector<1x1x32xf32> to vector<1x32xf32>
    %131 = vector.broadcast %130 : vector<1x32xf32> to vector<32x32xf32>
    %132 = arith.addf %128, %131 : vector<32x32xf32>
    %133 = math.tanh %132 : vector<32x32xf32>
    %134 = tpu.concatenate %133, %123 in 1 : vector<32x32xf32>, vector<32x32xf32> -> vector<32x64xf32>
    %c1_107 = arith.constant 1 : index
    %c0_108 = arith.constant 0 : index
    %c0_109 = arith.constant 0 : index
    %135 = vector.load %arg6[%c1_107, %c0_108, %c0_109] : memref<2x64x32xf32, #tpu.memory_space<vmem>>, vector<1x64x32xf32>
    %136 = vector.shape_cast %135 : vector<1x64x32xf32> to vector<64x32xf32>
    %cst_110 = arith.constant dense<0.000000e+00> : vector<32x32xf32>
    %137 = tpu.matmul %134, %136, %cst_110 {dimension_numbers = #tpu.dot_dimension_numbers<[1], [0], [0], [1], [0, 0, 1, 1], [], []>} : vector<32x64xf32>, vector<64x32xf32>, vector<32x32xf32> -> vector<32x32xf32>
    %c1_111 = arith.constant 1 : index
    %c0_112 = arith.constant 0 : index
    %c0_113 = arith.constant 0 : index
    %138 = vector.load %arg7[%c1_111, %c0_112, %c0_113] : memref<2x1x32xf32, #tpu.memory_space<vmem>>, vector<1x1x32xf32>
    %139 = vector.shape_cast %138 : vector<1x1x32xf32> to vector<1x32xf32>
    %140 = vector.broadcast %139 : vector<1x32xf32> to vector<32x32xf32>
    %141 = arith.addf %137, %140 : vector<32x32xf32>
    %142 = math.tanh %141 : vector<32x32xf32>
    %c6 = arith.constant 6 : index
    %c0_114 = arith.constant 0 : index
    %143 = tpu.strided_load %arg15[%c6, %c0_114] {strides = array<i32: 8, 1>} : memref<256x32xf32, #tpu.memory_space<vmem>>, vector<32x32xf32>
    %144 = tpu.concatenate %143, %133 in 1 : vector<32x32xf32>, vector<32x32xf32> -> vector<32x64xf32>
    %c0_115 = arith.constant 0 : index
    %c0_116 = arith.constant 0 : index
    %c0_117 = arith.constant 0 : index
    %145 = vector.load %arg6[%c0_115, %c0_116, %c0_117] : memref<2x64x32xf32, #tpu.memory_space<vmem>>, vector<1x64x32xf32>
    %146 = vector.shape_cast %145 : vector<1x64x32xf32> to vector<64x32xf32>
    %cst_118 = arith.constant dense<0.000000e+00> : vector<32x32xf32>
    %147 = tpu.matmul %144, %146, %cst_118 {dimension_numbers = #tpu.dot_dimension_numbers<[1], [0], [0], [1], [0, 0, 1, 1], [], []>} : vector<32x64xf32>, vector<64x32xf32>, vector<32x32xf32> -> vector<32x32xf32>
    %c0_119 = arith.constant 0 : index
    %c0_120 = arith.constant 0 : index
    %c0_121 = arith.constant 0 : index
    %148 = vector.load %arg7[%c0_119, %c0_120, %c0_121] : memref<2x1x32xf32, #tpu.memory_space<vmem>>, vector<1x1x32xf32>
    %149 = vector.shape_cast %148 : vector<1x1x32xf32> to vector<1x32xf32>
    %150 = vector.broadcast %149 : vector<1x32xf32> to vector<32x32xf32>
    %151 = arith.addf %147, %150 : vector<32x32xf32>
    %152 = math.tanh %151 : vector<32x32xf32>
    %153 = tpu.concatenate %152, %142 in 1 : vector<32x32xf32>, vector<32x32xf32> -> vector<32x64xf32>
    %c1_122 = arith.constant 1 : index
    %c0_123 = arith.constant 0 : index
    %c0_124 = arith.constant 0 : index
    %154 = vector.load %arg6[%c1_122, %c0_123, %c0_124] : memref<2x64x32xf32, #tpu.memory_space<vmem>>, vector<1x64x32xf32>
    %155 = vector.shape_cast %154 : vector<1x64x32xf32> to vector<64x32xf32>
    %cst_125 = arith.constant dense<0.000000e+00> : vector<32x32xf32>
    %156 = tpu.matmul %153, %155, %cst_125 {dimension_numbers = #tpu.dot_dimension_numbers<[1], [0], [0], [1], [0, 0, 1, 1], [], []>} : vector<32x64xf32>, vector<64x32xf32>, vector<32x32xf32> -> vector<32x32xf32>
    %c1_126 = arith.constant 1 : index
    %c0_127 = arith.constant 0 : index
    %c0_128 = arith.constant 0 : index
    %157 = vector.load %arg7[%c1_126, %c0_127, %c0_128] : memref<2x1x32xf32, #tpu.memory_space<vmem>>, vector<1x1x32xf32>
    %158 = vector.shape_cast %157 : vector<1x1x32xf32> to vector<1x32xf32>
    %159 = vector.broadcast %158 : vector<1x32xf32> to vector<32x32xf32>
    %160 = arith.addf %156, %159 : vector<32x32xf32>
    %161 = math.tanh %160 : vector<32x32xf32>
    %c7 = arith.constant 7 : index
    %c0_129 = arith.constant 0 : index
    %162 = tpu.strided_load %arg15[%c7, %c0_129] {strides = array<i32: 8, 1>} : memref<256x32xf32, #tpu.memory_space<vmem>>, vector<32x32xf32>
    %163 = tpu.concatenate %162, %152 in 1 : vector<32x32xf32>, vector<32x32xf32> -> vector<32x64xf32>
    %c0_130 = arith.constant 0 : index
    %c0_131 = arith.constant 0 : index
    %c0_132 = arith.constant 0 : index
    %164 = vector.load %arg6[%c0_130, %c0_131, %c0_132] : memref<2x64x32xf32, #tpu.memory_space<vmem>>, vector<1x64x32xf32>
    %165 = vector.shape_cast %164 : vector<1x64x32xf32> to vector<64x32xf32>
    %cst_133 = arith.constant dense<0.000000e+00> : vector<32x32xf32>
    %166 = tpu.matmul %163, %165, %cst_133 {dimension_numbers = #tpu.dot_dimension_numbers<[1], [0], [0], [1], [0, 0, 1, 1], [], []>} : vector<32x64xf32>, vector<64x32xf32>, vector<32x32xf32> -> vector<32x32xf32>
    %c0_134 = arith.constant 0 : index
    %c0_135 = arith.constant 0 : index
    %c0_136 = arith.constant 0 : index
    %167 = vector.load %arg7[%c0_134, %c0_135, %c0_136] : memref<2x1x32xf32, #tpu.memory_space<vmem>>, vector<1x1x32xf32>
    %168 = vector.shape_cast %167 : vector<1x1x32xf32> to vector<1x32xf32>
    %169 = vector.broadcast %168 : vector<1x32xf32> to vector<32x32xf32>
    %170 = arith.addf %166, %169 : vector<32x32xf32>
    %171 = math.tanh %170 : vector<32x32xf32>
    %172 = tpu.concatenate %171, %161 in 1 : vector<32x32xf32>, vector<32x32xf32> -> vector<32x64xf32>
    %c1_137 = arith.constant 1 : index
    %c0_138 = arith.constant 0 : index
    %c0_139 = arith.constant 0 : index
    %173 = vector.load %arg6[%c1_137, %c0_138, %c0_139] : memref<2x64x32xf32, #tpu.memory_space<vmem>>, vector<1x64x32xf32>
    %174 = vector.shape_cast %173 : vector<1x64x32xf32> to vector<64x32xf32>
    %cst_140 = arith.constant dense<0.000000e+00> : vector<32x32xf32>
    %175 = tpu.matmul %172, %174, %cst_140 {dimension_numbers = #tpu.dot_dimension_numbers<[1], [0], [0], [1], [0, 0, 1, 1], [], []>} : vector<32x64xf32>, vector<64x32xf32>, vector<32x32xf32> -> vector<32x32xf32>
    %c1_141 = arith.constant 1 : index
    %c0_142 = arith.constant 0 : index
    %c0_143 = arith.constant 0 : index
    %176 = vector.load %arg7[%c1_141, %c0_142, %c0_143] : memref<2x1x32xf32, #tpu.memory_space<vmem>>, vector<1x1x32xf32>
    %177 = vector.shape_cast %176 : vector<1x1x32xf32> to vector<1x32xf32>
    %178 = vector.broadcast %177 : vector<1x32xf32> to vector<32x32xf32>
    %179 = arith.addf %175, %178 : vector<32x32xf32>
    %180 = math.tanh %179 : vector<32x32xf32>
    %c0_144 = arith.constant 0 : index
    %c0_145 = arith.constant 0 : index
    %181 = vector.load %arg8[%c0_144, %c0_145] : memref<32x32xf32, #tpu.memory_space<vmem>>, vector<32x32xf32>
    %cst_146 = arith.constant dense<0.000000e+00> : vector<32x32xf32>
    %182 = tpu.matmul %180, %181, %cst_146 {dimension_numbers = #tpu.dot_dimension_numbers<[1], [0], [0], [1], [0, 0, 1, 1], [], []>} : vector<32x32xf32>, vector<32x32xf32>, vector<32x32xf32> -> vector<32x32xf32>
    %c0_147 = arith.constant 0 : index
    %c0_148 = arith.constant 0 : index
    %183 = vector.load %arg9[%c0_147, %c0_148] : memref<1x32xf32, #tpu.memory_space<vmem>>, vector<1x32xf32>
    %184 = vector.broadcast %183 : vector<1x32xf32> to vector<32x32xf32>
    %185 = arith.addf %182, %184 : vector<32x32xf32>
    %c0_149 = arith.constant 0 : index
    %c0_150 = arith.constant 0 : index
    %186 = vector.load %arg16[%c0_149, %c0_150] : memref<32x32xf32, #tpu.memory_space<vmem>>, vector<32x32xf32>
    tpu.vector_store %arg16[%c0_149, %c0_150], %185 {strides = array<i32>} : memref<32x32xf32, #tpu.memory_space<vmem>>, vector<32x32xf32>,
    %c0_151 = arith.constant 0 : index
    %c0_152 = arith.constant 0 : index
    %187 = tpu.strided_load %arg16[%c0_151, %c0_152] {strides = array<i32: 4, 1>} : memref<32x32xf32, #tpu.memory_space<vmem>>, vector<8x32xf32>
    %c1_153 = arith.constant 1 : index
    %c0_154 = arith.constant 0 : index
    %188 = tpu.strided_load %arg16[%c1_153, %c0_154] {strides = array<i32: 4, 1>} : memref<32x32xf32, #tpu.memory_space<vmem>>, vector<8x32xf32>
    %189 = arith.addf %187, %188 : vector<8x32xf32>
    %c2_155 = arith.constant 2 : index
    %c0_156 = arith.constant 0 : index
    %190 = tpu.strided_load %arg16[%c2_155, %c0_156] {strides = array<i32: 4, 1>} : memref<32x32xf32, #tpu.memory_space<vmem>>, vector<8x32xf32>
    %191 = arith.addf %189, %190 : vector<8x32xf32>
    %c3_157 = arith.constant 3 : index
    %c0_158 = arith.constant 0 : index
    %192 = tpu.strided_load %arg16[%c3_157, %c0_158] {strides = array<i32: 4, 1>} : memref<32x32xf32, #tpu.memory_space<vmem>>, vector<8x32xf32>
    %193 = arith.addf %191, %192 : vector<8x32xf32>
    %cst_159 = arith.constant 2.500000e-01 : f32
    %194 = vector.broadcast %cst_159 : f32 to vector<8x32xf32>
    %195 = arith.mulf %193, %194 : vector<8x32xf32>
    %196 = vector.extract_strided_slice %195 {offsets = [0, 0], sizes = [2, 32], strides = [1, 1]} : vector<8x32xf32> to vector<2x32xf32>
    %197 = vector.extract_strided_slice %195 {offsets = [2, 0], sizes = [2, 32], strides = [1, 1]} : vector<8x32xf32> to vector<2x32xf32>
    %198 = vector.extract_strided_slice %195 {offsets = [4, 0], sizes = [2, 32], strides = [1, 1]} : vector<8x32xf32> to vector<2x32xf32>
    %199 = vector.extract_strided_slice %195 {offsets = [6, 0], sizes = [2, 32], strides = [1, 1]} : vector<8x32xf32> to vector<2x32xf32>
    %200 = tpu.concatenate %196, %197, %198, %199 in 1 : vector<2x32xf32>, vector<2x32xf32>, vector<2x32xf32>, vector<2x32xf32> -> vector<2x128xf32>
    %c0_160 = arith.constant 0 : index
    %c0_161 = arith.constant 0 : index
    %201 = vector.load %arg10[%c0_160, %c0_161] : memref<128x32xf32, #tpu.memory_space<vmem>>, vector<128x32xf32>
    %cst_162 = arith.constant dense<0.000000e+00> : vector<2x32xf32>
    %202 = tpu.matmul %200, %201, %cst_162 {dimension_numbers = #tpu.dot_dimension_numbers<[1], [0], [0], [1], [0, 0, 1, 1], [], []>} : vector<2x128xf32>, vector<128x32xf32>, vector<2x32xf32> -> vector<2x32xf32>
    %c0_163 = arith.constant 0 : index
    %c0_164 = arith.constant 0 : index
    %203 = vector.load %arg11[%c0_163, %c0_164] : memref<1x32xf32, #tpu.memory_space<vmem>>, vector<1x32xf32>
    %204 = vector.broadcast %203 : vector<1x32xf32> to vector<2x32xf32>
    %205 = arith.addf %202, %204 : vector<2x32xf32>
    %cst_165 = arith.constant 0.000000e+00 : f32
    %206 = vector.broadcast %cst_165 : f32 to vector<2x32xf32>
    %207 = arith.maximumf %205, %206 : vector<2x32xf32>
    %c0_166 = arith.constant 0 : index
    %c0_167 = arith.constant 0 : index
    %208 = vector.load %arg12[%c0_166, %c0_167] : memref<32x1xf32, #tpu.memory_space<vmem>>, vector<32x1xf32>
    %cst_168 = arith.constant dense<0.000000e+00> : vector<2x1xf32>
    %209 = tpu.matmul %207, %208, %cst_168 {dimension_numbers = #tpu.dot_dimension_numbers<[1], [0], [0], [1], [0, 0, 1, 1], [], []>} : vector<2x32xf32>, vector<32x1xf32>, vector<2x1xf32> -> vector<2x1xf32>
    %c0_169 = arith.constant 0 : index
    %c0_170 = arith.constant 0 : index
    %210 = vector.load %arg13[%c0_169, %c0_170] : memref<1x1xf32, #tpu.memory_space<vmem>>, vector<1x1xf32>
    %211 = vector.broadcast %210 : vector<1x1xf32> to vector<2x1xf32>
    %212 = arith.addf %209, %211 : vector<2x1xf32>
    %c0_171 = arith.constant 0 : index
    %c0_172 = arith.constant 0 : index
    %213 = vector.load %arg14[%c0_171, %c0_172] : memref<2x1xf32, #tpu.memory_space<vmem>>, vector<2x1xf32>
    tpu.vector_store %arg14[%c0_171, %c0_172], %212 {strides = array<i32>} : memref<2x1xf32, #tpu.memory_space<vmem>>, vector<2x1xf32>,
    return
  }
  func.func @transform_0(%arg0: i32) -> (i32, i32, i32) {
    %c0_i32 = arith.constant 0 : i32
    %c0_i32_0 = arith.constant 0 : i32
    %c0_i32_1 = arith.constant 0 : i32
    %c0_i32_2 = arith.constant 0 : i32
    return %c0_i32, %c0_i32_0, %c0_i32_1 : i32, i32, i32
  }
  func.func @transform_1(%arg0: i32) -> (i32, i32) {
    %c0_i32 = arith.constant 0 : i32
    %c0_i32_0 = arith.constant 0 : i32
    %c0_i32_1 = arith.constant 0 : i32
    return %c0_i32, %c0_i32_0 : i32, i32
  }
  func.func @transform_2(%arg0: i32) -> (i32, i32) {
    %c0_i32 = arith.constant 0 : i32
    %c0_i32_0 = arith.constant 0 : i32
    %c0_i32_1 = arith.constant 0 : i32
    return %c0_i32, %c0_i32_0 : i32, i32
  }
  func.func @transform_3(%arg0: i32) -> (i32, i32) {
    %c0_i32 = arith.constant 0 : i32
    %c0_i32_0 = arith.constant 0 : i32
    %c0_i32_1 = arith.constant 0 : i32
    return %c0_i32, %c0_i32_0 : i32, i32
  }
  func.func @transform_4(%arg0: i32) -> (i32, i32) {
    %c0_i32 = arith.constant 0 : i32
    %c0_i32_0 = arith.constant 0 : i32
    %c0_i32_1 = arith.constant 0 : i32
    return %c0_i32, %c0_i32_0 : i32, i32
  }
  func.func @transform_5(%arg0: i32) -> (i32, i32, i32) {
    %c0_i32 = arith.constant 0 : i32
    %c0_i32_0 = arith.constant 0 : i32
    %c0_i32_1 = arith.constant 0 : i32
    %c0_i32_2 = arith.constant 0 : i32
    return %c0_i32, %c0_i32_0, %c0_i32_1 : i32, i32, i32
  }
  func.func @transform_6(%arg0: i32) -> (i32, i32, i32) {
    %c0_i32 = arith.constant 0 : i32
    %c0_i32_0 = arith.constant 0 : i32
    %c0_i32_1 = arith.constant 0 : i32
    %c0_i32_2 = arith.constant 0 : i32
    return %c0_i32, %c0_i32_0, %c0_i32_1 : i32, i32, i32
  }
  func.func @transform_7(%arg0: i32) -> (i32, i32) {
    %c0_i32 = arith.constant 0 : i32
    %c0_i32_0 = arith.constant 0 : i32
    %c0_i32_1 = arith.constant 0 : i32
    return %c0_i32, %c0_i32_0 : i32, i32
  }
  func.func @transform_8(%arg0: i32) -> (i32, i32) {
    %c0_i32 = arith.constant 0 : i32
    %c0_i32_0 = arith.constant 0 : i32
    %c0_i32_1 = arith.constant 0 : i32
    return %c0_i32, %c0_i32_0 : i32, i32
  }
  func.func @transform_9(%arg0: i32) -> (i32, i32) {
    %c0_i32 = arith.constant 0 : i32
    %c0_i32_0 = arith.constant 0 : i32
    %c0_i32_1 = arith.constant 0 : i32
    return %c0_i32, %c0_i32_0 : i32, i32
  }
  func.func @transform_10(%arg0: i32) -> (i32, i32) {
    %c0_i32 = arith.constant 0 : i32
    %c0_i32_0 = arith.constant 0 : i32
    %c0_i32_1 = arith.constant 0 : i32
    return %c0_i32, %c0_i32_0 : i32, i32
  }
  func.func @transform_11(%arg0: i32) -> (i32, i32) {
    %c0_i32 = arith.constant 0 : i32
    %c0_i32_0 = arith.constant 0 : i32
    %c0_i32_1 = arith.constant 0 : i32
    return %c0_i32, %c0_i32_0 : i32, i32
  }
  func.func @transform_12(%arg0: i32) -> (i32, i32) {
    %c0_i32 = arith.constant 0 : i32
    %c0_i32_0 = arith.constant 0 : i32
    %c0_i32_1 = arith.constant 0 : i32
    return %c0_i32, %c0_i32_0 : i32, i32
  }
  func.func @transform_13(%arg0: i32) -> (i32, i32) {
    %c0_i32 = arith.constant 0 : i32
    %c0_i32_0 = arith.constant 0 : i32
    %c0_i32_1 = arith.constant 0 : i32
    return %c0_i32, %c0_i32_0 : i32, i32
  }
}

</mosaic_0001>

<bundles_post_ra>
// kernel: honet_forward.1
= control target key start
LH: loop header
LB: loop body
LE: loop exit
PB: predicated region body
PF: predicated region fallthrough
CT: control target
= control target key end

     0   :  { %vm1071_vm0 = vcmask 1041409   ;;  %vm1074_vm1 = vcmask 1042434   ;;  %vm1077_vm2 = vcmask 1043459   ;;  %vm1080_vm3 = vcmask 1044484   ;;  %s8219_s19 = smov 96   ;;  %s12361_s1 = inlined_call_operand.vmem [shape: f32[8,32], index: 1, kind: input, shape index: {}]   ;;  %s12362_s0 = inlined_call_operand.vmem [shape: f32[256,3,8], index: 0, kind: input, shape index: {}]   ;;  %s12363_s2 = inlined_call_operand.vmem [shape: f32[1,32], index: 2, kind: input, shape index: {}]   ;;  %s12364_s3 = inlined_call_operand.vmem [shape: f32[32,32], index: 3, kind: input, shape index: {}]   ;;  %s12365_s5 = inlined_call_operand.vmem [shape: f32[2,64,32], index: 5, kind: input, shape index: {}]   ;;  %s12366_s4 = inlined_call_operand.vmem [shape: f32[1,32], index: 4, kind: input, shape index: {}]   ;;  %s12367_s6 = inlined_call_operand.vmem [shape: f32[2,1,32], index: 6, kind: input, shape index: {}]   ;;  %s12368_s7 = inlined_call_operand.vmem [shape: f32[32,32], index: 7, kind: input, shape index: {}]   ;;  %s12369_s9 = inlined_call_operand.vmem [shape: f32[128,32], index: 9, kind: input, shape index: {}]   ;;  %s12370_s8 = inlined_call_operand.vmem [shape: f32[1,32], index: 8, kind: input, shape index: {}]   ;;  %s12371_s11 = inlined_call_operand.vmem [shape: f32[32,1], index: 11, kind: input, shape index: {}]   ;;  %s12372_s12 = inlined_call_operand.<no memory space> [shape: f32[1,1], index: 12, kind: input, shape index: {}]   ;;  %s12373_s10 = inlined_call_operand.vmem [shape: f32[1,32], index: 10, kind: input, shape index: {}]   ;;  %s12374_s13 = inlined_call_operand.vmem [shape: f32[2,1], index: 13, kind: output, shape index: {}]  }
   0x1   :  { %v2933_v0 = vld [vmem:[%s12361_s1] sm:$0xff]  ;;  %v48_v3 = vld [vmem:[%s12362_s0 + $0x8] sm:$0x1]  ;;  %v49_v4 = vld [vmem:[%s12362_s0 + $0xc] sm:$0x1]  ;;  %vm1083_vm4 = vcmask 1045509  }
   0x2   :  { %v46_v1 = vld [vmem:[%s12362_s0] sm:$0x1]  ;;  %v47_v2 = vld [vmem:[%s12362_s0 + $0x4] sm:$0x1]  ;;  %7160 = vmatprep.subr.mxu0 %v2933_v0  ;;  %v50_v5 = vld [vmem:[%s12362_s0 + $0x10] sm:$0x1]  ;;  %8076 = vmatprep.subr.mxu1 %v2933_v0 }
   0x3   :  { %7161 = vmatpush3.msra.mxu0 %v2933_v0  ;;  %v51_v6 = vld [vmem:[%s12362_s0 + $0x14] sm:$0x1]  ;;  %v52_v7 = vld [vmem:[%s12362_s0 + $0x18] sm:$0x1]  ;;  %v53_v8 = vld [vmem:[%s12362_s0 + $0x1c] sm:$0x1]  ;;  %8077 = vmatpush3.msra.mxu1 %v2933_v0 }
   0x4   :  { %v1070_v9 = vrot.slane %v47_v2, 7  ;;  %v1073_v10 = vrot.slane %v48_v3, 6  ;;  %v1076_v11 = vrot.slane %v49_v4, 5  ;;  %v1079_v12 = vrot.slane %v50_v5, 4  ;;  %v54_v15 = vld [vmem:[%s12362_s0 + $0x20] sm:$0x1] }
   0x5   :  { %v1082_v13 = vrot.slane %v51_v6, 3  ;;  %v1085_v14 = vrot.slane %v52_v7, 2  ;;  %vm1086_vm5 = vcmask 1046534   ;;  %v55_v16 = vld [vmem:[%s12362_s0 + $0x24] sm:$0x1]  ;;  %v1088_v18 = vrot.slane %v53_v8, 1 }
   0x6   :  { %v1072_v17 = vsel %vm1071_vm0, %v1070_v9, %v46_v1  ;;  %vm1089_vm6 = vcmask 1047559   ;;  %v56_v19 = vld [vmem:[%s12362_s0 + $0x28] sm:$0x1]  ;;  %v57_v20 = vld [vmem:[%s12362_s0 + $0x2c] sm:$0x1]  ;;  %v1091_v27 = vrot.slane %v55_v16, 7 }
   0x7   :  { %v1075_v21 = vsel %vm1074_vm1, %v1073_v10, %v1072_v17  ;;  %v58_v22 = vld [vmem:[%s12362_s0 + $0x30] sm:$0x1]  ;;  %v59_v23 = vld [vmem:[%s12362_s0 + $0x34] sm:$0x1]  ;;  %v60_v24 = vld [vmem:[%s12362_s0 + $0x38] sm:$0x1] }
   0x8   :  { %v1078_v25 = vsel %vm1077_vm2, %v1076_v11, %v1075_v21  ;;  %v61_v26 = vld [vmem:[%s12362_s0 + $0x3c] sm:$0x1]  ;;  %v1093_v28 = vrot.slane %v56_v19, 6  ;;  %v1095_v29 = vrot.slane %v57_v20, 5  ;;  %vm2941_vm7 = vcmask 64512  }
   0x9   :  { %v1081_v30 = vsel %vm1080_vm3, %v1079_v12, %v1078_v25  ;;  %v1097_v31 = vrot.slane %v58_v22, 4  ;;  %v1099_v32 = vrot.slane %v59_v23, 3  ;;  %v62_v33 = vld [vmem:[%s12362_s0 + $0x40] sm:$0x1]  ;;  %v1092_v35 = vsel %vm1071_vm0, %v1091_v27, %v54_v15  ;;  %v63_v38 = vld [vmem:[%s12362_s0 + $0x44] sm:$0x1] }
   0xa   :  { %v1084_v34 = vsel %vm1083_vm4, %v1082_v13, %v1081_v30  ;;  %v1101_v36 = vrot.slane %v60_v24, 2  ;;  %v1103_v37 = vrot.slane %v61_v26, 1  ;;  %v64_v39 = vld [vmem:[%s12362_s0 + $0x48] sm:$0x1]  ;;  %v1094_v41 = vsel %vm1074_vm1, %v1093_v28, %v1092_v35  ;;  %v65_v42 = vld [vmem:[%s12362_s0 + $0x4c] sm:$0x1] }
   0xb   :  { %v1087_v40 = vsel %vm1086_vm5, %v1085_v14, %v1084_v34  ;;  %v66_v43 = vld [vmem:[%s12362_s0 + $0x50] sm:$0x1]  ;;  %v67_v44 = vld [vmem:[%s12362_s0 + $0x54] sm:$0x1]  ;;  %v1096_v46 = vsel %vm1077_vm2, %v1095_v29, %v1094_v41  ;;  %v68_v47 = vld [vmem:[%s12362_s0 + $0x58] sm:$0x1] }
   0xc   :  { %v1090_v45 = vsel %vm1089_vm6, %v1088_v18, %v1087_v40  ;;  %v69_v48 = vld [vmem:[%s12362_s0 + $0x5c] sm:$0x1]  ;;  %v1105_v49 = vrot.slane %v63_v38, 7  ;;  %v1107_v50 = vrot.slane %v64_v39, 6  ;;  %v1098_v51 = vsel %vm1080_vm3, %v1097_v31, %v1096_v46  ;;  %v70_v55 = vld [vmem:[%s12362_s0 + $0x60] sm:$0x1] }
   0xd   :  { %7162 = vmatprep.mubr.msk.f32.mxu0 %vm2941_vm7, %v1090_v45  ;;  %v1109_v52 = vrot.slane %v65_v42, 5  ;;  %v1111_v53 = vrot.slane %v66_v43, 4  ;;  %v1113_v54 = vrot.slane %v67_v44, 3  ;;  %v1100_v56 = vsel %vm1083_vm4, %v1099_v32, %v1098_v51  ;;  %v71_v60 = vld [vmem:[%s12362_s0 + $0x64] sm:$0x1] }
   0xe   :  { %v1106_v57 = vsel %vm1071_vm0, %v1105_v49, %v62_v33  ;;  %v1115_v58 = vrot.slane %v68_v47, 2  ;;  %v1117_v59 = vrot.slane %v69_v48, 1  ;;  %v72_v61 = vld [vmem:[%s12362_s0 + $0x68] sm:$0x1]  ;;  %v1102_v62 = vsel %vm1086_vm5, %v1101_v36, %v1100_v56  ;;  %v73_v0 = vld [vmem:[%s12362_s0 + $0x6c] sm:$0x1] }
   0xf   :  { %v1108_v63 = vsel %vm1074_vm1, %v1107_v50, %v1106_v57  ;;  %v74_v1 = vld [vmem:[%s12362_s0 + $0x70] sm:$0x1]  ;;  %v75_v2 = vld [vmem:[%s12362_s0 + $0x74] sm:$0x1]  ;;  %v1104_v3 = vsel %vm1089_vm6, %v1103_v37, %v1102_v62  ;;  %v76_v5 = vld [vmem:[%s12362_s0 + $0x78] sm:$0x1] }
  0x10   :  { %v1110_v4 = vsel %vm1077_vm2, %v1109_v52, %v1108_v63  ;;  %v77_v6 = vld [vmem:[%s12362_s0 + $0x7c] sm:$0x1]  ;;  %v1119_v7 = vrot.slane %v71_v60, 7  ;;  %v1121_v8 = vrot.slane %v72_v61, 6  ;;  %7163 = vmatmul.mubr.msk.f32.vlgmr.msra.gmra.mrb[0].mxu0 %vm2941_vm7, %v1104_v3  ;;  %v1123_v10 = vrot.slane %v73_v0, 5 }
  0x11   :  { %v1112_v9 = vsel %vm1080_vm3, %v1111_v53, %v1110_v4  ;;  %v1125_v11 = vrot.slane %v74_v1, 4  ;;  %v1127_v12 = vrot.slane %v75_v2, 3  ;;  %v78_v13 = vld [vmem:[%s12362_s0 + $0x80] sm:$0x1]  ;;  %v1129_v16 = vrot.slane %v76_v5, 2 }
  0x12   :  { %v1114_v14 = vsel %vm1083_vm4, %v1113_v54, %v1112_v9  ;;  %v1120_v15 = vsel %vm1071_vm0, %v1119_v7, %v70_v55  ;;  %v1131_v17 = vrot.slane %v77_v6, 1  ;;  %v79_v18 = vld [vmem:[%s12362_s0 + $0x84] sm:$0x1]  ;;  %v80_v19 = vld [vmem:[%s12362_s0 + $0x88] sm:$0x1]  ;;  %vm3851_vm8 = vcmask 261120  }
  0x13   :  { %v1116_v20 = vsel %vm1086_vm5, %v1115_v58, %v1114_v14  ;;  %v1122_v21 = vsel %vm1074_vm1, %v1121_v8, %v1120_v15  ;;  %v81_v22 = vld [vmem:[%s12362_s0 + $0x8c] sm:$0x1]  ;;  %v82_v23 = vld [vmem:[%s12362_s0 + $0x90] sm:$0x1]  ;;  %v83_v24 = vld [vmem:[%s12362_s0 + $0x94] sm:$0x1] }
  0x14   :  { %v1118_v25 = vsel %vm1089_vm6, %v1117_v59, %v1116_v20  ;;  %v1124_v26 = vsel %vm1077_vm2, %v1123_v10, %v1122_v21  ;;  %v84_v27 = vld [vmem:[%s12362_s0 + $0x98] sm:$0x1]  ;;  %v85_v28 = vld [vmem:[%s12362_s0 + $0x9c] sm:$0x1]  ;;  %v1133_v29 = vrot.slane %v79_v18, 7  ;;  %v1135_v30 = vrot.slane %v80_v19, 6 }
  0x15   :  { %7165 = vmatprep.mubr.msk.f32.mxu0 %vm2941_vm7, %v1118_v25  ;;  %v1126_v31 = vsel %vm1080_vm3, %v1125_v11, %v1124_v26  ;;  %v1137_v32 = vrot.slane %v81_v22, 5  ;;  %v1139_v33 = vrot.slane %v82_v23, 4  ;;  %v1141_v34 = vrot.slane %v83_v24, 3  ;;  %v86_v35 = vld [vmem:[%s12362_s0 + $0xa0] sm:$0x1] }
  0x16   :  { %v1128_v36 = vsel %vm1083_vm4, %v1127_v12, %v1126_v31  ;;  %v1134_v37 = vsel %vm1071_vm0, %v1133_v29, %v78_v13  ;;  %v1143_v38 = vrot.slane %v84_v27, 2  ;;  %v1145_v39 = vrot.slane %v85_v28, 1  ;;  %v87_v40 = vld [vmem:[%s12362_s0 + $0xa4] sm:$0x1]  ;;  %v88_v41 = vld [vmem:[%s12362_s0 + $0xa8] sm:$0x1] }
  0x17   :  { %v1130_v42 = vsel %vm1086_vm5, %v1129_v16, %v1128_v36  ;;  %v1136_v43 = vsel %vm1074_vm1, %v1135_v30, %v1134_v37  ;;  %v89_v44 = vld [vmem:[%s12362_s0 + $0xac] sm:$0x1]  ;;  %v90_v45 = vld [vmem:[%s12362_s0 + $0xb0] sm:$0x1]  ;;  %v91_v46 = vld [vmem:[%s12362_s0 + $0xb4] sm:$0x1] }
  0x18   :  { %v1132_v47 = vsel %vm1089_vm6, %v1131_v17, %v1130_v42  ;;  %v1138_v48 = vsel %vm1077_vm2, %v1137_v32, %v1136_v43  ;;  %v92_v49 = vld [vmem:[%s12362_s0 + $0xb8] sm:$0x1]  ;;  %v93_v50 = vld [vmem:[%s12362_s0 + $0xbc] sm:$0x1]  ;;  %v1147_v51 = vrot.slane %v87_v40, 7  ;;  %v1149_v52 = vrot.slane %v88_v41, 6 }
  0x19   :  { %7166 = vmatmul.mubr.msk.f32.gmra.mrb[2].mxu0 %vm2941_vm7, %v1132_v47  ;;  %v1140_v53 = vsel %vm1080_vm3, %v1139_v33, %v1138_v48  ;;  %v1151_v54 = vrot.slane %v89_v44, 5  ;;  %v1153_v55 = vrot.slane %v90_v45, 4  ;;  %v1155_v56 = vrot.slane %v91_v46, 3  ;;  %v94_v57 = vld [vmem:[%s12362_s0 + $0xc0] sm:$0x1] }
  0x1a   :  { %v1142_v58 = vsel %vm1083_vm4, %v1141_v34, %v1140_v53  ;;  %v1148_v59 = vsel %vm1071_vm0, %v1147_v51, %v86_v35  ;;  %v1157_v60 = vrot.slane %v92_v49, 2  ;;  %v1159_v61 = vrot.slane %v93_v50, 1  ;;  %v95_v62 = vld [vmem:[%s12362_s0 + $0xc4] sm:$0x1]  ;;  %v96_v63 = vld [vmem:[%s12362_s0 + $0xc8] sm:$0x1] }
  0x1b   :  { %v1144_v0 = vsel %vm1086_vm5, %v1143_v38, %v1142_v58  ;;  %v1150_v1 = vsel %vm1074_vm1, %v1149_v52, %v1148_v59  ;;  %v97_v2 = vld [vmem:[%s12362_s0 + $0xcc] sm:$0x1]  ;;  %v98_v3 = vld [vmem:[%s12362_s0 + $0xd0] sm:$0x1]  ;;  %v99_v4 = vld [vmem:[%s12362_s0 + $0xd4] sm:$0x1] }
  0x1c   :  { %v1146_v5 = vsel %vm1089_vm6, %v1145_v39, %v1144_v0  ;;  %v1152_v6 = vsel %vm1077_vm2, %v1151_v54, %v1150_v1  ;;  %v100_v7 = vld [vmem:[%s12362_s0 + $0xd8] sm:$0x1]  ;;  %v101_v8 = vld [vmem:[%s12362_s0 + $0xdc] sm:$0x1]  ;;  %v1161_v9 = vrot.slane %v95_v62, 7  ;;  %v1163_v10 = vrot.slane %v96_v63, 6 }
  0x1d   :  { %7168 = vmatprep.mubr.msk.f32.mxu0 %vm2941_vm7, %v1146_v5  ;;  %v1154_v11 = vsel %vm1080_vm3, %v1153_v55, %v1152_v6  ;;  %v1165_v12 = vrot.slane %v97_v2, 5  ;;  %v1167_v13 = vrot.slane %v98_v3, 4  ;;  %v1169_v14 = vrot.slane %v99_v4, 3  ;;  %v102_v15 = vld [vmem:[%s12362_s0 + $0xe0] sm:$0x1] }
  0x1e   :  { %v1156_v16 = vsel %vm1083_vm4, %v1155_v56, %v1154_v11  ;;  %v1162_v17 = vsel %vm1071_vm0, %v1161_v9, %v94_v57  ;;  %v1171_v18 = vrot.slane %v100_v7, 2  ;;  %v1173_v19 = vrot.slane %v101_v8, 1  ;;  %v103_v20 = vld [vmem:[%s12362_s0 + $0xe4] sm:$0x1]  ;;  %v104_v21 = vld [vmem:[%s12362_s0 + $0xe8] sm:$0x1] }
  0x1f   :  { %v1158_v22 = vsel %vm1086_vm5, %v1157_v60, %v1156_v16  ;;  %v1164_v23 = vsel %vm1074_vm1, %v1163_v10, %v1162_v17  ;;  %v105_v24 = vld [vmem:[%s12362_s0 + $0xec] sm:$0x1]  ;;  %v106_v25 = vld [vmem:[%s12362_s0 + $0xf0] sm:$0x1]  ;;  %v107_v26 = vld [vmem:[%s12362_s0 + $0xf4] sm:$0x1] }
  0x20   :  { %v1160_v27 = vsel %vm1089_vm6, %v1159_v61, %v1158_v22  ;;  %v1166_v28 = vsel %vm1077_vm2, %v1165_v12, %v1164_v23  ;;  %v108_v29 = vld [vmem:[%s12362_s0 + $0xf8] sm:$0x1]  ;;  %v109_v30 = vld [vmem:[%s12362_s0 + $0xfc] sm:$0x1]  ;;  %v1175_v31 = vrot.slane %v103_v20, 7  ;;  %v1177_v32 = vrot.slane %v104_v21, 6 }
  0x21   :  { %7169 = vmatmul.mubr.msk.f32.gmra.mrb[4].mxu0 %vm2941_vm7, %v1160_v27  ;;  %v1168_v33 = vsel %vm1080_vm3, %v1167_v13, %v1166_v28  ;;  %v1179_v34 = vrot.slane %v105_v24, 5  ;;  %v1181_v35 = vrot.slane %v106_v25, 4  ;;  %v1183_v36 = vrot.slane %v107_v26, 3  ;;  %v110_v37 = vld [vmem:[%s12362_s0 + $0x100] sm:$0x1] }
  0x22   :  { %v1170_v38 = vsel %vm1083_vm4, %v1169_v14, %v1168_v33  ;;  %v1176_v39 = vsel %vm1071_vm0, %v1175_v31, %v102_v15  ;;  %v1185_v40 = vrot.slane %v108_v29, 2  ;;  %v1187_v41 = vrot.slane %v109_v30, 1  ;;  %v111_v42 = vld [vmem:[%s12362_s0 + $0x104] sm:$0x1]  ;;  %v112_v43 = vld [vmem:[%s12362_s0 + $0x108] sm:$0x1] }
  0x23   :  { %v1172_v44 = vsel %vm1086_vm5, %v1171_v18, %v1170_v38  ;;  %v1178_v45 = vsel %vm1074_vm1, %v1177_v32, %v1176_v39  ;;  %v113_v46 = vld [vmem:[%s12362_s0 + $0x10c] sm:$0x1]  ;;  %v114_v47 = vld [vmem:[%s12362_s0 + $0x110] sm:$0x1]  ;;  %v115_v48 = vld [vmem:[%s12362_s0 + $0x114] sm:$0x1] }
  0x24   :  { %v1174_v49 = vsel %vm1089_vm6, %v1173_v19, %v1172_v44  ;;  %v1180_v50 = vsel %vm1077_vm2, %v1179_v34, %v1178_v45  ;;  %v116_v51 = vld [vmem:[%s12362_s0 + $0x118] sm:$0x1]  ;;  %v117_v52 = vld [vmem:[%s12362_s0 + $0x11c] sm:$0x1]  ;;  %v1189_v53 = vrot.slane %v111_v42, 7  ;;  %v1191_v54 = vrot.slane %v112_v43, 6 }
  0x25   :  { %7171 = vmatprep.mubr.msk.f32.mxu0 %vm2941_vm7, %v1174_v49  ;;  %v1182_v55 = vsel %vm1080_vm3, %v1181_v35, %v1180_v50  ;;  %v1193_v56 = vrot.slane %v113_v46, 5  ;;  %v1195_v57 = vrot.slane %v114_v47, 4  ;;  %v1197_v58 = vrot.slane %v115_v48, 3  ;;  %v118_v59 = vld [vmem:[%s12362_s0 + $0x120] sm:$0x1] }
  0x26   :  { %v1184_v60 = vsel %vm1083_vm4, %v1183_v36, %v1182_v55  ;;  %v1190_v61 = vsel %vm1071_vm0, %v1189_v53, %v110_v37  ;;  %v1199_v62 = vrot.slane %v116_v51, 2  ;;  %v1201_v63 = vrot.slane %v117_v52, 1  ;;  %v119_v0 = vld [vmem:[%s12362_s0 + $0x124] sm:$0x1]  ;;  %v120_v1 = vld [vmem:[%s12362_s0 + $0x128] sm:$0x1] }
  0x27   :  { %v1186_v2 = vsel %vm1086_vm5, %v1185_v40, %v1184_v60  ;;  %v1192_v3 = vsel %vm1074_vm1, %v1191_v54, %v1190_v61  ;;  %v121_v4 = vld [vmem:[%s12362_s0 + $0x12c] sm:$0x1]  ;;  %v122_v5 = vld [vmem:[%s12362_s0 + $0x130] sm:$0x1]  ;;  %v123_v6 = vld [vmem:[%s12362_s0 + $0x134] sm:$0x1] }
  0x28   :  { %v1188_v7 = vsel %vm1089_vm6, %v1187_v41, %v1186_v2  ;;  %v1194_v8 = vsel %vm1077_vm2, %v1193_v56, %v1192_v3  ;;  %v124_v9 = vld [vmem:[%s12362_s0 + $0x138] sm:$0x1]  ;;  %v125_v10 = vld [vmem:[%s12362_s0 + $0x13c] sm:$0x1]  ;;  %v1203_v11 = vrot.slane %v119_v0, 7  ;;  %v1205_v12 = vrot.slane %v120_v1, 6 }
  0x29   :  { %7172 = vmatmul.mubr.msk.f32.gmra.mrb[6].mxu0 %vm2941_vm7, %v1188_v7  ;;  %v1196_v13 = vsel %vm1080_vm3, %v1195_v57, %v1194_v8  ;;  %v1207_v14 = vrot.slane %v121_v4, 5  ;;  %v1209_v15 = vrot.slane %v122_v5, 4  ;;  %v1211_v16 = vrot.slane %v123_v6, 3  ;;  %v126_v17 = vld [vmem:[%s12362_s0 + $0x140] sm:$0x1] }
  0x2a   :  { %v1198_v18 = vsel %vm1083_vm4, %v1197_v58, %v1196_v13  ;;  %v1204_v19 = vsel %vm1071_vm0, %v1203_v11, %v118_v59  ;;  %v1213_v20 = vrot.slane %v124_v9, 2  ;;  %v1215_v21 = vrot.slane %v125_v10, 1  ;;  %v127_v22 = vld [vmem:[%s12362_s0 + $0x144] sm:$0x1]  ;;  %v128_v23 = vld [vmem:[%s12362_s0 + $0x148] sm:$0x1] }
  0x2b   :  { %v1200_v24 = vsel %vm1086_vm5, %v1199_v62, %v1198_v18  ;;  %v1206_v25 = vsel %vm1074_vm1, %v1205_v12, %v1204_v19  ;;  %v129_v26 = vld [vmem:[%s12362_s0 + $0x14c] sm:$0x1]  ;;  %v130_v27 = vld [vmem:[%s12362_s0 + $0x150] sm:$0x1]  ;;  %v131_v28 = vld [vmem:[%s12362_s0 + $0x154] sm:$0x1] }
  0x2c   :  { %v1202_v29 = vsel %vm1089_vm6, %v1201_v63, %v1200_v24  ;;  %v1208_v30 = vsel %vm1077_vm2, %v1207_v14, %v1206_v25  ;;  %v132_v31 = vld [vmem:[%s12362_s0 + $0x158] sm:$0x1]  ;;  %v133_v32 = vld [vmem:[%s12362_s0 + $0x15c] sm:$0x1]  ;;  %v1217_v33 = vrot.slane %v127_v22, 7  ;;  %v1219_v34 = vrot.slane %v128_v23, 6 }
  0x2d   :  { %7174 = vmatprep.mubr.msk.f32.mxu0 %vm2941_vm7, %v1202_v29  ;;  %v1210_v35 = vsel %vm1080_vm3, %v1209_v15, %v1208_v30  ;;  %v1221_v36 = vrot.slane %v129_v26, 5  ;;  %v1223_v37 = vrot.slane %v130_v27, 4  ;;  %v1225_v38 = vrot.slane %v131_v28, 3  ;;  %v134_v39 = vld [vmem:[%s12362_s0 + $0x160] sm:$0x1] }
  0x2e   :  { %v1212_v40 = vsel %vm1083_vm4, %v1211_v16, %v1210_v35  ;;  %v1218_v41 = vsel %vm1071_vm0, %v1217_v33, %v126_v17  ;;  %v1227_v42 = vrot.slane %v132_v31, 2  ;;  %v1229_v43 = vrot.slane %v133_v32, 1  ;;  %v135_v44 = vld [vmem:[%s12362_s0 + $0x164] sm:$0x1]  ;;  %v136_v45 = vld [vmem:[%s12362_s0 + $0x168] sm:$0x1] }
  0x2f   :  { %v1214_v46 = vsel %vm1086_vm5, %v1213_v20, %v1212_v40  ;;  %v1220_v47 = vsel %vm1074_vm1, %v1219_v34, %v1218_v41  ;;  %v137_v48 = vld [vmem:[%s12362_s0 + $0x16c] sm:$0x1]  ;;  %v138_v49 = vld [vmem:[%s12362_s0 + $0x170] sm:$0x1]  ;;  %v139_v50 = vld [vmem:[%s12362_s0 + $0x174] sm:$0x1] }
  0x30   :  { %v1216_v51 = vsel %vm1089_vm6, %v1215_v21, %v1214_v46  ;;  %v1222_v52 = vsel %vm1077_vm2, %v1221_v36, %v1220_v47  ;;  %v140_v53 = vld [vmem:[%s12362_s0 + $0x178] sm:$0x1]  ;;  %v141_v54 = vld [vmem:[%s12362_s0 + $0x17c] sm:$0x1]  ;;  %v1231_v55 = vrot.slane %v135_v44, 7  ;;  %v1233_v56 = vrot.slane %v136_v45, 6 }
  0x31   :  { %7175 = vmatmul.mubr.msk.f32.gmra.mrb[8].mxu0 %vm2941_vm7, %v1216_v51  ;;  %v1224_v57 = vsel %vm1080_vm3, %v1223_v37, %v1222_v52  ;;  %v1235_v58 = vrot.slane %v137_v48, 5  ;;  %v1237_v59 = vrot.slane %v138_v49, 4  ;;  %v1239_v60 = vrot.slane %v139_v50, 3  ;;  %v142_v61 = vld [vmem:[%s12362_s0 + $0x180] sm:$0x1] }
  0x32   :  { %v1226_v62 = vsel %vm1083_vm4, %v1225_v38, %v1224_v57  ;;  %v1232_v63 = vsel %vm1071_vm0, %v1231_v55, %v134_v39  ;;  %v1241_v0 = vrot.slane %v140_v53, 2  ;;  %v1243_v1 = vrot.slane %v141_v54, 1  ;;  %v143_v2 = vld [vmem:[%s12362_s0 + $0x184] sm:$0x1]  ;;  %v144_v3 = vld [vmem:[%s12362_s0 + $0x188] sm:$0x1] }
  0x33   :  { %v1228_v4 = vsel %vm1086_vm5, %v1227_v42, %v1226_v62  ;;  %v1234_v5 = vsel %vm1074_vm1, %v1233_v56, %v1232_v63  ;;  %v145_v6 = vld [vmem:[%s12362_s0 + $0x18c] sm:$0x1]  ;;  %v146_v7 = vld [vmem:[%s12362_s0 + $0x190] sm:$0x1]  ;;  %v147_v8 = vld [vmem:[%s12362_s0 + $0x194] sm:$0x1] }
  0x34   :  { %v1230_v9 = vsel %vm1089_vm6, %v1229_v43, %v1228_v4  ;;  %v1236_v10 = vsel %vm1077_vm2, %v1235_v58, %v1234_v5  ;;  %v148_v11 = vld [vmem:[%s12362_s0 + $0x198] sm:$0x1]  ;;  %v149_v12 = vld [vmem:[%s12362_s0 + $0x19c] sm:$0x1]  ;;  %v1245_v13 = vrot.slane %v143_v2, 7  ;;  %v1247_v14 = vrot.slane %v144_v3, 6 }
  0x35   :  { %7177 = vmatprep.mubr.msk.f32.mxu0 %vm2941_vm7, %v1230_v9  ;;  %v1238_v15 = vsel %vm1080_vm3, %v1237_v59, %v1236_v10  ;;  %v1249_v16 = vrot.slane %v145_v6, 5  ;;  %v1251_v17 = vrot.slane %v146_v7, 4  ;;  %v1253_v18 = vrot.slane %v147_v8, 3  ;;  %v150_v19 = vld [vmem:[%s12362_s0 + $0x1a0] sm:$0x1] }
  0x36   :  { %v1240_v20 = vsel %vm1083_vm4, %v1239_v60, %v1238_v15  ;;  %v1246_v21 = vsel %vm1071_vm0, %v1245_v13, %v142_v61  ;;  %v1255_v22 = vrot.slane %v148_v11, 2  ;;  %v1257_v23 = vrot.slane %v149_v12, 1  ;;  %v151_v24 = vld [vmem:[%s12362_s0 + $0x1a4] sm:$0x1]  ;;  %v152_v25 = vld [vmem:[%s12362_s0 + $0x1a8] sm:$0x1] }
  0x37   :  { %v1242_v26 = vsel %vm1086_vm5, %v1241_v0, %v1240_v20  ;;  %v1248_v27 = vsel %vm1074_vm1, %v1247_v14, %v1246_v21  ;;  %v153_v28 = vld [vmem:[%s12362_s0 + $0x1ac] sm:$0x1]  ;;  %v154_v29 = vld [vmem:[%s12362_s0 + $0x1b0] sm:$0x1]  ;;  %v155_v30 = vld [vmem:[%s12362_s0 + $0x1b4] sm:$0x1] }
  0x38   :  { %v1244_v31 = vsel %vm1089_vm6, %v1243_v1, %v1242_v26  ;;  %v1250_v32 = vsel %vm1077_vm2, %v1249_v16, %v1248_v27  ;;  %v156_v33 = vld [vmem:[%s12362_s0 + $0x1b8] sm:$0x1]  ;;  %v157_v34 = vld [vmem:[%s12362_s0 + $0x1bc] sm:$0x1]  ;;  %v1259_v35 = vrot.slane %v151_v24, 7  ;;  %v1261_v36 = vrot.slane %v152_v25, 6 }
  0x39   :  { %7178 = vmatmul.mubr.msk.f32.gmra.mrb[10].mxu0 %vm2941_vm7, %v1244_v31  ;;  %v1252_v37 = vsel %vm1080_vm3, %v1251_v17, %v1250_v32  ;;  %v1263_v38 = vrot.slane %v153_v28, 5  ;;  %v1265_v39 = vrot.slane %v154_v29, 4  ;;  %v1267_v40 = vrot.slane %v155_v30, 3  ;;  %v158_v41 = vld [vmem:[%s12362_s0 + $0x1c0] sm:$0x1] }
  0x3a   :  { %v1254_v42 = vsel %vm1083_vm4, %v1253_v18, %v1252_v37  ;;  %v1260_v43 = vsel %vm1071_vm0, %v1259_v35, %v150_v19  ;;  %v1269_v44 = vrot.slane %v156_v33, 2  ;;  %v1271_v45 = vrot.slane %v157_v34, 1  ;;  %v159_v46 = vld [vmem:[%s12362_s0 + $0x1c4] sm:$0x1]  ;;  %v160_v47 = vld [vmem:[%s12362_s0 + $0x1c8] sm:$0x1] }
  0x3b   :  { %v1256_v48 = vsel %vm1086_vm5, %v1255_v22, %v1254_v42  ;;  %v1262_v49 = vsel %vm1074_vm1, %v1261_v36, %v1260_v43  ;;  %v161_v50 = vld [vmem:[%s12362_s0 + $0x1cc] sm:$0x1]  ;;  %v162_v51 = vld [vmem:[%s12362_s0 + $0x1d0] sm:$0x1]  ;;  %v163_v52 = vld [vmem:[%s12362_s0 + $0x1d4] sm:$0x1] }
  0x3c   :  { %v1258_v53 = vsel %vm1089_vm6, %v1257_v23, %v1256_v48  ;;  %v1264_v54 = vsel %vm1077_vm2, %v1263_v38, %v1262_v49  ;;  %v164_v55 = vld [vmem:[%s12362_s0 + $0x1d8] sm:$0x1]  ;;  %v165_v56 = vld [vmem:[%s12362_s0 + $0x1dc] sm:$0x1]  ;;  %v1273_v57 = vrot.slane %v159_v46, 7  ;;  %v1275_v58 = vrot.slane %v160_v47, 6 }
  0x3d   :  { %7180 = vmatprep.mubr.msk.f32.mxu0 %vm2941_vm7, %v1258_v53  ;;  %v1266_v59 = vsel %vm1080_vm3, %v1265_v39, %v1264_v54  ;;  %v1277_v60 = vrot.slane %v161_v50, 5  ;;  %v1279_v61 = vrot.slane %v162_v51, 4  ;;  %v1281_v62 = vrot.slane %v163_v52, 3  ;;  %v166_v63 = vld [vmem:[%s12362_s0 + $0x1e0] sm:$0x1] }
  0x3e   :  { %v1268_v0 = vsel %vm1083_vm4, %v1267_v40, %v1266_v59  ;;  %v1274_v1 = vsel %vm1071_vm0, %v1273_v57, %v158_v41  ;;  %v1283_v2 = vrot.slane %v164_v55, 2  ;;  %v1285_v3 = vrot.slane %v165_v56, 1  ;;  %v167_v4 = vld [vmem:[%s12362_s0 + $0x1e4] sm:$0x1]  ;;  %v168_v5 = vld [vmem:[%s12362_s0 + $0x1e8] sm:$0x1] }
  0x3f   :  { %v1270_v6 = vsel %vm1086_vm5, %v1269_v44, %v1268_v0  ;;  %v1276_v7 = vsel %vm1074_vm1, %v1275_v58, %v1274_v1  ;;  %v169_v8 = vld [vmem:[%s12362_s0 + $0x1ec] sm:$0x1]  ;;  %v170_v9 = vld [vmem:[%s12362_s0 + $0x1f0] sm:$0x1]  ;;  %v171_v10 = vld [vmem:[%s12362_s0 + $0x1f4] sm:$0x1] }
  0x40   :  { %v1272_v11 = vsel %vm1089_vm6, %v1271_v45, %v1270_v6  ;;  %v1278_v12 = vsel %vm1077_vm2, %v1277_v60, %v1276_v7  ;;  %v172_v13 = vld [vmem:[%s12362_s0 + $0x1f8] sm:$0x1]  ;;  %v173_v14 = vld [vmem:[%s12362_s0 + $0x1fc] sm:$0x1]  ;;  %v1287_v15 = vrot.slane %v167_v4, 7  ;;  %v1289_v16 = vrot.slane %v168_v5, 6 }
  0x41   :  { %7181 = vmatmul.mubr.msk.f32.gmra.mrb[12].mxu0 %vm2941_vm7, %v1272_v11  ;;  %v1280_v17 = vsel %vm1080_vm3, %v1279_v61, %v1278_v12  ;;  %v1291_v18 = vrot.slane %v169_v8, 5  ;;  %v1293_v19 = vrot.slane %v170_v9, 4  ;;  %v1295_v20 = vrot.slane %v171_v10, 3  ;;  %v174_v21 = vld [vmem:[%s12362_s0 + $0x200] sm:$0x1] }
  0x42   :  { %v1282_v22 = vsel %vm1083_vm4, %v1281_v62, %v1280_v17  ;;  %v1288_v23 = vsel %vm1071_vm0, %v1287_v15, %v166_v63  ;;  %v1297_v24 = vrot.slane %v172_v13, 2  ;;  %v1299_v25 = vrot.slane %v173_v14, 1  ;;  %v175_v26 = vld [vmem:[%s12362_s0 + $0x204] sm:$0x1]  ;;  %v176_v27 = vld [vmem:[%s12362_s0 + $0x208] sm:$0x1] }
  0x43   :  { %v1284_v28 = vsel %vm1086_vm5, %v1283_v2, %v1282_v22  ;;  %v1290_v29 = vsel %vm1074_vm1, %v1289_v16, %v1288_v23  ;;  %v177_v30 = vld [vmem:[%s12362_s0 + $0x20c] sm:$0x1]  ;;  %v178_v31 = vld [vmem:[%s12362_s0 + $0x210] sm:$0x1]  ;;  %v179_v32 = vld [vmem:[%s12362_s0 + $0x214] sm:$0x1] }
  0x44   :  { %v1286_v33 = vsel %vm1089_vm6, %v1285_v3, %v1284_v28  ;;  %v1292_v34 = vsel %vm1077_vm2, %v1291_v18, %v1290_v29  ;;  %v180_v35 = vld [vmem:[%s12362_s0 + $0x218] sm:$0x1]  ;;  %v181_v36 = vld [vmem:[%s12362_s0 + $0x21c] sm:$0x1]  ;;  %v1301_v37 = vrot.slane %v175_v26, 7  ;;  %v1303_v38 = vrot.slane %v176_v27, 6 }
  0x45   :  { %7183 = vmatprep.mubr.msk.f32.mxu0 %vm2941_vm7, %v1286_v33  ;;  %v1294_v39 = vsel %vm1080_vm3, %v1293_v19, %v1292_v34  ;;  %v1305_v40 = vrot.slane %v177_v30, 5  ;;  %v1307_v41 = vrot.slane %v178_v31, 4  ;;  %v1309_v42 = vrot.slane %v179_v32, 3  ;;  %v182_v43 = vld [vmem:[%s12362_s0 + $0x220] sm:$0x1] }
  0x46   :  { %v1296_v44 = vsel %vm1083_vm4, %v1295_v20, %v1294_v39  ;;  %v1302_v45 = vsel %vm1071_vm0, %v1301_v37, %v174_v21  ;;  %v1311_v46 = vrot.slane %v180_v35, 2  ;;  %v1313_v47 = vrot.slane %v181_v36, 1  ;;  %v183_v48 = vld [vmem:[%s12362_s0 + $0x224] sm:$0x1]  ;;  %v184_v49 = vld [vmem:[%s12362_s0 + $0x228] sm:$0x1] }
  0x47   :  { %v1298_v50 = vsel %vm1086_vm5, %v1297_v24, %v1296_v44  ;;  %v1304_v51 = vsel %vm1074_vm1, %v1303_v38, %v1302_v45  ;;  %v185_v52 = vld [vmem:[%s12362_s0 + $0x22c] sm:$0x1]  ;;  %v186_v53 = vld [vmem:[%s12362_s0 + $0x230] sm:$0x1]  ;;  %v187_v54 = vld [vmem:[%s12362_s0 + $0x234] sm:$0x1] }
  0x48   :  { %v1300_v55 = vsel %vm1089_vm6, %v1299_v25, %v1298_v50  ;;  %v1306_v56 = vsel %vm1077_vm2, %v1305_v40, %v1304_v51  ;;  %v188_v57 = vld [vmem:[%s12362_s0 + $0x238] sm:$0x1]  ;;  %v189_v58 = vld [vmem:[%s12362_s0 + $0x23c] sm:$0x1]  ;;  %v1315_v59 = vrot.slane %v183_v48, 7  ;;  %v1317_v60 = vrot.slane %v184_v49, 6 }
  0x49   :  { %7184 = vmatmul.mubr.msk.f32.gmra.mrb[14].mxu0 %vm2941_vm7, %v1300_v55  ;;  %v1308_v61 = vsel %vm1080_vm3, %v1307_v41, %v1306_v56  ;;  %v1319_v62 = vrot.slane %v185_v52, 5  ;;  %v1321_v63 = vrot.slane %v186_v53, 4  ;;  %v1323_v0 = vrot.slane %v187_v54, 3  ;;  %v190_v1 = vld [vmem:[%s12362_s0 + $0x240] sm:$0x1] }
  0x4a   :  { %v1310_v2 = vsel %vm1083_vm4, %v1309_v42, %v1308_v61  ;;  %v1316_v3 = vsel %vm1071_vm0, %v1315_v59, %v182_v43  ;;  %v1325_v4 = vrot.slane %v188_v57, 2  ;;  %v1327_v5 = vrot.slane %v189_v58, 1  ;;  %v191_v6 = vld [vmem:[%s12362_s0 + $0x244] sm:$0x1]  ;;  %v192_v7 = vld [vmem:[%s12362_s0 + $0x248] sm:$0x1] }
  0x4b   :  { %v1312_v8 = vsel %vm1086_vm5, %v1311_v46, %v1310_v2  ;;  %v1318_v9 = vsel %vm1074_vm1, %v1317_v60, %v1316_v3  ;;  %v193_v10 = vld [vmem:[%s12362_s0 + $0x24c] sm:$0x1]  ;;  %v194_v11 = vld [vmem:[%s12362_s0 + $0x250] sm:$0x1]  ;;  %v195_v12 = vld [vmem:[%s12362_s0 + $0x254] sm:$0x1] }
  0x4c   :  { %v1314_v13 = vsel %vm1089_vm6, %v1313_v47, %v1312_v8  ;;  %v1320_v14 = vsel %vm1077_vm2, %v1319_v62, %v1318_v9  ;;  %v196_v15 = vld [vmem:[%s12362_s0 + $0x258] sm:$0x1]  ;;  %v197_v16 = vld [vmem:[%s12362_s0 + $0x25c] sm:$0x1]  ;;  %v1329_v17 = vrot.slane %v191_v6, 7  ;;  %v1331_v18 = vrot.slane %v192_v7, 6 }
  0x4d   :  { %7186 = vmatprep.mubr.msk.f32.mxu0 %vm2941_vm7, %v1314_v13  ;;  %v1322_v19 = vsel %vm1080_vm3, %v1321_v63, %v1320_v14  ;;  %v1333_v20 = vrot.slane %v193_v10, 5  ;;  %v1335_v21 = vrot.slane %v194_v11, 4  ;;  %v1337_v22 = vrot.slane %v195_v12, 3  ;;  %v198_v23 = vld [vmem:[%s12362_s0 + $0x260] sm:$0x1] }
  0x4e   :  { %v1324_v24 = vsel %vm1083_vm4, %v1323_v0, %v1322_v19  ;;  %v1330_v25 = vsel %vm1071_vm0, %v1329_v17, %v190_v1  ;;  %v1339_v26 = vrot.slane %v196_v15, 2  ;;  %v1341_v27 = vrot.slane %v197_v16, 1  ;;  %v199_v28 = vld [vmem:[%s12362_s0 + $0x264] sm:$0x1]  ;;  %v200_v29 = vld [vmem:[%s12362_s0 + $0x268] sm:$0x1] }
  0x4f   :  { %v1326_v30 = vsel %vm1086_vm5, %v1325_v4, %v1324_v24  ;;  %v1332_v31 = vsel %vm1074_vm1, %v1331_v18, %v1330_v25  ;;  %v201_v32 = vld [vmem:[%s12362_s0 + $0x26c] sm:$0x1]  ;;  %v202_v33 = vld [vmem:[%s12362_s0 + $0x270] sm:$0x1]  ;;  %v203_v34 = vld [vmem:[%s12362_s0 + $0x274] sm:$0x1] }
  0x50   :  { %v1328_v35 = vsel %vm1089_vm6, %v1327_v5, %v1326_v30  ;;  %v1334_v36 = vsel %vm1077_vm2, %v1333_v20, %v1332_v31  ;;  %v204_v37 = vld [vmem:[%s12362_s0 + $0x278] sm:$0x1]  ;;  %v205_v38 = vld [vmem:[%s12362_s0 + $0x27c] sm:$0x1]  ;;  %v1343_v39 = vrot.slane %v199_v28, 7  ;;  %v1345_v40 = vrot.slane %v200_v29, 6 }
  0x51   :  { %7187 = vmatmul.mubr.msk.f32.gmra.mrb[16].mxu0 %vm2941_vm7, %v1328_v35  ;;  %v1336_v41 = vsel %vm1080_vm3, %v1335_v21, %v1334_v36  ;;  %v1347_v42 = vrot.slane %v201_v32, 5  ;;  %v1349_v43 = vrot.slane %v202_v33, 4  ;;  %v1351_v44 = vrot.slane %v203_v34, 3  ;;  %v206_v45 = vld [vmem:[%s12362_s0 + $0x280] sm:$0x1] }
  0x52   :  { %v1338_v46 = vsel %vm1083_vm4, %v1337_v22, %v1336_v41  ;;  %v1344_v47 = vsel %vm1071_vm0, %v1343_v39, %v198_v23  ;;  %v1353_v48 = vrot.slane %v204_v37, 2  ;;  %v1355_v49 = vrot.slane %v205_v38, 1  ;;  %v207_v50 = vld [vmem:[%s12362_s0 + $0x284] sm:$0x1]  ;;  %v208_v51 = vld [vmem:[%s12362_s0 + $0x288] sm:$0x1] }
  0x53   :  { %v1340_v52 = vsel %vm1086_vm5, %v1339_v26, %v1338_v46  ;;  %v1346_v53 = vsel %vm1074_vm1, %v1345_v40, %v1344_v47  ;;  %v209_v54 = vld [vmem:[%s12362_s0 + $0x28c] sm:$0x1]  ;;  %v210_v55 = vld [vmem:[%s12362_s0 + $0x290] sm:$0x1]  ;;  %v211_v56 = vld [vmem:[%s12362_s0 + $0x294] sm:$0x1] }
  0x54   :  { %v1342_v57 = vsel %vm1089_vm6, %v1341_v27, %v1340_v52  ;;  %v1348_v58 = vsel %vm1077_vm2, %v1347_v42, %v1346_v53  ;;  %v212_v59 = vld [vmem:[%s12362_s0 + $0x298] sm:$0x1]  ;;  %v213_v60 = vld [vmem:[%s12362_s0 + $0x29c] sm:$0x1]  ;;  %v1357_v61 = vrot.slane %v207_v50, 7  ;;  %v1359_v62 = vrot.slane %v208_v51, 6 }
  0x55   :  { %7189 = vmatprep.mubr.msk.f32.mxu0 %vm2941_vm7, %v1342_v57  ;;  %v1350_v63 = vsel %vm1080_vm3, %v1349_v43, %v1348_v58  ;;  %v1361_v0 = vrot.slane %v209_v54, 5  ;;  %v1363_v1 = vrot.slane %v210_v55, 4  ;;  %v1365_v2 = vrot.slane %v211_v56, 3  ;;  %v214_v3 = vld [vmem:[%s12362_s0 + $0x2a0] sm:$0x1] }
  0x56   :  { %v1352_v4 = vsel %vm1083_vm4, %v1351_v44, %v1350_v63  ;;  %v1358_v5 = vsel %vm1071_vm0, %v1357_v61, %v206_v45  ;;  %v1367_v6 = vrot.slane %v212_v59, 2  ;;  %v1369_v7 = vrot.slane %v213_v60, 1  ;;  %v215_v8 = vld [vmem:[%s12362_s0 + $0x2a4] sm:$0x1]  ;;  %v216_v9 = vld [vmem:[%s12362_s0 + $0x2a8] sm:$0x1] }
  0x57   :  { %v1354_v10 = vsel %vm1086_vm5, %v1353_v48, %v1352_v4  ;;  %v1360_v11 = vsel %vm1074_vm1, %v1359_v62, %v1358_v5  ;;  %v217_v12 = vld [vmem:[%s12362_s0 + $0x2ac] sm:$0x1]  ;;  %v218_v13 = vld [vmem:[%s12362_s0 + $0x2b0] sm:$0x1]  ;;  %v219_v14 = vld [vmem:[%s12362_s0 + $0x2b4] sm:$0x1] }
  0x58   :  { %v1356_v15 = vsel %vm1089_vm6, %v1355_v49, %v1354_v10  ;;  %v1362_v16 = vsel %vm1077_vm2, %v1361_v0, %v1360_v11  ;;  %v220_v17 = vld [vmem:[%s12362_s0 + $0x2b8] sm:$0x1]  ;;  %v221_v18 = vld [vmem:[%s12362_s0 + $0x2bc] sm:$0x1]  ;;  %v1371_v19 = vrot.slane %v215_v8, 7  ;;  %v1373_v20 = vrot.slane %v216_v9, 6 }
  0x59   :  { %7190 = vmatmul.mubr.msk.f32.gmra.mrb[18].mxu0 %vm2941_vm7, %v1356_v15  ;;  %v1364_v21 = vsel %vm1080_vm3, %v1363_v1, %v1362_v16  ;;  %v1375_v22 = vrot.slane %v217_v12, 5  ;;  %v1377_v23 = vrot.slane %v218_v13, 4  ;;  %v1379_v24 = vrot.slane %v219_v14, 3  ;;  %v222_v25 = vld [vmem:[%s12362_s0 + $0x2c0] sm:$0x1] }
  0x5a   :  { %v1366_v26 = vsel %vm1083_vm4, %v1365_v2, %v1364_v21  ;;  %v1372_v27 = vsel %vm1071_vm0, %v1371_v19, %v214_v3  ;;  %v1381_v28 = vrot.slane %v220_v17, 2  ;;  %v1383_v29 = vrot.slane %v221_v18, 1  ;;  %v223_v30 = vld [vmem:[%s12362_s0 + $0x2c4] sm:$0x1]  ;;  %v224_v31 = vld [vmem:[%s12362_s0 + $0x2c8] sm:$0x1] }
  0x5b   :  { %v1368_v32 = vsel %vm1086_vm5, %v1367_v6, %v1366_v26  ;;  %v1374_v33 = vsel %vm1074_vm1, %v1373_v20, %v1372_v27  ;;  %v225_v34 = vld [vmem:[%s12362_s0 + $0x2cc] sm:$0x1]  ;;  %v226_v35 = vld [vmem:[%s12362_s0 + $0x2d0] sm:$0x1]  ;;  %v227_v36 = vld [vmem:[%s12362_s0 + $0x2d4] sm:$0x1] }
  0x5c   :  { %v1370_v37 = vsel %vm1089_vm6, %v1369_v7, %v1368_v32  ;;  %v1376_v38 = vsel %vm1077_vm2, %v1375_v22, %v1374_v33  ;;  %v228_v39 = vld [vmem:[%s12362_s0 + $0x2d8] sm:$0x1]  ;;  %v229_v40 = vld [vmem:[%s12362_s0 + $0x2dc] sm:$0x1]  ;;  %v1385_v41 = vrot.slane %v223_v30, 7  ;;  %v1387_v42 = vrot.slane %v224_v31, 6 }
  0x5d   :  { %7192 = vmatprep.mubr.msk.f32.mxu0 %vm2941_vm7, %v1370_v37  ;;  %v1378_v43 = vsel %vm1080_vm3, %v1377_v23, %v1376_v38  ;;  %v1389_v44 = vrot.slane %v225_v34, 5  ;;  %v1391_v45 = vrot.slane %v226_v35, 4  ;;  %v1393_v46 = vrot.slane %v227_v36, 3  ;;  %v230_v47 = vld [vmem:[%s12362_s0 + $0x2e0] sm:$0x1] }
  0x5e   :  { %v1380_v48 = vsel %vm1083_vm4, %v1379_v24, %v1378_v43  ;;  %v1386_v49 = vsel %vm1071_vm0, %v1385_v41, %v222_v25  ;;  %v1395_v50 = vrot.slane %v228_v39, 2  ;;  %v1397_v51 = vrot.slane %v229_v40, 1  ;;  %v231_v52 = vld [vmem:[%s12362_s0 + $0x2e4] sm:$0x1]  ;;  %v232_v53 = vld [vmem:[%s12362_s0 + $0x2e8] sm:$0x1] }
  0x5f   :  { %v1382_v54 = vsel %vm1086_vm5, %v1381_v28, %v1380_v48  ;;  %v1388_v55 = vsel %vm1074_vm1, %v1387_v42, %v1386_v49  ;;  %v233_v56 = vld [vmem:[%s12362_s0 + $0x2ec] sm:$0x1]  ;;  %v234_v57 = vld [vmem:[%s12362_s0 + $0x2f0] sm:$0x1]  ;;  %v235_v58 = vld [vmem:[%s12362_s0 + $0x2f4] sm:$0x1] }
  0x60   :  { %v1384_v59 = vsel %vm1089_vm6, %v1383_v29, %v1382_v54  ;;  %v1390_v60 = vsel %vm1077_vm2, %v1389_v44, %v1388_v55  ;;  %v236_v61 = vld [vmem:[%s12362_s0 + $0x2f8] sm:$0x1]  ;;  %v237_v62 = vld [vmem:[%s12362_s0 + $0x2fc] sm:$0x1]  ;;  %v1399_v63 = vrot.slane %v231_v52, 7  ;;  %v1401_v0 = vrot.slane %v232_v53, 6 }
  0x61   :  { %7193 = vmatmul.mubr.msk.f32.gmra.mrb[20].mxu0 %vm2941_vm7, %v1384_v59  ;;  %v1392_v1 = vsel %vm1080_vm3, %v1391_v45, %v1390_v60  ;;  %v1403_v2 = vrot.slane %v233_v56, 5  ;;  %v1405_v3 = vrot.slane %v234_v57, 4  ;;  %v1407_v4 = vrot.slane %v235_v58, 3  ;;  %v238_v5 = vld [vmem:[%s12362_s0 + $0x300] sm:$0x1] }
  0x62   :  { %v1394_v6 = vsel %vm1083_vm4, %v1393_v46, %v1392_v1  ;;  %v1400_v7 = vsel %vm1071_vm0, %v1399_v63, %v230_v47  ;;  %v1409_v8 = vrot.slane %v236_v61, 2  ;;  %v1411_v9 = vrot.slane %v237_v62, 1  ;;  %v239_v10 = vld [vmem:[%s12362_s0 + $0x304] sm:$0x1]  ;;  %v240_v11 = vld [vmem:[%s12362_s0 + $0x308] sm:$0x1] }
  0x63   :  { %v1396_v12 = vsel %vm1086_vm5, %v1395_v50, %v1394_v6  ;;  %v1402_v13 = vsel %vm1074_vm1, %v1401_v0, %v1400_v7  ;;  %v241_v14 = vld [vmem:[%s12362_s0 + $0x30c] sm:$0x1]  ;;  %v242_v15 = vld [vmem:[%s12362_s0 + $0x310] sm:$0x1]  ;;  %v243_v16 = vld [vmem:[%s12362_s0 + $0x314] sm:$0x1] }
  0x64   :  { %v1398_v17 = vsel %vm1089_vm6, %v1397_v51, %v1396_v12  ;;  %v1404_v18 = vsel %vm1077_vm2, %v1403_v2, %v1402_v13  ;;  %v244_v19 = vld [vmem:[%s12362_s0 + $0x318] sm:$0x1]  ;;  %v245_v20 = vld [vmem:[%s12362_s0 + $0x31c] sm:$0x1]  ;;  %v1413_v21 = vrot.slane %v239_v10, 7  ;;  %v1415_v22 = vrot.slane %v240_v11, 6 }
  0x65   :  { %7195 = vmatprep.mubr.msk.f32.mxu0 %vm2941_vm7, %v1398_v17  ;;  %v1406_v23 = vsel %vm1080_vm3, %v1405_v3, %v1404_v18  ;;  %v1417_v24 = vrot.slane %v241_v14, 5  ;;  %v1419_v25 = vrot.slane %v242_v15, 4  ;;  %v1421_v26 = vrot.slane %v243_v16, 3  ;;  %v246_v27 = vld [vmem:[%s12362_s0 + $0x320] sm:$0x1] }
  0x66   :  { %v1408_v28 = vsel %vm1083_vm4, %v1407_v4, %v1406_v23  ;;  %v1414_v29 = vsel %vm1071_vm0, %v1413_v21, %v238_v5  ;;  %v1423_v30 = vrot.slane %v244_v19, 2  ;;  %v1425_v31 = vrot.slane %v245_v20, 1  ;;  %v247_v32 = vld [vmem:[%s12362_s0 + $0x324] sm:$0x1]  ;;  %v248_v33 = vld [vmem:[%s12362_s0 + $0x328] sm:$0x1] }
  0x67   :  { %v1410_v34 = vsel %vm1086_vm5, %v1409_v8, %v1408_v28  ;;  %v1416_v35 = vsel %vm1074_vm1, %v1415_v22, %v1414_v29  ;;  %v249_v36 = vld [vmem:[%s12362_s0 + $0x32c] sm:$0x1]  ;;  %v250_v37 = vld [vmem:[%s12362_s0 + $0x330] sm:$0x1]  ;;  %v251_v38 = vld [vmem:[%s12362_s0 + $0x334] sm:$0x1] }
  0x68   :  { %v1412_v39 = vsel %vm1089_vm6, %v1411_v9, %v1410_v34  ;;  %v1418_v40 = vsel %vm1077_vm2, %v1417_v24, %v1416_v35  ;;  %v252_v41 = vld [vmem:[%s12362_s0 + $0x338] sm:$0x1]  ;;  %v253_v42 = vld [vmem:[%s12362_s0 + $0x33c] sm:$0x1]  ;;  %v1427_v43 = vrot.slane %v247_v32, 7  ;;  %v1429_v44 = vrot.slane %v248_v33, 6 }
  0x69   :  { %7196 = vmatmul.mubr.msk.f32.gmra.mrb[22].mxu0 %vm2941_vm7, %v1412_v39  ;;  %v1420_v45 = vsel %vm1080_vm3, %v1419_v25, %v1418_v40  ;;  %v1431_v46 = vrot.slane %v249_v36, 5  ;;  %v1433_v47 = vrot.slane %v250_v37, 4  ;;  %v1435_v48 = vrot.slane %v251_v38, 3  ;;  %v254_v49 = vld [vmem:[%s12362_s0 + $0x340] sm:$0x1] }
  0x6a   :  { %v1422_v50 = vsel %vm1083_vm4, %v1421_v26, %v1420_v45  ;;  %v1428_v51 = vsel %vm1071_vm0, %v1427_v43, %v246_v27  ;;  %v1437_v52 = vrot.slane %v252_v41, 2  ;;  %v1439_v53 = vrot.slane %v253_v42, 1  ;;  %v255_v54 = vld [vmem:[%s12362_s0 + $0x344] sm:$0x1]  ;;  %v256_v55 = vld [vmem:[%s12362_s0 + $0x348] sm:$0x1] }
  0x6b   :  { %v1424_v56 = vsel %vm1086_vm5, %v1423_v30, %v1422_v50  ;;  %v1430_v57 = vsel %vm1074_vm1, %v1429_v44, %v1428_v51  ;;  %v257_v58 = vld [vmem:[%s12362_s0 + $0x34c] sm:$0x1]  ;;  %v258_v59 = vld [vmem:[%s12362_s0 + $0x350] sm:$0x1]  ;;  %v259_v60 = vld [vmem:[%s12362_s0 + $0x354] sm:$0x1] }
  0x6c   :  { %v1426_v61 = vsel %vm1089_vm6, %v1425_v31, %v1424_v56  ;;  %v1432_v62 = vsel %vm1077_vm2, %v1431_v46, %v1430_v57  ;;  %v260_v63 = vld [vmem:[%s12362_s0 + $0x358] sm:$0x1]  ;;  %v261_v0 = vld [vmem:[%s12362_s0 + $0x35c] sm:$0x1]  ;;  %v1441_v1 = vrot.slane %v255_v54, 7  ;;  %v1443_v2 = vrot.slane %v256_v55, 6 }
  0x6d   :  { %7198 = vmatprep.mubr.msk.f32.mxu0 %vm2941_vm7, %v1426_v61  ;;  %v1434_v3 = vsel %vm1080_vm3, %v1433_v47, %v1432_v62  ;;  %v1445_v4 = vrot.slane %v257_v58, 5  ;;  %v1447_v5 = vrot.slane %v258_v59, 4  ;;  %v1449_v6 = vrot.slane %v259_v60, 3  ;;  %v262_v7 = vld [vmem:[%s12362_s0 + $0x360] sm:$0x1] }
  0x6e   :  { %v1436_v8 = vsel %vm1083_vm4, %v1435_v48, %v1434_v3  ;;  %v1442_v9 = vsel %vm1071_vm0, %v1441_v1, %v254_v49  ;;  %v1451_v10 = vrot.slane %v260_v63, 2  ;;  %v1453_v11 = vrot.slane %v261_v0, 1  ;;  %v263_v12 = vld [vmem:[%s12362_s0 + $0x364] sm:$0x1]  ;;  %v264_v13 = vld [vmem:[%s12362_s0 + $0x368] sm:$0x1] }
  0x6f   :  { %v1438_v14 = vsel %vm1086_vm5, %v1437_v52, %v1436_v8  ;;  %v1444_v15 = vsel %vm1074_vm1, %v1443_v2, %v1442_v9  ;;  %v265_v16 = vld [vmem:[%s12362_s0 + $0x36c] sm:$0x1]  ;;  %v266_v17 = vld [vmem:[%s12362_s0 + $0x370] sm:$0x1]  ;;  %v267_v18 = vld [vmem:[%s12362_s0 + $0x374] sm:$0x1] }
  0x70   :  { %v1440_v19 = vsel %vm1089_vm6, %v1439_v53, %v1438_v14  ;;  %v1446_v20 = vsel %vm1077_vm2, %v1445_v4, %v1444_v15  ;;  %v268_v21 = vld [vmem:[%s12362_s0 + $0x378] sm:$0x1]  ;;  %v269_v22 = vld [vmem:[%s12362_s0 + $0x37c] sm:$0x1]  ;;  %v1455_v23 = vrot.slane %v263_v12, 7  ;;  %v1457_v24 = vrot.slane %v264_v13, 6 }
  0x71   :  { %7199 = vmatmul.mubr.msk.f32.gmra.mrb[24].mxu0 %vm2941_vm7, %v1440_v19  ;;  %v1448_v25 = vsel %vm1080_vm3, %v1447_v5, %v1446_v20  ;;  %v1459_v26 = vrot.slane %v265_v16, 5  ;;  %v1461_v27 = vrot.slane %v266_v17, 4  ;;  %v1463_v28 = vrot.slane %v267_v18, 3  ;;  %v270_v29 = vld [vmem:[%s12362_s0 + $0x380] sm:$0x1] }
  0x72   :  { %v1450_v30 = vsel %vm1083_vm4, %v1449_v6, %v1448_v25  ;;  %v1456_v31 = vsel %vm1071_vm0, %v1455_v23, %v262_v7  ;;  %v1465_v32 = vrot.slane %v268_v21, 2  ;;  %v1467_v33 = vrot.slane %v269_v22, 1  ;;  %v271_v34 = vld [vmem:[%s12362_s0 + $0x384] sm:$0x1]  ;;  %v272_v35 = vld [vmem:[%s12362_s0 + $0x388] sm:$0x1] }
  0x73   :  { %v1452_v36 = vsel %vm1086_vm5, %v1451_v10, %v1450_v30  ;;  %v1458_v37 = vsel %vm1074_vm1, %v1457_v24, %v1456_v31  ;;  %v273_v38 = vld [vmem:[%s12362_s0 + $0x38c] sm:$0x1]  ;;  %v274_v39 = vld [vmem:[%s12362_s0 + $0x390] sm:$0x1]  ;;  %v275_v40 = vld [vmem:[%s12362_s0 + $0x394] sm:$0x1] }
  0x74   :  { %v1454_v41 = vsel %vm1089_vm6, %v1453_v11, %v1452_v36  ;;  %v1460_v42 = vsel %vm1077_vm2, %v1459_v26, %v1458_v37  ;;  %v276_v43 = vld [vmem:[%s12362_s0 + $0x398] sm:$0x1]  ;;  %v277_v44 = vld [vmem:[%s12362_s0 + $0x39c] sm:$0x1]  ;;  %v1469_v45 = vrot.slane %v271_v34, 7  ;;  %v1471_v46 = vrot.slane %v272_v35, 6 }
  0x75   :  { %7201 = vmatprep.mubr.msk.f32.mxu0 %vm2941_vm7, %v1454_v41  ;;  %v1462_v47 = vsel %vm1080_vm3, %v1461_v27, %v1460_v42  ;;  %v1473_v48 = vrot.slane %v273_v38, 5  ;;  %v1475_v49 = vrot.slane %v274_v39, 4  ;;  %v1477_v50 = vrot.slane %v275_v40, 3  ;;  %v278_v51 = vld [vmem:[%s12362_s0 + $0x3a0] sm:$0x1] }
  0x76   :  { %v1464_v52 = vsel %vm1083_vm4, %v1463_v28, %v1462_v47  ;;  %v1470_v53 = vsel %vm1071_vm0, %v1469_v45, %v270_v29  ;;  %v1479_v54 = vrot.slane %v276_v43, 2  ;;  %v1481_v55 = vrot.slane %v277_v44, 1  ;;  %v279_v56 = vld [vmem:[%s12362_s0 + $0x3a4] sm:$0x1]  ;;  %v280_v57 = vld [vmem:[%s12362_s0 + $0x3a8] sm:$0x1] }
  0x77   :  { %v1466_v58 = vsel %vm1086_vm5, %v1465_v32, %v1464_v52  ;;  %v1472_v59 = vsel %vm1074_vm1, %v1471_v46, %v1470_v53  ;;  %v281_v60 = vld [vmem:[%s12362_s0 + $0x3ac] sm:$0x1]  ;;  %v282_v61 = vld [vmem:[%s12362_s0 + $0x3b0] sm:$0x1]  ;;  %v283_v62 = vld [vmem:[%s12362_s0 + $0x3b4] sm:$0x1] }
  0x78   :  { %v1468_v63 = vsel %vm1089_vm6, %v1467_v33, %v1466_v58  ;;  %v1474_v0 = vsel %vm1077_vm2, %v1473_v48, %v1472_v59  ;;  %v284_v1 = vld [vmem:[%s12362_s0 + $0x3b8] sm:$0x1]  ;;  %v285_v2 = vld [vmem:[%s12362_s0 + $0x3bc] sm:$0x1]  ;;  %v1483_v3 = vrot.slane %v279_v56, 7  ;;  %v1485_v4 = vrot.slane %v280_v57, 6 }
  0x79   :  { %7202 = vmatmul.mubr.msk.f32.gmra.mrb[26].mxu0 %vm2941_vm7, %v1468_v63  ;;  %v1476_v5 = vsel %vm1080_vm3, %v1475_v49, %v1474_v0  ;;  %v1487_v6 = vrot.slane %v281_v60, 5  ;;  %v1489_v7 = vrot.slane %v282_v61, 4  ;;  %v1491_v8 = vrot.slane %v283_v62, 3  ;;  %v286_v9 = vld [vmem:[%s12362_s0 + $0x3c0] sm:$0x1] }
  0x7a   :  { %v1478_v10 = vsel %vm1083_vm4, %v1477_v50, %v1476_v5  ;;  %v1484_v11 = vsel %vm1071_vm0, %v1483_v3, %v278_v51  ;;  %v1493_v12 = vrot.slane %v284_v1, 2  ;;  %v1495_v13 = vrot.slane %v285_v2, 1  ;;  %v287_v14 = vld [vmem:[%s12362_s0 + $0x3c4] sm:$0x1]  ;;  %v288_v15 = vld [vmem:[%s12362_s0 + $0x3c8] sm:$0x1] }
  0x7b   :  { %v1480_v16 = vsel %vm1086_vm5, %v1479_v54, %v1478_v10  ;;  %v1486_v17 = vsel %vm1074_vm1, %v1485_v4, %v1484_v11  ;;  %v289_v18 = vld [vmem:[%s12362_s0 + $0x3cc] sm:$0x1]  ;;  %v290_v19 = vld [vmem:[%s12362_s0 + $0x3d0] sm:$0x1]  ;;  %v291_v20 = vld [vmem:[%s12362_s0 + $0x3d4] sm:$0x1] }
  0x7c   :  { %v1482_v21 = vsel %vm1089_vm6, %v1481_v55, %v1480_v16  ;;  %v1488_v22 = vsel %vm1077_vm2, %v1487_v6, %v1486_v17  ;;  %v292_v23 = vld [vmem:[%s12362_s0 + $0x3d8] sm:$0x1]  ;;  %v293_v24 = vld [vmem:[%s12362_s0 + $0x3dc] sm:$0x1]  ;;  %v1497_v25 = vrot.slane %v287_v14, 7  ;;  %v1499_v26 = vrot.slane %v288_v15, 6 }
  0x7d   :  { %7204 = vmatprep.mubr.msk.f32.mxu0 %vm2941_vm7, %v1482_v21  ;;  %v1490_v27 = vsel %vm1080_vm3, %v1489_v7, %v1488_v22  ;;  %v1501_v28 = vrot.slane %v289_v18, 5  ;;  %v1503_v29 = vrot.slane %v290_v19, 4  ;;  %v1505_v30 = vrot.slane %v291_v20, 3  ;;  %v294_v31 = vld [vmem:[%s12362_s0 + $0x3e0] sm:$0x1] }
  0x7e   :  { %v1492_v32 = vsel %vm1083_vm4, %v1491_v8, %v1490_v27  ;;  %v1498_v33 = vsel %vm1071_vm0, %v1497_v25, %v286_v9  ;;  %v1507_v34 = vrot.slane %v292_v23, 2  ;;  %v1509_v35 = vrot.slane %v293_v24, 1  ;;  %v295_v36 = vld [vmem:[%s12362_s0 + $0x3e4] sm:$0x1]  ;;  %v296_v37 = vld [vmem:[%s12362_s0 + $0x3e8] sm:$0x1] }
  0x7f   :  { %v1494_v38 = vsel %vm1086_vm5, %v1493_v12, %v1492_v32  ;;  %v1500_v39 = vsel %vm1074_vm1, %v1499_v26, %v1498_v33  ;;  %v297_v40 = vld [vmem:[%s12362_s0 + $0x3ec] sm:$0x1]  ;;  %v298_v41 = vld [vmem:[%s12362_s0 + $0x3f0] sm:$0x1]  ;;  %v299_v42 = vld [vmem:[%s12362_s0 + $0x3f4] sm:$0x1] }
  0x80   :  { %v1496_v43 = vsel %vm1089_vm6, %v1495_v13, %v1494_v38  ;;  %v1502_v44 = vsel %vm1077_vm2, %v1501_v28, %v1500_v39  ;;  %v300_v45 = vld [vmem:[%s12362_s0 + $0x3f8] sm:$0x1]  ;;  %v301_v46 = vld [vmem:[%s12362_s0 + $0x3fc] sm:$0x1]  ;;  %v1511_v47 = vrot.slane %v295_v36, 7  ;;  %v1513_v48 = vrot.slane %v296_v37, 6 }
  0x81   :  { %7205 = vmatmul.mubr.msk.f32.gmra.mrb[28].mxu0 %vm2941_vm7, %v1496_v43  ;;  %v1504_v49 = vsel %vm1080_vm3, %v1503_v29, %v1502_v44  ;;  %v1515_v50 = vrot.slane %v297_v40, 5  ;;  %v1517_v51 = vrot.slane %v298_v41, 4  ;;  %v1519_v52 = vrot.slane %v299_v42, 3  ;;  %v302_v53 = vld [vmem:[%s12362_s0 + $0x1] sm:$0x1] }
  0x82   :  { %v1506_v54 = vsel %vm1083_vm4, %v1505_v30, %v1504_v49  ;;  %v1512_v55 = vsel %vm1071_vm0, %v1511_v47, %v294_v31  ;;  %v1521_v56 = vrot.slane %v300_v45, 2  ;;  %v1523_v57 = vrot.slane %v301_v46, 1  ;;  %v303_v58 = vld [vmem:[%s12362_s0 + $0x5] sm:$0x1]  ;;  %v304_v59 = vld [vmem:[%s12362_s0 + $0x9] sm:$0x1] }
  0x83   :  { %v1508_v60 = vsel %vm1086_vm5, %v1507_v34, %v1506_v54  ;;  %v1514_v61 = vsel %vm1074_vm1, %v1513_v48, %v1512_v55  ;;  %v305_v62 = vld [vmem:[%s12362_s0 + $0xd] sm:$0x1]  ;;  %v306_v63 = vld [vmem:[%s12362_s0 + $0x11] sm:$0x1]  ;;  %v307_v0 = vld [vmem:[%s12362_s0 + $0x15] sm:$0x1] }
  0x84   :  { %v1510_v1 = vsel %vm1089_vm6, %v1509_v35, %v1508_v60  ;;  %v1516_v2 = vsel %vm1077_vm2, %v1515_v50, %v1514_v61  ;;  %v308_v3 = vld [vmem:[%s12362_s0 + $0x19] sm:$0x1]  ;;  %v309_v4 = vld [vmem:[%s12362_s0 + $0x1d] sm:$0x1]  ;;  %v1781_v5 = vrot.slane %v303_v58, 7  ;;  %v1783_v6 = vrot.slane %v304_v59, 6 }
  0x85   :  { %7207 = vmatprep.mubr.msk.f32.mxu0 %vm2941_vm7, %v1510_v1  ;;  %v1518_v7 = vsel %vm1080_vm3, %v1517_v51, %v1516_v2  ;;  %v1785_v8 = vrot.slane %v305_v62, 5  ;;  %v1787_v9 = vrot.slane %v306_v63, 4  ;;  %v1789_v10 = vrot.slane %v307_v0, 3  ;;  %v310_v11 = vld [vmem:[%s12362_s0 + $0x21] sm:$0x1] }
  0x86   :  { %v1520_v12 = vsel %vm1083_vm4, %v1519_v52, %v1518_v7  ;;  %v1782_v13 = vsel %vm1071_vm0, %v1781_v5, %v302_v53  ;;  %v1791_v14 = vrot.slane %v308_v3, 2  ;;  %v1793_v15 = vrot.slane %v309_v4, 1  ;;  %v311_v16 = vld [vmem:[%s12362_s0 + $0x25] sm:$0x1]  ;;  %v312_v17 = vld [vmem:[%s12362_s0 + $0x29] sm:$0x1] }
  0x87   :  { %v1522_v18 = vsel %vm1086_vm5, %v1521_v56, %v1520_v12  ;;  %v1784_v19 = vsel %vm1074_vm1, %v1783_v6, %v1782_v13  ;;  %v313_v20 = vld [vmem:[%s12362_s0 + $0x2d] sm:$0x1]  ;;  %v314_v21 = vld [vmem:[%s12362_s0 + $0x31] sm:$0x1]  ;;  %v315_v22 = vld [vmem:[%s12362_s0 + $0x35] sm:$0x1] }
  0x88   :  { %v1524_v23 = vsel %vm1089_vm6, %v1523_v57, %v1522_v18  ;;  %v1786_v24 = vsel %vm1077_vm2, %v1785_v8, %v1784_v19  ;;  %v316_v25 = vld [vmem:[%s12362_s0 + $0x39] sm:$0x1]  ;;  %v317_v26 = vld [vmem:[%s12362_s0 + $0x3d] sm:$0x1]  ;;  %v1795_v27 = vrot.slane %v311_v16, 7  ;;  %v1797_v28 = vrot.slane %v312_v17, 6 }
  0x89   :  { %7208 = vmatmul.mubr.msk.f32.gmra.mrb[30].mxu0 %vm2941_vm7, %v1524_v23  ;;  %v1788_v29 = vsel %vm1080_vm3, %v1787_v9, %v1786_v24  ;;  %v1799_v30 = vrot.slane %v313_v20, 5  ;;  %v1801_v31 = vrot.slane %v314_v21, 4  ;;  %v1803_v32 = vrot.slane %v315_v22, 3  ;;  %v318_v33 = vld [vmem:[%s12362_s0 + $0x41] sm:$0x1] }
  0x8a   :  { %v1790_v34 = vsel %vm1083_vm4, %v1789_v10, %v1788_v29  ;;  %v1796_v35 = vsel %vm1071_vm0, %v1795_v27, %v310_v11  ;;  %v1805_v36 = vrot.slane %v316_v25, 2  ;;  %v1807_v37 = vrot.slane %v317_v26, 1  ;;  %v319_v38 = vld [vmem:[%s12362_s0 + $0x45] sm:$0x1]  ;;  %v320_v39 = vld [vmem:[%s12362_s0 + $0x49] sm:$0x1] }
  0x8b   :  { %v1792_v40 = vsel %vm1086_vm5, %v1791_v14, %v1790_v34  ;;  %v1798_v41 = vsel %vm1074_vm1, %v1797_v28, %v1796_v35  ;;  %v321_v42 = vld [vmem:[%s12362_s0 + $0x4d] sm:$0x1]  ;;  %v322_v43 = vld [vmem:[%s12362_s0 + $0x51] sm:$0x1]  ;;  %v323_v44 = vld [vmem:[%s12362_s0 + $0x55] sm:$0x1] }
  0x8c   :  { %v1794_v45 = vsel %vm1089_vm6, %v1793_v15, %v1792_v40  ;;  %v1800_v46 = vsel %vm1077_vm2, %v1799_v30, %v1798_v41  ;;  %v324_v47 = vld [vmem:[%s12362_s0 + $0x59] sm:$0x1]  ;;  %v325_v48 = vld [vmem:[%s12362_s0 + $0x5d] sm:$0x1]  ;;  %v1809_v49 = vrot.slane %v319_v38, 7  ;;  %v1811_v50 = vrot.slane %v320_v39, 6 }
  0x8d   :  { %7210 = vmatprep.mubr.msk.f32.mxu0 %vm2941_vm7, %v1794_v45  ;;  %v1802_v51 = vsel %vm1080_vm3, %v1801_v31, %v1800_v46  ;;  %v1813_v52 = vrot.slane %v321_v42, 5  ;;  %v1815_v53 = vrot.slane %v322_v43, 4  ;;  %v1817_v54 = vrot.slane %v323_v44, 3  ;;  %v326_v55 = vld [vmem:[%s12362_s0 + $0x61] sm:$0x1] }
  0x8e   :  { %v1804_v56 = vsel %vm1083_vm4, %v1803_v32, %v1802_v51  ;;  %v1810_v57 = vsel %vm1071_vm0, %v1809_v49, %v318_v33  ;;  %v1819_v58 = vrot.slane %v324_v47, 2  ;;  %v1821_v59 = vrot.slane %v325_v48, 1  ;;  %v327_v60 = vld [vmem:[%s12362_s0 + $0x65] sm:$0x1]  ;;  %v328_v61 = vld [vmem:[%s12362_s0 + $0x69] sm:$0x1] }
  0x8f   :  { %v1806_v62 = vsel %vm1086_vm5, %v1805_v36, %v1804_v56  ;;  %v1812_v63 = vsel %vm1074_vm1, %v1811_v50, %v1810_v57  ;;  %v329_v0 = vld [vmem:[%s12362_s0 + $0x6d] sm:$0x1]  ;;  %v330_v1 = vld [vmem:[%s12362_s0 + $0x71] sm:$0x1]  ;;  %v331_v2 = vld [vmem:[%s12362_s0 + $0x75] sm:$0x1] }
  0x90   :  { %v1808_v3 = vsel %vm1089_vm6, %v1807_v37, %v1806_v62  ;;  %v1814_v4 = vsel %vm1077_vm2, %v1813_v52, %v1812_v63  ;;  %v332_v5 = vld [vmem:[%s12362_s0 + $0x79] sm:$0x1]  ;;  %v333_v6 = vld [vmem:[%s12362_s0 + $0x7d] sm:$0x1]  ;;  %v1823_v7 = vrot.slane %v327_v60, 7  ;;  %v1825_v8 = vrot.slane %v328_v61, 6 }
  0x91   :  { %7211 = vmatmul.mubr.msk.f32.gmra.mrb[32].mxu0 %vm2941_vm7, %v1808_v3  ;;  %v1816_v9 = vsel %vm1080_vm3, %v1815_v53, %v1814_v4  ;;  %v1827_v10 = vrot.slane %v329_v0, 5  ;;  %v1829_v11 = vrot.slane %v330_v1, 4  ;;  %v1831_v12 = vrot.slane %v331_v2, 3  ;;  %v334_v13 = vld [vmem:[%s12362_s0 + $0x81] sm:$0x1] }
  0x92   :  { %v1818_v14 = vsel %vm1083_vm4, %v1817_v54, %v1816_v9  ;;  %v1824_v15 = vsel %vm1071_vm0, %v1823_v7, %v326_v55  ;;  %v1833_v16 = vrot.slane %v332_v5, 2  ;;  %v1835_v17 = vrot.slane %v333_v6, 1  ;;  %v335_v18 = vld [vmem:[%s12362_s0 + $0x85] sm:$0x1]  ;;  %v336_v19 = vld [vmem:[%s12362_s0 + $0x89] sm:$0x1] }
  0x93   :  { %v1820_v20 = vsel %vm1086_vm5, %v1819_v58, %v1818_v14  ;;  %v1826_v21 = vsel %vm1074_vm1, %v1825_v8, %v1824_v15  ;;  %v337_v22 = vld [vmem:[%s12362_s0 + $0x8d] sm:$0x1]  ;;  %v338_v23 = vld [vmem:[%s12362_s0 + $0x91] sm:$0x1]  ;;  %v339_v24 = vld [vmem:[%s12362_s0 + $0x95] sm:$0x1] }
  0x94   :  { %v1822_v25 = vsel %vm1089_vm6, %v1821_v59, %v1820_v20  ;;  %v1828_v26 = vsel %vm1077_vm2, %v1827_v10, %v1826_v21  ;;  %v340_v27 = vld [vmem:[%s12362_s0 + $0x99] sm:$0x1]  ;;  %v341_v28 = vld [vmem:[%s12362_s0 + $0x9d] sm:$0x1]  ;;  %v1837_v29 = vrot.slane %v335_v18, 7  ;;  %v1839_v30 = vrot.slane %v336_v19, 6 }
  0x95   :  { %7213 = vmatprep.mubr.msk.f32.mxu0 %vm2941_vm7, %v1822_v25  ;;  %v1830_v31 = vsel %vm1080_vm3, %v1829_v11, %v1828_v26  ;;  %v1841_v32 = vrot.slane %v337_v22, 5  ;;  %v1843_v33 = vrot.slane %v338_v23, 4  ;;  %v1845_v34 = vrot.slane %v339_v24, 3  ;;  %v342_v35 = vld [vmem:[%s12362_s0 + $0xa1] sm:$0x1] }
  0x96   :  { %v1832_v36 = vsel %vm1083_vm4, %v1831_v12, %v1830_v31  ;;  %v1838_v37 = vsel %vm1071_vm0, %v1837_v29, %v334_v13  ;;  %v1847_v38 = vrot.slane %v340_v27, 2  ;;  %v1849_v39 = vrot.slane %v341_v28, 1  ;;  %v343_v40 = vld [vmem:[%s12362_s0 + $0xa5] sm:$0x1]  ;;  %v344_v41 = vld [vmem:[%s12362_s0 + $0xa9] sm:$0x1] }
  0x97   :  { %v1834_v42 = vsel %vm1086_vm5, %v1833_v16, %v1832_v36  ;;  %v1840_v43 = vsel %vm1074_vm1, %v1839_v30, %v1838_v37  ;;  %v345_v44 = vld [vmem:[%s12362_s0 + $0xad] sm:$0x1]  ;;  %v346_v45 = vld [vmem:[%s12362_s0 + $0xb1] sm:$0x1]  ;;  %v347_v46 = vld [vmem:[%s12362_s0 + $0xb5] sm:$0x1] }
  0x98   :  { %v1836_v47 = vsel %vm1089_vm6, %v1835_v17, %v1834_v42  ;;  %v1842_v48 = vsel %vm1077_vm2, %v1841_v32, %v1840_v43  ;;  %v348_v49 = vld [vmem:[%s12362_s0 + $0xb9] sm:$0x1]  ;;  %v349_v50 = vld [vmem:[%s12362_s0 + $0xbd] sm:$0x1]  ;;  %v1851_v51 = vrot.slane %v343_v40, 7  ;;  %v1853_v52 = vrot.slane %v344_v41, 6 }
  0x99   :  { %7214 = vmatmul.mubr.msk.f32.gmra.mrb[34].mxu0 %vm2941_vm7, %v1836_v47  ;;  %v1844_v53 = vsel %vm1080_vm3, %v1843_v33, %v1842_v48  ;;  %v1855_v54 = vrot.slane %v345_v44, 5  ;;  %v1857_v55 = vrot.slane %v346_v45, 4  ;;  %v1859_v56 = vrot.slane %v347_v46, 3  ;;  %v350_v57 = vld [vmem:[%s12362_s0 + $0xc1] sm:$0x1] }
  0x9a   :  { %v1846_v58 = vsel %vm1083_vm4, %v1845_v34, %v1844_v53  ;;  %v1852_v59 = vsel %vm1071_vm0, %v1851_v51, %v342_v35  ;;  %v1861_v60 = vrot.slane %v348_v49, 2  ;;  %v1863_v61 = vrot.slane %v349_v50, 1  ;;  %v351_v62 = vld [vmem:[%s12362_s0 + $0xc5] sm:$0x1]  ;;  %v352_v63 = vld [vmem:[%s12362_s0 + $0xc9] sm:$0x1] }
  0x9b   :  { %v1848_v0 = vsel %vm1086_vm5, %v1847_v38, %v1846_v58  ;;  %v1854_v1 = vsel %vm1074_vm1, %v1853_v52, %v1852_v59  ;;  %v353_v2 = vld [vmem:[%s12362_s0 + $0xcd] sm:$0x1]  ;;  %v354_v3 = vld [vmem:[%s12362_s0 + $0xd1] sm:$0x1]  ;;  %v355_v4 = vld [vmem:[%s12362_s0 + $0xd5] sm:$0x1] }
  0x9c   :  { %v1850_v5 = vsel %vm1089_vm6, %v1849_v39, %v1848_v0  ;;  %v1856_v6 = vsel %vm1077_vm2, %v1855_v54, %v1854_v1  ;;  %v356_v7 = vld [vmem:[%s12362_s0 + $0xd9] sm:$0x1]  ;;  %v357_v8 = vld [vmem:[%s12362_s0 + $0xdd] sm:$0x1]  ;;  %v1865_v9 = vrot.slane %v351_v62, 7  ;;  %v1867_v10 = vrot.slane %v352_v63, 6 }
  0x9d   :  { %7216 = vmatprep.mubr.msk.f32.mxu0 %vm2941_vm7, %v1850_v5  ;;  %v1858_v11 = vsel %vm1080_vm3, %v1857_v55, %v1856_v6  ;;  %v1869_v12 = vrot.slane %v353_v2, 5  ;;  %v1871_v13 = vrot.slane %v354_v3, 4  ;;  %v1873_v14 = vrot.slane %v355_v4, 3  ;;  %v358_v15 = vld [vmem:[%s12362_s0 + $0xe1] sm:$0x1] }
  0x9e   :  { %v1860_v16 = vsel %vm1083_vm4, %v1859_v56, %v1858_v11  ;;  %v1866_v17 = vsel %vm1071_vm0, %v1865_v9, %v350_v57  ;;  %v1875_v18 = vrot.slane %v356_v7, 2  ;;  %v1877_v19 = vrot.slane %v357_v8, 1  ;;  %v359_v20 = vld [vmem:[%s12362_s0 + $0xe5] sm:$0x1]  ;;  %v360_v21 = vld [vmem:[%s12362_s0 + $0xe9] sm:$0x1] }
  0x9f   :  { %v1862_v22 = vsel %vm1086_vm5, %v1861_v60, %v1860_v16  ;;  %v1868_v23 = vsel %vm1074_vm1, %v1867_v10, %v1866_v17  ;;  %v361_v24 = vld [vmem:[%s12362_s0 + $0xed] sm:$0x1]  ;;  %v362_v25 = vld [vmem:[%s12362_s0 + $0xf1] sm:$0x1]  ;;  %v363_v26 = vld [vmem:[%s12362_s0 + $0xf5] sm:$0x1] }
  0xa0   :  { %v1864_v27 = vsel %vm1089_vm6, %v1863_v61, %v1862_v22  ;;  %v1870_v28 = vsel %vm1077_vm2, %v1869_v12, %v1868_v23  ;;  %v364_v29 = vld [vmem:[%s12362_s0 + $0xf9] sm:$0x1]  ;;  %v365_v30 = vld [vmem:[%s12362_s0 + $0xfd] sm:$0x1]  ;;  %v1879_v31 = vrot.slane %v359_v20, 7  ;;  %v1881_v32 = vrot.slane %v360_v21, 6 }
  0xa1   :  { %7217 = vmatmul.mubr.msk.f32.gmra.mrb[36].mxu0 %vm2941_vm7, %v1864_v27  ;;  %v1872_v33 = vsel %vm1080_vm3, %v1871_v13, %v1870_v28  ;;  %v1883_v34 = vrot.slane %v361_v24, 5  ;;  %v1885_v35 = vrot.slane %v362_v25, 4  ;;  %v1887_v36 = vrot.slane %v363_v26, 3  ;;  %v366_v37 = vld [vmem:[%s12362_s0 + $0x101] sm:$0x1] }
  0xa2   :  { %v1874_v38 = vsel %vm1083_vm4, %v1873_v14, %v1872_v33  ;;  %v1880_v39 = vsel %vm1071_vm0, %v1879_v31, %v358_v15  ;;  %v1889_v40 = vrot.slane %v364_v29, 2  ;;  %v1891_v41 = vrot.slane %v365_v30, 1  ;;  %v367_v42 = vld [vmem:[%s12362_s0 + $0x105] sm:$0x1]  ;;  %v368_v43 = vld [vmem:[%s12362_s0 + $0x109] sm:$0x1] }
  0xa3   :  { %v1876_v44 = vsel %vm1086_vm5, %v1875_v18, %v1874_v38  ;;  %v1882_v45 = vsel %vm1074_vm1, %v1881_v32, %v1880_v39  ;;  %v369_v46 = vld [vmem:[%s12362_s0 + $0x10d] sm:$0x1]  ;;  %v370_v47 = vld [vmem:[%s12362_s0 + $0x111] sm:$0x1]  ;;  %v371_v48 = vld [vmem:[%s12362_s0 + $0x115] sm:$0x1] }
  0xa4   :  { %v1878_v49 = vsel %vm1089_vm6, %v1877_v19, %v1876_v44  ;;  %v1884_v50 = vsel %vm1077_vm2, %v1883_v34, %v1882_v45  ;;  %v372_v51 = vld [vmem:[%s12362_s0 + $0x119] sm:$0x1]  ;;  %v373_v52 = vld [vmem:[%s12362_s0 + $0x11d] sm:$0x1]  ;;  %v1893_v53 = vrot.slane %v367_v42, 7  ;;  %v1895_v54 = vrot.slane %v368_v43, 6 }
  0xa5   :  { %7219 = vmatprep.mubr.msk.f32.mxu0 %vm2941_vm7, %v1878_v49  ;;  %v1886_v55 = vsel %vm1080_vm3, %v1885_v35, %v1884_v50  ;;  %v1897_v56 = vrot.slane %v369_v46, 5  ;;  %v1899_v57 = vrot.slane %v370_v47, 4  ;;  %v1901_v58 = vrot.slane %v371_v48, 3  ;;  %v374_v59 = vld [vmem:[%s12362_s0 + $0x121] sm:$0x1] }
  0xa6   :  { %v1888_v60 = vsel %vm1083_vm4, %v1887_v36, %v1886_v55  ;;  %v1894_v61 = vsel %vm1071_vm0, %v1893_v53, %v366_v37  ;;  %v1903_v62 = vrot.slane %v372_v51, 2  ;;  %v1905_v63 = vrot.slane %v373_v52, 1  ;;  %v375_v0 = vld [vmem:[%s12362_s0 + $0x125] sm:$0x1]  ;;  %v376_v1 = vld [vmem:[%s12362_s0 + $0x129] sm:$0x1] }
  0xa7   :  { %v1890_v2 = vsel %vm1086_vm5, %v1889_v40, %v1888_v60  ;;  %v1896_v3 = vsel %vm1074_vm1, %v1895_v54, %v1894_v61  ;;  %v377_v4 = vld [vmem:[%s12362_s0 + $0x12d] sm:$0x1]  ;;  %v378_v5 = vld [vmem:[%s12362_s0 + $0x131] sm:$0x1]  ;;  %v379_v6 = vld [vmem:[%s12362_s0 + $0x135] sm:$0x1] }
  0xa8   :  { %v1892_v7 = vsel %vm1089_vm6, %v1891_v41, %v1890_v2  ;;  %v1898_v8 = vsel %vm1077_vm2, %v1897_v56, %v1896_v3  ;;  %v380_v9 = vld [vmem:[%s12362_s0 + $0x139] sm:$0x1]  ;;  %v381_v10 = vld [vmem:[%s12362_s0 + $0x13d] sm:$0x1]  ;;  %v1907_v11 = vrot.slane %v375_v0, 7  ;;  %v1909_v12 = vrot.slane %v376_v1, 6 }
  0xa9   :  { %7220 = vmatmul.mubr.msk.f32.gmra.mrb[38].mxu0 %vm2941_vm7, %v1892_v7  ;;  %v1900_v13 = vsel %vm1080_vm3, %v1899_v57, %v1898_v8  ;;  %v1911_v14 = vrot.slane %v377_v4, 5  ;;  %v1913_v15 = vrot.slane %v378_v5, 4  ;;  %v1915_v16 = vrot.slane %v379_v6, 3  ;;  %v382_v17 = vld [vmem:[%s12362_s0 + $0x141] sm:$0x1] }
  0xaa   :  { %v1902_v18 = vsel %vm1083_vm4, %v1901_v58, %v1900_v13  ;;  %v1908_v19 = vsel %vm1071_vm0, %v1907_v11, %v374_v59  ;;  %v1917_v20 = vrot.slane %v380_v9, 2  ;;  %v1919_v21 = vrot.slane %v381_v10, 1  ;;  %v383_v22 = vld [vmem:[%s12362_s0 + $0x145] sm:$0x1]  ;;  %v384_v23 = vld [vmem:[%s12362_s0 + $0x149] sm:$0x1] }
  0xab   :  { %v1904_v24 = vsel %vm1086_vm5, %v1903_v62, %v1902_v18  ;;  %v1910_v25 = vsel %vm1074_vm1, %v1909_v12, %v1908_v19  ;;  %v385_v26 = vld [vmem:[%s12362_s0 + $0x14d] sm:$0x1]  ;;  %v386_v27 = vld [vmem:[%s12362_s0 + $0x151] sm:$0x1]  ;;  %v387_v28 = vld [vmem:[%s12362_s0 + $0x155] sm:$0x1] }
  0xac   :  { %v1906_v29 = vsel %vm1089_vm6, %v1905_v63, %v1904_v24  ;;  %v1912_v30 = vsel %vm1077_vm2, %v1911_v14, %v1910_v25  ;;  %v388_v31 = vld [vmem:[%s12362_s0 + $0x159] sm:$0x1]  ;;  %v389_v32 = vld [vmem:[%s12362_s0 + $0x15d] sm:$0x1]  ;;  %v1921_v33 = vrot.slane %v383_v22, 7  ;;  %v1923_v34 = vrot.slane %v384_v23, 6 }
  0xad   :  { %7222 = vmatprep.mubr.msk.f32.mxu0 %vm2941_vm7, %v1906_v29  ;;  %v1914_v35 = vsel %vm1080_vm3, %v1913_v15, %v1912_v30  ;;  %v1925_v36 = vrot.slane %v385_v26, 5  ;;  %v1927_v37 = vrot.slane %v386_v27, 4  ;;  %v1929_v38 = vrot.slane %v387_v28, 3  ;;  %v390_v39 = vld [vmem:[%s12362_s0 + $0x161] sm:$0x1] }
  0xae   :  { %v1916_v40 = vsel %vm1083_vm4, %v1915_v16, %v1914_v35  ;;  %v1922_v41 = vsel %vm1071_vm0, %v1921_v33, %v382_v17  ;;  %v1931_v42 = vrot.slane %v388_v31, 2  ;;  %v1933_v43 = vrot.slane %v389_v32, 1  ;;  %v391_v44 = vld [vmem:[%s12362_s0 + $0x165] sm:$0x1]  ;;  %v392_v45 = vld [vmem:[%s12362_s0 + $0x169] sm:$0x1] }
  0xaf   :  { %v1918_v46 = vsel %vm1086_vm5, %v1917_v20, %v1916_v40  ;;  %v1924_v47 = vsel %vm1074_vm1, %v1923_v34, %v1922_v41  ;;  %v393_v48 = vld [vmem:[%s12362_s0 + $0x16d] sm:$0x1]  ;;  %v394_v49 = vld [vmem:[%s12362_s0 + $0x171] sm:$0x1]  ;;  %v395_v50 = vld [vmem:[%s12362_s0 + $0x175] sm:$0x1] }
  0xb0   :  { %v1920_v51 = vsel %vm1089_vm6, %v1919_v21, %v1918_v46  ;;  %v1926_v52 = vsel %vm1077_vm2, %v1925_v36, %v1924_v47  ;;  %v396_v53 = vld [vmem:[%s12362_s0 + $0x179] sm:$0x1]  ;;  %v397_v54 = vld [vmem:[%s12362_s0 + $0x17d] sm:$0x1]  ;;  %v1935_v55 = vrot.slane %v391_v44, 7  ;;  %v1937_v56 = vrot.slane %v392_v45, 6 }
  0xb1   :  { %7223 = vmatmul.mubr.msk.f32.gmra.mrb[40].mxu0 %vm2941_vm7, %v1920_v51  ;;  %v1928_v57 = vsel %vm1080_vm3, %v1927_v37, %v1926_v52  ;;  %v1939_v58 = vrot.slane %v393_v48, 5  ;;  %v1941_v59 = vrot.slane %v394_v49, 4  ;;  %v1943_v60 = vrot.slane %v395_v50, 3  ;;  %v398_v61 = vld [vmem:[%s12362_s0 + $0x181] sm:$0x1] }
  0xb2   :  { %v1930_v62 = vsel %vm1083_vm4, %v1929_v38, %v1928_v57  ;;  %v1936_v63 = vsel %vm1071_vm0, %v1935_v55, %v390_v39  ;;  %v1945_v0 = vrot.slane %v396_v53, 2  ;;  %v1947_v1 = vrot.slane %v397_v54, 1  ;;  %v399_v2 = vld [vmem:[%s12362_s0 + $0x185] sm:$0x1]  ;;  %v400_v3 = vld [vmem:[%s12362_s0 + $0x189] sm:$0x1] }
  0xb3   :  { %v1932_v4 = vsel %vm1086_vm5, %v1931_v42, %v1930_v62  ;;  %v1938_v5 = vsel %vm1074_vm1, %v1937_v56, %v1936_v63  ;;  %v401_v6 = vld [vmem:[%s12362_s0 + $0x18d] sm:$0x1]  ;;  %v402_v7 = vld [vmem:[%s12362_s0 + $0x191] sm:$0x1]  ;;  %v403_v8 = vld [vmem:[%s12362_s0 + $0x195] sm:$0x1] }
  0xb4   :  { %v1934_v9 = vsel %vm1089_vm6, %v1933_v43, %v1932_v4  ;;  %v1940_v10 = vsel %vm1077_vm2, %v1939_v58, %v1938_v5  ;;  %v404_v11 = vld [vmem:[%s12362_s0 + $0x199] sm:$0x1]  ;;  %v405_v12 = vld [vmem:[%s12362_s0 + $0x19d] sm:$0x1]  ;;  %v1949_v13 = vrot.slane %v399_v2, 7  ;;  %v1951_v14 = vrot.slane %v400_v3, 6 }
  0xb5   :  { %7225 = vmatprep.mubr.msk.f32.mxu0 %vm2941_vm7, %v1934_v9  ;;  %v1942_v15 = vsel %vm1080_vm3, %v1941_v59, %v1940_v10  ;;  %v1953_v16 = vrot.slane %v401_v6, 5  ;;  %v1955_v17 = vrot.slane %v402_v7, 4  ;;  %v1957_v18 = vrot.slane %v403_v8, 3  ;;  %v406_v19 = vld [vmem:[%s12362_s0 + $0x1a1] sm:$0x1] }
  0xb6   :  { %v1944_v20 = vsel %vm1083_vm4, %v1943_v60, %v1942_v15  ;;  %v1950_v21 = vsel %vm1071_vm0, %v1949_v13, %v398_v61  ;;  %v1959_v22 = vrot.slane %v404_v11, 2  ;;  %v1961_v23 = vrot.slane %v405_v12, 1  ;;  %v407_v24 = vld [vmem:[%s12362_s0 + $0x1a5] sm:$0x1]  ;;  %v408_v25 = vld [vmem:[%s12362_s0 + $0x1a9] sm:$0x1] }
  0xb7   :  { %v1946_v26 = vsel %vm1086_vm5, %v1945_v0, %v1944_v20  ;;  %v1952_v27 = vsel %vm1074_vm1, %v1951_v14, %v1950_v21  ;;  %v409_v28 = vld [vmem:[%s12362_s0 + $0x1ad] sm:$0x1]  ;;  %v410_v29 = vld [vmem:[%s12362_s0 + $0x1b1] sm:$0x1]  ;;  %v411_v30 = vld [vmem:[%s12362_s0 + $0x1b5] sm:$0x1] }
  0xb8   :  { %v1948_v31 = vsel %vm1089_vm6, %v1947_v1, %v1946_v26  ;;  %v1954_v32 = vsel %vm1077_vm2, %v1953_v16, %v1952_v27  ;;  %v412_v33 = vld [vmem:[%s12362_s0 + $0x1b9] sm:$0x1]  ;;  %v413_v34 = vld [vmem:[%s12362_s0 + $0x1bd] sm:$0x1]  ;;  %v1963_v35 = vrot.slane %v407_v24, 7  ;;  %v1965_v36 = vrot.slane %v408_v25, 6 }
  0xb9   :  { %7226 = vmatmul.mubr.msk.f32.gmra.mrb[42].mxu0 %vm2941_vm7, %v1948_v31  ;;  %v1956_v37 = vsel %vm1080_vm3, %v1955_v17, %v1954_v32  ;;  %v1967_v38 = vrot.slane %v409_v28, 5  ;;  %v1969_v39 = vrot.slane %v410_v29, 4  ;;  %v1971_v40 = vrot.slane %v411_v30, 3  ;;  %v414_v41 = vld [vmem:[%s12362_s0 + $0x1c1] sm:$0x1] }
  0xba   :  { %v1958_v42 = vsel %vm1083_vm4, %v1957_v18, %v1956_v37  ;;  %v1964_v43 = vsel %vm1071_vm0, %v1963_v35, %v406_v19  ;;  %v1973_v44 = vrot.slane %v412_v33, 2  ;;  %v1975_v45 = vrot.slane %v413_v34, 1  ;;  %v415_v46 = vld [vmem:[%s12362_s0 + $0x1c5] sm:$0x1]  ;;  %v416_v47 = vld [vmem:[%s12362_s0 + $0x1c9] sm:$0x1] }
  0xbb   :  { %v1960_v48 = vsel %vm1086_vm5, %v1959_v22, %v1958_v42  ;;  %v1966_v49 = vsel %vm1074_vm1, %v1965_v36, %v1964_v43  ;;  %v417_v50 = vld [vmem:[%s12362_s0 + $0x1cd] sm:$0x1]  ;;  %v418_v51 = vld [vmem:[%s12362_s0 + $0x1d1] sm:$0x1]  ;;  %v419_v52 = vld [vmem:[%s12362_s0 + $0x1d5] sm:$0x1] }
  0xbc   :  { %v1962_v53 = vsel %vm1089_vm6, %v1961_v23, %v1960_v48  ;;  %v1968_v54 = vsel %vm1077_vm2, %v1967_v38, %v1966_v49  ;;  %v420_v55 = vld [vmem:[%s12362_s0 + $0x1d9] sm:$0x1]  ;;  %v421_v56 = vld [vmem:[%s12362_s0 + $0x1dd] sm:$0x1]  ;;  %v1977_v57 = vrot.slane %v415_v46, 7  ;;  %v1979_v58 = vrot.slane %v416_v47, 6 }
  0xbd   :  { %7228 = vmatprep.mubr.msk.f32.mxu0 %vm2941_vm7, %v1962_v53  ;;  %v1970_v59 = vsel %vm1080_vm3, %v1969_v39, %v1968_v54  ;;  %v1981_v60 = vrot.slane %v417_v50, 5  ;;  %v1983_v61 = vrot.slane %v418_v51, 4  ;;  %v1985_v62 = vrot.slane %v419_v52, 3  ;;  %v422_v63 = vld [vmem:[%s12362_s0 + $0x1e1] sm:$0x1] }
  0xbe   :  { %v1972_v0 = vsel %vm1083_vm4, %v1971_v40, %v1970_v59  ;;  %v1978_v1 = vsel %vm1071_vm0, %v1977_v57, %v414_v41  ;;  %v1987_v2 = vrot.slane %v420_v55, 2  ;;  %v1989_v3 = vrot.slane %v421_v56, 1  ;;  %v423_v4 = vld [vmem:[%s12362_s0 + $0x1e5] sm:$0x1]  ;;  %v424_v5 = vld [vmem:[%s12362_s0 + $0x1e9] sm:$0x1] }
  0xbf   :  { %v1974_v6 = vsel %vm1086_vm5, %v1973_v44, %v1972_v0  ;;  %v1980_v7 = vsel %vm1074_vm1, %v1979_v58, %v1978_v1  ;;  %v425_v8 = vld [vmem:[%s12362_s0 + $0x1ed] sm:$0x1]  ;;  %v426_v9 = vld [vmem:[%s12362_s0 + $0x1f1] sm:$0x1]  ;;  %v427_v10 = vld [vmem:[%s12362_s0 + $0x1f5] sm:$0x1] }
  0xc0   :  { %v1976_v11 = vsel %vm1089_vm6, %v1975_v45, %v1974_v6  ;;  %v1982_v12 = vsel %vm1077_vm2, %v1981_v60, %v1980_v7  ;;  %v428_v13 = vld [vmem:[%s12362_s0 + $0x1f9] sm:$0x1]  ;;  %v429_v14 = vld [vmem:[%s12362_s0 + $0x1fd] sm:$0x1]  ;;  %v1991_v15 = vrot.slane %v423_v4, 7  ;;  %v1993_v16 = vrot.slane %v424_v5, 6 }
  0xc1   :  { %7229 = vmatmul.mubr.msk.f32.gmra.mrb[44].mxu0 %vm2941_vm7, %v1976_v11  ;;  %v1984_v17 = vsel %vm1080_vm3, %v1983_v61, %v1982_v12  ;;  %v1995_v18 = vrot.slane %v425_v8, 5  ;;  %v1997_v19 = vrot.slane %v426_v9, 4  ;;  %v1999_v20 = vrot.slane %v427_v10, 3  ;;  %v430_v21 = vld [vmem:[%s12362_s0 + $0x201] sm:$0x1] }
  0xc2   :  { %v1986_v22 = vsel %vm1083_vm4, %v1985_v62, %v1984_v17  ;;  %v1992_v23 = vsel %vm1071_vm0, %v1991_v15, %v422_v63  ;;  %v2001_v24 = vrot.slane %v428_v13, 2  ;;  %v2003_v25 = vrot.slane %v429_v14, 1  ;;  %v431_v26 = vld [vmem:[%s12362_s0 + $0x205] sm:$0x1]  ;;  %v432_v27 = vld [vmem:[%s12362_s0 + $0x209] sm:$0x1] }
  0xc3   :  { %v1988_v28 = vsel %vm1086_vm5, %v1987_v2, %v1986_v22  ;;  %v1994_v29 = vsel %vm1074_vm1, %v1993_v16, %v1992_v23  ;;  %v433_v30 = vld [vmem:[%s12362_s0 + $0x20d] sm:$0x1]  ;;  %v434_v31 = vld [vmem:[%s12362_s0 + $0x211] sm:$0x1]  ;;  %v435_v32 = vld [vmem:[%s12362_s0 + $0x215] sm:$0x1] }
  0xc4   :  { %v1990_v33 = vsel %vm1089_vm6, %v1989_v3, %v1988_v28  ;;  %v1996_v34 = vsel %vm1077_vm2, %v1995_v18, %v1994_v29  ;;  %v436_v35 = vld [vmem:[%s12362_s0 + $0x219] sm:$0x1]  ;;  %v437_v36 = vld [vmem:[%s12362_s0 + $0x21d] sm:$0x1]  ;;  %v2005_v37 = vrot.slane %v431_v26, 7  ;;  %v2007_v38 = vrot.slane %v432_v27, 6 }
  0xc5   :  { %7231 = vmatprep.mubr.msk.f32.mxu0 %vm2941_vm7, %v1990_v33  ;;  %v1998_v39 = vsel %vm1080_vm3, %v1997_v19, %v1996_v34  ;;  %v2009_v40 = vrot.slane %v433_v30, 5  ;;  %v2011_v41 = vrot.slane %v434_v31, 4  ;;  %v2013_v42 = vrot.slane %v435_v32, 3  ;;  %v438_v43 = vld [vmem:[%s12362_s0 + $0x221] sm:$0x1] }
  0xc6   :  { %v2000_v44 = vsel %vm1083_vm4, %v1999_v20, %v1998_v39  ;;  %v2006_v45 = vsel %vm1071_vm0, %v2005_v37, %v430_v21  ;;  %v2015_v46 = vrot.slane %v436_v35, 2  ;;  %v2017_v47 = vrot.slane %v437_v36, 1  ;;  %v439_v48 = vld [vmem:[%s12362_s0 + $0x225] sm:$0x1]  ;;  %v440_v49 = vld [vmem:[%s12362_s0 + $0x229] sm:$0x1] }
  0xc7   :  { %v2002_v50 = vsel %vm1086_vm5, %v2001_v24, %v2000_v44  ;;  %v2008_v51 = vsel %vm1074_vm1, %v2007_v38, %v2006_v45  ;;  %v441_v52 = vld [vmem:[%s12362_s0 + $0x22d] sm:$0x1]  ;;  %v442_v53 = vld [vmem:[%s12362_s0 + $0x231] sm:$0x1]  ;;  %v443_v54 = vld [vmem:[%s12362_s0 + $0x235] sm:$0x1] }
  0xc8   :  { %v2004_v55 = vsel %vm1089_vm6, %v2003_v25, %v2002_v50  ;;  %v2010_v56 = vsel %vm1077_vm2, %v2009_v40, %v2008_v51  ;;  %v444_v57 = vld [vmem:[%s12362_s0 + $0x239] sm:$0x1]  ;;  %v445_v58 = vld [vmem:[%s12362_s0 + $0x23d] sm:$0x1]  ;;  %v2019_v59 = vrot.slane %v439_v48, 7  ;;  %v2021_v60 = vrot.slane %v440_v49, 6 }
  0xc9   :  { %7232 = vmatmul.mubr.msk.f32.gmra.mrb[46].mxu0 %vm2941_vm7, %v2004_v55  ;;  %v2012_v61 = vsel %vm1080_vm3, %v2011_v41, %v2010_v56  ;;  %v2023_v62 = vrot.slane %v441_v52, 5  ;;  %v2025_v63 = vrot.slane %v442_v53, 4  ;;  %v2027_v0 = vrot.slane %v443_v54, 3  ;;  %v446_v1 = vld [vmem:[%s12362_s0 + $0x241] sm:$0x1] }
  0xca   :  { %v2014_v2 = vsel %vm1083_vm4, %v2013_v42, %v2012_v61  ;;  %v2020_v3 = vsel %vm1071_vm0, %v2019_v59, %v438_v43  ;;  %v2029_v4 = vrot.slane %v444_v57, 2  ;;  %v2031_v5 = vrot.slane %v445_v58, 1  ;;  %v447_v6 = vld [vmem:[%s12362_s0 + $0x245] sm:$0x1]  ;;  %v448_v7 = vld [vmem:[%s12362_s0 + $0x249] sm:$0x1] }
  0xcb   :  { %v2016_v8 = vsel %vm1086_vm5, %v2015_v46, %v2014_v2  ;;  %v2022_v9 = vsel %vm1074_vm1, %v2021_v60, %v2020_v3  ;;  %v449_v10 = vld [vmem:[%s12362_s0 + $0x24d] sm:$0x1]  ;;  %v450_v11 = vld [vmem:[%s12362_s0 + $0x251] sm:$0x1]  ;;  %v451_v12 = vld [vmem:[%s12362_s0 + $0x255] sm:$0x1] }
  0xcc   :  { %v2018_v13 = vsel %vm1089_vm6, %v2017_v47, %v2016_v8  ;;  %v2024_v14 = vsel %vm1077_vm2, %v2023_v62, %v2022_v9  ;;  %v452_v15 = vld [vmem:[%s12362_s0 + $0x259] sm:$0x1]  ;;  %v453_v16 = vld [vmem:[%s12362_s0 + $0x25d] sm:$0x1]  ;;  %v2033_v17 = vrot.slane %v447_v6, 7  ;;  %v2035_v18 = vrot.slane %v448_v7, 6 }
  0xcd   :  { %7234 = vmatprep.mubr.msk.f32.mxu0 %vm2941_vm7, %v2018_v13  ;;  %v2026_v19 = vsel %vm1080_vm3, %v2025_v63, %v2024_v14  ;;  %v2037_v20 = vrot.slane %v449_v10, 5  ;;  %v2039_v21 = vrot.slane %v450_v11, 4  ;;  %v2041_v22 = vrot.slane %v451_v12, 3  ;;  %v454_v23 = vld [vmem:[%s12362_s0 + $0x261] sm:$0x1] }
  0xce   :  { %v2028_v24 = vsel %vm1083_vm4, %v2027_v0, %v2026_v19  ;;  %v2034_v25 = vsel %vm1071_vm0, %v2033_v17, %v446_v1  ;;  %v2043_v26 = vrot.slane %v452_v15, 2  ;;  %v2045_v27 = vrot.slane %v453_v16, 1  ;;  %v455_v28 = vld [vmem:[%s12362_s0 + $0x265] sm:$0x1]  ;;  %v456_v29 = vld [vmem:[%s12362_s0 + $0x269] sm:$0x1] }
  0xcf   :  { %v2030_v30 = vsel %vm1086_vm5, %v2029_v4, %v2028_v24  ;;  %v2036_v31 = vsel %vm1074_vm1, %v2035_v18, %v2034_v25  ;;  %v457_v32 = vld [vmem:[%s12362_s0 + $0x26d] sm:$0x1]  ;;  %v458_v33 = vld [vmem:[%s12362_s0 + $0x271] sm:$0x1]  ;;  %v459_v34 = vld [vmem:[%s12362_s0 + $0x275] sm:$0x1] }
  0xd0   :  { %v2032_v35 = vsel %vm1089_vm6, %v2031_v5, %v2030_v30  ;;  %v2038_v36 = vsel %vm1077_vm2, %v2037_v20, %v2036_v31  ;;  %v460_v37 = vld [vmem:[%s12362_s0 + $0x279] sm:$0x1]  ;;  %v461_v38 = vld [vmem:[%s12362_s0 + $0x27d] sm:$0x1]  ;;  %v2047_v39 = vrot.slane %v455_v28, 7  ;;  %v2049_v40 = vrot.slane %v456_v29, 6 }
  0xd1   :  { %7235 = vmatmul.mubr.msk.f32.gmra.mrb[48].mxu0 %vm2941_vm7, %v2032_v35  ;;  %v2040_v41 = vsel %vm1080_vm3, %v2039_v21, %v2038_v36  ;;  %v2051_v42 = vrot.slane %v457_v32, 5  ;;  %v2053_v43 = vrot.slane %v458_v33, 4  ;;  %v2055_v44 = vrot.slane %v459_v34, 3  ;;  %v462_v45 = vld [vmem:[%s12362_s0 + $0x281] sm:$0x1] }
  0xd2   :  { %v2042_v46 = vsel %vm1083_vm4, %v2041_v22, %v2040_v41  ;;  %v2048_v47 = vsel %vm1071_vm0, %v2047_v39, %v454_v23  ;;  %v2057_v48 = vrot.slane %v460_v37, 2  ;;  %v2059_v49 = vrot.slane %v461_v38, 1  ;;  %v463_v50 = vld [vmem:[%s12362_s0 + $0x285] sm:$0x1]  ;;  %v464_v51 = vld [vmem:[%s12362_s0 + $0x289] sm:$0x1] }
  0xd3   :  { %v2044_v52 = vsel %vm1086_vm5, %v2043_v26, %v2042_v46  ;;  %v2050_v53 = vsel %vm1074_vm1, %v2049_v40, %v2048_v47  ;;  %v465_v54 = vld [vmem:[%s12362_s0 + $0x28d] sm:$0x1]  ;;  %v466_v55 = vld [vmem:[%s12362_s0 + $0x291] sm:$0x1]  ;;  %v467_v56 = vld [vmem:[%s12362_s0 + $0x295] sm:$0x1] }
  0xd4   :  { %v2046_v57 = vsel %vm1089_vm6, %v2045_v27, %v2044_v52  ;;  %v2052_v58 = vsel %vm1077_vm2, %v2051_v42, %v2050_v53  ;;  %v468_v59 = vld [vmem:[%s12362_s0 + $0x299] sm:$0x1]  ;;  %v469_v60 = vld [vmem:[%s12362_s0 + $0x29d] sm:$0x1]  ;;  %v2061_v61 = vrot.slane %v463_v50, 7  ;;  %v2063_v62 = vrot.slane %v464_v51, 6 }
  0xd5   :  { %7237 = vmatprep.mubr.msk.f32.mxu0 %vm2941_vm7, %v2046_v57  ;;  %v2054_v63 = vsel %vm1080_vm3, %v2053_v43, %v2052_v58  ;;  %v2065_v0 = vrot.slane %v465_v54, 5  ;;  %v2067_v1 = vrot.slane %v466_v55, 4  ;;  %v2069_v2 = vrot.slane %v467_v56, 3  ;;  %v470_v3 = vld [vmem:[%s12362_s0 + $0x2a1] sm:$0x1] }
  0xd6   :  { %v2056_v4 = vsel %vm1083_vm4, %v2055_v44, %v2054_v63  ;;  %v2062_v5 = vsel %vm1071_vm0, %v2061_v61, %v462_v45  ;;  %v2071_v6 = vrot.slane %v468_v59, 2  ;;  %v2073_v7 = vrot.slane %v469_v60, 1  ;;  %v471_v8 = vld [vmem:[%s12362_s0 + $0x2a5] sm:$0x1]  ;;  %v472_v9 = vld [vmem:[%s12362_s0 + $0x2a9] sm:$0x1] }
  0xd7   :  { %v2058_v10 = vsel %vm1086_vm5, %v2057_v48, %v2056_v4  ;;  %v2064_v11 = vsel %vm1074_vm1, %v2063_v62, %v2062_v5  ;;  %v473_v12 = vld [vmem:[%s12362_s0 + $0x2ad] sm:$0x1]  ;;  %v474_v13 = vld [vmem:[%s12362_s0 + $0x2b1] sm:$0x1]  ;;  %v475_v14 = vld [vmem:[%s12362_s0 + $0x2b5] sm:$0x1] }
  0xd8   :  { %v2060_v15 = vsel %vm1089_vm6, %v2059_v49, %v2058_v10  ;;  %v2066_v16 = vsel %vm1077_vm2, %v2065_v0, %v2064_v11  ;;  %v476_v17 = vld [vmem:[%s12362_s0 + $0x2b9] sm:$0x1]  ;;  %v477_v18 = vld [vmem:[%s12362_s0 + $0x2bd] sm:$0x1]  ;;  %v2075_v19 = vrot.slane %v471_v8, 7  ;;  %v2077_v20 = vrot.slane %v472_v9, 6 }
  0xd9   :  { %7238 = vmatmul.mubr.msk.f32.gmra.mrb[50].mxu0 %vm2941_vm7, %v2060_v15  ;;  %v2068_v21 = vsel %vm1080_vm3, %v2067_v1, %v2066_v16  ;;  %v2079_v22 = vrot.slane %v473_v12, 5  ;;  %v2081_v23 = vrot.slane %v474_v13, 4  ;;  %v2083_v24 = vrot.slane %v475_v14, 3  ;;  %v478_v25 = vld [vmem:[%s12362_s0 + $0x2c1] sm:$0x1] }
  0xda   :  { %v2070_v26 = vsel %vm1083_vm4, %v2069_v2, %v2068_v21  ;;  %v2076_v27 = vsel %vm1071_vm0, %v2075_v19, %v470_v3  ;;  %v2085_v28 = vrot.slane %v476_v17, 2  ;;  %v2087_v29 = vrot.slane %v477_v18, 1  ;;  %v479_v30 = vld [vmem:[%s12362_s0 + $0x2c5] sm:$0x1]  ;;  %v480_v31 = vld [vmem:[%s12362_s0 + $0x2c9] sm:$0x1] }
  0xdb   :  { %v2072_v32 = vsel %vm1086_vm5, %v2071_v6, %v2070_v26  ;;  %v2078_v33 = vsel %vm1074_vm1, %v2077_v20, %v2076_v27  ;;  %v481_v34 = vld [vmem:[%s12362_s0 + $0x2cd] sm:$0x1]  ;;  %v482_v35 = vld [vmem:[%s12362_s0 + $0x2d1] sm:$0x1]  ;;  %v483_v36 = vld [vmem:[%s12362_s0 + $0x2d5] sm:$0x1] }
  0xdc   :  { %v2074_v37 = vsel %vm1089_vm6, %v2073_v7, %v2072_v32  ;;  %v2080_v38 = vsel %vm1077_vm2, %v2079_v22, %v2078_v33  ;;  %v484_v39 = vld [vmem:[%s12362_s0 + $0x2d9] sm:$0x1]  ;;  %v485_v40 = vld [vmem:[%s12362_s0 + $0x2dd] sm:$0x1]  ;;  %v2089_v41 = vrot.slane %v479_v30, 7  ;;  %v2091_v42 = vrot.slane %v480_v31, 6 }
  0xdd   :  { %7240 = vmatprep.mubr.msk.f32.mxu0 %vm2941_vm7, %v2074_v37  ;;  %v2082_v43 = vsel %vm1080_vm3, %v2081_v23, %v2080_v38  ;;  %v2093_v44 = vrot.slane %v481_v34, 5  ;;  %v2095_v45 = vrot.slane %v482_v35, 4  ;;  %v2097_v46 = vrot.slane %v483_v36, 3  ;;  %v486_v47 = vld [vmem:[%s12362_s0 + $0x2e1] sm:$0x1] }
  0xde   :  { %v2084_v48 = vsel %vm1083_vm4, %v2083_v24, %v2082_v43  ;;  %v2090_v49 = vsel %vm1071_vm0, %v2089_v41, %v478_v25  ;;  %v2099_v50 = vrot.slane %v484_v39, 2  ;;  %v2101_v51 = vrot.slane %v485_v40, 1  ;;  %v487_v52 = vld [vmem:[%s12362_s0 + $0x2e5] sm:$0x1]  ;;  %v488_v53 = vld [vmem:[%s12362_s0 + $0x2e9] sm:$0x1] }
  0xdf   :  { %v2086_v54 = vsel %vm1086_vm5, %v2085_v28, %v2084_v48  ;;  %v2092_v55 = vsel %vm1074_vm1, %v2091_v42, %v2090_v49  ;;  %v489_v56 = vld [vmem:[%s12362_s0 + $0x2ed] sm:$0x1]  ;;  %v490_v57 = vld [vmem:[%s12362_s0 + $0x2f1] sm:$0x1]  ;;  %v491_v58 = vld [vmem:[%s12362_s0 + $0x2f5] sm:$0x1] }
  0xe0   :  { %v2088_v59 = vsel %vm1089_vm6, %v2087_v29, %v2086_v54  ;;  %v2094_v60 = vsel %vm1077_vm2, %v2093_v44, %v2092_v55  ;;  %v492_v61 = vld [vmem:[%s12362_s0 + $0x2f9] sm:$0x1]  ;;  %v493_v62 = vld [vmem:[%s12362_s0 + $0x2fd] sm:$0x1]  ;;  %v2103_v63 = vrot.slane %v487_v52, 7  ;;  %v2105_v0 = vrot.slane %v488_v53, 6 }
  0xe1   :  { %7241 = vmatmul.mubr.msk.f32.gmra.mrb[52].mxu0 %vm2941_vm7, %v2088_v59  ;;  %v2096_v1 = vsel %vm1080_vm3, %v2095_v45, %v2094_v60  ;;  %v2107_v2 = vrot.slane %v489_v56, 5  ;;  %v2109_v3 = vrot.slane %v490_v57, 4  ;;  %v2111_v4 = vrot.slane %v491_v58, 3  ;;  %v494_v5 = vld [vmem:[%s12362_s0 + $0x301] sm:$0x1] }
  0xe2   :  { %v2098_v6 = vsel %vm1083_vm4, %v2097_v46, %v2096_v1  ;;  %v2104_v7 = vsel %vm1071_vm0, %v2103_v63, %v486_v47  ;;  %v2113_v8 = vrot.slane %v492_v61, 2  ;;  %v2115_v9 = vrot.slane %v493_v62, 1  ;;  %v495_v10 = vld [vmem:[%s12362_s0 + $0x305] sm:$0x1]  ;;  %v496_v11 = vld [vmem:[%s12362_s0 + $0x309] sm:$0x1] }
  0xe3   :  { %v2100_v12 = vsel %vm1086_vm5, %v2099_v50, %v2098_v6  ;;  %v2106_v13 = vsel %vm1074_vm1, %v2105_v0, %v2104_v7  ;;  %v497_v14 = vld [vmem:[%s12362_s0 + $0x30d] sm:$0x1]  ;;  %v498_v15 = vld [vmem:[%s12362_s0 + $0x311] sm:$0x1]  ;;  %v499_v16 = vld [vmem:[%s12362_s0 + $0x315] sm:$0x1] }
  0xe4   :  { %v2102_v17 = vsel %vm1089_vm6, %v2101_v51, %v2100_v12  ;;  %v2108_v18 = vsel %vm1077_vm2, %v2107_v2, %v2106_v13  ;;  %v500_v19 = vld [vmem:[%s12362_s0 + $0x319] sm:$0x1]  ;;  %v501_v20 = vld [vmem:[%s12362_s0 + $0x31d] sm:$0x1]  ;;  %v2117_v21 = vrot.slane %v495_v10, 7  ;;  %v2119_v22 = vrot.slane %v496_v11, 6 }
  0xe5   :  { %7243 = vmatprep.mubr.msk.f32.mxu0 %vm2941_vm7, %v2102_v17  ;;  %v2110_v23 = vsel %vm1080_vm3, %v2109_v3, %v2108_v18  ;;  %v2121_v24 = vrot.slane %v497_v14, 5  ;;  %v2123_v25 = vrot.slane %v498_v15, 4  ;;  %v2125_v26 = vrot.slane %v499_v16, 3  ;;  %v502_v27 = vld [vmem:[%s12362_s0 + $0x321] sm:$0x1] }
  0xe6   :  { %v2112_v28 = vsel %vm1083_vm4, %v2111_v4, %v2110_v23  ;;  %v2118_v29 = vsel %vm1071_vm0, %v2117_v21, %v494_v5  ;;  %v2127_v30 = vrot.slane %v500_v19, 2  ;;  %v2129_v31 = vrot.slane %v501_v20, 1  ;;  %v503_v32 = vld [vmem:[%s12362_s0 + $0x325] sm:$0x1]  ;;  %v504_v33 = vld [vmem:[%s12362_s0 + $0x329] sm:$0x1] }
  0xe7   :  { %v2114_v34 = vsel %vm1086_vm5, %v2113_v8, %v2112_v28  ;;  %v2120_v35 = vsel %vm1074_vm1, %v2119_v22, %v2118_v29  ;;  %v505_v36 = vld [vmem:[%s12362_s0 + $0x32d] sm:$0x1]  ;;  %v506_v37 = vld [vmem:[%s12362_s0 + $0x331] sm:$0x1]  ;;  %v507_v38 = vld [vmem:[%s12362_s0 + $0x335] sm:$0x1] }
  0xe8   :  { %v2116_v39 = vsel %vm1089_vm6, %v2115_v9, %v2114_v34  ;;  %v2122_v40 = vsel %vm1077_vm2, %v2121_v24, %v2120_v35  ;;  %v508_v41 = vld [vmem:[%s12362_s0 + $0x339] sm:$0x1]  ;;  %v509_v42 = vld [vmem:[%s12362_s0 + $0x33d] sm:$0x1]  ;;  %v2131_v43 = vrot.slane %v503_v32, 7  ;;  %v2133_v44 = vrot.slane %v504_v33, 6 }
  0xe9   :  { %7244 = vmatmul.mubr.msk.f32.gmra.mrb[54].mxu0 %vm2941_vm7, %v2116_v39  ;;  %v2124_v45 = vsel %vm1080_vm3, %v2123_v25, %v2122_v40  ;;  %v2135_v46 = vrot.slane %v505_v36, 5  ;;  %v2137_v47 = vrot.slane %v506_v37, 4  ;;  %v2139_v48 = vrot.slane %v507_v38, 3  ;;  %v510_v49 = vld [vmem:[%s12362_s0 + $0x341] sm:$0x1] }
  0xea   :  { %v2126_v50 = vsel %vm1083_vm4, %v2125_v26, %v2124_v45  ;;  %v2132_v51 = vsel %vm1071_vm0, %v2131_v43, %v502_v27  ;;  %v2141_v52 = vrot.slane %v508_v41, 2  ;;  %v2143_v53 = vrot.slane %v509_v42, 1  ;;  %v511_v54 = vld [vmem:[%s12362_s0 + $0x345] sm:$0x1]  ;;  %v512_v55 = vld [vmem:[%s12362_s0 + $0x349] sm:$0x1] }
  0xeb   :  { %v2128_v56 = vsel %vm1086_vm5, %v2127_v30, %v2126_v50  ;;  %v2134_v57 = vsel %vm1074_vm1, %v2133_v44, %v2132_v51  ;;  %v513_v58 = vld [vmem:[%s12362_s0 + $0x34d] sm:$0x1]  ;;  %v514_v59 = vld [vmem:[%s12362_s0 + $0x351] sm:$0x1]  ;;  %v515_v60 = vld [vmem:[%s12362_s0 + $0x355] sm:$0x1] }
  0xec   :  { %v2130_v61 = vsel %vm1089_vm6, %v2129_v31, %v2128_v56  ;;  %v2136_v62 = vsel %vm1077_vm2, %v2135_v46, %v2134_v57  ;;  %v516_v63 = vld [vmem:[%s12362_s0 + $0x359] sm:$0x1]  ;;  %v517_v0 = vld [vmem:[%s12362_s0 + $0x35d] sm:$0x1]  ;;  %v2145_v1 = vrot.slane %v511_v54, 7  ;;  %v2147_v2 = vrot.slane %v512_v55, 6 }
  0xed   :  { %7246 = vmatprep.mubr.msk.f32.mxu0 %vm2941_vm7, %v2130_v61  ;;  %v2138_v3 = vsel %vm1080_vm3, %v2137_v47, %v2136_v62  ;;  %v2149_v4 = vrot.slane %v513_v58, 5  ;;  %v2151_v5 = vrot.slane %v514_v59, 4  ;;  %v2153_v6 = vrot.slane %v515_v60, 3  ;;  %v518_v7 = vld [vmem:[%s12362_s0 + $0x361] sm:$0x1] }
  0xee   :  { %v2140_v8 = vsel %vm1083_vm4, %v2139_v48, %v2138_v3  ;;  %v2146_v9 = vsel %vm1071_vm0, %v2145_v1, %v510_v49  ;;  %v2155_v10 = vrot.slane %v516_v63, 2  ;;  %v2157_v11 = vrot.slane %v517_v0, 1  ;;  %v519_v12 = vld [vmem:[%s12362_s0 + $0x365] sm:$0x1]  ;;  %v520_v13 = vld [vmem:[%s12362_s0 + $0x369] sm:$0x1] }
  0xef   :  { %v2142_v14 = vsel %vm1086_vm5, %v2141_v52, %v2140_v8  ;;  %v2148_v15 = vsel %vm1074_vm1, %v2147_v2, %v2146_v9  ;;  %v521_v16 = vld [vmem:[%s12362_s0 + $0x36d] sm:$0x1]  ;;  %v522_v17 = vld [vmem:[%s12362_s0 + $0x371] sm:$0x1]  ;;  %v523_v18 = vld [vmem:[%s12362_s0 + $0x375] sm:$0x1] }
  0xf0   :  { %v2144_v19 = vsel %vm1089_vm6, %v2143_v53, %v2142_v14  ;;  %v2150_v20 = vsel %vm1077_vm2, %v2149_v4, %v2148_v15  ;;  %v524_v21 = vld [vmem:[%s12362_s0 + $0x379] sm:$0x1]  ;;  %v525_v22 = vld [vmem:[%s12362_s0 + $0x37d] sm:$0x1]  ;;  %v2159_v23 = vrot.slane %v519_v12, 7  ;;  %v2161_v24 = vrot.slane %v520_v13, 6 }
  0xf1   :  { %7247 = vmatmul.mubr.msk.f32.gmra.mrb[56].mxu0 %vm2941_vm7, %v2144_v19  ;;  %v2152_v25 = vsel %vm1080_vm3, %v2151_v5, %v2150_v20  ;;  %v2163_v26 = vrot.slane %v521_v16, 5  ;;  %v2165_v27 = vrot.slane %v522_v17, 4  ;;  %v2167_v28 = vrot.slane %v523_v18, 3  ;;  %v526_v29 = vld [vmem:[%s12362_s0 + $0x381] sm:$0x1] }
  0xf2   :  { %v2154_v30 = vsel %vm1083_vm4, %v2153_v6, %v2152_v25  ;;  %v2160_v31 = vsel %vm1071_vm0, %v2159_v23, %v518_v7  ;;  %v2169_v32 = vrot.slane %v524_v21, 2  ;;  %v2171_v33 = vrot.slane %v525_v22, 1  ;;  %v527_v34 = vld [vmem:[%s12362_s0 + $0x385] sm:$0x1]  ;;  %v528_v35 = vld [vmem:[%s12362_s0 + $0x389] sm:$0x1] }
  0xf3   :  { %v2156_v36 = vsel %vm1086_vm5, %v2155_v10, %v2154_v30  ;;  %v2162_v37 = vsel %vm1074_vm1, %v2161_v24, %v2160_v31  ;;  %v529_v38 = vld [vmem:[%s12362_s0 + $0x38d] sm:$0x1]  ;;  %v530_v39 = vld [vmem:[%s12362_s0 + $0x391] sm:$0x1]  ;;  %v531_v40 = vld [vmem:[%s12362_s0 + $0x395] sm:$0x1] }
  0xf4   :  { %v2158_v41 = vsel %vm1089_vm6, %v2157_v11, %v2156_v36  ;;  %v2164_v42 = vsel %vm1077_vm2, %v2163_v26, %v2162_v37  ;;  %v532_v43 = vld [vmem:[%s12362_s0 + $0x399] sm:$0x1]  ;;  %v533_v44 = vld [vmem:[%s12362_s0 + $0x39d] sm:$0x1]  ;;  %v2173_v45 = vrot.slane %v527_v34, 7  ;;  %v2175_v46 = vrot.slane %v528_v35, 6 }
  0xf5   :  { %7249 = vmatprep.mubr.msk.f32.mxu0 %vm2941_vm7, %v2158_v41  ;;  %v2166_v47 = vsel %vm1080_vm3, %v2165_v27, %v2164_v42  ;;  %v2177_v48 = vrot.slane %v529_v38, 5  ;;  %v2179_v49 = vrot.slane %v530_v39, 4  ;;  %v2181_v50 = vrot.slane %v531_v40, 3  ;;  %v534_v51 = vld [vmem:[%s12362_s0 + $0x3a1] sm:$0x1] }
  0xf6   :  { %v2168_v52 = vsel %vm1083_vm4, %v2167_v28, %v2166_v47  ;;  %v2174_v53 = vsel %vm1071_vm0, %v2173_v45, %v526_v29  ;;  %v2183_v54 = vrot.slane %v532_v43, 2  ;;  %v2185_v55 = vrot.slane %v533_v44, 1  ;;  %v535_v56 = vld [vmem:[%s12362_s0 + $0x3a5] sm:$0x1]  ;;  %v536_v57 = vld [vmem:[%s12362_s0 + $0x3a9] sm:$0x1] }
  0xf7   :  { %v2170_v58 = vsel %vm1086_vm5, %v2169_v32, %v2168_v52  ;;  %v2176_v59 = vsel %vm1074_vm1, %v2175_v46, %v2174_v53  ;;  %v537_v60 = vld [vmem:[%s12362_s0 + $0x3ad] sm:$0x1]  ;;  %v538_v61 = vld [vmem:[%s12362_s0 + $0x3b1] sm:$0x1]  ;;  %v539_v62 = vld [vmem:[%s12362_s0 + $0x3b5] sm:$0x1] }
  0xf8   :  { %v2172_v63 = vsel %vm1089_vm6, %v2171_v33, %v2170_v58  ;;  %v2178_v0 = vsel %vm1077_vm2, %v2177_v48, %v2176_v59  ;;  %v540_v1 = vld [vmem:[%s12362_s0 + $0x3b9] sm:$0x1]  ;;  %v541_v2 = vld [vmem:[%s12362_s0 + $0x3bd] sm:$0x1]  ;;  %v2187_v3 = vrot.slane %v535_v56, 7  ;;  %v2189_v4 = vrot.slane %v536_v57, 6 }
  0xf9   :  { %7250 = vmatmul.mubr.msk.f32.gmra.mrb[58].mxu0 %vm2941_vm7, %v2172_v63  ;;  %v2180_v5 = vsel %vm1080_vm3, %v2179_v49, %v2178_v0  ;;  %v2191_v6 = vrot.slane %v537_v60, 5  ;;  %v2193_v7 = vrot.slane %v538_v61, 4  ;;  %v2195_v8 = vrot.slane %v539_v62, 3  ;;  %v782_v9 = vld [vmem:[%s12362_s0 + $0x382] sm:$0x1] }
  0xfa   :  { %v2182_v10 = vsel %vm1083_vm4, %v2181_v50, %v2180_v5  ;;  %v2188_v11 = vsel %vm1071_vm0, %v2187_v3, %v534_v51  ;;  %v2197_v12 = vrot.slane %v540_v1, 2  ;;  %v2199_v13 = vrot.slane %v541_v2, 1  ;;  %v783_v14 = vld [vmem:[%s12362_s0 + $0x386] sm:$0x1]  ;;  %v784_v15 = vld [vmem:[%s12362_s0 + $0x38a] sm:$0x1] }
  0xfb   :  { %v2184_v16 = vsel %vm1086_vm5, %v2183_v54, %v2182_v10  ;;  %v2190_v17 = vsel %vm1074_vm1, %v2189_v4, %v2188_v11  ;;  %v785_v18 = vld [vmem:[%s12362_s0 + $0x38e] sm:$0x1]  ;;  %v786_v19 = vld [vmem:[%s12362_s0 + $0x392] sm:$0x1]  ;;  %v787_v20 = vld [vmem:[%s12362_s0 + $0x396] sm:$0x1] }
  0xfc   :  { %v2186_v21 = vsel %vm1089_vm6, %v2185_v55, %v2184_v16  ;;  %v2192_v22 = vsel %vm1077_vm2, %v2191_v6, %v2190_v17  ;;  %v788_v23 = vld [vmem:[%s12362_s0 + $0x39a] sm:$0x1]  ;;  %v789_v24 = vld [vmem:[%s12362_s0 + $0x39e] sm:$0x1]  ;;  %v2877_v25 = vrot.slane %v783_v14, 7  ;;  %v2879_v26 = vrot.slane %v784_v15, 6 }
  0xfd   :  { %7252 = vmatprep.mubr.msk.f32.mxu0 %vm2941_vm7, %v2186_v21  ;;  %v2194_v27 = vsel %vm1080_vm3, %v2193_v7, %v2192_v22  ;;  %v2881_v28 = vrot.slane %v785_v18, 5  ;;  %v2883_v29 = vrot.slane %v786_v19, 4  ;;  %v2885_v30 = vrot.slane %v787_v20, 3  ;;  %v790_v31 = vld [vmem:[%s12362_s0 + $0x3a2] sm:$0x1] }
  0xfe   :  { %v2196_v32 = vsel %vm1083_vm4, %v2195_v8, %v2194_v27  ;;  %v2878_v33 = vsel %vm1071_vm0, %v2877_v25, %v782_v9  ;;  %v2887_v34 = vrot.slane %v788_v23, 2  ;;  %v2889_v35 = vrot.slane %v789_v24, 1  ;;  %v791_v36 = vld [vmem:[%s12362_s0 + $0x3a6] sm:$0x1]  ;;  %v792_v37 = vld [vmem:[%s12362_s0 + $0x3aa] sm:$0x1] }
  0xff   :  { %v2198_v38 = vsel %vm1086_vm5, %v2197_v12, %v2196_v32  ;;  %v2880_v39 = vsel %vm1074_vm1, %v2879_v26, %v2878_v33  ;;  %v793_v40 = vld [vmem:[%s12362_s0 + $0x3ae] sm:$0x1]  ;;  %v794_v41 = vld [vmem:[%s12362_s0 + $0x3b2] sm:$0x1]  ;;  %v795_v42 = vld [vmem:[%s12362_s0 + $0x3b6] sm:$0x1] }
 0x100   :  { %v2200_v43 = vsel %vm1089_vm6, %v2199_v13, %v2198_v38  ;;  %v2882_v44 = vsel %vm1077_vm2, %v2881_v28, %v2880_v39  ;;  %v796_v45 = vld [vmem:[%s12362_s0 + $0x3ba] sm:$0x1]  ;;  %v797_v46 = vld [vmem:[%s12362_s0 + $0x3be] sm:$0x1]  ;;  %v2891_v47 = vrot.slane %v791_v36, 7  ;;  %v2893_v48 = vrot.slane %v792_v37, 6 }
 0x101   :  { %7253 = vmatmul.mubr.msk.f32.gmra.mrb[60].mxu0 %vm2941_vm7, %v2200_v43  ;;  %v2884_v49 = vsel %vm1080_vm3, %v2883_v29, %v2882_v44  ;;  %v2895_v50 = vrot.slane %v793_v40, 5  ;;  %v2897_v51 = vrot.slane %v794_v41, 4  ;;  %v2899_v52 = vrot.slane %v795_v42, 3  ;;  %v542_v53 = vld [vmem:[%s12362_s0 + $0x3c1] sm:$0x1] }
 0x102   :  { %v2886_v54 = vsel %vm1083_vm4, %v2885_v30, %v2884_v49  ;;  %v2892_v55 = vsel %vm1071_vm0, %v2891_v47, %v790_v31  ;;  %v2901_v56 = vrot.slane %v796_v45, 2  ;;  %v2903_v57 = vrot.slane %v797_v46, 1  ;;  %v543_v58 = vld [vmem:[%s12362_s0 + $0x3c5] sm:$0x1]  ;;  %v544_v59 = vld [vmem:[%s12362_s0 + $0x3c9] sm:$0x1] }
 0x103   :  { %v2888_v60 = vsel %vm1086_vm5, %v2887_v34, %v2886_v54  ;;  %v2894_v61 = vsel %vm1074_vm1, %v2893_v48, %v2892_v55  ;;  %v545_v62 = vld [vmem:[%s12362_s0 + $0x3cd] sm:$0x1]  ;;  %v546_v63 = vld [vmem:[%s12362_s0 + $0x3d1] sm:$0x1]  ;;  %v547_v0 = vld [vmem:[%s12362_s0 + $0x3d5] sm:$0x1] }
 0x104   :  { %v2890_v1 = vsel %vm1089_vm6, %v2889_v35, %v2888_v60  ;;  %v2896_v2 = vsel %vm1077_vm2, %v2895_v50, %v2894_v61  ;;  %v548_v3 = vld [vmem:[%s12362_s0 + $0x3d9] sm:$0x1]  ;;  %v549_v4 = vld [vmem:[%s12362_s0 + $0x3dd] sm:$0x1]  ;;  %v2201_v5 = vrot.slane %v543_v58, 7  ;;  %v2203_v6 = vrot.slane %v544_v59, 6 }
 0x105   :  { %7300 = vmatprep.mubr.msk.f32.mxu1 %vm2941_vm7, %v2890_v1  ;;  %v2898_v7 = vsel %vm1080_vm3, %v2897_v51, %v2896_v2  ;;  %v2205_v8 = vrot.slane %v545_v62, 5  ;;  %v2207_v9 = vrot.slane %v546_v63, 4  ;;  %v2209_v10 = vrot.slane %v547_v0, 3  ;;  %v550_v11 = vld [vmem:[%s12362_s0 + $0x3e1] sm:$0x1]  ;;  %v10396_v34 = vpop.f32.mrb[0].mxu0 }
 0x106   :  { %v2900_v12 = vsel %vm1083_vm4, %v2899_v52, %v2898_v7  ;;  %v2202_v13 = vsel %vm1071_vm0, %v2201_v5, %v542_v53  ;;  %v2211_v14 = vrot.slane %v548_v3, 2  ;;  %v2213_v15 = vrot.slane %v549_v4, 1  ;;  %v551_v16 = vld [vmem:[%s12362_s0 + $0x3e5] sm:$0x1]  ;;  %v552_v17 = vld [vmem:[%s12362_s0 + $0x3e9] sm:$0x1] }
 0x107   :  { %v2902_v18 = vsel %vm1086_vm5, %v2901_v56, %v2900_v12  ;;  %v2204_v19 = vsel %vm1074_vm1, %v2203_v6, %v2202_v13  ;;  %v553_v20 = vld [vmem:[%s12362_s0 + $0x3ed] sm:$0x1]  ;;  %v554_v21 = vld [vmem:[%s12362_s0 + $0x3f1] sm:$0x1]  ;;  %v555_v22 = vld [vmem:[%s12362_s0 + $0x3f5] sm:$0x1] }
 0x108   :  { %v2904_v23 = vsel %vm1089_vm6, %v2903_v57, %v2902_v18  ;;  %v2206_v24 = vsel %vm1077_vm2, %v2205_v8, %v2204_v19  ;;  %v556_v25 = vld [vmem:[%s12362_s0 + $0x3f9] sm:$0x1]  ;;  %v557_v26 = vld [vmem:[%s12362_s0 + $0x3fd] sm:$0x1]  ;;  %v2215_v27 = vrot.slane %v551_v16, 7  ;;  %v2217_v28 = vrot.slane %v552_v17, 6 }
 0x109   :  { %7301 = vmatmul.mubr.msk.f32.vlgmr.msra.gmra.mrb[0].mxu1 %vm2941_vm7, %v2904_v23  ;;  %v2208_v29 = vsel %vm1080_vm3, %v2207_v9, %v2206_v24  ;;  %v2219_v30 = vrot.slane %v553_v20, 5  ;;  %v2221_v31 = vrot.slane %v554_v21, 4  ;;  %v2223_v32 = vrot.slane %v555_v22, 3  ;;  %v798_v33 = vld [vmem:[%s12362_s0 + $0x3c2] sm:$0x1]  ;;  %v10430_v57 = vpop.f32.mrb[1].mxu0 }
 0x10a   :  { %v2210_v35 = vsel %vm1083_vm4, %v2209_v10, %v2208_v29  ;;  %v2216_v36 = vsel %vm1071_vm0, %v2215_v27, %v550_v11  ;;  %v2225_v37 = vrot.slane %v556_v25, 2  ;;  %v2227_v38 = vrot.slane %v557_v26, 1  ;;  %v799_v39 = vld [vmem:[%s12362_s0 + $0x3c6] sm:$0x1]  ;;  %v800_v40 = vld [vmem:[%s12362_s0 + $0x3ca] sm:$0x1] }
 0x10b   :  { %v2212_v41 = vsel %vm1086_vm5, %v2211_v14, %v2210_v35  ;;  %v2218_v42 = vsel %vm1074_vm1, %v2217_v28, %v2216_v36  ;;  %v801_v43 = vld [vmem:[%s12362_s0 + $0x3ce] sm:$0x1]  ;;  %v802_v44 = vld [vmem:[%s12362_s0 + $0x3d2] sm:$0x1]  ;;  %v803_v45 = vld [vmem:[%s12362_s0 + $0x3d6] sm:$0x1] }
 0x10c   :  { %v2214_v46 = vsel %vm1089_vm6, %v2213_v15, %v2212_v41  ;;  %v2220_v47 = vsel %vm1077_vm2, %v2219_v30, %v2218_v42  ;;  %v804_v48 = vld [vmem:[%s12362_s0 + $0x3da] sm:$0x1]  ;;  %v805_v49 = vld [vmem:[%s12362_s0 + $0x3de] sm:$0x1]  ;;  %v2905_v50 = vrot.slane %v799_v39, 7  ;;  %v2907_v51 = vrot.slane %v800_v40, 6 }
 0x10d   :  { %7255 = vmatprep.mubr.msk.f32.mxu0 %vm2941_vm7, %v2214_v46  ;;  %v2222_v52 = vsel %vm1080_vm3, %v2221_v31, %v2220_v47  ;;  %v2909_v53 = vrot.slane %v801_v43, 5  ;;  %v2911_v54 = vrot.slane %v802_v44, 4  ;;  %v2913_v55 = vrot.slane %v803_v45, 3  ;;  %v806_v56 = vld [vmem:[%s12362_s0 + $0x3e2] sm:$0x1]  ;;  %v10464_v16 = vpop.f32.mrb[2].mxu0 }
 0x10e   :  { %v2224_v58 = vsel %vm1083_vm4, %v2223_v32, %v2222_v52  ;;  %v2906_v59 = vsel %vm1071_vm0, %v2905_v50, %v798_v33  ;;  %v2915_v60 = vrot.slane %v804_v48, 2  ;;  %v2917_v61 = vrot.slane %v805_v49, 1  ;;  %v807_v62 = vld [vmem:[%s12362_s0 + $0x3e6] sm:$0x1]  ;;  %v808_v63 = vld [vmem:[%s12362_s0 + $0x3ea] sm:$0x1] }
 0x10f   :  { %v2226_v0 = vsel %vm1086_vm5, %v2225_v37, %v2224_v58  ;;  %v2908_v1 = vsel %vm1074_vm1, %v2907_v51, %v2906_v59  ;;  %v809_v2 = vld [vmem:[%s12362_s0 + $0x3ee] sm:$0x1]  ;;  %v810_v3 = vld [vmem:[%s12362_s0 + $0x3f2] sm:$0x1]  ;;  %v811_v4 = vld [vmem:[%s12362_s0 + $0x3f6] sm:$0x1] }
 0x110   :  { %v2228_v5 = vsel %vm1089_vm6, %v2227_v38, %v2226_v0  ;;  %v2910_v6 = vsel %vm1077_vm2, %v2909_v53, %v2908_v1  ;;  %v812_v7 = vld [vmem:[%s12362_s0 + $0x3fa] sm:$0x1]  ;;  %v813_v8 = vld [vmem:[%s12362_s0 + $0x3fe] sm:$0x1]  ;;  %v2919_v9 = vrot.slane %v807_v62, 7  ;;  %v2921_v10 = vrot.slane %v808_v63, 6 }
 0x111   :  { %7256 = vmatmul.mubr.msk.f32.gmra.mrb[62].mxu0 %vm2941_vm7, %v2228_v5  ;;  %v2912_v11 = vsel %vm1080_vm3, %v2911_v54, %v2910_v6  ;;  %v2923_v12 = vrot.slane %v809_v2, 5  ;;  %v2925_v13 = vrot.slane %v810_v3, 4  ;;  %v2927_v14 = vrot.slane %v811_v4, 3  ;;  %v558_v15 = vld [vmem:[%s12362_s0 + $0x2] sm:$0x1]  ;;  %v10498_v40 = vpop.f32.mrb[3].mxu0 }
 0x112   :  { %v2914_v17 = vsel %vm1083_vm4, %v2913_v55, %v2912_v11  ;;  %v2920_v18 = vsel %vm1071_vm0, %v2919_v9, %v806_v56  ;;  %v2929_v19 = vrot.slane %v812_v7, 2  ;;  %v2931_v20 = vrot.slane %v813_v8, 1  ;;  %v559_v21 = vld [vmem:[%s12362_s0 + $0x6] sm:$0x1]  ;;  %v560_v22 = vld [vmem:[%s12362_s0 + $0xa] sm:$0x1] }
 0x113   :  { %v2916_v23 = vsel %vm1086_vm5, %v2915_v60, %v2914_v17  ;;  %v2922_v24 = vsel %vm1074_vm1, %v2921_v10, %v2920_v18  ;;  %v561_v25 = vld [vmem:[%s12362_s0 + $0xe] sm:$0x1]  ;;  %v562_v26 = vld [vmem:[%s12362_s0 + $0x12] sm:$0x1]  ;;  %v563_v27 = vld [vmem:[%s12362_s0 + $0x16] sm:$0x1] }
 0x114   :  { %v2918_v28 = vsel %vm1089_vm6, %v2917_v61, %v2916_v23  ;;  %v2924_v29 = vsel %vm1077_vm2, %v2923_v12, %v2922_v24  ;;  %v564_v30 = vld [vmem:[%s12362_s0 + $0x1a] sm:$0x1]  ;;  %v565_v31 = vld [vmem:[%s12362_s0 + $0x1e] sm:$0x1]  ;;  %v2485_v32 = vrot.slane %v559_v21, 7  ;;  %v2487_v33 = vrot.slane %v560_v22, 6 }
 0x115   :  { %7303 = vmatprep.mubr.msk.f32.mxu1 %vm2941_vm7, %v2918_v28  ;;  %v2926_v35 = vsel %vm1080_vm3, %v2925_v13, %v2924_v29  ;;  %v2489_v36 = vrot.slane %v561_v25, 5  ;;  %v2491_v37 = vrot.slane %v562_v26, 4  ;;  %v2493_v38 = vrot.slane %v563_v27, 3  ;;  %v566_v39 = vld [vmem:[%s12362_s0 + $0x22] sm:$0x1]  ;;  %v10532_v0 = vpop.f32.mrb[4].mxu0 }
 0x116   :  { %v2928_v41 = vsel %vm1083_vm4, %v2927_v14, %v2926_v35  ;;  %v2486_v42 = vsel %vm1071_vm0, %v2485_v32, %v558_v15  ;;  %v2495_v43 = vrot.slane %v564_v30, 2  ;;  %v2497_v44 = vrot.slane %v565_v31, 1  ;;  %v567_v45 = vld [vmem:[%s12362_s0 + $0x26] sm:$0x1]  ;;  %v568_v46 = vld [vmem:[%s12362_s0 + $0x2a] sm:$0x1] }
 0x117   :  { %v2930_v47 = vsel %vm1086_vm5, %v2929_v19, %v2928_v41  ;;  %v2488_v48 = vsel %vm1074_vm1, %v2487_v33, %v2486_v42  ;;  %v569_v49 = vld [vmem:[%s12362_s0 + $0x2e] sm:$0x1]  ;;  %v570_v50 = vld [vmem:[%s12362_s0 + $0x32] sm:$0x1]  ;;  %v571_v51 = vld [vmem:[%s12362_s0 + $0x36] sm:$0x1] }
 0x118   :  { %v2932_v52 = vsel %vm1089_vm6, %v2931_v20, %v2930_v47  ;;  %v2490_v53 = vsel %vm1077_vm2, %v2489_v36, %v2488_v48  ;;  %v572_v54 = vld [vmem:[%s12362_s0 + $0x3a] sm:$0x1]  ;;  %v573_v55 = vld [vmem:[%s12362_s0 + $0x3e] sm:$0x1]  ;;  %v2499_v56 = vrot.slane %v567_v45, 7  ;;  %v2501_v58 = vrot.slane %v568_v46, 6 }
 0x119   :  { %7304 = vmatmul.mubr.msk.f32.gmra.mrb[2].mxu1 %vm2941_vm7, %v2932_v52  ;;  %v2492_v59 = vsel %vm1080_vm3, %v2491_v37, %v2490_v53  ;;  %v2503_v60 = vrot.slane %v569_v49, 5  ;;  %v2505_v61 = vrot.slane %v570_v50, 4  ;;  %v2507_v62 = vrot.slane %v571_v51, 3  ;;  %v574_v63 = vld [vmem:[%s12362_s0 + $0x42] sm:$0x1]  ;;  %v10566_v24 = vpop.f32.mrb[5].mxu0 }
 0x11a   :  { %v2494_v1 = vsel %vm1083_vm4, %v2493_v38, %v2492_v59  ;;  %v2500_v2 = vsel %vm1071_vm0, %v2499_v56, %v566_v39  ;;  %v2509_v3 = vrot.slane %v572_v54, 2  ;;  %v2511_v4 = vrot.slane %v573_v55, 1  ;;  %v575_v5 = vld [vmem:[%s12362_s0 + $0x46] sm:$0x1]  ;;  %v576_v6 = vld [vmem:[%s12362_s0 + $0x4a] sm:$0x1] }
 0x11b   :  { %v2496_v7 = vsel %vm1086_vm5, %v2495_v43, %v2494_v1  ;;  %v2502_v8 = vsel %vm1074_vm1, %v2501_v58, %v2500_v2  ;;  %v577_v9 = vld [vmem:[%s12362_s0 + $0x4e] sm:$0x1]  ;;  %v578_v10 = vld [vmem:[%s12362_s0 + $0x52] sm:$0x1]  ;;  %v579_v11 = vld [vmem:[%s12362_s0 + $0x56] sm:$0x1] }
 0x11c   :  { %v2498_v12 = vsel %vm1089_vm6, %v2497_v44, %v2496_v7  ;;  %v2504_v13 = vsel %vm1077_vm2, %v2503_v60, %v2502_v8  ;;  %v580_v14 = vld [vmem:[%s12362_s0 + $0x5a] sm:$0x1]  ;;  %v581_v15 = vld [vmem:[%s12362_s0 + $0x5e] sm:$0x1]  ;;  %v2513_v17 = vrot.slane %v575_v5, 7  ;;  %v2515_v18 = vrot.slane %v576_v6, 6 }
 0x11d   :  { %7258 = vmatprep.mubr.msk.f32.mxu0 %vm2941_vm7, %v2498_v12  ;;  %v2506_v19 = vsel %vm1080_vm3, %v2505_v61, %v2504_v13  ;;  %v2517_v20 = vrot.slane %v577_v9, 5  ;;  %v2519_v21 = vrot.slane %v578_v10, 4  ;;  %v2521_v22 = vrot.slane %v579_v11, 3  ;;  %v582_v23 = vld [vmem:[%s12362_s0 + $0x62] sm:$0x1]  ;;  %v10600_v49 = vpop.f32.mrb[6].mxu0 }
 0x11e   :  { %v2508_v25 = vsel %vm1083_vm4, %v2507_v62, %v2506_v19  ;;  %v2514_v26 = vsel %vm1071_vm0, %v2513_v17, %v574_v63  ;;  %v2523_v27 = vrot.slane %v580_v14, 2  ;;  %v2525_v28 = vrot.slane %v581_v15, 1  ;;  %v583_v29 = vld [vmem:[%s12362_s0 + $0x66] sm:$0x1]  ;;  %v584_v30 = vld [vmem:[%s12362_s0 + $0x6a] sm:$0x1] }
 0x11f   :  { %v2510_v31 = vsel %vm1086_vm5, %v2509_v3, %v2508_v25  ;;  %v2516_v32 = vsel %vm1074_vm1, %v2515_v18, %v2514_v26  ;;  %v585_v33 = vld [vmem:[%s12362_s0 + $0x6e] sm:$0x1]  ;;  %v586_v35 = vld [vmem:[%s12362_s0 + $0x72] sm:$0x1]  ;;  %v587_v36 = vld [vmem:[%s12362_s0 + $0x76] sm:$0x1] }
 0x120   :  { %v2512_v37 = vsel %vm1089_vm6, %v2511_v4, %v2510_v31  ;;  %v2518_v38 = vsel %vm1077_vm2, %v2517_v20, %v2516_v32  ;;  %v588_v39 = vld [vmem:[%s12362_s0 + $0x7a] sm:$0x1]  ;;  %v589_v41 = vld [vmem:[%s12362_s0 + $0x7e] sm:$0x1]  ;;  %v2527_v42 = vrot.slane %v583_v29, 7  ;;  %v2529_v43 = vrot.slane %v584_v30, 6 }
 0x121   :  { %7259 = vmatmul.mubr.msk.f32.gmra.mrb[64].mxu0 %vm2941_vm7, %v2512_v37  ;;  %v2520_v44 = vsel %vm1080_vm3, %v2519_v21, %v2518_v38  ;;  %v2531_v45 = vrot.slane %v585_v33, 5  ;;  %v2533_v46 = vrot.slane %v586_v35, 4  ;;  %v2535_v47 = vrot.slane %v587_v36, 3  ;;  %v590_v48 = vld [vmem:[%s12362_s0 + $0x82] sm:$0x1]  ;;  %v10634_v10 = vpop.f32.mrb[7].mxu0 }
 0x122   :  { %v2522_v50 = vsel %vm1083_vm4, %v2521_v22, %v2520_v44  ;;  %v2528_v51 = vsel %vm1071_vm0, %v2527_v42, %v582_v23  ;;  %v2537_v52 = vrot.slane %v588_v39, 2  ;;  %v2539_v53 = vrot.slane %v589_v41, 1  ;;  %v591_v54 = vld [vmem:[%s12362_s0 + $0x86] sm:$0x1]  ;;  %v592_v55 = vld [vmem:[%s12362_s0 + $0x8a] sm:$0x1] }
 0x123   :  { %v2524_v56 = vsel %vm1086_vm5, %v2523_v27, %v2522_v50  ;;  %v2530_v58 = vsel %vm1074_vm1, %v2529_v43, %v2528_v51  ;;  %v593_v59 = vld [vmem:[%s12362_s0 + $0x8e] sm:$0x1]  ;;  %v594_v60 = vld [vmem:[%s12362_s0 + $0x92] sm:$0x1]  ;;  %v595_v61 = vld [vmem:[%s12362_s0 + $0x96] sm:$0x1] }
 0x124   :  { %v2526_v62 = vsel %vm1089_vm6, %v2525_v28, %v2524_v56  ;;  %v2532_v63 = vsel %vm1077_vm2, %v2531_v45, %v2530_v58  ;;  %v596_v1 = vld [vmem:[%s12362_s0 + $0x9a] sm:$0x1]  ;;  %v597_v2 = vld [vmem:[%s12362_s0 + $0x9e] sm:$0x1]  ;;  %v2541_v3 = vrot.slane %v591_v54, 7  ;;  %v2543_v4 = vrot.slane %v592_v55, 6 }
 0x125   :  { %7261 = vmatprep.mubr.msk.f32.mxu0 %vm2941_vm7, %v2526_v62  ;;  %v2534_v5 = vsel %vm1080_vm3, %v2533_v46, %v2532_v63  ;;  %v2545_v6 = vrot.slane %v593_v59, 5  ;;  %v2547_v7 = vrot.slane %v594_v60, 4  ;;  %v2549_v8 = vrot.slane %v595_v61, 3  ;;  %v598_v9 = vld [vmem:[%s12362_s0 + $0xa2] sm:$0x1]  ;;  %v10668_v36 = vpop.f32.mrb[8].mxu0 }
 0x126   :  { %v2536_v11 = vsel %vm1083_vm4, %v2535_v47, %v2534_v5  ;;  %v2542_v12 = vsel %vm1071_vm0, %v2541_v3, %v590_v48  ;;  %v2551_v13 = vrot.slane %v596_v1, 2  ;;  %v2553_v14 = vrot.slane %v597_v2, 1  ;;  %v599_v15 = vld [vmem:[%s12362_s0 + $0xa6] sm:$0x1]  ;;  %v600_v17 = vld [vmem:[%s12362_s0 + $0xaa] sm:$0x1] }
 0x127   :  { %v2538_v18 = vsel %vm1086_vm5, %v2537_v52, %v2536_v11  ;;  %v2544_v19 = vsel %vm1074_vm1, %v2543_v4, %v2542_v12  ;;  %v601_v20 = vld [vmem:[%s12362_s0 + $0xae] sm:$0x1]  ;;  %v602_v21 = vld [vmem:[%s12362_s0 + $0xb2] sm:$0x1]  ;;  %v603_v22 = vld [vmem:[%s12362_s0 + $0xb6] sm:$0x1] }
 0x128   :  { %v2540_v23 = vsel %vm1089_vm6, %v2539_v53, %v2538_v18  ;;  %v2546_v25 = vsel %vm1077_vm2, %v2545_v6, %v2544_v19  ;;  %v604_v26 = vld [vmem:[%s12362_s0 + $0xba] sm:$0x1]  ;;  %v605_v27 = vld [vmem:[%s12362_s0 + $0xbe] sm:$0x1]  ;;  %v2555_v28 = vrot.slane %v599_v15, 7  ;;  %v2557_v29 = vrot.slane %v600_v17, 6 }
 0x129   :  { %7262 = vmatmul.mubr.msk.f32.gmra.mrb[66].mxu0 %vm2941_vm7, %v2540_v23  ;;  %v2548_v30 = vsel %vm1080_vm3, %v2547_v7, %v2546_v25  ;;  %v2559_v31 = vrot.slane %v601_v20, 5  ;;  %v2561_v32 = vrot.slane %v602_v21, 4  ;;  %v2563_v33 = vrot.slane %v603_v22, 3  ;;  %v606_v35 = vld [vmem:[%s12362_s0 + $0xc2] sm:$0x1]  ;;  %v10702_v62 = vpop.f32.mrb[9].mxu0 }
 0x12a   :  { %v2550_v37 = vsel %vm1083_vm4, %v2549_v8, %v2548_v30  ;;  %v2556_v38 = vsel %vm1071_vm0, %v2555_v28, %v598_v9  ;;  %v2565_v39 = vrot.slane %v604_v26, 2  ;;  %v2567_v41 = vrot.slane %v605_v27, 1  ;;  %v607_v42 = vld [vmem:[%s12362_s0 + $0xc6] sm:$0x1]  ;;  %v608_v43 = vld [vmem:[%s12362_s0 + $0xca] sm:$0x1] }
 0x12b   :  { %v2552_v44 = vsel %vm1086_vm5, %v2551_v13, %v2550_v37  ;;  %v2558_v45 = vsel %vm1074_vm1, %v2557_v29, %v2556_v38  ;;  %v609_v46 = vld [vmem:[%s12362_s0 + $0xce] sm:$0x1]  ;;  %v610_v47 = vld [vmem:[%s12362_s0 + $0xd2] sm:$0x1]  ;;  %v611_v48 = vld [vmem:[%s12362_s0 + $0xd6] sm:$0x1] }
 0x12c   :  { %v2554_v50 = vsel %vm1089_vm6, %v2553_v14, %v2552_v44  ;;  %v2560_v51 = vsel %vm1077_vm2, %v2559_v31, %v2558_v45  ;;  %v612_v52 = vld [vmem:[%s12362_s0 + $0xda] sm:$0x1]  ;;  %v613_v53 = vld [vmem:[%s12362_s0 + $0xde] sm:$0x1]  ;;  %v2569_v54 = vrot.slane %v607_v42, 7  ;;  %v2571_v55 = vrot.slane %v608_v43, 6 }
 0x12d   :  { %7264 = vmatprep.mubr.msk.f32.mxu0 %vm2941_vm7, %v2554_v50  ;;  %v2562_v56 = vsel %vm1080_vm3, %v2561_v32, %v2560_v51  ;;  %v2573_v58 = vrot.slane %v609_v46, 5  ;;  %v2575_v59 = vrot.slane %v610_v47, 4  ;;  %v2577_v60 = vrot.slane %v611_v48, 3  ;;  %v614_v61 = vld [vmem:[%s12362_s0 + $0xe2] sm:$0x1]  ;;  %v10736_v25 = vpop.f32.mrb[10].mxu0 }
 0x12e   :  { %v2564_v63 = vsel %vm1083_vm4, %v2563_v33, %v2562_v56  ;;  %v2570_v1 = vsel %vm1071_vm0, %v2569_v54, %v606_v35  ;;  %v2579_v2 = vrot.slane %v612_v52, 2  ;;  %v2581_v3 = vrot.slane %v613_v53, 1  ;;  %v615_v4 = vld [vmem:[%s12362_s0 + $0xe6] sm:$0x1]  ;;  %v616_v5 = vld [vmem:[%s12362_s0 + $0xea] sm:$0x1] }
 0x12f   :  { %v2566_v6 = vsel %vm1086_vm5, %v2565_v39, %v2564_v63  ;;  %v2572_v7 = vsel %vm1074_vm1, %v2571_v55, %v2570_v1  ;;  %v617_v8 = vld [vmem:[%s12362_s0 + $0xee] sm:$0x1]  ;;  %v618_v9 = vld [vmem:[%s12362_s0 + $0xf2] sm:$0x1]  ;;  %v619_v11 = vld [vmem:[%s12362_s0 + $0xf6] sm:$0x1] }
 0x130   :  { %v2568_v12 = vsel %vm1089_vm6, %v2567_v41, %v2566_v6  ;;  %v2574_v13 = vsel %vm1077_vm2, %v2573_v58, %v2572_v7  ;;  %v620_v14 = vld [vmem:[%s12362_s0 + $0xfa] sm:$0x1]  ;;  %v621_v15 = vld [vmem:[%s12362_s0 + $0xfe] sm:$0x1]  ;;  %v2583_v17 = vrot.slane %v615_v4, 7  ;;  %v2585_v18 = vrot.slane %v616_v5, 6 }
 0x131   :  { %7265 = vmatmul.mubr.msk.f32.gmra.mrb[68].mxu0 %vm2941_vm7, %v2568_v12  ;;  %v2576_v19 = vsel %vm1080_vm3, %v2575_v59, %v2574_v13  ;;  %v2587_v20 = vrot.slane %v617_v8, 5  ;;  %v2589_v21 = vrot.slane %v618_v9, 4  ;;  %v2591_v22 = vrot.slane %v619_v11, 3  ;;  %v622_v23 = vld [vmem:[%s12362_s0 + $0x102] sm:$0x1]  ;;  %v10770_v52 = vpop.f32.mrb[11].mxu0 }
 0x132   :  { %v2578_v26 = vsel %vm1083_vm4, %v2577_v60, %v2576_v19  ;;  %v2584_v27 = vsel %vm1071_vm0, %v2583_v17, %v614_v61  ;;  %v2593_v28 = vrot.slane %v620_v14, 2  ;;  %v2595_v29 = vrot.slane %v621_v15, 1  ;;  %v623_v30 = vld [vmem:[%s12362_s0 + $0x106] sm:$0x1]  ;;  %v624_v31 = vld [vmem:[%s12362_s0 + $0x10a] sm:$0x1] }
 0x133   :  { %v2580_v32 = vsel %vm1086_vm5, %v2579_v2, %v2578_v26  ;;  %v2586_v33 = vsel %vm1074_vm1, %v2585_v18, %v2584_v27  ;;  %v625_v35 = vld [vmem:[%s12362_s0 + $0x10e] sm:$0x1]  ;;  %v626_v37 = vld [vmem:[%s12362_s0 + $0x112] sm:$0x1]  ;;  %v627_v38 = vld [vmem:[%s12362_s0 + $0x116] sm:$0x1] }
 0x134   :  { %v2582_v39 = vsel %vm1089_vm6, %v2581_v3, %v2580_v32  ;;  %v2588_v41 = vsel %vm1077_vm2, %v2587_v20, %v2586_v33  ;;  %v628_v42 = vld [vmem:[%s12362_s0 + $0x11a] sm:$0x1]  ;;  %v629_v43 = vld [vmem:[%s12362_s0 + $0x11e] sm:$0x1]  ;;  %v2597_v44 = vrot.slane %v623_v30, 7  ;;  %v2599_v45 = vrot.slane %v624_v31, 6 }
 0x135   :  { %7267 = vmatprep.mubr.msk.f32.mxu0 %vm2941_vm7, %v2582_v39  ;;  %v2590_v46 = vsel %vm1080_vm3, %v2589_v21, %v2588_v41  ;;  %v2601_v47 = vrot.slane %v625_v35, 5  ;;  %v2603_v48 = vrot.slane %v626_v37, 4  ;;  %v2605_v50 = vrot.slane %v627_v38, 3  ;;  %v630_v51 = vld [vmem:[%s12362_s0 + $0x122] sm:$0x1]  ;;  %v10804_v15 = vpop.f32.mrb[12].mxu0 }
 0x136   :  { %v2592_v53 = vsel %vm1083_vm4, %v2591_v22, %v2590_v46  ;;  %v2598_v54 = vsel %vm1071_vm0, %v2597_v44, %v622_v23  ;;  %v2607_v55 = vrot.slane %v628_v42, 2  ;;  %v2609_v56 = vrot.slane %v629_v43, 1  ;;  %v631_v58 = vld [vmem:[%s12362_s0 + $0x126] sm:$0x1]  ;;  %v632_v59 = vld [vmem:[%s12362_s0 + $0x12a] sm:$0x1] }
 0x137   :  { %v2594_v60 = vsel %vm1086_vm5, %v2593_v28, %v2592_v53  ;;  %v2600_v61 = vsel %vm1074_vm1, %v2599_v45, %v2598_v54  ;;  %v633_v63 = vld [vmem:[%s12362_s0 + $0x12e] sm:$0x1]  ;;  %v634_v1 = vld [vmem:[%s12362_s0 + $0x132] sm:$0x1]  ;;  %v635_v2 = vld [vmem:[%s12362_s0 + $0x136] sm:$0x1] }
 0x138   :  { %v2596_v3 = vsel %vm1089_vm6, %v2595_v29, %v2594_v60  ;;  %v2602_v4 = vsel %vm1077_vm2, %v2601_v47, %v2600_v61  ;;  %v636_v5 = vld [vmem:[%s12362_s0 + $0x13a] sm:$0x1]  ;;  %v637_v6 = vld [vmem:[%s12362_s0 + $0x13e] sm:$0x1]  ;;  %v2611_v7 = vrot.slane %v631_v58, 7  ;;  %v2613_v8 = vrot.slane %v632_v59, 6 }
 0x139   :  { %7268 = vmatmul.mubr.msk.f32.gmra.mrb[70].mxu0 %vm2941_vm7, %v2596_v3  ;;  %v2604_v9 = vsel %vm1080_vm3, %v2603_v48, %v2602_v4  ;;  %v2615_v11 = vrot.slane %v633_v63, 5  ;;  %v2617_v12 = vrot.slane %v634_v1, 4  ;;  %v2619_v13 = vrot.slane %v635_v2, 3  ;;  %v638_v14 = vld [vmem:[%s12362_s0 + $0x142] sm:$0x1]  ;;  %v10838_v44 = vpop.f32.mrb[13].mxu0 }
 0x13a   :  { %v2606_v17 = vsel %vm1083_vm4, %v2605_v50, %v2604_v9  ;;  %v2612_v18 = vsel %vm1071_vm0, %v2611_v7, %v630_v51  ;;  %v2621_v19 = vrot.slane %v636_v5, 2  ;;  %v2623_v20 = vrot.slane %v637_v6, 1  ;;  %v639_v21 = vld [vmem:[%s12362_s0 + $0x146] sm:$0x1]  ;;  %v640_v22 = vld [vmem:[%s12362_s0 + $0x14a] sm:$0x1] }
 0x13b   :  { %v2608_v23 = vsel %vm1086_vm5, %v2607_v55, %v2606_v17  ;;  %v2614_v26 = vsel %vm1074_vm1, %v2613_v8, %v2612_v18  ;;  %v641_v27 = vld [vmem:[%s12362_s0 + $0x14e] sm:$0x1]  ;;  %v642_v28 = vld [vmem:[%s12362_s0 + $0x152] sm:$0x1]  ;;  %v643_v29 = vld [vmem:[%s12362_s0 + $0x156] sm:$0x1] }
 0x13c   :  { %v2610_v30 = vsel %vm1089_vm6, %v2609_v56, %v2608_v23  ;;  %v2616_v31 = vsel %vm1077_vm2, %v2615_v11, %v2614_v26  ;;  %v644_v32 = vld [vmem:[%s12362_s0 + $0x15a] sm:$0x1]  ;;  %v645_v33 = vld [vmem:[%s12362_s0 + $0x15e] sm:$0x1]  ;;  %v2625_v35 = vrot.slane %v639_v21, 7  ;;  %v2627_v37 = vrot.slane %v640_v22, 6 }
 0x13d   :  { %7270 = vmatprep.mubr.msk.f32.mxu0 %vm2941_vm7, %v2610_v30  ;;  %v2618_v38 = vsel %vm1080_vm3, %v2617_v12, %v2616_v31  ;;  %v2629_v39 = vrot.slane %v641_v27, 5  ;;  %v2631_v41 = vrot.slane %v642_v28, 4  ;;  %v2633_v42 = vrot.slane %v643_v29, 3  ;;  %v646_v43 = vld [vmem:[%s12362_s0 + $0x162] sm:$0x1]  ;;  %v10872_v8 = vpop.f32.mrb[14].mxu0 }
 0x13e   :  { %v2620_v45 = vsel %vm1083_vm4, %v2619_v13, %v2618_v38  ;;  %v2626_v46 = vsel %vm1071_vm0, %v2625_v35, %v638_v14  ;;  %v2635_v47 = vrot.slane %v644_v32, 2  ;;  %v2637_v48 = vrot.slane %v645_v33, 1  ;;  %v647_v50 = vld [vmem:[%s12362_s0 + $0x166] sm:$0x1]  ;;  %v648_v51 = vld [vmem:[%s12362_s0 + $0x16a] sm:$0x1] }
 0x13f   :  { %v2622_v53 = vsel %vm1086_vm5, %v2621_v19, %v2620_v45  ;;  %v2628_v54 = vsel %vm1074_vm1, %v2627_v37, %v2626_v46  ;;  %v649_v55 = vld [vmem:[%s12362_s0 + $0x16e] sm:$0x1]  ;;  %v650_v56 = vld [vmem:[%s12362_s0 + $0x172] sm:$0x1]  ;;  %v651_v58 = vld [vmem:[%s12362_s0 + $0x176] sm:$0x1] }
 0x140   :  { %v2624_v59 = vsel %vm1089_vm6, %v2623_v20, %v2622_v53  ;;  %v2630_v60 = vsel %vm1077_vm2, %v2629_v39, %v2628_v54  ;;  %v652_v61 = vld [vmem:[%s12362_s0 + $0x17a] sm:$0x1]  ;;  %v653_v63 = vld [vmem:[%s12362_s0 + $0x17e] sm:$0x1]  ;;  %v2639_v1 = vrot.slane %v647_v50, 7  ;;  %v2641_v2 = vrot.slane %v648_v51, 6 }
 0x141   :  { %7271 = vmatmul.mubr.msk.f32.gmra.mrb[72].mxu0 %vm2941_vm7, %v2624_v59  ;;  %v2632_v3 = vsel %vm1080_vm3, %v2631_v41, %v2630_v60  ;;  %v2643_v4 = vrot.slane %v649_v55, 5  ;;  %v2645_v5 = vrot.slane %v650_v56, 4  ;;  %v2647_v6 = vrot.slane %v651_v58, 3  ;;  %v654_v7 = vld [vmem:[%s12362_s0 + $0x182] sm:$0x1]  ;;  %v10906_v38 = vpop.f32.mrb[15].mxu0 }
 0x142   :  { %v2634_v9 = vsel %vm1083_vm4, %v2633_v42, %v2632_v3  ;;  %v2640_v11 = vsel %vm1071_vm0, %v2639_v1, %v646_v43  ;;  %v2649_v12 = vrot.slane %v652_v61, 2  ;;  %v2651_v13 = vrot.slane %v653_v63, 1  ;;  %v655_v14 = vld [vmem:[%s12362_s0 + $0x186] sm:$0x1]  ;;  %v656_v17 = vld [vmem:[%s12362_s0 + $0x18a] sm:$0x1] }
 0x143   :  { %v2636_v18 = vsel %vm1086_vm5, %v2635_v47, %v2634_v9  ;;  %v2642_v19 = vsel %vm1074_vm1, %v2641_v2, %v2640_v11  ;;  %v657_v20 = vld [vmem:[%s12362_s0 + $0x18e] sm:$0x1]  ;;  %v658_v21 = vld [vmem:[%s12362_s0 + $0x192] sm:$0x1]  ;;  %v659_v22 = vld [vmem:[%s12362_s0 + $0x196] sm:$0x1] }
 0x144   :  { %v2638_v23 = vsel %vm1089_vm6, %v2637_v48, %v2636_v18  ;;  %v2644_v26 = vsel %vm1077_vm2, %v2643_v4, %v2642_v19  ;;  %v660_v27 = vld [vmem:[%s12362_s0 + $0x19a] sm:$0x1]  ;;  %v661_v28 = vld [vmem:[%s12362_s0 + $0x19e] sm:$0x1]  ;;  %v2653_v29 = vrot.slane %v655_v14, 7  ;;  %v2655_v30 = vrot.slane %v656_v17, 6 }
 0x145   :  { %7273 = vmatprep.mubr.msk.f32.mxu0 %vm2941_vm7, %v2638_v23  ;;  %v2646_v31 = vsel %vm1080_vm3, %v2645_v5, %v2644_v26  ;;  %v2657_v32 = vrot.slane %v657_v20, 5  ;;  %v2659_v33 = vrot.slane %v658_v21, 4  ;;  %v2661_v35 = vrot.slane %v659_v22, 3  ;;  %v662_v37 = vld [vmem:[%s12362_s0 + $0x1a2] sm:$0x1]  ;;  %v10940_v4 = vpop.f32.mrb[16].mxu0 }
 0x146   :  { %v2648_v39 = vsel %vm1083_vm4, %v2647_v6, %v2646_v31  ;;  %v2654_v41 = vsel %vm1071_vm0, %v2653_v29, %v654_v7  ;;  %v2663_v42 = vrot.slane %v660_v27, 2  ;;  %v2665_v43 = vrot.slane %v661_v28, 1  ;;  %v663_v45 = vld [vmem:[%s12362_s0 + $0x1a6] sm:$0x1]  ;;  %v664_v46 = vld [vmem:[%s12362_s0 + $0x1aa] sm:$0x1] }
 0x147   :  { %v2650_v47 = vsel %vm1086_vm5, %v2649_v12, %v2648_v39  ;;  %v2656_v48 = vsel %vm1074_vm1, %v2655_v30, %v2654_v41  ;;  %v665_v50 = vld [vmem:[%s12362_s0 + $0x1ae] sm:$0x1]  ;;  %v666_v51 = vld [vmem:[%s12362_s0 + $0x1b2] sm:$0x1]  ;;  %v667_v53 = vld [vmem:[%s12362_s0 + $0x1b6] sm:$0x1] }
 0x148   :  { %v2652_v54 = vsel %vm1089_vm6, %v2651_v13, %v2650_v47  ;;  %v2658_v55 = vsel %vm1077_vm2, %v2657_v32, %v2656_v48  ;;  %v668_v56 = vld [vmem:[%s12362_s0 + $0x1ba] sm:$0x1]  ;;  %v669_v58 = vld [vmem:[%s12362_s0 + $0x1be] sm:$0x1]  ;;  %v2667_v59 = vrot.slane %v663_v45, 7  ;;  %v2669_v60 = vrot.slane %v664_v46, 6 }
 0x149   :  { %7274 = vmatmul.mubr.msk.f32.gmra.mrb[74].mxu0 %vm2941_vm7, %v2652_v54  ;;  %v2660_v61 = vsel %vm1080_vm3, %v2659_v33, %v2658_v55  ;;  %v2671_v63 = vrot.slane %v665_v50, 5  ;;  %v2673_v1 = vrot.slane %v666_v51, 4  ;;  %v2675_v2 = vrot.slane %v667_v53, 3  ;;  %v670_v3 = vld [vmem:[%s12362_s0 + $0x1c2] sm:$0x1]  ;;  %v10974_v33 = vpop.f32.mrb[17].mxu0 }
 0x14a   :  { %v2662_v5 = vsel %vm1083_vm4, %v2661_v35, %v2660_v61  ;;  %v2668_v6 = vsel %vm1071_vm0, %v2667_v59, %v662_v37  ;;  %v2677_v7 = vrot.slane %v668_v56, 2  ;;  %v2679_v9 = vrot.slane %v669_v58, 1  ;;  %v671_v11 = vld [vmem:[%s12362_s0 + $0x1c6] sm:$0x1]  ;;  %v672_v12 = vld [vmem:[%s12362_s0 + $0x1ca] sm:$0x1] }
 0x14b   :  { %v2664_v13 = vsel %vm1086_vm5, %v2663_v42, %v2662_v5  ;;  %v2670_v14 = vsel %vm1074_vm1, %v2669_v60, %v2668_v6  ;;  %v673_v17 = vld [vmem:[%s12362_s0 + $0x1ce] sm:$0x1]  ;;  %v674_v18 = vld [vmem:[%s12362_s0 + $0x1d2] sm:$0x1]  ;;  %v675_v19 = vld [vmem:[%s12362_s0 + $0x1d6] sm:$0x1] }
 0x14c   :  { %v2666_v20 = vsel %vm1089_vm6, %v2665_v43, %v2664_v13  ;;  %v2672_v21 = vsel %vm1077_vm2, %v2671_v63, %v2670_v14  ;;  %v676_v22 = vld [vmem:[%s12362_s0 + $0x1da] sm:$0x1]  ;;  %v677_v23 = vld [vmem:[%s12362_s0 + $0x1de] sm:$0x1]  ;;  %v2681_v26 = vrot.slane %v671_v11, 7  ;;  %v2683_v27 = vrot.slane %v672_v12, 6 }
 0x14d   :  { %7276 = vmatprep.mubr.msk.f32.mxu0 %vm2941_vm7, %v2666_v20  ;;  %v2674_v28 = vsel %vm1080_vm3, %v2673_v1, %v2672_v21  ;;  %v2685_v29 = vrot.slane %v673_v17, 5  ;;  %v2687_v30 = vrot.slane %v674_v18, 4  ;;  %v2689_v31 = vrot.slane %v675_v19, 3  ;;  %v678_v32 = vld [vmem:[%s12362_s0 + $0x1e2] sm:$0x1] }
 0x14e   :  { %v2676_v35 = vsel %vm1083_vm4, %v2675_v2, %v2674_v28  ;;  %v2682_v37 = vsel %vm1071_vm0, %v2681_v26, %v670_v3  ;;  %v2691_v39 = vrot.slane %v676_v22, 2  ;;  %v2693_v41 = vrot.slane %v677_v23, 1  ;;  %v679_v42 = vld [vmem:[%s12362_s0 + $0x1e6] sm:$0x1]  ;;  %v680_v43 = vld [vmem:[%s12362_s0 + $0x1ea] sm:$0x1] }
 0x14f   :  { %v2678_v45 = vsel %vm1086_vm5, %v2677_v7, %v2676_v35  ;;  %v2684_v46 = vsel %vm1074_vm1, %v2683_v27, %v2682_v37  ;;  %v681_v47 = vld [vmem:[%s12362_s0 + $0x1ee] sm:$0x1]  ;;  %v682_v48 = vld [vmem:[%s12362_s0 + $0x1f2] sm:$0x1]  ;;  %v683_v50 = vld [vmem:[%s12362_s0 + $0x1f6] sm:$0x1] }
 0x150   :  { %v2680_v51 = vsel %vm1089_vm6, %v2679_v9, %v2678_v45  ;;  %v2686_v53 = vsel %vm1077_vm2, %v2685_v29, %v2684_v46  ;;  %v684_v54 = vld [vmem:[%s12362_s0 + $0x1fa] sm:$0x1]  ;;  %v685_v55 = vld [vmem:[%s12362_s0 + $0x1fe] sm:$0x1]  ;;  %v2695_v56 = vrot.slane %v679_v42, 7  ;;  %v2697_v58 = vrot.slane %v680_v43, 6 }
 0x151   :  { %7277 = vmatmul.mubr.msk.f32.gmra.mrb[76].mxu0 %vm2941_vm7, %v2680_v51  ;;  %v2688_v59 = vsel %vm1080_vm3, %v2687_v30, %v2686_v53  ;;  %v2699_v60 = vrot.slane %v681_v47, 5  ;;  %v2701_v61 = vrot.slane %v682_v48, 4  ;;  %v2703_v63 = vrot.slane %v683_v50, 3  ;;  %v686_v1 = vld [vmem:[%s12362_s0 + $0x202] sm:$0x1]  ;;  %v11008_v2 = vpop.f32.mrb[18].mxu0 }
 0x152   :  { %v2690_v3 = vsel %vm1083_vm4, %v2689_v31, %v2688_v59  ;;  %v2696_v5 = vsel %vm1071_vm0, %v2695_v56, %v678_v32  ;;  %v2705_v6 = vrot.slane %v684_v54, 2  ;;  %v2707_v7 = vrot.slane %v685_v55, 1  ;;  %v687_v9 = vld [vmem:[%s12362_s0 + $0x206] sm:$0x1]  ;;  %v688_v11 = vld [vmem:[%s12362_s0 + $0x20a] sm:$0x1] }
 0x153   :  { %v2692_v12 = vsel %vm1086_vm5, %v2691_v39, %v2690_v3  ;;  %v2698_v13 = vsel %vm1074_vm1, %v2697_v58, %v2696_v5  ;;  %v689_v14 = vld [vmem:[%s12362_s0 + $0x20e] sm:$0x1]  ;;  %v690_v17 = vld [vmem:[%s12362_s0 + $0x212] sm:$0x1]  ;;  %v691_v18 = vld [vmem:[%s12362_s0 + $0x216] sm:$0x1] }
 0x154   :  { %v2694_v19 = vsel %vm1089_vm6, %v2693_v41, %v2692_v12  ;;  %v2700_v20 = vsel %vm1077_vm2, %v2699_v60, %v2698_v13  ;;  %v692_v21 = vld [vmem:[%s12362_s0 + $0x21a] sm:$0x1]  ;;  %v693_v22 = vld [vmem:[%s12362_s0 + $0x21e] sm:$0x1]  ;;  %v2709_v23 = vrot.slane %v687_v9, 7  ;;  %v2711_v26 = vrot.slane %v688_v11, 6 }
 0x155   :  { %7279 = vmatprep.mubr.msk.f32.mxu0 %vm2941_vm7, %v2694_v19  ;;  %v2702_v27 = vsel %vm1080_vm3, %v2701_v61, %v2700_v20  ;;  %v2713_v28 = vrot.slane %v689_v14, 5  ;;  %v2715_v29 = vrot.slane %v690_v17, 4  ;;  %v2717_v30 = vrot.slane %v691_v18, 3  ;;  %v694_v31 = vld [vmem:[%s12362_s0 + $0x222] sm:$0x1]  ;;  %v11042_v32 = vpop.f32.mrb[19].mxu0 }
 0x156   :  { %v2704_v35 = vsel %vm1083_vm4, %v2703_v63, %v2702_v27  ;;  %v2710_v37 = vsel %vm1071_vm0, %v2709_v23, %v686_v1  ;;  %v2719_v39 = vrot.slane %v692_v21, 2  ;;  %v2721_v41 = vrot.slane %v693_v22, 1  ;;  %v695_v42 = vld [vmem:[%s12362_s0 + $0x226] sm:$0x1]  ;;  %v696_v43 = vld [vmem:[%s12362_s0 + $0x22a] sm:$0x1] }
 0x157   :  { %v2706_v45 = vsel %vm1086_vm5, %v2705_v6, %v2704_v35  ;;  %v2712_v46 = vsel %vm1074_vm1, %v2711_v26, %v2710_v37  ;;  %v697_v47 = vld [vmem:[%s12362_s0 + $0x22e] sm:$0x1]  ;;  %v698_v48 = vld [vmem:[%s12362_s0 + $0x232] sm:$0x1]  ;;  %v699_v50 = vld [vmem:[%s12362_s0 + $0x236] sm:$0x1] }
 0x158   :  { %v2708_v51 = vsel %vm1089_vm6, %v2707_v7, %v2706_v45  ;;  %v2714_v53 = vsel %vm1077_vm2, %v2713_v28, %v2712_v46  ;;  %v700_v54 = vld [vmem:[%s12362_s0 + $0x23a] sm:$0x1]  ;;  %v701_v55 = vld [vmem:[%s12362_s0 + $0x23e] sm:$0x1]  ;;  %v2723_v56 = vrot.slane %v695_v42, 7  ;;  %v2725_v58 = vrot.slane %v696_v43, 6 }
 0x159   :  { %7280 = vmatmul.mubr.msk.f32.gmra.mrb[78].mxu0 %vm2941_vm7, %v2708_v51  ;;  %v2716_v59 = vsel %vm1080_vm3, %v2715_v29, %v2714_v53  ;;  %v2727_v60 = vrot.slane %v697_v47, 5  ;;  %v2729_v61 = vrot.slane %v698_v48, 4  ;;  %v2731_v63 = vrot.slane %v699_v50, 3  ;;  %v702_v1 = vld [vmem:[%s12362_s0 + $0x242] sm:$0x1]  ;;  %v11076_v3 = vpop.f32.mrb[20].mxu0 }
 0x15a   :  { %v2718_v5 = vsel %vm1083_vm4, %v2717_v30, %v2716_v59  ;;  %v2724_v6 = vsel %vm1071_vm0, %v2723_v56, %v694_v31  ;;  %v2733_v7 = vrot.slane %v700_v54, 2  ;;  %v2735_v9 = vrot.slane %v701_v55, 1  ;;  %v703_v11 = vld [vmem:[%s12362_s0 + $0x246] sm:$0x1]  ;;  %v704_v12 = vld [vmem:[%s12362_s0 + $0x24a] sm:$0x1] }
 0x15b   :  { %v2720_v13 = vsel %vm1086_vm5, %v2719_v39, %v2718_v5  ;;  %v2726_v14 = vsel %vm1074_vm1, %v2725_v58, %v2724_v6  ;;  %v705_v17 = vld [vmem:[%s12362_s0 + $0x24e] sm:$0x1]  ;;  %v706_v18 = vld [vmem:[%s12362_s0 + $0x252] sm:$0x1]  ;;  %v707_v19 = vld [vmem:[%s12362_s0 + $0x256] sm:$0x1] }
 0x15c   :  { %v2722_v20 = vsel %vm1089_vm6, %v2721_v41, %v2720_v13  ;;  %v2728_v21 = vsel %vm1077_vm2, %v2727_v60, %v2726_v14  ;;  %v708_v22 = vld [vmem:[%s12362_s0 + $0x25a] sm:$0x1]  ;;  %v709_v23 = vld [vmem:[%s12362_s0 + $0x25e] sm:$0x1]  ;;  %v2737_v26 = vrot.slane %v703_v11, 7  ;;  %v2739_v27 = vrot.slane %v704_v12, 6 }
 0x15d   :  { %7282 = vmatprep.mubr.msk.f32.mxu0 %vm2941_vm7, %v2722_v20  ;;  %v2730_v28 = vsel %vm1080_vm3, %v2729_v61, %v2728_v21  ;;  %v2741_v29 = vrot.slane %v705_v17, 5  ;;  %v2743_v30 = vrot.slane %v706_v18, 4  ;;  %v2745_v31 = vrot.slane %v707_v19, 3  ;;  %v710_v35 = vld [vmem:[%s12362_s0 + $0x262] sm:$0x1]  ;;  %v11110_v37 = vpop.f32.mrb[21].mxu0 }
 0x15e   :  { %v2732_v39 = vsel %vm1083_vm4, %v2731_v63, %v2730_v28  ;;  %v2738_v41 = vsel %vm1071_vm0, %v2737_v26, %v702_v1  ;;  %v2747_v42 = vrot.slane %v708_v22, 2  ;;  %v2749_v43 = vrot.slane %v709_v23, 1  ;;  %v711_v45 = vld [vmem:[%s12362_s0 + $0x266] sm:$0x1]  ;;  %v712_v46 = vld [vmem:[%s12362_s0 + $0x26a] sm:$0x1] }
 0x15f   :  { %v2734_v47 = vsel %vm1086_vm5, %v2733_v7, %v2732_v39  ;;  %v2740_v48 = vsel %vm1074_vm1, %v2739_v27, %v2738_v41  ;;  %v713_v50 = vld [vmem:[%s12362_s0 + $0x26e] sm:$0x1]  ;;  %v714_v51 = vld [vmem:[%s12362_s0 + $0x272] sm:$0x1]  ;;  %v715_v53 = vld [vmem:[%s12362_s0 + $0x276] sm:$0x1] }
 0x160   :  { %v2736_v54 = vsel %vm1089_vm6, %v2735_v9, %v2734_v47  ;;  %v2742_v55 = vsel %vm1077_vm2, %v2741_v29, %v2740_v48  ;;  %v716_v56 = vld [vmem:[%s12362_s0 + $0x27a] sm:$0x1]  ;;  %v717_v58 = vld [vmem:[%s12362_s0 + $0x27e] sm:$0x1]  ;;  %v2751_v59 = vrot.slane %v711_v45, 7  ;;  %v2753_v60 = vrot.slane %v712_v46, 6 }
 0x161   :  { %7283 = vmatmul.mubr.msk.f32.gmra.mrb[80].mxu0 %vm2941_vm7, %v2736_v54  ;;  %v2744_v61 = vsel %vm1080_vm3, %v2743_v30, %v2742_v55  ;;  %v2755_v63 = vrot.slane %v713_v50, 5  ;;  %v2757_v1 = vrot.slane %v714_v51, 4  ;;  %v2759_v5 = vrot.slane %v715_v53, 3  ;;  %v718_v6 = vld [vmem:[%s12362_s0 + $0x282] sm:$0x1]  ;;  %v11144_v7 = vpop.f32.mrb[22].mxu0 }
 0x162   :  { %v2746_v9 = vsel %vm1083_vm4, %v2745_v31, %v2744_v61  ;;  %v2752_v11 = vsel %vm1071_vm0, %v2751_v59, %v710_v35  ;;  %v2761_v12 = vrot.slane %v716_v56, 2  ;;  %v2763_v13 = vrot.slane %v717_v58, 1  ;;  %v719_v14 = vld [vmem:[%s12362_s0 + $0x286] sm:$0x1]  ;;  %v720_v17 = vld [vmem:[%s12362_s0 + $0x28a] sm:$0x1] }
 0x163   :  { %v2748_v18 = vsel %vm1086_vm5, %v2747_v42, %v2746_v9  ;;  %v2754_v19 = vsel %vm1074_vm1, %v2753_v60, %v2752_v11  ;;  %v721_v20 = vld [vmem:[%s12362_s0 + $0x28e] sm:$0x1]  ;;  %v722_v21 = vld [vmem:[%s12362_s0 + $0x292] sm:$0x1]  ;;  %v723_v22 = vld [vmem:[%s12362_s0 + $0x296] sm:$0x1] }
 0x164   :  { %v2750_v23 = vsel %vm1089_vm6, %v2749_v43, %v2748_v18  ;;  %v2756_v26 = vsel %vm1077_vm2, %v2755_v63, %v2754_v19  ;;  %v724_v27 = vld [vmem:[%s12362_s0 + $0x29a] sm:$0x1]  ;;  %v725_v28 = vld [vmem:[%s12362_s0 + $0x29e] sm:$0x1]  ;;  %v2765_v29 = vrot.slane %v719_v14, 7  ;;  %v2767_v30 = vrot.slane %v720_v17, 6 }
 0x165   :  { %7285 = vmatprep.mubr.msk.f32.mxu0 %vm2941_vm7, %v2750_v23  ;;  %v2758_v31 = vsel %vm1080_vm3, %v2757_v1, %v2756_v26  ;;  %v2769_v35 = vrot.slane %v721_v20, 5  ;;  %v2771_v39 = vrot.slane %v722_v21, 4  ;;  %v2773_v41 = vrot.slane %v723_v22, 3  ;;  %v726_v42 = vld [vmem:[%s12362_s0 + $0x2a2] sm:$0x1]  ;;  %v11178_v43 = vpop.f32.mrb[23].mxu0 }
 0x166   :  { %v2760_v45 = vsel %vm1083_vm4, %v2759_v5, %v2758_v31  ;;  %v2766_v46 = vsel %vm1071_vm0, %v2765_v29, %v718_v6  ;;  %v2775_v47 = vrot.slane %v724_v27, 2  ;;  %v2777_v48 = vrot.slane %v725_v28, 1  ;;  %v727_v50 = vld [vmem:[%s12362_s0 + $0x2a6] sm:$0x1]  ;;  %v728_v51 = vld [vmem:[%s12362_s0 + $0x2aa] sm:$0x1] }
 0x167   :  { %v2762_v53 = vsel %vm1086_vm5, %v2761_v12, %v2760_v45  ;;  %v2768_v54 = vsel %vm1074_vm1, %v2767_v30, %v2766_v46  ;;  %v729_v55 = vld [vmem:[%s12362_s0 + $0x2ae] sm:$0x1]  ;;  %v730_v56 = vld [vmem:[%s12362_s0 + $0x2b2] sm:$0x1]  ;;  %v731_v58 = vld [vmem:[%s12362_s0 + $0x2b6] sm:$0x1] }
 0x168   :  { %v2764_v59 = vsel %vm1089_vm6, %v2763_v13, %v2762_v53  ;;  %v2770_v60 = vsel %vm1077_vm2, %v2769_v35, %v2768_v54  ;;  %v732_v61 = vld [vmem:[%s12362_s0 + $0x2ba] sm:$0x1]  ;;  %v733_v63 = vld [vmem:[%s12362_s0 + $0x2be] sm:$0x1]  ;;  %v2779_v1 = vrot.slane %v727_v50, 7  ;;  %v2781_v5 = vrot.slane %v728_v51, 6 }
 0x169   :  { %7286 = vmatmul.mubr.msk.f32.gmra.mrb[82].mxu0 %vm2941_vm7, %v2764_v59  ;;  %v2772_v6 = vsel %vm1080_vm3, %v2771_v39, %v2770_v60  ;;  %v2783_v9 = vrot.slane %v729_v55, 5  ;;  %v2785_v11 = vrot.slane %v730_v56, 4  ;;  %v2787_v12 = vrot.slane %v731_v58, 3  ;;  %v734_v13 = vld [vmem:[%s12362_s0 + $0x2c2] sm:$0x1]  ;;  %v11212_v14 = vpop.f32.mrb[24].mxu0 }
 0x16a   :  { %v2774_v17 = vsel %vm1083_vm4, %v2773_v41, %v2772_v6  ;;  %v2780_v18 = vsel %vm1071_vm0, %v2779_v1, %v726_v42  ;;  %v2789_v19 = vrot.slane %v732_v61, 2  ;;  %v2791_v20 = vrot.slane %v733_v63, 1  ;;  %v735_v21 = vld [vmem:[%s12362_s0 + $0x2c6] sm:$0x1]  ;;  %v736_v22 = vld [vmem:[%s12362_s0 + $0x2ca] sm:$0x1] }
 0x16b   :  { %v2776_v23 = vsel %vm1086_vm5, %v2775_v47, %v2774_v17  ;;  %v2782_v26 = vsel %vm1074_vm1, %v2781_v5, %v2780_v18  ;;  %v737_v27 = vld [vmem:[%s12362_s0 + $0x2ce] sm:$0x1]  ;;  %v738_v28 = vld [vmem:[%s12362_s0 + $0x2d2] sm:$0x1]  ;;  %v739_v29 = vld [vmem:[%s12362_s0 + $0x2d6] sm:$0x1] }
 0x16c   :  { %v2778_v30 = vsel %vm1089_vm6, %v2777_v48, %v2776_v23  ;;  %v2784_v31 = vsel %vm1077_vm2, %v2783_v9, %v2782_v26  ;;  %v740_v35 = vld [vmem:[%s12362_s0 + $0x2da] sm:$0x1]  ;;  %v741_v39 = vld [vmem:[%s12362_s0 + $0x2de] sm:$0x1]  ;;  %v2793_v41 = vrot.slane %v735_v21, 7  ;;  %v2795_v42 = vrot.slane %v736_v22, 6 }
 0x16d   :  { %7288 = vmatprep.mubr.msk.f32.mxu0 %vm2941_vm7, %v2778_v30  ;;  %v2786_v45 = vsel %vm1080_vm3, %v2785_v11, %v2784_v31  ;;  %v2797_v46 = vrot.slane %v737_v27, 5  ;;  %v2799_v47 = vrot.slane %v738_v28, 4  ;;  %v2801_v50 = vrot.slane %v739_v29, 3  ;;  %v742_v48 = vld [vmem:[%s12362_s0 + $0x2e2] sm:$0x1]  ;;  %v11246_v51 = vpop.f32.mrb[25].mxu0 }
 0x16e   :  { %v2788_v53 = vsel %vm1083_vm4, %v2787_v12, %v2786_v45  ;;  %v2794_v54 = vsel %vm1071_vm0, %v2793_v41, %v734_v13  ;;  %v2803_v55 = vrot.slane %v740_v35, 2  ;;  %v2805_v56 = vrot.slane %v741_v39, 1  ;;  %v743_v58 = vld [vmem:[%s12362_s0 + $0x2e6] sm:$0x1]  ;;  %v744_v59 = vld [vmem:[%s12362_s0 + $0x2ea] sm:$0x1] }
 0x16f   :  { %v2790_v60 = vsel %vm1086_vm5, %v2789_v19, %v2788_v53  ;;  %v2796_v61 = vsel %vm1074_vm1, %v2795_v42, %v2794_v54  ;;  %v745_v63 = vld [vmem:[%s12362_s0 + $0x2ee] sm:$0x1]  ;;  %v746_v1 = vld [vmem:[%s12362_s0 + $0x2f2] sm:$0x1]  ;;  %v747_v5 = vld [vmem:[%s12362_s0 + $0x2f6] sm:$0x1] }
 0x170   :  { %v2792_v6 = vsel %vm1089_vm6, %v2791_v20, %v2790_v60  ;;  %v2798_v9 = vsel %vm1077_vm2, %v2797_v46, %v2796_v61  ;;  %v748_v11 = vld [vmem:[%s12362_s0 + $0x2fa] sm:$0x1]  ;;  %v749_v12 = vld [vmem:[%s12362_s0 + $0x2fe] sm:$0x1]  ;;  %v2807_v13 = vrot.slane %v743_v58, 7  ;;  %v2809_v17 = vrot.slane %v744_v59, 6 }
 0x171   :  { %7289 = vmatmul.mubr.msk.f32.gmra.mrb[84].mxu0 %vm2941_vm7, %v2792_v6  ;;  %v2800_v18 = vsel %vm1080_vm3, %v2799_v47, %v2798_v9  ;;  %v2811_v19 = vrot.slane %v745_v63, 5  ;;  %v2813_v21 = vrot.slane %v746_v1, 4  ;;  %v2815_v22 = vrot.slane %v747_v5, 3  ;;  %v750_v20 = vld [vmem:[%s12362_s0 + $0x302] sm:$0x1]  ;;  %v11280_v23 = vpop.f32.mrb[26].mxu0 }
 0x172   :  { %v2802_v26 = vsel %vm1083_vm4, %v2801_v50, %v2800_v18  ;;  %v2808_v27 = vsel %vm1071_vm0, %v2807_v13, %v742_v48  ;;  %v2817_v28 = vrot.slane %v748_v11, 2  ;;  %v2819_v29 = vrot.slane %v749_v12, 1  ;;  %v751_v30 = vld [vmem:[%s12362_s0 + $0x306] sm:$0x1]  ;;  %v752_v31 = vld [vmem:[%s12362_s0 + $0x30a] sm:$0x1] }
 0x173   :  { %v2804_v35 = vsel %vm1086_vm5, %v2803_v55, %v2802_v26  ;;  %v2810_v39 = vsel %vm1074_vm1, %v2809_v17, %v2808_v27  ;;  %v753_v41 = vld [vmem:[%s12362_s0 + $0x30e] sm:$0x1]  ;;  %v754_v42 = vld [vmem:[%s12362_s0 + $0x312] sm:$0x1]  ;;  %v755_v45 = vld [vmem:[%s12362_s0 + $0x316] sm:$0x1] }
 0x174   :  { %v2806_v46 = vsel %vm1089_vm6, %v2805_v56, %v2804_v35  ;;  %v2812_v47 = vsel %vm1077_vm2, %v2811_v19, %v2810_v39  ;;  %v756_v50 = vld [vmem:[%s12362_s0 + $0x31a] sm:$0x1]  ;;  %v757_v48 = vld [vmem:[%s12362_s0 + $0x31e] sm:$0x1]  ;;  %v2821_v53 = vrot.slane %v751_v30, 7  ;;  %v2823_v54 = vrot.slane %v752_v31, 6 }
 0x175   :  { %7291 = vmatprep.mubr.msk.f32.mxu0 %vm2941_vm7, %v2806_v46  ;;  %v2814_v55 = vsel %vm1080_vm3, %v2813_v21, %v2812_v47  ;;  %v2825_v58 = vrot.slane %v753_v41, 5  ;;  %v2827_v59 = vrot.slane %v754_v42, 4  ;;  %v2829_v60 = vrot.slane %v755_v45, 3  ;;  %v758_v56 = vld [vmem:[%s12362_s0 + $0x322] sm:$0x1]  ;;  %v11314_v61 = vpop.f32.mrb[27].mxu0 }
 0x176   :  { %v2816_v63 = vsel %vm1083_vm4, %v2815_v22, %v2814_v55  ;;  %v2822_v1 = vsel %vm1071_vm0, %v2821_v53, %v750_v20  ;;  %v2831_v5 = vrot.slane %v756_v50, 2  ;;  %v2833_v6 = vrot.slane %v757_v48, 1  ;;  %v759_v9 = vld [vmem:[%s12362_s0 + $0x326] sm:$0x1]  ;;  %v760_v11 = vld [vmem:[%s12362_s0 + $0x32a] sm:$0x1] }
 0x177   :  { %v2818_v12 = vsel %vm1086_vm5, %v2817_v28, %v2816_v63  ;;  %v2824_v13 = vsel %vm1074_vm1, %v2823_v54, %v2822_v1  ;;  %v761_v17 = vld [vmem:[%s12362_s0 + $0x32e] sm:$0x1]  ;;  %v762_v18 = vld [vmem:[%s12362_s0 + $0x332] sm:$0x1]  ;;  %v763_v19 = vld [vmem:[%s12362_s0 + $0x336] sm:$0x1] }
 0x178   :  { %v2820_v21 = vsel %vm1089_vm6, %v2819_v29, %v2818_v12  ;;  %v2826_v22 = vsel %vm1077_vm2, %v2825_v58, %v2824_v13  ;;  %v764_v20 = vld [vmem:[%s12362_s0 + $0x33a] sm:$0x1]  ;;  %v765_v26 = vld [vmem:[%s12362_s0 + $0x33e] sm:$0x1]  ;;  %v2835_v27 = vrot.slane %v759_v9, 7  ;;  %v2837_v28 = vrot.slane %v760_v11, 6 }
 0x179   :  { %7292 = vmatmul.mubr.msk.f32.gmra.mrb[86].mxu0 %vm2941_vm7, %v2820_v21  ;;  %v2828_v30 = vsel %vm1080_vm3, %v2827_v59, %v2826_v22  ;;  %v2839_v31 = vrot.slane %v761_v17, 5  ;;  %v2841_v35 = vrot.slane %v762_v18, 4  ;;  %v2843_v39 = vrot.slane %v763_v19, 3  ;;  %v766_v29 = vld [vmem:[%s12362_s0 + $0x342] sm:$0x1]  ;;  %v11348_v41 = vpop.f32.mrb[28].mxu0 }
 0x17a   :  { %v2830_v42 = vsel %vm1083_vm4, %v2829_v60, %v2828_v30  ;;  %v2836_v45 = vsel %vm1071_vm0, %v2835_v27, %v758_v56  ;;  %v2845_v46 = vrot.slane %v764_v20, 2  ;;  %v2847_v47 = vrot.slane %v765_v26, 1  ;;  %v767_v50 = vld [vmem:[%s12362_s0 + $0x346] sm:$0x1]  ;;  %v768_v48 = vld [vmem:[%s12362_s0 + $0x34a] sm:$0x1] }
 0x17b   :  { %v2832_v53 = vsel %vm1086_vm5, %v2831_v5, %v2830_v42  ;;  %v2838_v54 = vsel %vm1074_vm1, %v2837_v28, %v2836_v45  ;;  %v769_v55 = vld [vmem:[%s12362_s0 + $0x34e] sm:$0x1]  ;;  %v770_v58 = vld [vmem:[%s12362_s0 + $0x352] sm:$0x1]  ;;  %v771_v59 = vld [vmem:[%s12362_s0 + $0x356] sm:$0x1] }
 0x17c   :  { %v2834_v60 = vsel %vm1089_vm6, %v2833_v6, %v2832_v53  ;;  %v2840_v56 = vsel %vm1077_vm2, %v2839_v31, %v2838_v54  ;;  %v772_v63 = vld [vmem:[%s12362_s0 + $0x35a] sm:$0x1]  ;;  %v773_v1 = vld [vmem:[%s12362_s0 + $0x35e] sm:$0x1]  ;;  %v2849_v5 = vrot.slane %v767_v50, 7  ;;  %v2851_v9 = vrot.slane %v768_v48, 6 }
 0x17d   :  { %7294 = vmatprep.mubr.msk.f32.mxu0 %vm2941_vm7, %v2834_v60  ;;  %v2842_v11 = vsel %vm1080_vm3, %v2841_v35, %v2840_v56  ;;  %v2853_v12 = vrot.slane %v769_v55, 5  ;;  %v2855_v13 = vrot.slane %v770_v58, 4  ;;  %v2857_v17 = vrot.slane %v771_v59, 3  ;;  %v774_v6 = vld [vmem:[%s12362_s0 + $0x362] sm:$0x1]  ;;  %v11382_v18 = vpop.f32.mrb[29].mxu0 }
 0x17e   :  { %v2844_v19 = vsel %vm1083_vm4, %v2843_v39, %v2842_v11  ;;  %v2850_v21 = vsel %vm1071_vm0, %v2849_v5, %v766_v29  ;;  %v2859_v22 = vrot.slane %v772_v63, 2  ;;  %v2861_v20 = vrot.slane %v773_v1, 1  ;;  %v775_v26 = vld [vmem:[%s12362_s0 + $0x366] sm:$0x1]  ;;  %v776_v27 = vld [vmem:[%s12362_s0 + $0x36a] sm:$0x1] }
 0x17f   :  { %v2846_v28 = vsel %vm1086_vm5, %v2845_v46, %v2844_v19  ;;  %v2852_v30 = vsel %vm1074_vm1, %v2851_v9, %v2850_v21  ;;  %v777_v31 = vld [vmem:[%s12362_s0 + $0x36e] sm:$0x1]  ;;  %v778_v35 = vld [vmem:[%s12362_s0 + $0x372] sm:$0x1]  ;;  %v779_v39 = vld [vmem:[%s12362_s0 + $0x376] sm:$0x1] }
 0x180   :  { %v2848_v29 = vsel %vm1089_vm6, %v2847_v47, %v2846_v28  ;;  %v2854_v42 = vsel %vm1077_vm2, %v2853_v12, %v2852_v30  ;;  %v780_v45 = vld [vmem:[%s12362_s0 + $0x37a] sm:$0x1]  ;;  %v2863_v46 = vrot.slane %v775_v26, 7  ;;  %v2865_v50 = vrot.slane %v776_v27, 6  ;;  %v781_v53 = vld [vmem:[%s12362_s0 + $0x37e] sm:$0x1] }
 0x181   :  { %7295 = vmatmul.mubr.msk.f32.gmra.mrb[88].mxu0 %vm2941_vm7, %v2848_v29  ;;  %v2856_v48 = vsel %vm1080_vm3, %v2855_v13, %v2854_v42  ;;  %v2867_v54 = vrot.slane %v777_v31, 5  ;;  %v2869_v55 = vrot.slane %v778_v35, 4  ;;  %v11413_v58 = vpop.f32.mrb[30].mxu0  ;;  %v2871_v60 = vrot.slane %v779_v39, 3 }
 0x182   :  { %v2858_v47 = vsel %vm1083_vm4, %v2857_v17, %v2856_v48  ;;  %v2864_v59 = vsel %vm1071_vm0, %v2863_v46, %v774_v6  ;;  %v11417_v56 = vpop.f32.mrb[31].mxu0  ;;  %v2873_v5 = vrot.slane %v780_v45, 2  ;;  %v2875_v13 = vrot.slane %v781_v53, 1 }
 0x183   :  { %v2860_v63 = vsel %vm1086_vm5, %v2859_v22, %v2858_v47  ;;  %v2866_v1 = vsel %vm1074_vm1, %v2865_v50, %v2864_v59  ;;  %v7212_v9 = vpop.f32.mrb[32].mxu0  ;;  %vm4239_vm9 = vcmask 523264   ;;  %vm8216_vm10 = vmmov 0  }
 0x184   :  { %v2862_v11 = vsel %vm1089_vm6, %v2861_v20, %v2860_v63  ;;  %v2868_v12 = vsel %vm1077_vm2, %v2867_v54, %v2866_v1  ;;  %v3360_v19 = vpop.f32.mrb[33].mxu0  ;;  %v11432_v20 = vld [vmem:[%s12363_s2] ss:$0 sm:$0xff]  ;;  %vm6407_vm11 = vcmask 785408   ;;  %vm6587_vm12 = vcmask 1024  }
 0x185   :  { %7297 = vmatprep.mubr.msk.f32.mxu0 %vm2941_vm7, %v2862_v11  ;;  %v2870_v17 = vsel %vm1080_vm3, %v2869_v55, %v2868_v12  ;;  %v7215_v6 = vpop.f32.mrb[34].mxu0  ;;  %v3206_v29 = vadd.f32 %v10396_v34, %v11432_v20  ;;  %v3201_v42 = vadd.f32 %v11432_v20, %v10430_v57  ;;  %v3216_v46 = vadd.f32 %v10464_v16, %v11432_v20 }
 0x186   :  { %v2872_v21 = vsel %vm1083_vm4, %v2871_v60, %v2870_v17  ;;  %v3370_v26 = vpop.f32.mrb[35].mxu0  ;;  %v3211_v50 = vadd.f32 %v11432_v20, %v10498_v40  ;;  %v3226_v53 = vadd.f32 %v10532_v0, %v11432_v20  ;;  %v3221_v54 = vadd.f32 %v11432_v20, %v10566_v24 }
 0x187   :  { %v2874_v22 = vsel %vm1086_vm5, %v2873_v5, %v2872_v21  ;;  %v7218_v27 = vpop.f32.mrb[36].mxu0  ;;  %v3236_v34 = vadd.f32 %v10600_v49, %v11432_v20  ;;  %v3231_v57 = vadd.f32 %v11432_v20, %v10634_v10  ;;  %v11452_v16 = vadd.f32 %v10668_v36, %v11432_v20 }
 0x188   :  { %v2876_v28 = vsel %vm1089_vm6, %v2875_v13, %v2874_v22  ;;  %v3380_v30 = vpop.f32.mrb[37].mxu0  ;;  %v11456_v40 = vadd.f32 %v11432_v20, %v10702_v62  ;;  %v11460_v0 = vadd.f32 %v10736_v25, %v11432_v20  ;;  %v11464_v24 = vadd.f32 %v11432_v20, %v10770_v52 }
 0x189   :  { %7298 = vmatmul.mubr.msk.f32.gmra.mrb[90].mxu0 %vm2941_vm7, %v2876_v28  ;;  %v7221_v31 = vpop.f32.mrb[38].mxu0  ;;  %v3680_v49 = vmax.f32 %v3206_v29, 0.0  ;;  %v3679_v47 = vmax.f32 %v3201_v42, 0.0  ;;  %v11468_v10 = vadd.f32 %v10804_v15, %v11432_v20  ;;  %v3682_v36 = vmax.f32 %v3216_v46, 0.0 }
 0x18a   :  { %v3390_v35 = vpop.f32.mrb[39].mxu0  ;;  %v3681_v59 = vmax.f32 %v3211_v50, 0.0  ;;  %v11472_v62 = vadd.f32 %v11432_v20, %v10838_v44  ;;  %v11476_v25 = vadd.f32 %v10872_v8, %v11432_v20  ;;  %v3684_v60 = vmax.f32 %v3226_v53, 0.0 }
 0x18b   :  { %v7224_v39 = vpop.f32.mrb[40].mxu0  ;;  %v3683_v63 = vmax.f32 %v3221_v54, 0.0  ;;  %v3686_v52 = vmax.f32 %v3236_v34, 0.0  ;;  %v3685_v1 = vmax.f32 %v3231_v57, 0.0  ;;  %v3688_v5 = vmax.f32 %v11452_v16, 0.0 }
 0x18c   :  { %v3400_v45 = vpop.f32.mrb[41].mxu0  ;;  %v3687_v11 = vmax.f32 %v11456_v40, 0.0  ;;  %v3690_v15 = vmax.f32 %v11460_v0, 0.0  ;;  %v3689_v12 = vmax.f32 %v11464_v24, 0.0  ;;  %v3692_v13 = vmax.f32 %v11468_v10, 0.0 }
 0x18d   :  { %v7227_v48 = vpop.f32.mrb[42].mxu0  ;;  %v11485_v44 = vadd.f32 %v11432_v20, %v10906_v38  ;;  %v3366_v8 = vadd.f32 %v7212_v9, %v11432_v20  ;;  %v3361_v17 = vadd.f32 %v11432_v20, %v3360_v19  ;;  %v3691_v22 = vmax.f32 %v11472_v62, 0.0 }
 0x18e   :  { %v3410_v55 = vpop.f32.mrb[43].mxu0  ;;  %v3694_v28 = vmax.f32 %v11476_v25, 0.0  ;;  %v3376_v29 = vadd.f32 %v7215_v6, %v11432_v20  ;;  %v3371_v42 = vadd.f32 %v11432_v20, %v3370_v26  ;;  %v3386_v54 = vadd.f32 %v7218_v27, %v11432_v20 }
 0x18f   :  { %v3712_v50 = vmax.f32 %v3366_v8, 0.0  ;;  %v3711_v53 = vmax.f32 %v3361_v17, 0.0  ;;  %v3381_v38 = vadd.f32 %v11432_v20, %v3380_v30  ;;  %v3396_v19 = vadd.f32 %v7221_v31, %v11432_v20 }
 0x190   :  { %v3714_v34 = vmax.f32 %v3376_v29, 0.0  ;;  %v3713_v9 = vmax.f32 %v3371_v42, 0.0  ;;  %v3391_v57 = vadd.f32 %v11432_v20, %v3390_v35  ;;  %v3716_v6 = vmax.f32 %v3386_v54, 0.0 }
 0x191   :  { %v11497_v16 = vadd.f32 %v3712_v50, %v3680_v49  ;;  %v11499_v40 = vadd.f32 %v3711_v53, %v3679_v47  ;;  %v3715_v0 = vmax.f32 %v3381_v38, 0.0  ;;  %v3718_v10 = vmax.f32 %v3396_v19, 0.0  ;;  %v3839_v49 = vld [vmem:[%s12364_s3] sm:$0xff]  ;;  %v3840_v47 = vld [vmem:[%s12364_s3 + $0x8] sm:$0xff] }
 0x192   :  { %v11501_v26 = vadd.f32 %v3714_v34, %v3682_v36  ;;  %v11503_v24 = vadd.f32 %v3713_v9, %v3681_v59  ;;  %v3717_v27 = vmax.f32 %v3391_v57, 0.0  ;;  %v11505_v62 = vadd.f32 %v3716_v6, %v3684_v60 }
 0x193   :  { %v11507_v30 = vadd.f32 %v3715_v0, %v3683_v63  ;;  %v3406_v31 = vadd.f32 %v7224_v39, %v11432_v20  ;;  %v3401_v35 = vadd.f32 %v11432_v20, %v3400_v45  ;;  %v11517_v36 = vadd.f32 %v3718_v10, %v3686_v52 }
 0x194   :  { %v7230_v21 = vpop.f32.mrb[44].mxu0  ;;  %v11519_v59 = vadd.f32 %v3717_v27, %v3685_v1  ;;  %v3416_v25 = vadd.f32 %v7227_v48, %v11432_v20  ;;  %v3411_v60 = vadd.f32 %v11432_v20, %v3410_v55  ;;  %v7774_v52 = vpack.c.bf16 %v3840_v47, %v3839_v49  ;;  %v3841_v1 = vld [vmem:[%s12364_s3 + $0x10] sm:$0xff]  ;;  %v3842_v48 = vld [vmem:[%s12364_s3 + $0x18] sm:$0xff] }
 0x195   :  { %v3420_v46 = vpop.f32.mrb[45].mxu0  ;;  %v3720_v63 = vmax.f32 %v3406_v31, 0.0  ;;  %v3719_v39 = vmax.f32 %v3401_v35, 0.0  ;;  %v3426_v45 = vadd.f32 %v7230_v21, %v11432_v20  ;;  %v7778_v0 = vpack.c.bf16 %v3842_v48, %v3841_v1 }
 0x196   :  { %v3421_v8 = vadd.f32 %v11432_v20, %v3420_v46  ;;  %v3722_v29 = vmax.f32 %v3416_v25, 0.0  ;;  %v3721_v42 = vmax.f32 %v3411_v60, 0.0  ;;  %7775 = vmatprep.subr.bf16.mxu1 %v7774_v52  ;;  %v3281_v27 = vadd.f32 %v11432_v20, %v10974_v33 }
 0x197   :  { %v11532_v55 = vadd.f32 %v3720_v63, %v3688_v5  ;;  %v11534_v21 = vadd.f32 %v3719_v39, %v3687_v11  ;;  %v3724_v46 = vmax.f32 %v3426_v45, 0.0  ;;  %7777 = vmatpush3.bf16.msra.mxu1 %v7774_v52  ;;  %v3693_v5 = vmax.f32 %v11485_v44, 0.0 }
 0x198   :  { %v3723_v54 = vmax.f32 %v3421_v8, 0.0  ;;  %v11536_v38 = vadd.f32 %v3722_v29, %v3690_v15  ;;  %v11538_v34 = vadd.f32 %v3721_v42, %v3689_v12  ;;  %7779 = vmatprep.subr.bf16.mxu1 %v7778_v0  ;;  %v3286_v15 = vadd.f32 %v10940_v4, %v11432_v20 }
 0x199   :  { %v11541_v57 = vadd.f32 %v3724_v46, %v3692_v13  ;;  %v3695_v49 = vmax.f32 %v3281_v27, 0.0  ;;  %v3296_v4 = vadd.f32 %v11008_v2, %v11432_v20  ;;  %v3291_v33 = vadd.f32 %v11432_v20, %v11042_v32 }
 0x19a   :  { %v11543_v6 = vadd.f32 %v3723_v54, %v3691_v22  ;;  %v3696_v44 = vmax.f32 %v3286_v15, 0.0  ;;  %v3306_v2 = vadd.f32 %v11076_v3, %v11432_v20  ;;  %v3301_v32 = vadd.f32 %v11432_v20, %v11110_v37 }
 0x19b   :  { %7781 = vmatpush3.bf16.msra.mxu1 %v7778_v0  ;;  %v3697_v42 = vmax.f32 %v3291_v33, 0.0  ;;  %v3316_v3 = vadd.f32 %v11144_v7, %v11432_v20  ;;  %v3311_v37 = vadd.f32 %v11432_v20, %v11178_v43  ;;  %v3326_v7 = vadd.f32 %v11212_v14, %v11432_v20 }
 0x19c   :  { %v7233_v17 = vpop.f32.mrb[46].mxu0  ;;  %v3699_v0 = vmax.f32 %v3301_v32, 0.0  ;;  %v3321_v43 = vadd.f32 %v11432_v20, %v11246_v51  ;;  %v3336_v14 = vadd.f32 %v11280_v23, %v11432_v20  ;;  %v3331_v51 = vadd.f32 %v11432_v20, %v11314_v61 }
 0x19d   :  { %v3436_v50 = vadd.f32 %v7233_v17, %v11432_v20  ;;  %v3430_v53 = vpop.f32.mrb[47].mxu0  ;;  %v3698_v17 = vmax.f32 %v3296_v4, 0.0  ;;  %v3346_v23 = vadd.f32 %v11348_v41, %v11432_v20  ;;  %v3341_v61 = vadd.f32 %v11432_v20, %v11382_v18 }
 0x19e   :  { %v3431_v19 = vadd.f32 %v11432_v20, %v3430_v53 }
 0x19f   :  { %v3726_v9 = vmax.f32 %v3436_v50, 0.0 }
 0x1a0   :  { %v3725_v10 = vmax.f32 %v3431_v19, 0.0 }
 0x1a1   :  { %v11546_v11 = vadd.f32 %v3726_v9, %v3694_v28  ;;  %v3700_v9 = vmax.f32 %v3306_v2, 0.0 }
 0x1a2   :  { %v11550_v12 = vadd.f32 %v3725_v10, %v3693_v5 }
 0x1a4   :  { %v7236_v13 = vpop.f32.mrb[48].mxu0 }
 0x1a5   :  { %v3446_v22 = vadd.f32 %v7236_v13, %v11432_v20  ;;  %v3440_v31 = vpop.f32.mrb[49].mxu0 }
 0x1a6   :  { %v3441_v35 = vadd.f32 %v11432_v20, %v3440_v31 }
 0x1a7   :  { %v3728_v28 = vmax.f32 %v3446_v22, 0.0 }
 0x1a8   :  { %v3727_v47 = vmax.f32 %v3441_v35, 0.0  ;;  %v3702_v35 = vmax.f32 %v3316_v3, 0.0 }
 0x1a9   :  { %v11556_v25 = vadd.f32 %v3728_v28, %v3696_v44  ;;  %v3701_v28 = vmax.f32 %v3311_v37, 0.0 }
 0x1aa   :  { %v11558_v60 = vadd.f32 %v3727_v47, %v3695_v49 }
 0x1ac   :  { %v7239_v63 = vpop.f32.mrb[50].mxu0 }
 0x1ad   :  { %v3456_v39 = vadd.f32 %v7239_v63, %v11432_v20  ;;  %v3450_v45 = vpop.f32.mrb[51].mxu0 }
 0x1ae   :  { %v3451_v8 = vadd.f32 %v11432_v20, %v3450_v45 }
 0x1af   :  { %v3730_v29 = vmax.f32 %v3456_v39, 0.0 }
 0x1b0   :  { %v3729_v50 = vmax.f32 %v3451_v8, 0.0  ;;  %v3704_v8 = vmax.f32 %v3326_v7, 0.0 }
 0x1b1   :  { %v11566_v53 = vadd.f32 %v3730_v29, %v3698_v17  ;;  %v3703_v29 = vmax.f32 %v3321_v43, 0.0 }
 0x1b2   :  { %v11568_v52 = vadd.f32 %v3729_v50, %v3697_v42 }
 0x1b4   :  { %v7242_v1 = vpop.f32.mrb[52].mxu0 }
 0x1b5   :  { %v3466_v48 = vadd.f32 %v7242_v1, %v11432_v20  ;;  %v3460_v46 = vpop.f32.mrb[53].mxu0 }
 0x1b6   :  { %v3461_v54 = vadd.f32 %v11432_v20, %v3460_v46 }
 0x1b7   :  { %v3732_v19 = vmax.f32 %v3466_v48, 0.0 }
 0x1b8   :  { %v3731_v5 = vmax.f32 %v3461_v54, 0.0  ;;  %v3706_v54 = vmax.f32 %v3336_v14, 0.0 }
 0x1b9   :  { %v11576_v10 = vadd.f32 %v3732_v19, %v3700_v9  ;;  %v3705_v19 = vmax.f32 %v3331_v51, 0.0 }
 0x1ba   :  { %v11578_v15 = vadd.f32 %v3731_v5, %v3699_v0 }
 0x1bc   :  { %v7245_v27 = vpop.f32.mrb[54].mxu0 }
 0x1bd   :  { %v3476_v13 = vadd.f32 %v7245_v27, %v11432_v20  ;;  %v3470_v22 = vpop.f32.mrb[55].mxu0 }
 0x1be   :  { %v3471_v31 = vadd.f32 %v11432_v20, %v3470_v22 }
 0x1bf   :  { %v3734_v44 = vmax.f32 %v3476_v13, 0.0 }
 0x1c0   :  { %v3733_v49 = vmax.f32 %v3471_v31, 0.0  ;;  %v3708_v31 = vmax.f32 %v3346_v23, 0.0 }
 0x1c1   :  { %v11586_v47 = vadd.f32 %v3734_v44, %v3702_v35  ;;  %v3707_v44 = vmax.f32 %v3341_v61, 0.0 }
 0x1c2   :  { %v11588_v4 = vadd.f32 %v3733_v49, %v3701_v28 }
 0x1c4   :  { %v7248_v33 = vpop.f32.mrb[56].mxu0 }
 0x1c5   :  { %v3486_v63 = vadd.f32 %v7248_v33, %v11432_v20  ;;  %v3480_v39 = vpop.f32.mrb[57].mxu0 }
 0x1c6   :  { %v3481_v45 = vadd.f32 %v11432_v20, %v3480_v39 }
 0x1c7   :  { %v3736_v17 = vmax.f32 %v3486_v63, 0.0 }
 0x1c8   :  { %v3735_v42 = vmax.f32 %v3481_v45, 0.0 }
 0x1c9   :  { %v11596_v50 = vadd.f32 %v3736_v17, %v3704_v8  ;;  %v3356_v17 = vadd.f32 %v11413_v58, %v11432_v20 }
 0x1ca   :  { %v11598_v2 = vadd.f32 %v3735_v42, %v3703_v29  ;;  %v3351_v29 = vadd.f32 %v11432_v20, %v11417_v56  ;;  %v4224_v56 = vld [vmem:[%s12365_s5] sm:$0xff] }
 0x1cc   :  { %v7251_v32 = vpop.f32.mrb[58].mxu0 }
 0x1cd   :  { %v3496_v1 = vadd.f32 %v7251_v32, %v11432_v20  ;;  %v3490_v48 = vpop.f32.mrb[59].mxu0 }
 0x1ce   :  { %v3491_v46 = vadd.f32 %v11432_v20, %v3490_v48 }
 0x1cf   :  { %v3738_v9 = vmax.f32 %v3496_v1, 0.0  ;;  %v3710_v1 = vmax.f32 %v3356_v17, 0.0 }
 0x1d0   :  { %v3737_v0 = vmax.f32 %v3491_v46, 0.0  ;;  %v3709_v46 = vmax.f32 %v3351_v29, 0.0 }
 0x1d1   :  { %v11606_v5 = vadd.f32 %v3738_v9, %v3706_v54 }
 0x1d2   :  { %v11608_v3 = vadd.f32 %v3737_v0, %v3705_v19 }
 0x1d4   :  { %v7254_v37 = vpop.f32.mrb[60].mxu0 }
 0x1d5   :  { %v3506_v27 = vadd.f32 %v7254_v37, %v11432_v20  ;;  %v3500_v13 = vpop.f32.mrb[61].mxu0  ;;  %v4225_v37 = vld [vmem:[%s12365_s5 + $0x8] sm:$0xff] }
 0x1d6   :  { %v3501_v22 = vadd.f32 %v11432_v20, %v3500_v13 }
 0x1d7   :  { %v3740_v35 = vmax.f32 %v3506_v27, 0.0  ;;  %v4226_v27 = vld [vmem:[%s12365_s5 + $0x10] sm:$0xff] }
 0x1d8   :  { %v3739_v28 = vmax.f32 %v3501_v22, 0.0  ;;  %v11639_v22 = vpack.c.bf16 %v4225_v37, %v4224_v56 }
 0x1d9   :  { %v3804_v49 = vadd.f32 %v3740_v35, %v3708_v31  ;;  %v4227_v31 = vld [vmem:[%s12365_s5 + $0x18] sm:$0xff] }
 0x1da   :  { %v3803_v7 = vadd.f32 %v3739_v28, %v3707_v44  ;;  %v11644_v44 = vpack.c.bf16 %v4227_v31, %v4226_v27  ;;  %v4228_v28 = vld [vmem:[%s12365_s5 + $0x20] sm:$0xff]  ;;  %7783 = vmatprep.subr.bf16.mxu0 %v11639_v22 }
 0x1db   :  { %7785 = vmatpush3.bf16.msra.mxu0 %v11639_v22 }
 0x1dc   :  { %v7302_v43 = vpop.f32.mrb[0].mxu1  ;;  %7787 = vmatprep.subr.bf16.mxu0 %v11644_v44 }
 0x1dd   :  { %v3666_v33 = vadd.f32 %v7302_v43, %v11432_v20  ;;  %v3660_v63 = vpop.f32.mrb[1].mxu1 }
 0x1de   :  { %v3661_v41 = vadd.f32 %v11432_v20, %v3660_v63 }
 0x1df   :  { %v3772_v39 = vmax.f32 %v3666_v33, 0.0  ;;  %7789 = vmatpush3.bf16.msra.mxu0 %v11644_v44 }
 0x1e0   :  { %v3771_v18 = vmax.f32 %v3661_v41, 0.0 }
 0x1e1   :  { %v11618_v45 = vadd.f32 %v3804_v49, %v3772_v39  ;;  %v4229_v49 = vld [vmem:[%s12365_s5 + $0x28] sm:$0xff] }
 0x1e2   :  { %v11620_v8 = vadd.f32 %v3803_v7, %v3771_v18  ;;  %v11659_v33 = vpack.c.bf16 %v4229_v49, %v4228_v28 }
 0x1e4   :  { %v7257_v42 = vpop.f32.mrb[62].mxu0  ;;  %7791 = vmatprep.subr.bf16.mxu0 %v11659_v33 }
 0x1e5   :  { %v3516_v14 = vadd.f32 %v7257_v42, %v11432_v20  ;;  %v3510_v51 = vpop.f32.mrb[63].mxu0  ;;  %7793 = vmatpush3.bf16.msra.mxu0 %v11659_v33 }
 0x1e6   :  { %v3511_v32 = vadd.f32 %v11432_v20, %v3510_v51 }
 0x1e7   :  { %v3742_v48 = vmax.f32 %v3516_v14, 0.0 }
 0x1e8   :  { %v3741_v54 = vmax.f32 %v3511_v32, 0.0 }
 0x1e9   :  { %v3806_v9 = vadd.f32 %v3742_v48, %v3710_v1 }
 0x1ea   :  { %v3805_v19 = vadd.f32 %v3741_v54, %v3709_v46 }
 0x1ec   :  { %v7305_v0 = vpop.f32.mrb[2].mxu1 }
 0x1ed   :  { %v3676_v23 = vadd.f32 %v7305_v0, %v11432_v20  ;;  %v3670_v61 = vpop.f32.mrb[3].mxu1 }
 0x1ee   :  { %v3671_v58 = vadd.f32 %v11432_v20, %v3670_v61 }
 0x1ef   :  { %v3774_v13 = vmax.f32 %v3676_v23, 0.0 }
 0x1f0   :  { %v3773_v35 = vmax.f32 %v3671_v58, 0.0 }
 0x1f1   :  { %v11652_v7 = vadd.f32 %v3806_v9, %v3774_v13 }
 0x1f2   :  { %v11655_v43 = vadd.f32 %v3805_v19, %v3773_v35 }
 0x1f4   :  { %v7260_v63 = vpop.f32.mrb[64].mxu0 }
 0x1f5   :  { %v3526_v41 = vadd.f32 %v7260_v63, %v11432_v20  ;;  %v3520_v39 = vpop.f32.mrb[65].mxu0 }
 0x1f6   :  { %v3521_v18 = vadd.f32 %v11432_v20, %v3520_v39 }
 0x1f7   :  { %v3744_v17 = vmax.f32 %v3526_v41, 0.0 }
 0x1f8   :  { %v3743_v29 = vmax.f32 %v3521_v18, 0.0 }
 0x1f9   :  { %v3808_v42 = vadd.f32 %v11497_v16, %v3744_v17 }
 0x1fa   :  { %v3807_v14 = vadd.f32 %v11499_v40, %v3743_v29 }
 0x1fc   :  { %v7263_v51 = vpop.f32.mrb[66].mxu0  ;;  %7314 = vmatprep.mubr.msk.f32.mxu1 %vm3851_vm8, %v3807_v14 }
 0x1fd   :  { %v3536_v32 = vadd.f32 %v7263_v51, %v11432_v20  ;;  %v3530_v1 = vpop.f32.mrb[67].mxu0  ;;  %7315 = vmatmul.mubr.msk.f32.vlgmr.msra.gmra.mrb[4].mxu1 %vm3851_vm8, %v3808_v42 }
 0x1fe   :  { %v3531_v48 = vadd.f32 %v11432_v20, %v3530_v1 }
 0x1ff   :  { %v3746_v46 = vmax.f32 %v3536_v32, 0.0 }
 0x200   :  { %v3745_v54 = vmax.f32 %v3531_v48, 0.0 }
 0x201   :  { %v3810_v9 = vadd.f32 %v11501_v26, %v3746_v46 }
 0x202   :  { %v3809_v16 = vadd.f32 %v11503_v24, %v3745_v54 }
 0x204   :  { %v7266_v19 = vpop.f32.mrb[68].mxu0  ;;  %7317 = vmatprep.mubr.msk.f32.mxu1 %vm3851_vm8, %v3809_v16 }
 0x205   :  { %v3546_v40 = vadd.f32 %v7266_v19, %v11432_v20  ;;  %v3540_v0 = vpop.f32.mrb[69].mxu0  ;;  %7318 = vmatmul.mubr.msk.f32.gmra.mrb[6].mxu1 %vm3851_vm8, %v3810_v9 }
 0x206   :  { %v3541_v23 = vadd.f32 %v11432_v20, %v3540_v0 }
 0x207   :  { %v3748_v61 = vmax.f32 %v3546_v40, 0.0 }
 0x208   :  { %v3747_v58 = vmax.f32 %v3541_v23, 0.0 }
 0x209   :  { %v3812_v56 = vadd.f32 %v11505_v62, %v3748_v61 }
 0x20a   :  { %v3811_v37 = vadd.f32 %v11507_v30, %v3747_v58 }
 0x20c   :  { %v7269_v27 = vpop.f32.mrb[70].mxu0  ;;  %7320 = vmatprep.mubr.msk.f32.mxu1 %vm3851_vm8, %v3811_v37 }
 0x20d   :  { %v3556_v26 = vadd.f32 %v7269_v27, %v11432_v20  ;;  %v3550_v24 = vpop.f32.mrb[71].mxu0  ;;  %7321 = vmatmul.mubr.msk.f32.gmra.mrb[8].mxu1 %vm3851_vm8, %v3812_v56 }
 0x20e   :  { %v3551_v13 = vadd.f32 %v11432_v20, %v3550_v24 }
 0x20f   :  { %v3750_v31 = vmax.f32 %v3556_v26, 0.0 }
 0x210   :  { %v3749_v35 = vmax.f32 %v3551_v13, 0.0 }
 0x211   :  { %v3814_v28 = vadd.f32 %v11517_v36, %v3750_v31 }
 0x212   :  { %v3813_v49 = vadd.f32 %v11519_v59, %v3749_v35 }
 0x214   :  { %v7272_v63 = vpop.f32.mrb[72].mxu0  ;;  %7323 = vmatprep.mubr.msk.f32.mxu1 %vm3851_vm8, %v3813_v49 }
 0x215   :  { %v3566_v62 = vadd.f32 %v7272_v63, %v11432_v20  ;;  %v3560_v30 = vpop.f32.mrb[73].mxu0  ;;  %7324 = vmatmul.mubr.msk.f32.gmra.mrb[10].mxu1 %vm3851_vm8, %v3814_v28 }
 0x216   :  { %v3561_v41 = vadd.f32 %v11432_v20, %v3560_v30 }
 0x217   :  { %v3752_v39 = vmax.f32 %v3566_v62, 0.0 }
 0x218   :  { %v3751_v18 = vmax.f32 %v3561_v41, 0.0 }
 0x219   :  { %v3816_v17 = vadd.f32 %v11532_v55, %v3752_v39 }
 0x21a   :  { %v3815_v29 = vadd.f32 %v11534_v21, %v3751_v18 }
 0x21c   :  { %v7275_v42 = vpop.f32.mrb[74].mxu0  ;;  %7326 = vmatprep.mubr.msk.f32.mxu1 %vm3851_vm8, %v3815_v29 }
 0x21d   :  { %v3576_v36 = vadd.f32 %v7275_v42, %v11432_v20  ;;  %v3570_v59 = vpop.f32.mrb[75].mxu0  ;;  %7327 = vmatmul.mubr.msk.f32.gmra.mrb[12].mxu1 %vm3851_vm8, %v3816_v17 }
 0x21e   :  { %v3571_v14 = vadd.f32 %v11432_v20, %v3570_v59 }
 0x21f   :  { %v3754_v51 = vmax.f32 %v3576_v36, 0.0 }
 0x220   :  { %v3753_v32 = vmax.f32 %v3571_v14, 0.0 }
 0x221   :  { %v3818_v1 = vadd.f32 %v11536_v38, %v3754_v51 }
 0x222   :  { %v3817_v48 = vadd.f32 %v11538_v34, %v3753_v32 }
 0x224   :  { %v7278_v46 = vpop.f32.mrb[76].mxu0  ;;  %7329 = vmatprep.mubr.msk.f32.mxu1 %vm3851_vm8, %v3817_v48 }
 0x225   :  { %v3586_v55 = vadd.f32 %v7278_v46, %v11432_v20  ;;  %v3580_v21 = vpop.f32.mrb[77].mxu0  ;;  %7330 = vmatmul.mubr.msk.f32.gmra.mrb[14].mxu1 %vm3851_vm8, %v3818_v1 }
 0x226   :  { %v3581_v54 = vadd.f32 %v11432_v20, %v3580_v21 }
 0x227   :  { %v3756_v9 = vmax.f32 %v3586_v55, 0.0 }
 0x228   :  { %v3755_v16 = vmax.f32 %v3581_v54, 0.0 }
 0x229   :  { %v3820_v19 = vadd.f32 %v11541_v57, %v3756_v9 }
 0x22a   :  { %v3819_v40 = vadd.f32 %v11543_v6, %v3755_v16 }
 0x22c   :  { %v7281_v0 = vpop.f32.mrb[78].mxu0  ;;  %7332 = vmatprep.mubr.msk.f32.mxu1 %vm3851_vm8, %v3819_v40 }
 0x22d   :  { %v3596_v38 = vadd.f32 %v7281_v0, %v11432_v20  ;;  %v3590_v34 = vpop.f32.mrb[79].mxu0  ;;  %7333 = vmatmul.mubr.msk.f32.gmra.mrb[16].mxu1 %vm3851_vm8, %v3820_v19 }
 0x22e   :  { %v3591_v23 = vadd.f32 %v11432_v20, %v3590_v34 }
 0x22f   :  { %v3758_v61 = vmax.f32 %v3596_v38, 0.0 }
 0x230   :  { %v3757_v58 = vmax.f32 %v3591_v23, 0.0 }
 0x231   :  { %v3822_v56 = vadd.f32 %v11546_v11, %v3758_v61  ;;  %v6727_v61 = vld [vmem:[%s12365_s5 + $0x40] sm:$0xff] }
 0x232   :  { %v3821_v37 = vadd.f32 %v11550_v12, %v3757_v58  ;;  %v6728_v58 = vld [vmem:[%s12365_s5 + $0x48] sm:$0xff] }
 0x234   :  { %v7284_v27 = vpop.f32.mrb[80].mxu0  ;;  %7335 = vmatprep.mubr.msk.f32.mxu1 %vm3851_vm8, %v3821_v37 }
 0x235   :  { %v3606_v57 = vadd.f32 %v7284_v27, %v11432_v20  ;;  %v3600_v6 = vpop.f32.mrb[81].mxu0  ;;  %7336 = vmatmul.mubr.msk.f32.gmra.mrb[18].mxu1 %vm3851_vm8, %v3822_v56  ;;  %v6729_v56 = vld [vmem:[%s12365_s5 + $0x50] sm:$0xff]  ;;  %v11781_v27 = vpack.c.bf16 %v6728_v58, %v6727_v61 }
 0x236   :  { %v3601_v26 = vadd.f32 %v11432_v20, %v3600_v6 }
 0x237   :  { %v3760_v24 = vmax.f32 %v3606_v57, 0.0  ;;  %v6730_v57 = vld [vmem:[%s12365_s5 + $0x58] sm:$0xff]  ;;  %7799 = vmatprep.subr.bf16.mxu1 %v11781_v27 }
 0x238   :  { %v3759_v13 = vmax.f32 %v3601_v26, 0.0  ;;  %7801 = vmatpush3.bf16.msra.mxu1 %v11781_v27 }
 0x239   :  { %v3824_v31 = vadd.f32 %v11556_v25, %v3760_v24  ;;  %v11787_v24 = vpack.c.bf16 %v6730_v57, %v6729_v56 }
 0x23a   :  { %v3823_v35 = vadd.f32 %v11558_v60, %v3759_v13 }
 0x23b   :  { %7803 = vmatprep.subr.bf16.mxu1 %v11787_v24 }
 0x23c   :  { %v7287_v28 = vpop.f32.mrb[82].mxu0  ;;  %7338 = vmatprep.mubr.msk.f32.mxu1 %vm3851_vm8, %v3823_v35  ;;  %7805 = vmatpush3.bf16.msra.mxu1 %v11787_v24 }
 0x23d   :  { %v3616_v11 = vadd.f32 %v7287_v28, %v11432_v20  ;;  %v3610_v12 = vpop.f32.mrb[83].mxu0  ;;  %7339 = vmatmul.mubr.msk.f32.gmra.mrb[20].mxu1 %vm3851_vm8, %v3824_v31 }
 0x23e   :  { %v3611_v49 = vadd.f32 %v11432_v20, %v3610_v12 }
 0x23f   :  { %v3762_v63 = vmax.f32 %v3616_v11, 0.0 }
 0x240   :  { %v3761_v62 = vmax.f32 %v3611_v49, 0.0 }
 0x241   :  { %v3826_v30 = vadd.f32 %v11566_v53, %v3762_v63 }
 0x242   :  { %v3825_v41 = vadd.f32 %v11568_v52, %v3761_v62 }
 0x244   :  { %v7290_v39 = vpop.f32.mrb[84].mxu0  ;;  %7341 = vmatprep.mubr.msk.f32.mxu1 %vm3851_vm8, %v3825_v41 }
 0x245   :  { %v3626_v25 = vadd.f32 %v7290_v39, %v11432_v20  ;;  %v3620_v60 = vpop.f32.mrb[85].mxu0  ;;  %7342 = vmatmul.mubr.msk.f32.gmra.mrb[22].mxu1 %vm3851_vm8, %v3826_v30 }
 0x246   :  { %v3621_v18 = vadd.f32 %v11432_v20, %v3620_v60 }
 0x247   :  { %v3764_v17 = vmax.f32 %v3626_v25, 0.0 }
 0x248   :  { %v3763_v29 = vmax.f32 %v3621_v18, 0.0 }
 0x249   :  { %v3828_v42 = vadd.f32 %v11576_v10, %v3764_v17 }
 0x24a   :  { %v3827_v36 = vadd.f32 %v11578_v15, %v3763_v29 }
 0x24c   :  { %v7293_v59 = vpop.f32.mrb[86].mxu0  ;;  %7344 = vmatprep.mubr.msk.f32.mxu1 %vm3851_vm8, %v3827_v36 }
 0x24d   :  { %v3636_v53 = vadd.f32 %v7293_v59, %v11432_v20  ;;  %v3630_v52 = vpop.f32.mrb[87].mxu0  ;;  %7345 = vmatmul.mubr.msk.f32.gmra.mrb[24].mxu1 %vm3851_vm8, %v3828_v42 }
 0x24e   :  { %v3631_v14 = vadd.f32 %v11432_v20, %v3630_v52 }
 0x24f   :  { %v3766_v51 = vmax.f32 %v3636_v53, 0.0 }
 0x250   :  { %v3765_v32 = vmax.f32 %v3631_v14, 0.0 }
 0x251   :  { %v3830_v1 = vadd.f32 %v11586_v47, %v3766_v51 }
 0x252   :  { %v3829_v48 = vadd.f32 %v11588_v4, %v3765_v32 }
 0x254   :  { %v7296_v46 = vpop.f32.mrb[88].mxu0  ;;  %7347 = vmatprep.mubr.msk.f32.mxu1 %vm3851_vm8, %v3829_v48 }
 0x255   :  { %v3646_v10 = vadd.f32 %v7296_v46, %v11432_v20  ;;  %v3640_v15 = vpop.f32.mrb[89].mxu0  ;;  %7348 = vmatmul.mubr.msk.f32.gmra.mrb[26].mxu1 %vm3851_vm8, %v3830_v1 }
 0x256   :  { %v3641_v55 = vadd.f32 %v11432_v20, %v3640_v15 }
 0x257   :  { %v3768_v21 = vmax.f32 %v3646_v10, 0.0 }
 0x258   :  { %v3767_v54 = vmax.f32 %v3641_v55, 0.0 }
 0x259   :  { %v3832_v9 = vadd.f32 %v11596_v50, %v3768_v21  ;;  %v4231_v50 = vld [vmem:[%s12365_s5 + $0x38] sm:$0xff] }
 0x25a   :  { %v3831_v16 = vadd.f32 %v11598_v2, %v3767_v54 }
 0x25c   :  { %v7299_v19 = vpop.f32.mrb[90].mxu0  ;;  %7350 = vmatprep.mubr.msk.f32.mxu1 %vm3851_vm8, %v3831_v16 }
 0x25d   :  { %v3656_v47 = vadd.f32 %v7299_v19, %v11432_v20  ;;  %v3650_v4 = vpop.f32.mrb[91].mxu0  ;;  %7351 = vmatmul.mubr.msk.f32.gmra.mrb[28].mxu1 %vm3851_vm8, %v3832_v9 }
 0x25e   :  { %v3651_v40 = vadd.f32 %v11432_v20, %v3650_v4  ;;  %v4230_v20 = vld [vmem:[%s12365_s5 + $0x30] sm:$0xff] }
 0x25f   :  { %v3770_v0 = vmax.f32 %v3656_v47, 0.0  ;;  %v11762_v2 = vpack.c.bf16 %v4231_v50, %v4230_v20 }
 0x260   :  { %v3769_v38 = vmax.f32 %v3651_v40, 0.0 }
 0x261   :  { %v3834_v34 = vadd.f32 %v11606_v5, %v3770_v0  ;;  %7795 = vmatprep.subr.bf16.mxu0 %v11762_v2  ;;  %v3846_v5 = vlaneseq }
 0x262   :  { %v3833_v23 = vadd.f32 %v11608_v3, %v3769_v38  ;;  %7797 = vmatpush3.bf16.msra.mxu0 %v11762_v2 }
 0x263   :  { %7911 = vmatprep.subr.bf16.mxu0 %v11639_v22  ;;  %v3847_v3 = vshrl.u32 %v3846_v5, 7 }
 0x264   :  { %7353 = vmatprep.mubr.msk.f32.mxu1 %vm3851_vm8, %v3833_v23 }
 0x265   :  { %7354 = vmatmul.mubr.msk.f32.gmra.mrb[30].mxu1 %vm3851_vm8, %v3834_v34 }
 0x266   :  { %7356 = vmatprep.mubr.msk.f32.mxu1 %vm3851_vm8, %v11620_v8 }
 0x269   :  { %7357 = vmatmul.mubr.msk.f32.gmra.mrb[32].mxu1 %vm3851_vm8, %v11618_v45  ;;  %v3843_v45 = vld [vmem:[%s12366_s4] sm:$0x1] }
 0x26a   :  { %7359 = vmatprep.mubr.msk.f32.mxu1 %vm3851_vm8, %v11655_v43  ;;  %v3844_v8 = vmul.f32 3.0, %v3843_v45 }
 0x26d   :  { %7360 = vmatmul.mubr.msk.f32.gmra.mrb[34].mxu1 %vm3851_vm8, %v11652_v7  ;;  %v3848_v7 = vsub.s32 0, %v3847_v3 }
 0x26f   :  { %v11770_v43 = vrot.slane %v3844_v8, %v3848_v7 }
 0x2d0   :  { %v7316_v37 = vpop.f32.mrb[4].mxu1 }
 0x2d1   :  { %v4020_v6 = vadd.f32 %v7316_v37, %v11770_v43  ;;  %v4014_v26 = vpop.f32.mrb[5].mxu1 }
 0x2d2   :  { %v4015_v13 = vadd.f32 %v4014_v26, %v11770_v43 }
 0x2d3   :  { %4174 = vst.msk [vmem:[#allocation2 + $0x8] sm:$0xff] %vm3851_vm8, %v4020_v6 }
 0x2d4   :  { %4173 = vst.msk [vmem:[#allocation2] sm:$0xff] %vm3851_vm8, %v4015_v13 }
 0x2d8   :  { %v7319_v31 = vpop.f32.mrb[6].mxu1 }
 0x2d9   :  { %v4030_v35 = vadd.f32 %v7319_v31, %v11770_v43  ;;  %v4024_v28 = vpop.f32.mrb[7].mxu1 }
 0x2da   :  { %v4025_v11 = vadd.f32 %v4024_v28, %v11770_v43 }
 0x2db   :  { %4176 = vst.msk [vmem:[#allocation2 + $0x18] sm:$0xff] %vm3851_vm8, %v4030_v35 }
 0x2dc   :  { %4175 = vst.msk [vmem:[#allocation2 + $0x10] sm:$0xff] %vm3851_vm8, %v4025_v11 }
 0x2e0   :  { %v7322_v12 = vpop.f32.mrb[8].mxu1 }
 0x2e1   :  { %v4040_v49 = vadd.f32 %v7322_v12, %v11770_v43  ;;  %v4034_v63 = vpop.f32.mrb[9].mxu1 }
 0x2e2   :  { %v4035_v62 = vadd.f32 %v4034_v63, %v11770_v43 }
 0x2e3   :  { %4178 = vst.msk [vmem:[#allocation2 + $0x28] sm:$0xff] %vm3851_vm8, %v4040_v49  ;;  %v4205_v42 = vld [vmem:[#allocation2] ss:$8 sm:$0xf] }
 0x2e4   :  { %4177 = vst.msk [vmem:[#allocation2 + $0x20] sm:$0xff] %vm3851_vm8, %v4035_v62 }
 0x2e8   :  { %v7325_v30 = vpop.f32.mrb[10].mxu1 }
 0x2e9   :  { %v4050_v41 = vadd.f32 %v7325_v30, %v11770_v43  ;;  %v4044_v39 = vpop.f32.mrb[11].mxu1 }
 0x2ea   :  { %v4045_v25 = vadd.f32 %v4044_v39, %v11770_v43 }
 0x2eb   :  { %4180 = vst.msk [vmem:[#allocation2 + $0x38] sm:$0xff] %vm3851_vm8, %v4050_v41 }
 0x2ec   :  { %4179 = vst.msk [vmem:[#allocation2 + $0x30] sm:$0xff] %vm3851_vm8, %v4045_v25 }
 0x2f0   :  { %v7328_v60 = vpop.f32.mrb[12].mxu1 }
 0x2f1   :  { %v4060_v18 = vadd.f32 %v7328_v60, %v11770_v43  ;;  %v4054_v17 = vpop.f32.mrb[13].mxu1 }
 0x2f2   :  { %v4055_v29 = vadd.f32 %v4054_v17, %v11770_v43 }
 0x2f3   :  { %4182 = vst.msk [vmem:[#allocation2 + $0x48] sm:$0xff] %vm3851_vm8, %v4060_v18  ;;  %v4206_v36 = vld [vmem:[#allocation2] ss:$8 sm:$0xf0] }
 0x2f4   :  { %4181 = vst.msk [vmem:[#allocation2 + $0x40] sm:$0xff] %vm3851_vm8, %v4055_v29  ;;  %v4207_v59 = vor.u32 %v4206_v36, %v4205_v42 }
 0x2f6   :  { %v4220_v53 = vsel %vm3851_vm8, %v4207_v59, 0.0 }
 0x2f7   :  { %7378 = vmatprep.mubr.msk.f32.mxu0 %vm4239_vm9, %v4220_v53  ;;  %v6731_v53 = vld [vmem:[%s12365_s5 + $0x60] sm:$0xff] }
 0x2f8   :  { %v7331_v52 = vpop.f32.mrb[14].mxu1 }
 0x2f9   :  { %v4070_v14 = vadd.f32 %v7331_v52, %v11770_v43  ;;  %v4064_v51 = vpop.f32.mrb[15].mxu1  ;;  %v6732_v52 = vld [vmem:[%s12365_s5 + $0x68] sm:$0xff] }
 0x2fa   :  { %v4065_v32 = vadd.f32 %v4064_v51, %v11770_v43  ;;  %v6734_v51 = vld [vmem:[%s12365_s5 + $0x78] sm:$0xff] }
 0x2fb   :  { %4184 = vst.msk [vmem:[#allocation2 + $0x58] sm:$0xff] %vm3851_vm8, %v4070_v14  ;;  %v11881_v14 = vpack.c.bf16 %v6732_v52, %v6731_v53 }
 0x2fc   :  { %4183 = vst.msk [vmem:[#allocation2 + $0x50] sm:$0xff] %vm3851_vm8, %v4065_v32 }
 0x2fd   :  { %7807 = vmatprep.subr.bf16.mxu1 %v11881_v14 }
 0x2fe   :  { %7809 = vmatpush3.bf16.msra.mxu1 %v11881_v14 }
 0x300   :  { %v7334_v1 = vpop.f32.mrb[16].mxu1 }
 0x301   :  { %v4080_v48 = vadd.f32 %v7334_v1, %v11770_v43  ;;  %v4074_v46 = vpop.f32.mrb[17].mxu1  ;;  %v11896_v1 = vld [vmem:[%s12367_s6] ss:$0 sm:$0xff] }
 0x302   :  { %v4075_v10 = vadd.f32 %v4074_v46, %v11770_v43 }
 0x303   :  { %4186 = vst.msk [vmem:[#allocation2 + $0x68] sm:$0xff] %vm3851_vm8, %v4080_v48  ;;  %v4209_v4 = vld [vmem:[#allocation2 + $0x40] ss:$8 sm:$0xf] }
 0x304   :  { %4185 = vst.msk [vmem:[#allocation2 + $0x60] sm:$0xff] %vm3851_vm8, %v4075_v10 }
 0x308   :  { %v7337_v15 = vpop.f32.mrb[18].mxu1 }
 0x309   :  { %v4090_v55 = vadd.f32 %v7337_v15, %v11770_v43  ;;  %v4084_v21 = vpop.f32.mrb[19].mxu1 }
 0x30a   :  { %v4085_v54 = vadd.f32 %v4084_v21, %v11770_v43 }
 0x30b   :  { %4188 = vst.msk [vmem:[#allocation2 + $0x78] sm:$0xff] %vm3851_vm8, %v4090_v55 }
 0x30c   :  { %4187 = vst.msk [vmem:[#allocation2 + $0x70] sm:$0xff] %vm3851_vm8, %v4085_v54 }
 0x310   :  { %v7340_v9 = vpop.f32.mrb[20].mxu1 }
 0x311   :  { %v4100_v16 = vadd.f32 %v7340_v9, %v11770_v43  ;;  %v4094_v19 = vpop.f32.mrb[21].mxu1 }
 0x312   :  { %v4095_v47 = vadd.f32 %v4094_v19, %v11770_v43 }
 0x313   :  { %4190 = vst.msk [vmem:[#allocation2 + $0x88] sm:$0xff] %vm3851_vm8, %v4100_v16  ;;  %v4210_v40 = vld [vmem:[#allocation2 + $0x40] ss:$8 sm:$0xf0] }
 0x314   :  { %4189 = vst.msk [vmem:[#allocation2 + $0x80] sm:$0xff] %vm3851_vm8, %v4095_v47  ;;  %v4211_v0 = vor.u32 %v4210_v40, %v4209_v4 }
 0x316   :  { %v4221_v38 = vsel %vm3851_vm8, %v4211_v0, 0.0 }
 0x317   :  { %7379 = vmatmul.mubr.msk.f32.vlgmr.msra.gmra.mrb[92].mxu0 %vm4239_vm9, %v4221_v38 }
 0x318   :  { %v7343_v34 = vpop.f32.mrb[22].mxu1  ;;  %7913 = vmatpush3.bf16.msra.mxu0 %v11639_v22 }
 0x319   :  { %v4110_v23 = vadd.f32 %v7343_v34, %v11770_v43  ;;  %v4104_v20 = vpop.f32.mrb[23].mxu1  ;;  %7915 = vmatprep.subr.bf16.mxu0 %v11644_v44 }
 0x31a   :  { %v4105_v50 = vadd.f32 %v4104_v20, %v11770_v43  ;;  %v4464_v20 = vld [vmem:[#allocation2 + $0x1] ss:$8 sm:$0xf] }
 0x31b   :  { %4192 = vst.msk [vmem:[#allocation2 + $0x98] sm:$0xff] %vm3851_vm8, %v4110_v23  ;;  %v4465_v23 = vld [vmem:[#allocation2 + $0x1] ss:$8 sm:$0xf0] }
 0x31c   :  { %4191 = vst.msk [vmem:[#allocation2 + $0x90] sm:$0xff] %vm3851_vm8, %v4105_v50  ;;  %7917 = vmatpush3.bf16.msra.mxu0 %v11644_v44  ;;  %v4466_v50 = vor.u32 %v4465_v23, %v4464_v20  ;;  %v4722_v23 = vld [vmem:[#allocation2 + $0x2] ss:$8 sm:$0xf] }
 0x31d   :  { %7919 = vmatprep.subr.bf16.mxu0 %v11659_v33  ;;  %v4726_v20 = vld [vmem:[#allocation2 + $0x42] ss:$8 sm:$0xf] }
 0x320   :  { %v7346_v5 = vpop.f32.mrb[24].mxu1  ;;  %7921 = vmatpush3.bf16.msra.mxu0 %v11659_v33 }
 0x321   :  { %v4120_v3 = vadd.f32 %v7346_v5, %v11770_v43  ;;  %v4114_v45 = vpop.f32.mrb[25].mxu1  ;;  %7923 = vmatprep.subr.bf16.mxu0 %v11762_v2 }
 0x322   :  { %v4115_v8 = vadd.f32 %v4114_v45, %v11770_v43 }
 0x323   :  { %4194 = vst.msk [vmem:[#allocation2 + $0xa8] sm:$0xff] %vm3851_vm8, %v4120_v3  ;;  %v4213_v13 = vld [vmem:[#allocation2 + $0x80] ss:$8 sm:$0xf] }
 0x324   :  { %4193 = vst.msk [vmem:[#allocation2 + $0xa0] sm:$0xff] %vm3851_vm8, %v4115_v8  ;;  %7925 = vmatpush3.bf16.msra.mxu0 %v11762_v2  ;;  %v4469_v3 = vld [vmem:[#allocation2 + $0x41] ss:$8 sm:$0xf0] }
 0x325   :  { %7943 = vmatprep.subr.bf16.mxu0 %v11639_v22  ;;  %v4468_v8 = vld [vmem:[#allocation2 + $0x41] ss:$8 sm:$0xf] }
 0x328   :  { %v7349_v7 = vpop.f32.mrb[26].mxu1 }
 0x329   :  { %v4130_v61 = vadd.f32 %v7349_v7, %v11770_v43  ;;  %v4124_v58 = vpop.f32.mrb[27].mxu1  ;;  %v4470_v7 = vor.u32 %v4469_v3, %v4468_v8 }
 0x32a   :  { %v4125_v56 = vadd.f32 %v4124_v58, %v11770_v43 }
 0x32b   :  { %4196 = vst.msk [vmem:[#allocation2 + $0xb8] sm:$0xff] %vm3851_vm8, %v4130_v61 }
 0x32c   :  { %4195 = vst.msk [vmem:[#allocation2 + $0xb0] sm:$0xff] %vm3851_vm8, %v4125_v56 }
 0x330   :  { %v7352_v37 = vpop.f32.mrb[28].mxu1 }
 0x331   :  { %v4140_v57 = vadd.f32 %v7352_v37, %v11770_v43  ;;  %v4134_v6 = vpop.f32.mrb[29].mxu1  ;;  %v4472_v37 = vld [vmem:[#allocation2 + $0x81] ss:$8 sm:$0xf] }
 0x332   :  { %v4135_v26 = vadd.f32 %v4134_v6, %v11770_v43 }
 0x333   :  { %4198 = vst.msk [vmem:[#allocation2 + $0xc8] sm:$0xff] %vm3851_vm8, %v4140_v57  ;;  %v4214_v31 = vld [vmem:[#allocation2 + $0x80] ss:$8 sm:$0xf0] }
 0x334   :  { %4197 = vst.msk [vmem:[#allocation2 + $0xc0] sm:$0xff] %vm3851_vm8, %v4135_v26  ;;  %v4215_v35 = vor.u32 %v4214_v31, %v4213_v13  ;;  %v4473_v56 = vld [vmem:[#allocation2 + $0x81] ss:$8 sm:$0xf0] }
 0x335   :  { %v4474_v57 = vor.u32 %v4473_v56, %v4472_v37  ;;  %v4730_v56 = vld [vmem:[#allocation2 + $0x82] ss:$8 sm:$0xf] }
 0x336   :  { %v4222_v28 = vsel %vm3851_vm8, %v4215_v35, 0.0 }
 0x337   :  { %7381 = vmatprep.mubr.msk.f32.mxu0 %vm4239_vm9, %v4222_v28 }
 0x338   :  { %v7355_v11 = vpop.f32.mrb[30].mxu1 }
 0x339   :  { %v4150_v12 = vadd.f32 %v7355_v11, %v11770_v43  ;;  %v4144_v49 = vpop.f32.mrb[31].mxu1 }
 0x33a   :  { %v4145_v63 = vadd.f32 %v4144_v49, %v11770_v43 }
 0x33b   :  { %4200 = vst.msk [vmem:[#allocation2 + $0xd8] sm:$0xff] %vm3851_vm8, %v4150_v12  ;;  %v11941_v12 = vld [vmem:[%s12367_s6 + $0x1] ss:$0 sm:$0xff] }
 0x33c   :  { %4199 = vst.msk [vmem:[#allocation2 + $0xd0] sm:$0xff] %vm3851_vm8, %v4145_v63  ;;  %v7358_v62 = vpop.f32.mrb[32].mxu1 }
 0x33d   :  { %v4160_v30 = vadd.f32 %v7358_v62, %v11770_v43  ;;  %v4154_v41 = vpop.f32.mrb[33].mxu1 }
 0x33e   :  { %v4155_v39 = vadd.f32 %v4154_v41, %v11770_v43 }
 0x33f   :  { %4202 = vst.msk [vmem:[#allocation2 + $0xe8] sm:$0xff] %vm3851_vm8, %v4160_v30 }
 0x340   :  { %4201 = vst.msk [vmem:[#allocation2 + $0xe0] sm:$0xff] %vm3851_vm8, %v4155_v39  ;;  %v7361_v25 = vpop.f32.mrb[34].mxu1 }
 0x341   :  { %v4170_v60 = vadd.f32 %v7361_v25, %v11770_v43  ;;  %v4164_v18 = vpop.f32.mrb[35].mxu1 }
 0x342   :  { %v4165_v17 = vadd.f32 %v4164_v18, %v11770_v43  ;;  %v6733_v43 = vld [vmem:[%s12365_s5 + $0x70] sm:$0xff]  ;;  %s8214_s5 = smov 32  }
 0x343   :  { %4204 = vst.msk [vmem:[#allocation2 + $0xf8] sm:$0xff] %vm3851_vm8, %v4170_v60  ;;  %v4217_v29 = vld [vmem:[#allocation2 + $0xc0] ss:$8 sm:$0xf]  ;;  %v11886_v32 = vpack.c.bf16 %v6734_v51, %v6733_v43 }
 0x344   :  { %4203 = vst.msk [vmem:[#allocation2 + $0xf0] sm:$0xff] %vm3851_vm8, %v4165_v17  ;;  %v4476_v31 = vld [vmem:[#allocation2 + $0xc1] ss:$8 sm:$0xf] }
 0x345   :  { %7811 = vmatprep.subr.bf16.mxu1 %v11886_v32  ;;  %v4734_v37 = vld [vmem:[#allocation2 + $0xc2] ss:$8 sm:$0xf] }
 0x346   :  { %7813 = vmatpush3.bf16.msra.mxu1 %v11886_v32 }
 0x347   :  { %7815 = vmatprep.subr.bf16.mxu1 %v11639_v22 }
 0x34b   :  { %v4218_v42 = vld [vmem:[#allocation2 + $0xc0] ss:$8 sm:$0xf0]  ;;  %v4477_v26 = vld [vmem:[#allocation2 + $0xc1] ss:$8 sm:$0xf0] }
 0x34c   :  { %v4219_v36 = vor.u32 %v4218_v42, %v4217_v29  ;;  %v4478_v35 = vor.u32 %v4477_v26, %v4476_v31 }
 0x34e   :  { %v4223_v59 = vsel %vm3851_vm8, %v4219_v36, 0.0 }
 0x34f   :  { %7382 = vmatmul.mubr.msk.f32.gmra.mrb[94].mxu0 %vm4239_vm9, %v4223_v59 }
 0x3ea   :  { %v7380_v48 = vpop.f32.mrb[92].mxu0 }
 0x3eb   :  { %v4324_v46 = vadd.f32 %v7380_v48, %v11896_v1  ;;  %v4318_v10 = vpop.f32.mrb[93].mxu0 }
 0x3ec   :  { %v4319_v15 = vadd.f32 %v11896_v1, %v4318_v10 }
 0x3ed   :  { %8084 = vtanh.f32 %v4324_v46 }
 0x3ee   :  { %8086 = vtanh.f32 %v4319_v15 }
 0x3f7   :  { %v8085_v55 = vpop.eup %8084 }
 0x3f8   :  { %v8087_v21 = vpop.eup %8086  ;;  %v4342_v9 = vsel %vm3851_vm8, %v8085_v55, 0.0 }
 0x3f9   :  { %4483 = vrot.lane.b32.xlu0 %v8087_v21, %s8214_s5  ;;  %v4341_v54 = vsel %vm3851_vm8, %v8087_v21, 0.0 }
 0x3fa   :  { %7400 = vmatprep.mubr.msk.f32.mxu1 %vm4239_vm9, %v4341_v54 }
 0x3fb   :  { %7401 = vmatmul.mubr.msk.f32.vlgmr.msra.gmra.mrb[36].mxu1 %vm4239_vm9, %v4342_v9 }
 0x3fc   :  { %7817 = vmatpush3.bf16.msra.mxu1 %v11639_v22 }
 0x3fd   :  { %4485 = vrot.lane.b32.xlu0 %v8085_v55, %s8214_s5  ;;  %7819 = vmatprep.subr.bf16.mxu1 %v11644_v44 }
 0x400   :  { %7821 = vmatpush3.bf16.msra.mxu1 %v11644_v44 }
 0x401   :  { %7823 = vmatprep.subr.bf16.mxu1 %v11659_v33 }
 0x404   :  { %7825 = vmatpush3.bf16.msra.mxu1 %v11659_v33 }
 0x405   :  { %7827 = vmatprep.subr.bf16.mxu1 %v11762_v2 }
 0x408   :  { %7829 = vmatpush3.bf16.msra.mxu1 %v11762_v2 }
 0x409   :  { %7831 = vmatprep.subr.bf16.mxu1 %v11781_v27 }
 0x422   :  { %v7383_v16 = vpop.f32.mrb[94].mxu0 }
 0x423   :  { %v4334_v19 = vadd.f32 %v7383_v16, %v11896_v1  ;;  %v4328_v47 = vpop.f32.mrb[95].mxu0 }
 0x424   :  { %v4329_v4 = vadd.f32 %v11896_v1, %v4328_v47 }
 0x425   :  { %8088 = vtanh.f32 %v4334_v19 }
 0x426   :  { %8090 = vtanh.f32 %v4329_v4 }
 0x42f   :  { %v8089_v40 = vpop.eup %8088 }
 0x430   :  { %v8091_v0 = vpop.eup %8090  ;;  %v4344_v34 = vsel %vm3851_vm8, %v8089_v40, 0.0 }
 0x431   :  { %4487 = vrot.lane.b32.xlu1 %v8091_v0, %s8214_s5  ;;  %v4343_v38 = vsel %vm3851_vm8, %v8091_v0, 0.0 }
 0x432   :  { %7403 = vmatprep.mubr.msk.f32.mxu1 %vm4239_vm9, %v4343_v38  ;;  %v4723_v38 = vld [vmem:[#allocation2 + $0x2] ss:$8 sm:$0xf0] }
 0x433   :  { %7404 = vmatmul.mubr.msk.f32.gmra.mrb[38].mxu1 %vm4239_vm9, %v4344_v34  ;;  %v4727_v34 = vld [vmem:[#allocation2 + $0x42] ss:$8 sm:$0xf0] }
 0x434   :  { %v4728_v3 = vor.u32 %v4727_v34, %v4726_v20  ;;  %v4984_v34 = vld [vmem:[#allocation2 + $0x43] ss:$8 sm:$0xf] }
 0x435   :  { %4489 = vrot.lane.b32.xlu1 %v8089_v40, %s8214_s5 }
 0x46b   :  { %v4484_v5 = vpop.permute.xlu0 %4483 }
 0x46c   :  { %v4495_v45 = vsel %vm3851_vm8, %v4466_v50, %v4484_v5  ;;  %v4724_v5 = vor.u32 %v4723_v38, %v4722_v23  ;;  %v4980_v38 = vld [vmem:[#allocation2 + $0x3] ss:$8 sm:$0xf] }
 0x46d   :  { %7422 = vmatprep.mubr.msk.f32.mxu1 %vm4239_vm9, %v4495_v45 }
 0x46f   :  { %v4486_v61 = vpop.permute.xlu0 %4485 }
 0x470   :  { %v4496_v58 = vsel %vm3851_vm8, %v4470_v7, %v4486_v61  ;;  %v4731_v61 = vld [vmem:[#allocation2 + $0x82] ss:$8 sm:$0xf0] }
 0x471   :  { %7423 = vmatmul.mubr.msk.f32.vlgmr.msra.gmra.mrb[40].mxu1 %vm4239_vm9, %v4496_v58  ;;  %v4735_v58 = vld [vmem:[#allocation2 + $0xc2] ss:$8 sm:$0xf0] }
 0x472   :  { %7833 = vmatpush3.bf16.msra.mxu1 %v11781_v27  ;;  %v4736_v26 = vor.u32 %v4735_v58, %v4734_v37  ;;  %v4992_v58 = vld [vmem:[#allocation2 + $0xc3] ss:$8 sm:$0xf] }
 0x473   :  { %7835 = vmatprep.subr.bf16.mxu1 %v11787_v24 }
 0x476   :  { %7837 = vmatpush3.bf16.msra.mxu1 %v11787_v24 }
 0x477   :  { %7839 = vmatprep.subr.bf16.mxu1 %v11881_v14 }
 0x47a   :  { %7841 = vmatpush3.bf16.msra.mxu1 %v11881_v14 }
 0x47b   :  { %7843 = vmatprep.subr.bf16.mxu1 %v11886_v32 }
 0x47e   :  { %7845 = vmatpush3.bf16.msra.mxu1 %v11886_v32 }
 0x47f   :  { %7847 = vmatprep.subr.bf16.mxu1 %v11639_v22 }
 0x4a3   :  { %v4488_v6 = vpop.permute.xlu1 %4487 }
 0x4a4   :  { %v4497_v13 = vsel %vm3851_vm8, %v4474_v57, %v4488_v6  ;;  %v4732_v6 = vor.u32 %v4731_v61, %v4730_v56  ;;  %v4988_v61 = vld [vmem:[#allocation2 + $0x83] ss:$8 sm:$0xf] }
 0x4a5   :  { %7425 = vmatprep.mubr.msk.f32.mxu1 %vm4239_vm9, %v4497_v13 }
 0x4a7   :  { %v4490_v28 = vpop.permute.xlu1 %4489 }
 0x4a8   :  { %v4498_v11 = vsel %vm3851_vm8, %v4478_v35, %v4490_v28 }
 0x4a9   :  { %7426 = vmatmul.mubr.msk.f32.gmra.mrb[42].mxu1 %vm4239_vm9, %v4498_v11 }
 0x4ce   :  { %v7402_v49 = vpop.f32.mrb[36].mxu1 }
 0x4cf   :  { %v4446_v63 = vadd.f32 %v7402_v49, %v11941_v12  ;;  %v4440_v62 = vpop.f32.mrb[37].mxu1 }
 0x4d0   :  { %v4441_v30 = vadd.f32 %v11941_v12, %v4440_v62 }
 0x4d1   :  { %8092 = vtanh.f32 %v4446_v63 }
 0x4d2   :  { %8094 = vtanh.f32 %v4441_v30 }
 0x4db   :  { %v8093_v41 = vpop.eup %8092 }
 0x4dc   :  { %v8095_v39 = vpop.eup %8094  ;;  %4606 = vrot.lane.b32.xlu1 %v8093_v41, %s8214_s5 }
 0x4dd   :  { %4604 = vrot.lane.b32.xlu0 %v8095_v39, %s8214_s5 }
 0x506   :  { %v7405_v25 = vpop.f32.mrb[38].mxu1 }
 0x507   :  { %v4456_v60 = vadd.f32 %v7405_v25, %v11941_v12  ;;  %v4450_v18 = vpop.f32.mrb[39].mxu1 }
 0x508   :  { %v4451_v17 = vadd.f32 %v11941_v12, %v4450_v18 }
 0x509   :  { %8096 = vtanh.f32 %v4456_v60 }
 0x50a   :  { %8098 = vtanh.f32 %v4451_v17 }
 0x513   :  { %v8097_v29 = vpop.eup %8096 }
 0x514   :  { %v8099_v42 = vpop.eup %8098  ;;  %4610 = vrot.lane.b32.xlu1 %v8097_v29, %s8214_s5 }
 0x515   :  { %4608 = vrot.lane.b32.xlu0 %v8099_v42, %s8214_s5 }
 0x544   :  { %v7424_v36 = vpop.f32.mrb[40].mxu1 }
 0x545   :  { %v4583_v59 = vadd.f32 %v7424_v36, %v11896_v1  ;;  %v4577_v53 = vpop.f32.mrb[41].mxu1 }
 0x546   :  { %v4578_v52 = vadd.f32 %v11896_v1, %v4577_v53 }
 0x547   :  { %8100 = vtanh.f32 %v4583_v59 }
 0x548   :  { %8102 = vtanh.f32 %v4578_v52 }
 0x54e   :  { %v4607_v46 = vpop.permute.xlu1 %4606 }
 0x54f   :  { %v4605_v48 = vpop.permute.xlu0 %4604 }
 0x551   :  { %v8101_v43 = vpop.eup %8100 }
 0x552   :  { %v8103_v51 = vpop.eup %8102  ;;  %4743 = vrot.lane.b32.xlu1 %v8101_v43, %s8214_s5  ;;  %v4617_v15 = vsel %vm3851_vm8, %v8101_v43, %v4607_v46 }
 0x553   :  { %v4616_v10 = vsel %vm3851_vm8, %v8103_v51, %v4605_v48  ;;  %4741 = vrot.lane.b32.xlu0 %v8103_v51, %s8214_s5 }
 0x554   :  { %7444 = vmatprep.mubr.msk.f32.mxu1 %vm4239_vm9, %v4616_v10 }
 0x555   :  { %7445 = vmatmul.mubr.msk.f32.vlgmr.msra.gmra.mrb[44].mxu1 %vm4239_vm9, %v4617_v15 }
 0x556   :  { %7849 = vmatpush3.bf16.msra.mxu1 %v11639_v22 }
 0x557   :  { %7851 = vmatprep.subr.bf16.mxu1 %v11644_v44 }
 0x55a   :  { %7853 = vmatpush3.bf16.msra.mxu1 %v11644_v44 }
 0x55b   :  { %7855 = vmatprep.subr.bf16.mxu1 %v11659_v33 }
 0x55e   :  { %7857 = vmatpush3.bf16.msra.mxu1 %v11659_v33 }
 0x55f   :  { %7859 = vmatprep.subr.bf16.mxu1 %v11762_v2 }
 0x562   :  { %7861 = vmatpush3.bf16.msra.mxu1 %v11762_v2 }
 0x563   :  { %7863 = vmatprep.subr.bf16.mxu1 %v11781_v27 }
 0x57c   :  { %v7427_v55 = vpop.f32.mrb[42].mxu1 }
 0x57d   :  { %v4593_v21 = vadd.f32 %v7427_v55, %v11896_v1  ;;  %v4587_v54 = vpop.f32.mrb[43].mxu1 }
 0x57e   :  { %v4588_v9 = vadd.f32 %v11896_v1, %v4587_v54 }
 0x57f   :  { %8104 = vtanh.f32 %v4593_v21 }
 0x580   :  { %8106 = vtanh.f32 %v4588_v9 }
 0x586   :  { %v4611_v4 = vpop.permute.xlu1 %4610 }
 0x587   :  { %v4609_v47 = vpop.permute.xlu0 %4608 }
 0x589   :  { %v8105_v16 = vpop.eup %8104 }
 0x58a   :  { %v8107_v19 = vpop.eup %8106  ;;  %4747 = vrot.lane.b32.xlu1 %v8105_v16, %s8214_s5  ;;  %v4619_v0 = vsel %vm3851_vm8, %v8105_v16, %v4611_v4 }
 0x58b   :  { %v4618_v40 = vsel %vm3851_vm8, %v8107_v19, %v4609_v47  ;;  %4745 = vrot.lane.b32.xlu0 %v8107_v19, %s8214_s5 }
 0x58c   :  { %7447 = vmatprep.mubr.msk.f32.mxu1 %vm4239_vm9, %v4618_v40  ;;  %v4981_v40 = vld [vmem:[#allocation2 + $0x3] ss:$8 sm:$0xf0] }
 0x58d   :  { %7448 = vmatmul.mubr.msk.f32.gmra.mrb[46].mxu1 %vm4239_vm9, %v4619_v0  ;;  %v4985_v0 = vld [vmem:[#allocation2 + $0x43] ss:$8 sm:$0xf0]  ;;  %v4982_v20 = vor.u32 %v4981_v40, %v4980_v38  ;;  %v5238_v40 = vld [vmem:[#allocation2 + $0x4] ss:$8 sm:$0xf] }
 0x5c4   :  { %v4744_v50 = vpop.permute.xlu1 %4743 }
 0x5c5   :  { %v4742_v45 = vpop.permute.xlu0 %4741  ;;  %v4754_v7 = vsel %vm3851_vm8, %v4728_v3, %v4744_v50  ;;  %v4986_v50 = vor.u32 %v4985_v0, %v4984_v34  ;;  %v5242_v0 = vld [vmem:[#allocation2 + $0x44] ss:$8 sm:$0xf] }
 0x5c6   :  { %v4753_v8 = vsel %vm3851_vm8, %v4724_v5, %v4742_v45 }
 0x5c7   :  { %7466 = vmatprep.mubr.msk.f32.mxu1 %vm4239_vm9, %v4753_v8  ;;  %v4989_v8 = vld [vmem:[#allocation2 + $0x83] ss:$8 sm:$0xf0] }
 0x5c8   :  { %7467 = vmatmul.mubr.msk.f32.vlgmr.msra.gmra.mrb[48].mxu1 %vm4239_vm9, %v4754_v7  ;;  %v4993_v7 = vld [vmem:[#allocation2 + $0xc3] ss:$8 sm:$0xf0]  ;;  %v4990_v37 = vor.u32 %v4989_v8, %v4988_v61  ;;  %v5246_v8 = vld [vmem:[#allocation2 + $0x84] ss:$8 sm:$0xf] }
 0x5c9   :  { %7865 = vmatpush3.bf16.msra.mxu1 %v11781_v27 }
 0x5ca   :  { %7867 = vmatprep.subr.bf16.mxu1 %v11787_v24 }
 0x5cd   :  { %7869 = vmatpush3.bf16.msra.mxu1 %v11787_v24 }
 0x5ce   :  { %7871 = vmatprep.subr.bf16.mxu1 %v11881_v14 }
 0x5d1   :  { %7873 = vmatpush3.bf16.msra.mxu1 %v11881_v14 }
 0x5d2   :  { %7875 = vmatprep.subr.bf16.mxu1 %v11886_v32 }
 0x5d5   :  { %7877 = vmatpush3.bf16.msra.mxu1 %v11886_v32 }
 0x5d6   :  { %7879 = vmatprep.subr.bf16.mxu1 %v11639_v22 }
 0x5fc   :  { %v4748_v57 = vpop.permute.xlu1 %4747 }
 0x5fd   :  { %v4746_v13 = vpop.permute.xlu0 %4745  ;;  %v4756_v35 = vsel %vm3851_vm8, %v4736_v26, %v4748_v57  ;;  %v4994_v57 = vor.u32 %v4993_v7, %v4992_v58  ;;  %v5250_v7 = vld [vmem:[#allocation2 + $0xc4] ss:$8 sm:$0xf] }
 0x5fe   :  { %v4755_v31 = vsel %vm3851_vm8, %v4732_v6, %v4746_v13 }
 0x5ff   :  { %7469 = vmatprep.mubr.msk.f32.mxu1 %vm4239_vm9, %v4755_v31 }
 0x600   :  { %7470 = vmatmul.mubr.msk.f32.gmra.mrb[50].mxu1 %vm4239_vm9, %v4756_v35 }
 0x628   :  { %v7446_v28 = vpop.f32.mrb[44].mxu1 }
 0x629   :  { %v4704_v11 = vadd.f32 %v7446_v28, %v11941_v12  ;;  %v4698_v49 = vpop.f32.mrb[45].mxu1 }
 0x62a   :  { %v4699_v63 = vadd.f32 %v11941_v12, %v4698_v49 }
 0x62b   :  { %8108 = vtanh.f32 %v4704_v11 }
 0x62c   :  { %8110 = vtanh.f32 %v4699_v63 }
 0x635   :  { %v8109_v62 = vpop.eup %8108 }
 0x636   :  { %v8111_v30 = vpop.eup %8110  ;;  %4864 = vrot.lane.b32.xlu1 %v8109_v62, %s8214_s5 }
 0x637   :  { %4862 = vrot.lane.b32.xlu0 %v8111_v30, %s8214_s5 }
 0x660   :  { %v7449_v41 = vpop.f32.mrb[46].mxu1 }
 0x661   :  { %v4714_v39 = vadd.f32 %v7449_v41, %v11941_v12  ;;  %v4708_v25 = vpop.f32.mrb[47].mxu1 }
 0x662   :  { %v4709_v60 = vadd.f32 %v11941_v12, %v4708_v25 }
 0x663   :  { %8112 = vtanh.f32 %v4714_v39 }
 0x664   :  { %8114 = vtanh.f32 %v4709_v60 }
 0x66d   :  { %v8113_v18 = vpop.eup %8112 }
 0x66e   :  { %v8115_v17 = vpop.eup %8114  ;;  %4868 = vrot.lane.b32.xlu1 %v8113_v18, %s8214_s5 }
 0x66f   :  { %4866 = vrot.lane.b32.xlu0 %v8115_v17, %s8214_s5 }
 0x69b   :  { %v7468_v29 = vpop.f32.mrb[48].mxu1 }
 0x69c   :  { %v4841_v42 = vadd.f32 %v7468_v29, %v11896_v1  ;;  %v4835_v36 = vpop.f32.mrb[49].mxu1 }
 0x69d   :  { %v4836_v59 = vadd.f32 %v11896_v1, %v4835_v36 }
 0x69e   :  { %8116 = vtanh.f32 %v4841_v42 }
 0x69f   :  { %8118 = vtanh.f32 %v4836_v59 }
 0x6a8   :  { %v8117_v53 = vpop.eup %8116  ;;  %v4865_v52 = vpop.permute.xlu1 %4864 }
 0x6a9   :  { %v8119_v43 = vpop.eup %8118  ;;  %5001 = vrot.lane.b32.xlu1 %v8117_v53, %s8214_s5  ;;  %v4863_v51 = vpop.permute.xlu0 %4862  ;;  %v4875_v46 = vsel %vm3851_vm8, %v8117_v53, %v4865_v52 }
 0x6aa   :  { %v4874_v48 = vsel %vm3851_vm8, %v8119_v43, %v4863_v51  ;;  %4999 = vrot.lane.b32.xlu0 %v8119_v43, %s8214_s5 }
 0x6ab   :  { %7488 = vmatprep.mubr.msk.f32.mxu1 %vm4239_vm9, %v4874_v48 }
 0x6ac   :  { %7489 = vmatmul.mubr.msk.f32.vlgmr.msra.gmra.mrb[52].mxu1 %vm4239_vm9, %v4875_v46 }
 0x6ad   :  { %7881 = vmatpush3.bf16.msra.mxu1 %v11639_v22 }
 0x6ae   :  { %7883 = vmatprep.subr.bf16.mxu1 %v11644_v44 }
 0x6b1   :  { %7885 = vmatpush3.bf16.msra.mxu1 %v11644_v44 }
 0x6b2   :  { %7887 = vmatprep.subr.bf16.mxu1 %v11659_v33 }
 0x6b5   :  { %7889 = vmatpush3.bf16.msra.mxu1 %v11659_v33 }
 0x6b6   :  { %7891 = vmatprep.subr.bf16.mxu1 %v11762_v2 }
 0x6b9   :  { %7893 = vmatpush3.bf16.msra.mxu1 %v11762_v2 }
 0x6ba   :  { %7895 = vmatprep.subr.bf16.mxu1 %v11781_v27 }
 0x6d3   :  { %v7471_v10 = vpop.f32.mrb[50].mxu1 }
 0x6d4   :  { %v4851_v15 = vadd.f32 %v7471_v10, %v11896_v1  ;;  %v4845_v55 = vpop.f32.mrb[51].mxu1 }
 0x6d5   :  { %v4846_v21 = vadd.f32 %v11896_v1, %v4845_v55 }
 0x6d6   :  { %8120 = vtanh.f32 %v4851_v15 }
 0x6d7   :  { %8122 = vtanh.f32 %v4846_v21 }
 0x6e0   :  { %v8121_v54 = vpop.eup %8120  ;;  %v4869_v9 = vpop.permute.xlu1 %4868 }
 0x6e1   :  { %v8123_v16 = vpop.eup %8122  ;;  %5005 = vrot.lane.b32.xlu1 %v8121_v54, %s8214_s5  ;;  %v4867_v19 = vpop.permute.xlu0 %4866  ;;  %v4877_v4 = vsel %vm3851_vm8, %v8121_v54, %v4869_v9 }
 0x6e2   :  { %v4876_v47 = vsel %vm3851_vm8, %v8123_v16, %v4867_v19  ;;  %5003 = vrot.lane.b32.xlu0 %v8123_v16, %s8214_s5 }
 0x6e3   :  { %7491 = vmatprep.mubr.msk.f32.mxu1 %vm4239_vm9, %v4876_v47  ;;  %v5239_v47 = vld [vmem:[#allocation2 + $0x4] ss:$8 sm:$0xf0] }
 0x6e4   :  { %7492 = vmatmul.mubr.msk.f32.gmra.mrb[54].mxu1 %vm4239_vm9, %v4877_v4  ;;  %v5243_v4 = vld [vmem:[#allocation2 + $0x44] ss:$8 sm:$0xf0]  ;;  %v5240_v34 = vor.u32 %v5239_v47, %v5238_v40  ;;  %v5496_v47 = vld [vmem:[#allocation2 + $0x5] ss:$8 sm:$0xf] }
 0x71b   :  { %v5002_v23 = vpop.permute.xlu1 %5001 }
 0x71c   :  { %v5000_v5 = vpop.permute.xlu0 %4999  ;;  %v5012_v45 = vsel %vm3851_vm8, %v4986_v50, %v5002_v23  ;;  %v5244_v23 = vor.u32 %v5243_v4, %v5242_v0  ;;  %v5500_v4 = vld [vmem:[#allocation2 + $0x45] ss:$8 sm:$0xf] }
 0x71d   :  { %v5011_v3 = vsel %vm3851_vm8, %v4982_v20, %v5000_v5 }
 0x71e   :  { %7510 = vmatprep.mubr.msk.f32.mxu1 %vm4239_vm9, %v5011_v3  ;;  %v5247_v3 = vld [vmem:[#allocation2 + $0x84] ss:$8 sm:$0xf0] }
 0x71f   :  { %7511 = vmatmul.mubr.msk.f32.vlgmr.msra.gmra.mrb[56].mxu1 %vm4239_vm9, %v5012_v45  ;;  %v5251_v45 = vld [vmem:[#allocation2 + $0xc4] ss:$8 sm:$0xf0]  ;;  %v5248_v58 = vor.u32 %v5247_v3, %v5246_v8  ;;  %v5504_v3 = vld [vmem:[#allocation2 + $0x85] ss:$8 sm:$0xf] }
 0x720   :  { %7897 = vmatpush3.bf16.msra.mxu1 %v11781_v27 }
 0x721   :  { %7899 = vmatprep.subr.bf16.mxu1 %v11787_v24 }
 0x724   :  { %7901 = vmatpush3.bf16.msra.mxu1 %v11787_v24 }
 0x725   :  { %7903 = vmatprep.subr.bf16.mxu1 %v11881_v14 }
 0x728   :  { %7905 = vmatpush3.bf16.msra.mxu1 %v11881_v14 }
 0x729   :  { %7907 = vmatprep.subr.bf16.mxu1 %v11886_v32 }
 0x72c   :  { %7909 = vmatpush3.bf16.msra.mxu1 %v11886_v32 }
 0x72d   :  { %7927 = vmatprep.subr.bf16.mxu1 %v11781_v27 }
 0x753   :  { %v5006_v56 = vpop.permute.xlu1 %5005 }
 0x754   :  { %v5004_v6 = vpop.permute.xlu0 %5003  ;;  %v5014_v13 = vsel %vm3851_vm8, %v4994_v57, %v5006_v56  ;;  %v5252_v56 = vor.u32 %v5251_v45, %v5250_v7  ;;  %v5508_v45 = vld [vmem:[#allocation2 + $0xc5] ss:$8 sm:$0xf] }
 0x755   :  { %v5013_v26 = vsel %vm3851_vm8, %v4990_v37, %v5004_v6 }
 0x756   :  { %7513 = vmatprep.mubr.msk.f32.mxu1 %vm4239_vm9, %v5013_v26 }
 0x757   :  { %7514 = vmatmul.mubr.msk.f32.gmra.mrb[58].mxu1 %vm4239_vm9, %v5014_v13 }
 0x77f   :  { %v7490_v31 = vpop.f32.mrb[52].mxu1 }
 0x780   :  { %v4962_v35 = vadd.f32 %v7490_v31, %v11941_v12  ;;  %v4956_v28 = vpop.f32.mrb[53].mxu1 }
 0x781   :  { %v4957_v11 = vadd.f32 %v11941_v12, %v4956_v28 }
 0x782   :  { %8124 = vtanh.f32 %v4962_v35 }
 0x783   :  { %8126 = vtanh.f32 %v4957_v11 }
 0x78c   :  { %v8125_v49 = vpop.eup %8124 }
 0x78d   :  { %v8127_v63 = vpop.eup %8126  ;;  %5122 = vrot.lane.b32.xlu1 %v8125_v49, %s8214_s5 }
 0x78e   :  { %5120 = vrot.lane.b32.xlu0 %v8127_v63, %s8214_s5 }
 0x7b7   :  { %v7493_v62 = vpop.f32.mrb[54].mxu1 }
 0x7b8   :  { %v4972_v30 = vadd.f32 %v7493_v62, %v11941_v12  ;;  %v4966_v41 = vpop.f32.mrb[55].mxu1 }
 0x7b9   :  { %v4967_v39 = vadd.f32 %v11941_v12, %v4966_v41 }
 0x7ba   :  { %8128 = vtanh.f32 %v4972_v30 }
 0x7bb   :  { %8130 = vtanh.f32 %v4967_v39 }
 0x7c4   :  { %v8129_v25 = vpop.eup %8128 }
 0x7c5   :  { %v8131_v60 = vpop.eup %8130  ;;  %5126 = vrot.lane.b32.xlu1 %v8129_v25, %s8214_s5 }
 0x7c6   :  { %5124 = vrot.lane.b32.xlu0 %v8131_v60, %s8214_s5 }
 0x7f2   :  { %v7512_v18 = vpop.f32.mrb[56].mxu1 }
 0x7f3   :  { %v5099_v17 = vadd.f32 %v7512_v18, %v11896_v1  ;;  %v5093_v29 = vpop.f32.mrb[57].mxu1 }
 0x7f4   :  { %v5094_v42 = vadd.f32 %v11896_v1, %v5093_v29 }
 0x7f5   :  { %8132 = vtanh.f32 %v5099_v17 }
 0x7f6   :  { %8134 = vtanh.f32 %v5094_v42 }
 0x7ff   :  { %v8133_v36 = vpop.eup %8132  ;;  %v5123_v59 = vpop.permute.xlu1 %5122 }
 0x800   :  { %v8135_v53 = vpop.eup %8134  ;;  %5259 = vrot.lane.b32.xlu1 %v8133_v36, %s8214_s5  ;;  %v5121_v52 = vpop.permute.xlu0 %5120  ;;  %v5133_v51 = vsel %vm3851_vm8, %v8133_v36, %v5123_v59 }
 0x801   :  { %v5132_v43 = vsel %vm3851_vm8, %v8135_v53, %v5121_v52  ;;  %5257 = vrot.lane.b32.xlu0 %v8135_v53, %s8214_s5 }
 0x802   :  { %7532 = vmatprep.mubr.msk.f32.mxu1 %vm4239_vm9, %v5132_v43 }
 0x803   :  { %7533 = vmatmul.mubr.msk.f32.vlgmr.msra.gmra.mrb[60].mxu1 %vm4239_vm9, %v5133_v51 }
 0x804   :  { %7929 = vmatpush3.bf16.msra.mxu1 %v11781_v27 }
 0x805   :  { %7931 = vmatprep.subr.bf16.mxu1 %v11787_v24 }
 0x808   :  { %7933 = vmatpush3.bf16.msra.mxu1 %v11787_v24 }
 0x809   :  { %7935 = vmatprep.subr.bf16.mxu1 %v11881_v14 }
 0x80c   :  { %7937 = vmatpush3.bf16.msra.mxu1 %v11881_v14 }
 0x80d   :  { %7939 = vmatprep.subr.bf16.mxu1 %v11886_v32 }
 0x810   :  { %7941 = vmatpush3.bf16.msra.mxu1 %v11886_v32 }
 0x811   :  { %7959 = vmatprep.subr.bf16.mxu1 %v11781_v27 }
 0x82a   :  { %v7515_v48 = vpop.f32.mrb[58].mxu1 }
 0x82b   :  { %v5109_v46 = vadd.f32 %v7515_v48, %v11896_v1  ;;  %v5103_v10 = vpop.f32.mrb[59].mxu1 }
 0x82c   :  { %v5104_v15 = vadd.f32 %v11896_v1, %v5103_v10 }
 0x82d   :  { %8136 = vtanh.f32 %v5109_v46 }
 0x82e   :  { %8138 = vtanh.f32 %v5104_v15 }
 0x837   :  { %v8137_v55 = vpop.eup %8136  ;;  %v5127_v21 = vpop.permute.xlu1 %5126 }
 0x838   :  { %v8139_v54 = vpop.eup %8138  ;;  %5263 = vrot.lane.b32.xlu1 %v8137_v55, %s8214_s5  ;;  %v5125_v9 = vpop.permute.xlu0 %5124  ;;  %v5135_v19 = vsel %vm3851_vm8, %v8137_v55, %v5127_v21 }
 0x839   :  { %v5134_v16 = vsel %vm3851_vm8, %v8139_v54, %v5125_v9  ;;  %5261 = vrot.lane.b32.xlu0 %v8139_v54, %s8214_s5 }
 0x83a   :  { %7535 = vmatprep.mubr.msk.f32.mxu1 %vm4239_vm9, %v5134_v16  ;;  %v5497_v16 = vld [vmem:[#allocation2 + $0x5] ss:$8 sm:$0xf0] }
 0x83b   :  { %7536 = vmatmul.mubr.msk.f32.gmra.mrb[62].mxu1 %vm4239_vm9, %v5135_v19  ;;  %v5501_v19 = vld [vmem:[#allocation2 + $0x45] ss:$8 sm:$0xf0]  ;;  %v5498_v0 = vor.u32 %v5497_v16, %v5496_v47  ;;  %v5758_v16 = vld [vmem:[#allocation2 + $0x46] ss:$8 sm:$0xf] }
 0x872   :  { %v5260_v38 = vpop.permute.xlu1 %5259 }
 0x873   :  { %v5258_v20 = vpop.permute.xlu0 %5257  ;;  %v5270_v5 = vsel %vm3851_vm8, %v5244_v23, %v5260_v38  ;;  %v5502_v38 = vor.u32 %v5501_v19, %v5500_v4 }
 0x874   :  { %v5269_v50 = vsel %vm3851_vm8, %v5240_v34, %v5258_v20 }
 0x875   :  { %7554 = vmatprep.mubr.msk.f32.mxu0 %vm4239_vm9, %v5269_v50  ;;  %v5505_v50 = vld [vmem:[#allocation2 + $0x85] ss:$8 sm:$0xf0] }
 0x876   :  { %7555 = vmatmul.mubr.msk.f32.vlgmr.msra.gmra.mrb[96].mxu0 %vm4239_vm9, %v5270_v5  ;;  %v5509_v5 = vld [vmem:[#allocation2 + $0xc5] ss:$8 sm:$0xf0]  ;;  %v5506_v7 = vor.u32 %v5505_v50, %v5504_v3  ;;  %v5766_v50 = vld [vmem:[#allocation2 + $0xc6] ss:$8 sm:$0xf] }
 0x877   :  { %7945 = vmatpush3.bf16.msra.mxu0 %v11639_v22 }
 0x878   :  { %7947 = vmatprep.subr.bf16.mxu0 %v11644_v44 }
 0x87b   :  { %7949 = vmatpush3.bf16.msra.mxu0 %v11644_v44 }
 0x87c   :  { %7951 = vmatprep.subr.bf16.mxu0 %v11659_v33 }
 0x87f   :  { %7953 = vmatpush3.bf16.msra.mxu0 %v11659_v33 }
 0x880   :  { %7955 = vmatprep.subr.bf16.mxu0 %v11762_v2 }
 0x883   :  { %7957 = vmatpush3.bf16.msra.mxu0 %v11762_v2 }
 0x884   :  { %7975 = vmatprep.subr.bf16.mxu0 %v11639_v22 }
 0x8aa   :  { %v5264_v61 = vpop.permute.xlu1 %5263 }
 0x8ab   :  { %v5262_v37 = vpop.permute.xlu0 %5261  ;;  %v5272_v6 = vsel %vm3851_vm8, %v5252_v56, %v5264_v61  ;;  %v5510_v61 = vor.u32 %v5509_v5, %v5508_v45 }
 0x8ac   :  { %v5271_v57 = vsel %vm3851_vm8, %v5248_v58, %v5262_v37 }
 0x8ad   :  { %7557 = vmatprep.mubr.msk.f32.mxu0 %vm4239_vm9, %v5271_v57 }
 0x8ae   :  { %7558 = vmatmul.mubr.msk.f32.gmra.mrb[98].mxu0 %vm4239_vm9, %v5272_v6 }
 0x8d6   :  { %v7534_v26 = vpop.f32.mrb[60].mxu1 }
 0x8d7   :  { %v5220_v13 = vadd.f32 %v7534_v26, %v11941_v12  ;;  %v5214_v31 = vpop.f32.mrb[61].mxu1 }
 0x8d8   :  { %v5215_v35 = vadd.f32 %v11941_v12, %v5214_v31 }
 0x8d9   :  { %8140 = vtanh.f32 %v5220_v13 }
 0x8da   :  { %8142 = vtanh.f32 %v5215_v35 }
 0x8e3   :  { %v8141_v28 = vpop.eup %8140 }
 0x8e4   :  { %v8143_v11 = vpop.eup %8142  ;;  %5380 = vrot.lane.b32.xlu1 %v8141_v28, %s8214_s5 }
 0x8e5   :  { %5378 = vrot.lane.b32.xlu0 %v8143_v11, %s8214_s5 }
 0x90e   :  { %v7537_v49 = vpop.f32.mrb[62].mxu1 }
 0x90f   :  { %v5230_v63 = vadd.f32 %v7537_v49, %v11941_v12  ;;  %v5224_v62 = vpop.f32.mrb[63].mxu1 }
 0x910   :  { %v5225_v30 = vadd.f32 %v11941_v12, %v5224_v62 }
 0x911   :  { %8144 = vtanh.f32 %v5230_v63 }
 0x912   :  { %8146 = vtanh.f32 %v5225_v30 }
 0x91b   :  { %v8145_v41 = vpop.eup %8144 }
 0x91c   :  { %v8147_v39 = vpop.eup %8146  ;;  %5384 = vrot.lane.b32.xlu1 %v8145_v41, %s8214_s5 }
 0x91d   :  { %5382 = vrot.lane.b32.xlu0 %v8147_v39, %s8214_s5 }
 0x949   :  { %v7556_v25 = vpop.f32.mrb[96].mxu0 }
 0x94a   :  { %v5357_v60 = vadd.f32 %v7556_v25, %v11896_v1  ;;  %v5351_v18 = vpop.f32.mrb[97].mxu0 }
 0x94b   :  { %v5352_v17 = vadd.f32 %v11896_v1, %v5351_v18 }
 0x94c   :  { %8148 = vtanh.f32 %v5357_v60 }
 0x94d   :  { %8150 = vtanh.f32 %v5352_v17 }
 0x956   :  { %v8149_v29 = vpop.eup %8148  ;;  %v5381_v42 = vpop.permute.xlu1 %5380 }
 0x957   :  { %v8151_v36 = vpop.eup %8150  ;;  %5517 = vrot.lane.b32.xlu1 %v8149_v29, %s8214_s5  ;;  %v5379_v59 = vpop.permute.xlu0 %5378  ;;  %v5391_v52 = vsel %vm3851_vm8, %v8149_v29, %v5381_v42 }
 0x958   :  { %v5390_v53 = vsel %vm3851_vm8, %v8151_v36, %v5379_v59  ;;  %5515 = vrot.lane.b32.xlu0 %v8151_v36, %s8214_s5 }
 0x959   :  { %7576 = vmatprep.mubr.msk.f32.mxu1 %vm4239_vm9, %v5390_v53 }
 0x95a   :  { %7577 = vmatmul.mubr.msk.f32.vlgmr.msra.gmra.mrb[64].mxu1 %vm4239_vm9, %v5391_v52 }
 0x95b   :  { %7961 = vmatpush3.bf16.msra.mxu1 %v11781_v27 }
 0x95c   :  { %7963 = vmatprep.subr.bf16.mxu1 %v11787_v24 }
 0x95f   :  { %7965 = vmatpush3.bf16.msra.mxu1 %v11787_v24 }
 0x960   :  { %7967 = vmatprep.subr.bf16.mxu1 %v11881_v14 }
 0x963   :  { %7969 = vmatpush3.bf16.msra.mxu1 %v11881_v14 }
 0x964   :  { %7971 = vmatprep.subr.bf16.mxu1 %v11886_v32 }
 0x967   :  { %7973 = vmatpush3.bf16.msra.mxu1 %v11886_v32 }
 0x968   :  { %7991 = vmatprep.subr.bf16.mxu1 %v11781_v27 }
 0x981   :  { %v7559_v43 = vpop.f32.mrb[98].mxu0 }
 0x982   :  { %v5367_v51 = vadd.f32 %v7559_v43, %v11896_v1  ;;  %v5361_v48 = vpop.f32.mrb[99].mxu0 }
 0x983   :  { %v5362_v46 = vadd.f32 %v11896_v1, %v5361_v48 }
 0x984   :  { %8152 = vtanh.f32 %v5367_v51 }
 0x985   :  { %8154 = vtanh.f32 %v5362_v46 }
 0x98e   :  { %v8153_v10 = vpop.eup %8152  ;;  %v5385_v15 = vpop.permute.xlu1 %5384 }
 0x98f   :  { %v8155_v55 = vpop.eup %8154  ;;  %5521 = vrot.lane.b32.xlu1 %v8153_v10, %s8214_s5  ;;  %v5383_v21 = vpop.permute.xlu0 %5382  ;;  %v5393_v9 = vsel %vm3851_vm8, %v8153_v10, %v5385_v15 }
 0x990   :  { %v5392_v54 = vsel %vm3851_vm8, %v8155_v55, %v5383_v21  ;;  %5519 = vrot.lane.b32.xlu0 %v8155_v55, %s8214_s5 }
 0x991   :  { %7579 = vmatprep.mubr.msk.f32.mxu1 %vm4239_vm9, %v5392_v54  ;;  %v5755_v54 = vld [vmem:[#allocation2 + $0x6] ss:$8 sm:$0xf0] }
 0x992   :  { %7580 = vmatmul.mubr.msk.f32.gmra.mrb[66].mxu1 %vm4239_vm9, %v5393_v9  ;;  %v5754_v9 = vld [vmem:[#allocation2 + $0x6] ss:$8 sm:$0xf] }
 0x993   :  { %v5756_v47 = vor.u32 %v5755_v54, %v5754_v9  ;;  %v6025_v54 = vld [vmem:[#allocation2 + $0xc7] ss:$8 sm:$0xf0] }
 0x994   :  { %v6024_v9 = vld [vmem:[#allocation2 + $0xc7] ss:$8 sm:$0xf] }
 0x9c9   :  { %v5518_v40 = vpop.permute.xlu1 %5517 }
 0x9ca   :  { %v5516_v34 = vpop.permute.xlu0 %5515  ;;  %v5528_v20 = vsel %vm3851_vm8, %v5502_v38, %v5518_v40 }
 0x9cb   :  { %v5527_v23 = vsel %vm3851_vm8, %v5498_v0, %v5516_v34  ;;  %v5763_v34 = vld [vmem:[#allocation2 + $0x86] ss:$8 sm:$0xf0] }
 0x9cc   :  { %7598 = vmatprep.mubr.msk.f32.mxu0 %vm4239_vm9, %v5527_v23  ;;  %v5767_v23 = vld [vmem:[#allocation2 + $0xc6] ss:$8 sm:$0xf0] }
 0x9cd   :  { %7599 = vmatmul.mubr.msk.f32.vlgmr.msra.gmra.mrb[100].mxu0 %vm4239_vm9, %v5528_v20  ;;  %v5762_v20 = vld [vmem:[#allocation2 + $0x86] ss:$8 sm:$0xf]  ;;  %v5768_v45 = vor.u32 %v5767_v23, %v5766_v50 }
 0x9ce   :  { %7977 = vmatpush3.bf16.msra.mxu0 %v11639_v22  ;;  %v5764_v3 = vor.u32 %v5763_v34, %v5762_v20  ;;  %v12229_v34 = vld [vmem:[%s12367_s6 + $0x1] ss:$0 sm:$0xff] }
 0x9cf   :  { %7979 = vmatprep.subr.bf16.mxu0 %v11644_v44 }
 0x9d2   :  { %7981 = vmatpush3.bf16.msra.mxu0 %v11644_v44 }
 0x9d3   :  { %7983 = vmatprep.subr.bf16.mxu0 %v11659_v33 }
 0x9d6   :  { %7985 = vmatpush3.bf16.msra.mxu0 %v11659_v33 }
 0x9d7   :  { %7987 = vmatprep.subr.bf16.mxu0 %v11762_v2 }
 0x9da   :  { %7989 = vmatpush3.bf16.msra.mxu0 %v11762_v2 }
 0x9db   :  { %8007 = vmatprep.subr.bf16.mxu0 %v11639_v22 }
 0xa01   :  { %v5522_v8 = vpop.permute.xlu1 %5521 }
 0xa02   :  { %v5520_v58 = vpop.permute.xlu0 %5519  ;;  %v5530_v37 = vsel %vm3851_vm8, %v5510_v61, %v5522_v8 }
 0xa03   :  { %v5529_v56 = vsel %vm3851_vm8, %v5506_v7, %v5520_v58 }
 0xa04   :  { %7601 = vmatprep.mubr.msk.f32.mxu0 %vm4239_vm9, %v5529_v56 }
 0xa05   :  { %7602 = vmatmul.mubr.msk.f32.gmra.mrb[102].mxu0 %vm4239_vm9, %v5530_v37 }
 0xa2d   :  { %v7578_v57 = vpop.f32.mrb[64].mxu1 }
 0xa2e   :  { %v5478_v6 = vadd.f32 %v7578_v57, %v11941_v12  ;;  %v5472_v26 = vpop.f32.mrb[65].mxu1 }
 0xa2f   :  { %v5473_v13 = vadd.f32 %v11941_v12, %v5472_v26 }
 0xa30   :  { %8156 = vtanh.f32 %v5478_v6 }
 0xa31   :  { %8158 = vtanh.f32 %v5473_v13 }
 0xa3a   :  { %v8157_v31 = vpop.eup %8156 }
 0xa3b   :  { %v8159_v35 = vpop.eup %8158  ;;  %5638 = vrot.lane.b32.xlu1 %v8157_v31, %s8214_s5 }
 0xa3c   :  { %5636 = vrot.lane.b32.xlu0 %v8159_v35, %s8214_s5 }
 0xa65   :  { %v7581_v28 = vpop.f32.mrb[66].mxu1 }
 0xa66   :  { %v5488_v11 = vadd.f32 %v7581_v28, %v11941_v12  ;;  %v5482_v49 = vpop.f32.mrb[67].mxu1  ;;  %v12193_v28 = vld [vmem:[%s12367_s6] ss:$0 sm:$0xff] }
 0xa67   :  { %v5483_v63 = vadd.f32 %v11941_v12, %v5482_v49 }
 0xa68   :  { %8160 = vtanh.f32 %v5488_v11 }
 0xa69   :  { %8162 = vtanh.f32 %v5483_v63 }
 0xa72   :  { %v8161_v62 = vpop.eup %8160 }
 0xa73   :  { %v8163_v30 = vpop.eup %8162  ;;  %5642 = vrot.lane.b32.xlu1 %v8161_v62, %s8214_s5 }
 0xa74   :  { %5640 = vrot.lane.b32.xlu0 %v8163_v30, %s8214_s5 }
 0xaa0   :  { %v7600_v41 = vpop.f32.mrb[100].mxu0 }
 0xaa1   :  { %v5615_v39 = vadd.f32 %v7600_v41, %v11896_v1  ;;  %v5609_v25 = vpop.f32.mrb[101].mxu0 }
 0xaa2   :  { %v5610_v60 = vadd.f32 %v11896_v1, %v5609_v25 }
 0xaa3   :  { %8164 = vtanh.f32 %v5615_v39 }
 0xaa4   :  { %8166 = vtanh.f32 %v5610_v60 }
 0xaad   :  { %v8165_v18 = vpop.eup %8164  ;;  %v5639_v17 = vpop.permute.xlu1 %5638 }
 0xaae   :  { %v8167_v29 = vpop.eup %8166  ;;  %5775 = vrot.lane.b32.xlu1 %v8165_v18, %s8214_s5  ;;  %v5637_v42 = vpop.permute.xlu0 %5636  ;;  %v5649_v59 = vsel %vm3851_vm8, %v8165_v18, %v5639_v17 }
 0xaaf   :  { %v5648_v36 = vsel %vm3851_vm8, %v8167_v29, %v5637_v42  ;;  %5773 = vrot.lane.b32.xlu0 %v8167_v29, %s8214_s5 }
 0xab0   :  { %7620 = vmatprep.mubr.msk.f32.mxu1 %vm4239_vm9, %v5648_v36 }
 0xab1   :  { %7621 = vmatmul.mubr.msk.f32.vlgmr.msra.gmra.mrb[68].mxu1 %vm4239_vm9, %v5649_v59  ;;  %v6013_v59 = vld [vmem:[#allocation2 + $0x7] ss:$8 sm:$0xf0] }
 0xab2   :  { %7993 = vmatpush3.bf16.msra.mxu1 %v11781_v27 }
 0xab3   :  { %7995 = vmatprep.subr.bf16.mxu1 %v11787_v24 }
 0xab6   :  { %7997 = vmatpush3.bf16.msra.mxu1 %v11787_v24 }
 0xab7   :  { %7999 = vmatprep.subr.bf16.mxu1 %v11881_v14 }
 0xaba   :  { %8001 = vmatpush3.bf16.msra.mxu1 %v11881_v14 }
 0xabb   :  { %8003 = vmatprep.subr.bf16.mxu1 %v11886_v32 }
 0xabe   :  { %8005 = vmatpush3.bf16.msra.mxu1 %v11886_v32 }
 0xabf   :  { %8023 = vmatprep.subr.bf16.mxu1 %v11781_v27 }
 0xad8   :  { %v7603_v53 = vpop.f32.mrb[102].mxu0 }
 0xad9   :  { %v5625_v52 = vadd.f32 %v7603_v53, %v11896_v1  ;;  %v5619_v43 = vpop.f32.mrb[103].mxu0  ;;  %v6017_v53 = vld [vmem:[#allocation2 + $0x47] ss:$8 sm:$0xf0] }
 0xada   :  { %v5620_v51 = vadd.f32 %v11896_v1, %v5619_v43  ;;  %v5759_v1 = vld [vmem:[#allocation2 + $0x46] ss:$8 sm:$0xf0]  ;;  %v6016_v43 = vld [vmem:[#allocation2 + $0x47] ss:$8 sm:$0xf] }
 0xadb   :  { %8168 = vtanh.f32 %v5625_v52  ;;  %v5760_v4 = vor.u32 %v5759_v1, %v5758_v16  ;;  %v6012_v52 = vld [vmem:[#allocation2 + $0x7] ss:$8 sm:$0xf] }
 0xadc   :  { %8170 = vtanh.f32 %v5620_v51  ;;  %v6020_v1 = vld [vmem:[#allocation2 + $0x87] ss:$8 sm:$0xf] }
 0xae5   :  { %v8169_v48 = vpop.eup %8168  ;;  %v5643_v46 = vpop.permute.xlu1 %5642 }
 0xae6   :  { %v8171_v10 = vpop.eup %8170  ;;  %5779 = vrot.lane.b32.xlu1 %v8169_v48, %s8214_s5  ;;  %v5641_v15 = vpop.permute.xlu0 %5640  ;;  %v5651_v21 = vsel %vm3851_vm8, %v8169_v48, %v5643_v46  ;;  %v6014_v48 = vor.u32 %v6013_v59, %v6012_v52  ;;  %v6018_v46 = vor.u32 %v6017_v53, %v6016_v43 }
 0xae7   :  { %v5650_v55 = vsel %vm3851_vm8, %v8171_v10, %v5641_v15  ;;  %5777 = vrot.lane.b32.xlu0 %v8171_v10, %s8214_s5 }
 0xae8   :  { %7623 = vmatprep.mubr.msk.f32.mxu1 %vm4239_vm9, %v5650_v55 }
 0xae9   :  { %7624 = vmatmul.mubr.msk.f32.gmra.mrb[70].mxu1 %vm4239_vm9, %v5651_v21  ;;  %v6021_v21 = vld [vmem:[#allocation2 + $0x87] ss:$8 sm:$0xf0] }
 0xb20   :  { %v5776_v19 = vpop.permute.xlu1 %5775 }
 0xb21   :  { %v5774_v40 = vpop.permute.xlu0 %5773  ;;  %v5786_v38 = vsel %vm3851_vm8, %v5760_v4, %v5776_v19  ;;  %v6022_v19 = vor.u32 %v6021_v21, %v6020_v1  ;;  %v6411_v21 = vld [vmem:[%s12369_s9 + $0x10] sm:$0xff]  ;;  %v6412_v1 = vld [vmem:[%s12369_s9 + $0x18] sm:$0xff] }
 0xb22   :  { %v5785_v0 = vsel %vm3851_vm8, %v5756_v47, %v5774_v40  ;;  %v6026_v47 = vor.u32 %v6025_v54, %v6024_v9  ;;  %v8050_v9 = vpack.c.bf16 %v6412_v1, %v6411_v21 }
 0xb23   :  { %7642 = vmatprep.mubr.msk.f32.mxu0 %vm4239_vm9, %v5785_v0 }
 0xb24   :  { %7643 = vmatmul.mubr.msk.f32.vlgmr.msra.gmra.mrb[104].mxu0 %vm4239_vm9, %v5786_v38 }
 0xb25   :  { %8009 = vmatpush3.bf16.msra.mxu0 %v11639_v22 }
 0xb26   :  { %8011 = vmatprep.subr.bf16.mxu0 %v11644_v44 }
 0xb29   :  { %8013 = vmatpush3.bf16.msra.mxu0 %v11644_v44 }
 0xb2a   :  { %8015 = vmatprep.subr.bf16.mxu0 %v11659_v33 }
 0xb2d   :  { %8017 = vmatpush3.bf16.msra.mxu0 %v11659_v33 }
 0xb2e   :  { %8019 = vmatprep.subr.bf16.mxu0 %v11762_v2 }
 0xb31   :  { %8021 = vmatpush3.bf16.msra.mxu0 %v11762_v2 }
 0xb58   :  { %v5780_v5 = vpop.permute.xlu1 %5779 }
 0xb59   :  { %v5778_v22 = vpop.permute.xlu0 %5777  ;;  %v5788_v44 = vsel %vm3851_vm8, %v5768_v45, %v5780_v5 }
 0xb5a   :  { %v5787_v8 = vsel %vm3851_vm8, %v5764_v3, %v5778_v22 }
 0xb5b   :  { %7645 = vmatprep.mubr.msk.f32.mxu0 %vm4239_vm9, %v5787_v8 }
 0xb5c   :  { %7646 = vmatmul.mubr.msk.f32.gmra.mrb[106].mxu0 %vm4239_vm9, %v5788_v44 }
 0xb84   :  { %v7622_v33 = vpop.f32.mrb[68].mxu1 }
 0xb85   :  { %v5736_v7 = vadd.f32 %v7622_v33, %v11941_v12  ;;  %v5730_v2 = vpop.f32.mrb[69].mxu1 }
 0xb86   :  { %v5731_v61 = vadd.f32 %v11941_v12, %v5730_v2 }
 0xb87   :  { %8172 = vtanh.f32 %v5736_v7 }
 0xb88   :  { %8174 = vtanh.f32 %v5731_v61 }
 0xb91   :  { %v8173_v58 = vpop.eup %8172 }
 0xb92   :  { %v8175_v56 = vpop.eup %8174  ;;  %5896 = vrot.lane.b32.xlu1 %v8173_v58, %s8214_s5 }
 0xb93   :  { %5894 = vrot.lane.b32.xlu0 %v8175_v56, %s8214_s5 }
 0xbbc   :  { %v7625_v37 = vpop.f32.mrb[70].mxu1 }
 0xbbd   :  { %v5746_v57 = vadd.f32 %v7625_v37, %v11941_v12  ;;  %v5740_v6 = vpop.f32.mrb[71].mxu1 }
 0xbbe   :  { %v5741_v26 = vadd.f32 %v11941_v12, %v5740_v6 }
 0xbbf   :  { %8176 = vtanh.f32 %v5746_v57 }
 0xbc0   :  { %8178 = vtanh.f32 %v5741_v26 }
 0xbc9   :  { %v8177_v13 = vpop.eup %8176 }
 0xbca   :  { %v8179_v31 = vpop.eup %8178  ;;  %5900 = vrot.lane.b32.xlu1 %v8177_v13, %s8214_s5 }
 0xbcb   :  { %5898 = vrot.lane.b32.xlu0 %v8179_v31, %s8214_s5 }
 0xbf7   :  { %v7644_v35 = vpop.f32.mrb[104].mxu0 }
 0xbf8   :  { %v5873_v11 = vadd.f32 %v12193_v28, %v7644_v35  ;;  %v5867_v49 = vpop.f32.mrb[105].mxu0 }
 0xbf9   :  { %v5868_v63 = vadd.f32 %v12193_v28, %v5867_v49 }
 0xbfa   :  { %8180 = vtanh.f32 %v5873_v11 }
 0xbfb   :  { %8182 = vtanh.f32 %v5868_v63 }
 0xc04   :  { %v8181_v12 = vpop.eup %8180  ;;  %v5897_v62 = vpop.permute.xlu1 %5896 }
 0xc05   :  { %v8183_v30 = vpop.eup %8182  ;;  %6033 = vrot.lane.b32.xlu1 %v8181_v12, %s8214_s5  ;;  %v5895_v41 = vpop.permute.xlu0 %5894  ;;  %v5907_v25 = vsel %vm3851_vm8, %v8181_v12, %v5897_v62 }
 0xc06   :  { %v5906_v39 = vsel %vm3851_vm8, %v8183_v30, %v5895_v41  ;;  %6031 = vrot.lane.b32.xlu0 %v8183_v30, %s8214_s5 }
 0xc07   :  { %7664 = vmatprep.mubr.msk.f32.mxu1 %vm4239_vm9, %v5906_v39 }
 0xc08   :  { %7665 = vmatmul.mubr.msk.f32.vlgmr.msra.gmra.mrb[72].mxu1 %vm4239_vm9, %v5907_v25 }
 0xc09   :  { %8025 = vmatpush3.bf16.msra.mxu1 %v11781_v27 }
 0xc0a   :  { %8027 = vmatprep.subr.bf16.mxu1 %v11787_v24 }
 0xc0d   :  { %8029 = vmatpush3.bf16.msra.mxu1 %v11787_v24 }
 0xc0e   :  { %8031 = vmatprep.subr.bf16.mxu1 %v11881_v14 }
 0xc11   :  { %8033 = vmatpush3.bf16.msra.mxu1 %v11881_v14 }
 0xc12   :  { %8035 = vmatprep.subr.bf16.mxu1 %v11886_v32 }
 0xc15   :  { %8037 = vmatpush3.bf16.msra.mxu1 %v11886_v32 }
 0xc2f   :  { %v7647_v60 = vpop.f32.mrb[106].mxu0 }
 0xc30   :  { %v5883_v18 = vadd.f32 %v12193_v28, %v7647_v60  ;;  %v5877_v17 = vpop.f32.mrb[107].mxu0  ;;  %v6269_v60 = vld [vmem:[%s12368_s7] sm:$0xff] }
 0xc31   :  { %v5878_v29 = vadd.f32 %v12193_v28, %v5877_v17 }
 0xc32   :  { %8184 = vtanh.f32 %v5883_v18  ;;  %v6271_v18 = vld [vmem:[%s12368_s7 + $0x10] sm:$0xff] }
 0xc33   :  { %8186 = vtanh.f32 %v5878_v29  ;;  %v6272_v29 = vld [vmem:[%s12368_s7 + $0x18] sm:$0xff] }
 0xc3c   :  { %v8185_v27 = vpop.eup %8184  ;;  %v5901_v42 = vpop.permute.xlu1 %5900 }
 0xc3d   :  { %v8187_v36 = vpop.eup %8186  ;;  %6037 = vrot.lane.b32.xlu1 %v8185_v27, %s8214_s5  ;;  %v5899_v24 = vpop.permute.xlu0 %5898  ;;  %v5909_v32 = vsel %vm3851_vm8, %v8185_v27, %v5901_v42  ;;  %v8042_v27 = vpack.c.bf16 %v6272_v29, %v6271_v18 }
 0xc3e   :  { %v5908_v14 = vsel %vm3851_vm8, %v8187_v36, %v5899_v24  ;;  %6035 = vrot.lane.b32.xlu0 %v8187_v36, %s8214_s5 }
 0xc3f   :  { %7667 = vmatprep.mubr.msk.f32.mxu1 %vm4239_vm9, %v5908_v14 }
 0xc40   :  { %7668 = vmatmul.mubr.msk.f32.gmra.mrb[74].mxu1 %vm4239_vm9, %v5909_v32 }
 0xc77   :  { %v6034_v51 = vpop.permute.xlu1 %6033 }
 0xc78   :  { %v6032_v10 = vpop.permute.xlu0 %6031  ;;  %v6044_v55 = vsel %vm3851_vm8, %v6018_v46, %v6034_v51 }
 0xc79   :  { %v6043_v15 = vsel %vm3851_vm8, %v6014_v48, %v6032_v10  ;;  %v8215_v10 = vmov 0.0|0.0  }
 0xc7a   :  { %7686 = vmatprep.mubr.msk.f32.mxu0 %vm4239_vm9, %v6043_v15  ;;  %8046 = vmatprep.subr.bf16.mxu1 %v8215_v10  ;;  %v6409_v15 = vld [vmem:[%s12369_s9] sm:$0xff] }
 0xc7b   :  { %7687 = vmatmul.mubr.msk.f32.vlgmr.msra.gmra.mrb[108].mxu0 %vm4239_vm9, %v6044_v55  ;;  %v6410_v55 = vld [vmem:[%s12369_s9 + $0x8] sm:$0xff] }
 0xc7c   :  { %v8047_v54 = vpack.c.bf16 %v6410_v55, %v6409_v15 }
 0xcaf   :  { %v6038_v16 = vpop.permute.xlu1 %6037 }
 0xcb0   :  { %v6036_v4 = vpop.permute.xlu0 %6035  ;;  %v6046_v0 = vsel %vm3851_vm8, %v6026_v47, %v6038_v16  ;;  %v6413_v16 = vld [vmem:[%s12369_s9 + $0x20] sm:$0xff] }
 0xcb1   :  { %v6045_v40 = vsel %vm3851_vm8, %v6022_v19, %v6036_v4  ;;  %v6414_v19 = vld [vmem:[%s12369_s9 + $0x28] sm:$0xff]  ;;  %v6415_v4 = vld [vmem:[%s12369_s9 + $0x30] sm:$0xff] }
 0xcb2   :  { %7689 = vmatprep.mubr.msk.f32.mxu0 %vm4239_vm9, %v6045_v40  ;;  %v8053_v47 = vpack.c.bf16 %v6414_v19, %v6413_v16  ;;  %v6416_v40 = vld [vmem:[%s12369_s9 + $0x38] sm:$0xff] }
 0xcb3   :  { %7690 = vmatmul.mubr.msk.f32.gmra.mrb[110].mxu0 %vm4239_vm9, %v6046_v0  ;;  %v8056_v0 = vpack.c.bf16 %v6416_v40, %v6415_v4 }
 0xcdb   :  { %v7666_v38 = vpop.f32.mrb[72].mxu1 }
 0xcdc   :  { %v5994_v23 = vadd.f32 %v12229_v34, %v7666_v38  ;;  %v5988_v20 = vpop.f32.mrb[73].mxu1  ;;  %v6417_v38 = vld [vmem:[%s12369_s9 + $0x40] sm:$0xff] }
 0xcdd   :  { %v5989_v50 = vadd.f32 %v12229_v34, %v5988_v20  ;;  %v6419_v20 = vld [vmem:[%s12369_s9 + $0x50] sm:$0xff] }
 0xcde   :  { %8188 = vtanh.f32 %v5994_v23 }
 0xcdf   :  { %8190 = vtanh.f32 %v5989_v50  ;;  %v6420_v50 = vld [vmem:[%s12369_s9 + $0x58] sm:$0xff] }
 0xce8   :  { %v8189_v5 = vpop.eup %8188 }
 0xce9   :  { %v8191_v3 = vpop.eup %8190  ;;  %6154 = vrot.lane.b32.xlu1 %v8189_v5, %s8214_s5  ;;  %v8062_v5 = vpack.c.bf16 %v6420_v50, %v6419_v20 }
 0xcea   :  { %6152 = vrot.lane.b32.xlu0 %v8191_v3, %s8214_s5  ;;  %v6421_v3 = vld [vmem:[%s12369_s9 + $0x60] sm:$0xff] }
 0xd13   :  { %v7669_v45 = vpop.f32.mrb[74].mxu1 }
 0xd14   :  { %v6004_v22 = vadd.f32 %v12229_v34, %v7669_v45  ;;  %v5998_v8 = vpop.f32.mrb[75].mxu1  ;;  %v6422_v45 = vld [vmem:[%s12369_s9 + $0x68] sm:$0xff] }
 0xd15   :  { %v5999_v44 = vadd.f32 %v12229_v34, %v5998_v8  ;;  %v6797_v8 = vld [vmem:[%s12370_s8] ss:$0 sm:$0xff] }
 0xd16   :  { %8192 = vtanh.f32 %v6004_v22  ;;  %v8065_v22 = vpack.c.bf16 %v6422_v45, %v6421_v3 }
 0xd17   :  { %8194 = vtanh.f32 %v5999_v44 }
 0xd20   :  { %v8193_v33 = vpop.eup %8192 }
 0xd21   :  { %v8195_v7 = vpop.eup %8194  ;;  %6158 = vrot.lane.b32.xlu1 %v8193_v33, %s8214_s5 }
 0xd22   :  { %6156 = vrot.lane.b32.xlu0 %v8195_v7, %s8214_s5 }
 0xd4e   :  { %v7688_v2 = vpop.f32.mrb[108].mxu0 }
 0xd4f   :  { %v6131_v61 = vadd.f32 %v12193_v28, %v7688_v2  ;;  %v6125_v58 = vpop.f32.mrb[109].mxu0 }
 0xd50   :  { %v6126_v56 = vadd.f32 %v12193_v28, %v6125_v58 }
 0xd51   :  { %8196 = vtanh.f32 %v6131_v61 }
 0xd52   :  { %8198 = vtanh.f32 %v6126_v56 }
 0xd5b   :  { %v8197_v37 = vpop.eup %8196  ;;  %v6155_v57 = vpop.permute.xlu1 %6154 }
 0xd5c   :  { %v8199_v6 = vpop.eup %8198  ;;  %v6153_v26 = vpop.permute.xlu0 %6152  ;;  %v6165_v31 = vsel %vm3851_vm8, %v8197_v37, %v6155_v57  ;;  %v6423_v57 = vld [vmem:[%s12369_s9 + $0x70] sm:$0xff] }
 0xd5d   :  { %v6164_v13 = vsel %vm3851_vm8, %v8199_v6, %v6153_v26  ;;  %v6424_v6 = vld [vmem:[%s12369_s9 + $0x78] sm:$0xff] }
 0xd5e   :  { %7708 = vmatprep.mubr.msk.f32.mxu1 %vm4239_vm9, %v6164_v13  ;;  %v8068_v26 = vpack.c.bf16 %v6424_v6, %v6423_v57 }
 0xd5f   :  { %7709 = vmatmul.mubr.msk.f32.vlgmr.msra.gmra.mrb[76].mxu1 %vm4239_vm9, %v6165_v31 }
 0xd60   :  { %8048 = vmatpush3.bf16.msra.mxu1 %v8047_v54 }
 0xd61   :  { %8049 = vmatprep.subr.bf16.mxu1 %v8215_v10 }
 0xd64   :  { %8051 = vmatpush3.bf16.msra.mxu1 %v8050_v9 }
 0xd65   :  { %8052 = vmatprep.subr.bf16.mxu1 %v8215_v10 }
 0xd68   :  { %8054 = vmatpush3.bf16.msra.mxu1 %v8053_v47 }
 0xd69   :  { %8055 = vmatprep.subr.bf16.mxu1 %v8215_v10 }
 0xd6c   :  { %8057 = vmatpush3.bf16.msra.mxu1 %v8056_v0 }
 0xd6d   :  { %8058 = vmatprep.subr.bf16.mxu1 %v8215_v10 }
 0xd86   :  { %v7691_v35 = vpop.f32.mrb[110].mxu0 }
 0xd87   :  { %v6141_v11 = vadd.f32 %v12193_v28, %v7691_v35  ;;  %v6135_v49 = vpop.f32.mrb[111].mxu0 }
 0xd88   :  { %v6136_v63 = vadd.f32 %v12193_v28, %v6135_v49  ;;  %v6270_v28 = vld [vmem:[%s12368_s7 + $0x8] sm:$0xff] }
 0xd89   :  { %8200 = vtanh.f32 %v6141_v11  ;;  %v8038_v17 = vpack.c.bf16 %v6270_v28, %v6269_v60 }
 0xd8a   :  { %8202 = vtanh.f32 %v6136_v63  ;;  %v8217_v63 = vmov 0.0  }
 0xd8b   :  { %8039 = vmatprep.subr.bf16.mxu0 %v8038_v17 }
 0xd8c   :  { %8041 = vmatpush3.bf16.msra.mxu0 %v8038_v17 }
 0xd8d   :  { %8043 = vmatprep.subr.bf16.mxu0 %v8042_v27 }
 0xd90   :  { %8045 = vmatpush3.bf16.msra.mxu0 %v8042_v27 }
 0xd91   :  { %8070 = vmatprep.subr.bf16.mxu0 %v8215_v10 }
 0xd93   :  { %v8201_v12 = vpop.eup %8200  ;;  %v6159_v62 = vpop.permute.xlu1 %6158 }
 0xd94   :  { %v8203_v30 = vpop.eup %8202  ;;  %v6157_v41 = vpop.permute.xlu0 %6156  ;;  %v6167_v25 = vsel %vm3851_vm8, %v8201_v12, %v6159_v62  ;;  %v6503_v62 = vld [vmem:[%s12371_s11] sm:$0xff] }
 0xd95   :  { %v6166_v39 = vsel %vm3851_vm8, %v8203_v30, %v6157_v41  ;;  %v6504_v30 = vld [vmem:[%s12371_s11 + $0x8] sm:$0xff] }
 0xd96   :  { %7711 = vmatprep.mubr.msk.f32.mxu1 %vm4239_vm9, %v6166_v39  ;;  %v8071_v39 = vpack.c.bf16 %v6504_v30, %v6503_v62 }
 0xd97   :  { %7712 = vmatmul.mubr.msk.f32.gmra.mrb[78].mxu1 %vm4239_vm9, %v6167_v25 }
 0xd98   :  { %7760 = vmatprep.mubr.msk.f32.mxu1 %vm8216_vm10, %v8217_v63 }
 0xe32   :  { %v7710_v42 = vpop.f32.mrb[76].mxu1 }
 0xe33   :  { %v6252_v36 = vadd.f32 %v12229_v34, %v7710_v42  ;;  %v6246_v24 = vpop.f32.mrb[77].mxu1 }
 0xe34   :  { %v6247_v14 = vadd.f32 %v12229_v34, %v6246_v24 }
 0xe36   :  { %8204 = vtanh.f32 %v6247_v14  ;;  %v6505_v14 = vld [vmem:[%s12371_s11 + $0x10] sm:$0xff] }
 0xe37   :  { %8206 = vtanh.f32 %v6252_v36 }
 0xe40   :  { %v8205_v32 = vpop.eup %8204 }
 0xe41   :  { %v8207_v59 = vpop.eup %8206  ;;  %7722 = vmatprep.mubr.msk.f32.mxu0 %vm3851_vm8, %v8205_v32  ;;  %v6506_v32 = vld [vmem:[%s12371_s11 + $0x18] sm:$0xff] }
 0xe42   :  { %7723 = vmatmul.mubr.msk.f32.vlgmr.msra.gmra.mrb[112].mxu0 %vm3851_vm8, %v8207_v59  ;;  %v8074_v59 = vpack.c.bf16 %v6506_v32, %v6505_v14 }
 0xe43   :  { %8072 = vmatpush3.bf16.msra.mxu0 %v8071_v39 }
 0xe44   :  { %8073 = vmatprep.subr.bf16.mxu0 %v8215_v10 }
 0xe47   :  { %8075 = vmatpush3.bf16.msra.mxu0 %v8074_v59 }
 0xe6a   :  { %v7713_v53 = vpop.f32.mrb[78].mxu1 }
 0xe6b   :  { %v6262_v52 = vadd.f32 %v12229_v34, %v7713_v53  ;;  %v6256_v43 = vpop.f32.mrb[79].mxu1  ;;  %v18_v53 = vstv %s12372_s12 }
 0xe6c   :  { %v6257_v51 = vadd.f32 %v12229_v34, %v6256_v43  ;;  %v6418_v34 = vld [vmem:[%s12369_s9 + $0x48] sm:$0xff]  ;;  %s8218_s9 = smov 64   ;;  %19 = vst [vmem:[#allocation4] sm:$0x1] %v18_v53 }
 0xe6d   :  { %v8059_v23 = vpack.c.bf16 %v6418_v34, %v6417_v38 }
 0xe6e   :  { %8208 = vtanh.f32 %v6257_v51 }
 0xe6f   :  { %8210 = vtanh.f32 %v6262_v52  ;;  %8060 = vmatpush3.bf16.msra.mxu1 %v8059_v23  ;;  %v6802_v52 = vld [vmem:[%s12373_s10] ss:$0 sm:$0xff] }
 0xe70   :  { %8061 = vmatprep.subr.bf16.mxu1 %v8215_v10 }
 0xe73   :  { %8063 = vmatpush3.bf16.msra.mxu1 %v8062_v5 }
 0xe74   :  { %8064 = vmatprep.subr.bf16.mxu1 %v8215_v10 }
 0xe77   :  { %8066 = vmatpush3.bf16.msra.mxu1 %v8065_v22 }
 0xe78   :  { %v8209_v48 = vpop.eup %8208  ;;  %8067 = vmatprep.subr.bf16.mxu1 %v8215_v10  ;;  %v6803_v10 = vld [vmem:[#allocation4] ss:$0 sm:$0xff] }
 0xe79   :  { %v8211_v46 = vpop.eup %8210  ;;  %7725 = vmatprep.mubr.msk.f32.mxu0 %vm3851_vm8, %v8209_v48 }
 0xe7a   :  { %7726 = vmatmul.mubr.msk.f32.gmra.mrb[114].mxu0 %vm3851_vm8, %v8211_v46 }
 0xe7b   :  { %8069 = vmatpush3.bf16.msra.mxu1 %v8068_v26  ;;  %7771 = vmatprep.mubr.msk.f32.mxu0 %vm8216_vm10, %v8217_v63 }
 0xf15   :  { %v7724_v44 = vpop.f32.mrb[112].mxu0 }
 0xf16   :  { %v6364_v33 = vadd.f32 %v7724_v44, %v6797_v8  ;;  %v6358_v7 = vpop.f32.mrb[113].mxu0 }
 0xf17   :  { %v6359_v2 = vadd.f32 %v6797_v8, %v6358_v7 }
 0xf18   :  { %6378 = vst.msk [vmem:[#allocation3 + $0x8] sm:$0xff] %vm3851_vm8, %v6364_v33 }
 0xf19   :  { %6377 = vst.msk [vmem:[#allocation3] sm:$0xff] %vm3851_vm8, %v6359_v2 }
 0xf4d   :  { %v7727_v61 = vpop.f32.mrb[114].mxu0 }
 0xf4e   :  { %v6374_v58 = vadd.f32 %v7727_v61, %v6797_v8  ;;  %v6368_v56 = vpop.f32.mrb[115].mxu0 }
 0xf4f   :  { %v6369_v37 = vadd.f32 %v6797_v8, %v6368_v56 }
 0xf50   :  { %6380 = vst.msk [vmem:[#allocation3 + $0x18] sm:$0xff] %vm3851_vm8, %v6374_v58 }
 0xf51   :  { %6379 = vst.msk [vmem:[#allocation3 + $0x10] sm:$0xff] %vm3851_vm8, %v6369_v37 }
 0xf58   :  { %v6381_v13 = vld [vmem:[#allocation3] ss:$4 sm:$0xff]  ;;  %v6383_v31 = vld [vmem:[#allocation3 + $0x1] ss:$4 sm:$0xff]  ;;  %v6386_v11 = vld [vmem:[#allocation3 + $0x2] ss:$4 sm:$0xff] }
 0xf59   :  { %v6384_v35 = vadd.f32 %v6383_v31, %v6381_v13  ;;  %v6389_v12 = vld [vmem:[#allocation3 + $0x3] ss:$4 sm:$0xff] }
 0xf5b   :  { %v6387_v49 = vadd.f32 %v6386_v11, %v6384_v35 }
 0xf5d   :  { %v6390_v41 = vadd.f32 %v6389_v12, %v6387_v49 }
 0xf5f   :  { %v6391_v25 = vmul.f32 0.25, %v6390_v41 }
 0xf61   :  { %v6397_v60 = vrot.slane %v6391_v25, 4  ;;  %v6393_v28 = vrot.slane %v6391_v25, 2  ;;  %v6401_v18 = vrot.slane %v6391_v25, 6 }
 0xf63   :  { %6398 = vrot.lane.b32.xlu1 %v6397_v60, %s8218_s9  ;;  %6394 = vrot.lane.b32.xlu0 %v6393_v28, %s8214_s5 }
 0xf67   :  { %6402 = vrot.lane.b32.xlu0 %v6401_v18, %s8219_s19 }
 0xfd5   :  { %v6395_v17 = vpop.permute.xlu0 %6394  ;;  %v6399_v29 = vpop.permute.xlu1 %6398 }
 0xfd6   :  { %v6405_v27 = vsel %vm3851_vm8, %v6391_v25, %v6395_v17 }
 0xfd7   :  { %v6406_v42 = vsel %vm4239_vm9, %v6405_v27, %v6399_v29 }
 0xfd9   :  { %v6403_v36 = vpop.permute.xlu0 %6402 }
 0xfda   :  { %v6408_v24 = vsel %vm6407_vm11, %v6406_v42, %v6403_v36 }
 0xfdb   :  { %7761 = vmatmul.mubr.f32.vlgmr.msra.gmra.mrb[80].mxu1 %v6408_v24 }
0x10ae   :  { %v6498_v43 = vpop.f32.mrb[80].mxu1 }
0x10af   :  { %v6499_v51 = vadd.f32 %v6802_v52, %v6498_v43  ;;  %v7762_v48 = vpop.f32.mrb[81].mxu1 }
0x10b1   :  { %v6502_v46 = vmax.f32 %v6499_v51, 0.0 }
0x10b3   :  { %7772 = vmatmul.mubr.msk.f32.vlgmr.msra.gmra.mrb[116].mxu0 %vm3851_vm8, %v6502_v46 }
0x1186   :  { %v6583_v15 = vpop.f32.mrb[116].mxu0 }
0x1187   :  { %v6584_v55 = vadd.f32 %v6803_v10, %v6583_v15  ;;  %v7773_v21 = vpop.f32.mrb[117].mxu0 }
0x1189   :  { %6588 = vst.msk [vmem:[%s12374_s13] sm:$0x3] %vm6587_vm12, %v6584_v55 }

</bundles_post_ra>
